<compile_context>
chip_gen: v5e
topology: v5e:2x2
jax: 0.10.0
libtpu: 0.0.40
codegen_flags: <defaults>
</compile_context>

<pallas_src>
import numpy as np
import jax
import jax.numpy as jnp
from jax import lax
from jax.experimental import pallas as pl
from jax.experimental.pallas import tpu as pltpu

N = 2      # batch
T = 160    # time samples (self.T)
E = 56     # electrodes (spatial width)


def _elu(v):
    return jnp.where(v > 0, v, jnp.exp(jnp.minimum(v, 0.0)) - 1.0)


# ----------------------------- host-side packing ------------------------------

def _bn_fold(bn):
    g, b, m, v = (np.asarray(t, np.float32) for t in bn)
    scale = g / np.sqrt(v)            # eps == 0  (BatchNorm2d(c, False))
    shift = b - m * scale
    return scale.reshape(1, -1), shift.reshape(1, -1)


def _group_tap_matrix(wsub1, tap):
    w = np.asarray(wsub1)             # (16, 2, 1, 8)
    m = np.zeros((16, 16), np.float32)
    for co in range(16):
        g = co // 2
        for l in range(2):
            m[2 * g + l, co] = w[co, l, 0, tap]
    return m


def _wd1_mix_matrix(wd1):
    # wd1 (56, 8): [k, c].  Mixing weight for the mod-8 tap grouping:
    #   mix[q*8 + c, r*8 + c] = wd1[8q + r, c]
    w = np.asarray(wd1)
    m = np.zeros((56, 64), np.float32)
    for q in range(7):
        for r in range(8):
            for c in range(8):
                m[q * 8 + c, r * 8 + c] = w[8 * q + r, c]
    return m


def _wd2_block_matrix(wd2):
    # wd2 (16, 8): [k, ch].  Block-diag im2col weight: blk[k*8 + ch, ch] = wd2[k, ch]
    w = np.asarray(wd2)
    m = np.zeros((128, 8), np.float32)
    for k in range(16):
        for c in range(8):
            m[k * 8 + c, c] = w[k, c]
    return m


def _border_const(w2, bn3b_vec):
    # Additive contribution of the 4+4 zero-padded border rows (whose
    # post-elu/bn3/pool value is the constant per-channel vector bn3b) to the
    # ConvLayer2 output, precomputed on the host.
    w = np.asarray(w2)[:, :, :, 0]                                   # (o=8, i=16, kh=8)
    tap = np.einsum('i,oik->ko', np.asarray(bn3b_vec, np.float32), w)  # (kh, o)
    cc = np.zeros((106, 8), np.float32)
    for h in range(106):
        for kh in range(8):
            hp = h + kh
            if hp < 4 or hp >= 109:
                cc[h] += tap[kh]
    return cc


def _pack_slab(named_mats, width, row_align):
    """Stack 2-D host matrices into one (rows, width) slab; each section starts
    on a row_align boundary (tile-aligned) and is left-justified in the lanes."""
    offs, blocks, row = {}, [], 0
    for name, m in named_mats:
        m = np.asarray(m, np.float32)
        r, c = m.shape
        assert c <= width, (name, m.shape)
        rpad = ((r + row_align - 1) // row_align) * row_align
        blk = np.zeros((rpad, width), np.float32)
        blk[:r, :c] = m
        offs[name] = (row, r, c)
        blocks.append(blk)
        row += rpad
    return np.concatenate(blocks, axis=0), offs


# --------------------------------- kernel -------------------------------------

def _make_kernel(nb, woff, coff):
    bf16 = jnp.bfloat16
    f32 = jnp.float32

    def kernel(x_ref, w_ref, c_ref, out_ref):
        def W(name):                  # bf16 matmul weight slice (MXU operand)
            o, r, c = woff[name]
            return w_ref[o:o + r, 0:c]

        def C(name):                  # f32 per-channel constant / FC weight slice
            o, r, c = coff[name]
            return c_ref[o:o + r, 0:c]

        # ---- ConvLayer1 (1,56) -> elu -> bn1, shared across the nb samples ---
        if nb > 1:
            xall = jnp.concatenate([x_ref[s] for s in range(nb)], axis=0)
        else:
            xall = x_ref[0]
        a0all = jnp.dot(xall.astype(bf16), W('w1'),
                        preferred_element_type=f32)                  # (nb*160, 8)
        a0all = _elu(a0all) * C('bn1s') + C('bn1b')

        for s in range(nb):           # static unroll (nb in {1, 2})
            a0 = a0all[s * T:(s + 1) * T, :]                         # (160, 8)

            # ---- depthwise conv1 (56,1), groups=8 -> elu -> bn2 --------------
            # Taps grouped by offset mod 8: 7 sublane-aligned slices of a0 are
            # lane-concatenated, one MXU matmul against the (56,64) mixing
            # weight, then a balanced tree of 8 shifted (105,8) block-adds.
            A = jnp.concatenate([a0[8 * q:8 * q + 112, :] for q in range(7)],
                                axis=1)                              # (112, 56)
            Y = jnp.dot(A.astype(bf16), W('wd1mix'),
                        preferred_element_type=f32)                  # (112, 64)
            terms = [Y[r:r + 105, r * 8:(r + 1) * 8] for r in range(8)]
            while len(terms) > 1:                                    # tree sum
                nxt = [terms[i] + terms[i + 1]
                       for i in range(0, len(terms) - 1, 2)]
                if len(terms) % 2:
                    nxt.append(terms[-1])
                terms = nxt
            a1 = _elu(terms[0]) * C('bn2s') + C('bn2b')              # (105, 8)
            # avgpool1 (1,1) == identity

            # ---- separable pointwise 1x1 conv 8->16 (+bias) ------------------
            a2 = (jnp.dot(a1.astype(bf16), W('wsub2'),
                          preferred_element_type=f32) + C('bsub2'))  # (105, 16)

            # ---- separable grouped conv (1,8), pad 4 -> elu -> bn3 -> pool ---
            # Only W taps kw=4 (out w=0) and kw=3 (out w=1) touch the data
            # column; both fused into one (16,32) weight.  AvgPool2d((1,2)) is
            # the mean of the two 16-lane halves.
            y = jnp.dot(a2.astype(bf16), W('m43'),
                        preferred_element_type=f32)                  # (105, 32)
            y = _elu(y) * C('bn3s32') + C('bn3b32')
            mid = 0.5 * (y[:, 0:16] + y[:, 16:32])                   # (105, 16)

            # ---- ConvLayer2 (8,1) 16->8 -> elu -> bn2 : im2col, K = 128 ------
            # 4+4 padded border rows handled by the host-precomputed additive
            # constant 'cconst'; the kernel only zero-pads mid.
            z4 = jnp.zeros((4, 16), f32)
            b0 = jnp.concatenate([z4, mid, z4], axis=0)              # (113, 16)
            Bc = jnp.concatenate([b0[k:k + 106, :] for k in range(8)],
                                 axis=1)                             # (106, 128)
            c = (jnp.dot(Bc.astype(bf16), W('w2f'),
                         preferred_element_type=f32) + C('cconst'))  # (106, 8)
            c = _elu(c) * C('bn2s') + C('bn2b')

            # ---- depthwise conv2 (16,1), groups=8 -> elu -> bn4 --------------
            Bd = jnp.concatenate([c[k:k + 91, :] for k in range(16)],
                                 axis=1)                             # (91, 128)
            d = jnp.dot(Bd.astype(bf16), W('wd2blk'),
                        preferred_element_type=f32)                  # (91, 8)
            d = _elu(d) * C('bn4s') + C('bn4b')

            # TODO(synk): training-mode F.dropout(0.25) not implemented (inference identity).
            # avgpool3 (1,1) == identity

            # ---- flatten (NCHW order folded into wf) + Linear(728,1) + sigmoid
            acc = jnp.sum(d * C('wf'), axis=0, keepdims=True)        # (1, 8)
            logit = jnp.sum(acc, axis=1, keepdims=True) + C('bf')    # (1, 1)
            out_ref[s] = 1.0 / (1.0 + jnp.exp(-logit))

    return kernel


# ----------------------------- glue / wrapper ---------------------------------

def _samples_per_step():
    # v7x has 2 TensorCores per chip: keep one sample per grid step so the
    # "parallel" grid axis shards across cores.  v5e/v6e are single-TC: fold
    # the whole batch into one grid step (no per-step grid/prologue overhead).
    try:
        kind = jax.devices()[0].device_kind.lower()
    except Exception:
        kind = ""
    if "v7" in kind or "7x" in kind:
        return 1
    return N


def net_final_forward(x, p):
    xk = x.reshape(N, T, E)

    # ---------------- host-side weight / constant preprocessing ---------------
    w1 = np.asarray(p['w1']).reshape(8, 56).T                 # (56, 8)
    wd1 = np.asarray(p['wd1']).reshape(8, 56).T               # (56, 8)
    wd1mix = _wd1_mix_matrix(wd1)                             # (56, 64)
    wsub2 = np.asarray(p['wsub2']).reshape(16, 8).T           # (8, 16)
    m43 = np.concatenate([_group_tap_matrix(p['wsub1'], 4),
                          _group_tap_matrix(p['wsub1'], 3)], axis=1)   # (16, 32)
    w2f = np.transpose(np.asarray(p['w2'])[:, :, :, 0],
                       (2, 1, 0)).reshape(128, 8)             # (128, 8)
    wd2 = np.asarray(p['wd2']).reshape(8, 16).T               # (16, 8)
    wd2blk = _wd2_block_matrix(wd2)                           # (128, 8)
    wf = np.asarray(p['wf']).reshape(8, 91).T                 # (91, 8)
    bf = np.asarray(p['bf']).reshape(1, 1)
    bsub2 = np.asarray(p['bsub2']).reshape(1, 16)

    bn1s, bn1b = _bn_fold(p['bn1'])
    bn2s, bn2b = _bn_fold(p['bn2'])
    bn3s, bn3b = _bn_fold(p['bn3'])
    bn4s, bn4b = _bn_fold(p['bn4'])
    bn3s32 = np.concatenate([bn3s, bn3s], axis=1)             # (1, 32)
    bn3b32 = np.concatenate([bn3b, bn3b], axis=1)
    cconst = _border_const(p['w2'], bn3b.reshape(-1))         # (106, 8)

    # One bf16 slab for all MXU weights, one f32 slab for all VPU constants.
    wslab_np, woff = _pack_slab(
        [('w1', w1), ('wd1mix', wd1mix), ('wsub2', wsub2),
         ('m43', m43), ('w2f', w2f), ('wd2blk', wd2blk)],
        width=64, row_align=16)
    cslab_np, coff = _pack_slab(
        [('bn1s', bn1s), ('bn1b', bn1b), ('bn2s', bn2s), ('bn2b', bn2b),
         ('bsub2', bsub2), ('bn3s32', bn3s32), ('bn3b32', bn3b32),
         ('bn4s', bn4s), ('bn4b', bn4b), ('bf', bf),
         ('wf', wf), ('cconst', cconst)],
        width=32, row_align=8)
    wslab = jnp.asarray(wslab_np, dtype=jnp.bfloat16)
    cslab = jnp.asarray(cslab_np, dtype=jnp.float32)

    nb = _samples_per_step()
    kernel = _make_kernel(nb, woff, coff)

    out = pl.pallas_call(
        kernel,
        out_shape=jax.ShapeDtypeStruct((N, 1, 1), jnp.float32),
        grid=(N // nb,),
        in_specs=[
            pl.BlockSpec((nb, T, E), lambda n: (n, 0, 0)),
            pl.BlockSpec(wslab.shape, lambda n: (0, 0)),
            pl.BlockSpec(cslab.shape, lambda n: (0, 0)),
        ],
        out_specs=pl.BlockSpec((nb, 1, 1), lambda n: (n, 0, 0)),
        compiler_params=pltpu.CompilerParams(
            dimension_semantics=("parallel",)),
    )(xk, wslab, cslab)
    return out.reshape(N, 1)


# ------------------------- pure-JAX reference (NCHW) --------------------------

def _conv(x, w, groups=1, padding=(0, 0)):
    return lax.conv_general_dilated(
        x, w, window_strides=(1, 1),
        padding=((padding[0], padding[0]), (padding[1], padding[1])),
        dimension_numbers=('NCHW', 'OIHW', 'NCHW'),
        feature_group_count=groups,
        precision=lax.Precision.HIGHEST)


def _bn_ref(x, bn):
    g, b, m, v = bn
    return ((x - m[None, :, None, None]) / jnp.sqrt(v)[None, :, None, None]
            * g[None, :, None, None] + b[None, :, None, None])


def ref_forward(x, p):
    h = _elu(_conv(x, p['w1']))
    h = _bn_ref(h, p['bn1'])
    h = _elu(_conv(h, p['wd1'], groups=8))
    h = _bn_ref(h, p['bn2'])
    h = _conv(h, p['wsub2']) + p['bsub2'][None, :, None, None]
    h = _elu(_conv(h, p['wsub1'], groups=8, padding=(4, 4)))
    h = _bn_ref(h, p['bn3'])
    h = 0.5 * (h[:, :, :, 0:1] + h[:, :, :, 1:2])             # AvgPool2d((1,2))
    h = _elu(_conv(h, p['w2']))
    h = _bn_ref(h, p['bn2'])
    h = _elu(_conv(h, p['wd2'], groups=8))
    h = _bn_ref(h, p['bn4'])
    flat = h.reshape(h.shape[0], -1)                          # (N, 728) NCHW order
    logits = jnp.dot(flat, p['wf'].T, precision=lax.Precision.HIGHEST) + p['bf']
    return 1.0 / (1.0 + jnp.exp(-logits))


# --------------------------------- params -------------------------------------

def init_params(key):
    ks = jax.random.split(key, 16)

    def nrm(k, shape, scale=0.2):
        return scale * jax.random.normal(k, shape, jnp.float32)

    def bn(k, c):
        k1, k2, k3, k4 = jax.random.split(k, 4)
        gamma = 1.0 + 0.1 * jax.random.normal(k1, (c,), jnp.float32)
        beta = 0.1 * jax.random.normal(k2, (c,), jnp.float32)
        mean = 0.1 * jax.random.normal(k3, (c,), jnp.float32)
        var = jax.random.uniform(k4, (c,), jnp.float32, minval=0.5, maxval=1.5)
        return gamma, beta, mean, var

    p = {
        'w1':    nrm(ks[0], (8, 1, 1, 56)),     # ConvLayer1
        'wd1':   nrm(ks[1], (8, 1, 56, 1)),     # depthwiseconvlayer1
        'wsub1': nrm(ks[2], (16, 2, 1, 8)),     # separableconvlayer_sub1 (groups=8)
        'wsub2': nrm(ks[3], (16, 8, 1, 1)),     # separableconvlayer_sub2
        'bsub2': nrm(ks[4], (16,)),
        'w2':    nrm(ks[5], (8, 16, 8, 1)),     # ConvLayer2
        'wd2':   nrm(ks[6], (8, 1, 16, 1)),     # depthwiseconvlayer2
        'wf':    nrm(ks[7], (1, 728)),          # fullyconnectedlayer
        'bf':    nrm(ks[8], (1,)),
        'bn1':   bn(ks[9], 8),
        'bn2':   bn(ks[10], 8),
        'bn3':   bn(ks[11], 16),
        'bn4':   bn(ks[12], 8),
    }
    return p


if __name__ == "__main__":
    key = jax.random.PRNGKey(0)
    kx, kp = jax.random.split(key)
    params = init_params(kp)
    x = jax.random.normal(kx, (N, 1, T, E), jnp.float32)   # PyTorch NCHW input

    out = net_final_forward(x, params)
    out = jax.block_until_ready(out)

    ref = ref_forward(x, params)
    assert out.shape == (N, 1)
    assert bool(jnp.all(jnp.isfinite(out)))
    # Tolerance covers bf16 MXU operands (per perf review) on a sigmoid output.
    assert bool(jnp.allclose(out, ref, atol=2e-2, rtol=0.0)), (out, ref)
    print("KERNEL_OK")
</pallas_src>

<mosaic_0001>
module attributes {stable_mosaic.version = 11 : i64} {
  func.func @kernel(%arg0: i32, %arg1: memref<2x160x56xf32, #tpu.memory_space<vmem>>, %arg2: memref<416x64xbf16, #tpu.memory_space<vmem>>, %arg3: memref<288x32xf32, #tpu.memory_space<vmem>>, %arg4: memref<2x1x1xf32, #tpu.memory_space<vmem>>) attributes {dimension_semantics = [#tpu.dimension_semantics<parallel>], iteration_bounds = array<i64: 1>, scalar_prefetch = 0 : i64, scratch_operands = 0 : i64, tpu.core_type = #tpu.core_type<tc>, window_params = [{transform_indices = @transform_0, window_bounds = array<i64: 2, 160, 56>}, {pipeline_mode = #tpu.pipeline_mode<synchronous>, transform_indices = @transform_1, window_bounds = array<i64: 416, 64>}, {pipeline_mode = #tpu.pipeline_mode<synchronous>, transform_indices = @transform_2, window_bounds = array<i64: 288, 32>}, {transform_indices = @transform_3, window_bounds = array<i64: 2, 1, 1>}]} {
    %c0 = arith.constant 0 : index
    %c0_0 = arith.constant 0 : index
    %c0_1 = arith.constant 0 : index
    %0 = vector.load %arg1[%c0, %c0_0, %c0_1] : memref<2x160x56xf32, #tpu.memory_space<vmem>>, vector<1x160x56xf32>
    %1 = vector.shape_cast %0 : vector<1x160x56xf32> to vector<160x56xf32>
    %c1 = arith.constant 1 : index
    %c0_2 = arith.constant 0 : index
    %c0_3 = arith.constant 0 : index
    %2 = vector.load %arg1[%c1, %c0_2, %c0_3] : memref<2x160x56xf32, #tpu.memory_space<vmem>>, vector<1x160x56xf32>
    %3 = vector.shape_cast %2 : vector<1x160x56xf32> to vector<160x56xf32>
    %4 = tpu.concatenate %1, %3 in 0 : vector<160x56xf32>, vector<160x56xf32> -> vector<320x56xf32>
    %5 = arith.truncf %4 : vector<320x56xf32> to vector<320x56xbf16>
    %c0_4 = arith.constant 0 : index
    %c0_5 = arith.constant 0 : index
    %6 = vector.load %arg2[%c0_4, %c0_5] : memref<416x64xbf16, #tpu.memory_space<vmem>>, vector<56x8xbf16>
    %cst = arith.constant dense<0.000000e+00> : vector<320x8xf32>
    %7 = tpu.matmul %5, %6, %cst {dimension_numbers = #tpu.dot_dimension_numbers<[1], [0], [0], [1], [0, 0, 1, 1], [], []>} : vector<320x56xbf16>, vector<56x8xbf16>, vector<320x8xf32> -> vector<320x8xf32>
    %cst_6 = arith.constant 0.000000e+00 : f32
    %8 = vector.broadcast %cst_6 : f32 to vector<320x8xf32>
    %9 = arith.cmpf ogt, %7, %8 : vector<320x8xf32>
    %cst_7 = arith.constant 0.000000e+00 : f32
    %10 = vector.broadcast %cst_7 : f32 to vector<320x8xf32>
    %11 = arith.minimumf %7, %10 : vector<320x8xf32>
    %12 = math.exp %11 : vector<320x8xf32>
    %cst_8 = arith.constant 1.000000e+00 : f32
    %13 = vector.broadcast %cst_8 : f32 to vector<320x8xf32>
    %14 = arith.subf %12, %13 : vector<320x8xf32>
    %15 = arith.select %9, %7, %14 : vector<320x8xi1>, vector<320x8xf32>
    %c0_9 = arith.constant 0 : index
    %c0_10 = arith.constant 0 : index
    %16 = vector.load %arg3[%c0_9, %c0_10] : memref<288x32xf32, #tpu.memory_space<vmem>>, vector<1x8xf32>
    %17 = vector.broadcast %16 : vector<1x8xf32> to vector<320x8xf32>
    %18 = arith.mulf %15, %17 : vector<320x8xf32>
    %c8 = arith.constant 8 : index
    %c0_11 = arith.constant 0 : index
    %19 = vector.load %arg3[%c8, %c0_11] : memref<288x32xf32, #tpu.memory_space<vmem>>, vector<1x8xf32>
    %20 = vector.broadcast %19 : vector<1x8xf32> to vector<320x8xf32>
    %21 = arith.addf %18, %20 : vector<320x8xf32>
    %22 = vector.extract_strided_slice %21 {offsets = [0, 0], sizes = [160, 8], strides = [1, 1]} : vector<320x8xf32> to vector<160x8xf32>
    %23 = vector.extract_strided_slice %22 {offsets = [0, 0], sizes = [112, 8], strides = [1, 1]} : vector<160x8xf32> to vector<112x8xf32>
    %24 = vector.extract_strided_slice %22 {offsets = [8, 0], sizes = [112, 8], strides = [1, 1]} : vector<160x8xf32> to vector<112x8xf32>
    %25 = vector.extract_strided_slice %22 {offsets = [16, 0], sizes = [112, 8], strides = [1, 1]} : vector<160x8xf32> to vector<112x8xf32>
    %26 = vector.extract_strided_slice %22 {offsets = [24, 0], sizes = [112, 8], strides = [1, 1]} : vector<160x8xf32> to vector<112x8xf32>
    %27 = vector.extract_strided_slice %22 {offsets = [32, 0], sizes = [112, 8], strides = [1, 1]} : vector<160x8xf32> to vector<112x8xf32>
    %28 = vector.extract_strided_slice %22 {offsets = [40, 0], sizes = [112, 8], strides = [1, 1]} : vector<160x8xf32> to vector<112x8xf32>
    %29 = vector.extract_strided_slice %22 {offsets = [48, 0], sizes = [112, 8], strides = [1, 1]} : vector<160x8xf32> to vector<112x8xf32>
    %30 = tpu.concatenate %23, %24, %25, %26, %27, %28, %29 in 1 : vector<112x8xf32>, vector<112x8xf32>, vector<112x8xf32>, vector<112x8xf32>, vector<112x8xf32>, vector<112x8xf32>, vector<112x8xf32> -> vector<112x56xf32>
    %31 = arith.truncf %30 : vector<112x56xf32> to vector<112x56xbf16>
    %c64 = arith.constant 64 : index
    %c0_12 = arith.constant 0 : index
    %32 = vector.load %arg2[%c64, %c0_12] : memref<416x64xbf16, #tpu.memory_space<vmem>>, vector<56x64xbf16>
    %cst_13 = arith.constant dense<0.000000e+00> : vector<112x64xf32>
    %33 = tpu.matmul %31, %32, %cst_13 {dimension_numbers = #tpu.dot_dimension_numbers<[1], [0], [0], [1], [0, 0, 1, 1], [], []>} : vector<112x56xbf16>, vector<56x64xbf16>, vector<112x64xf32> -> vector<112x64xf32>
    %34 = vector.extract_strided_slice %33 {offsets = [0, 0], sizes = [105, 8], strides = [1, 1]} : vector<112x64xf32> to vector<105x8xf32>
    %35 = vector.extract_strided_slice %33 {offsets = [1, 8], sizes = [105, 8], strides = [1, 1]} : vector<112x64xf32> to vector<105x8xf32>
    %36 = vector.extract_strided_slice %33 {offsets = [2, 16], sizes = [105, 8], strides = [1, 1]} : vector<112x64xf32> to vector<105x8xf32>
    %37 = vector.extract_strided_slice %33 {offsets = [3, 24], sizes = [105, 8], strides = [1, 1]} : vector<112x64xf32> to vector<105x8xf32>
    %38 = vector.extract_strided_slice %33 {offsets = [4, 32], sizes = [105, 8], strides = [1, 1]} : vector<112x64xf32> to vector<105x8xf32>
    %39 = vector.extract_strided_slice %33 {offsets = [5, 40], sizes = [105, 8], strides = [1, 1]} : vector<112x64xf32> to vector<105x8xf32>
    %40 = vector.extract_strided_slice %33 {offsets = [6, 48], sizes = [105, 8], strides = [1, 1]} : vector<112x64xf32> to vector<105x8xf32>
    %41 = vector.extract_strided_slice %33 {offsets = [7, 56], sizes = [105, 8], strides = [1, 1]} : vector<112x64xf32> to vector<105x8xf32>
    %42 = arith.addf %34, %35 : vector<105x8xf32>
    %43 = arith.addf %36, %37 : vector<105x8xf32>
    %44 = arith.addf %38, %39 : vector<105x8xf32>
    %45 = arith.addf %40, %41 : vector<105x8xf32>
    %46 = arith.addf %42, %43 : vector<105x8xf32>
    %47 = arith.addf %44, %45 : vector<105x8xf32>
    %48 = arith.addf %46, %47 : vector<105x8xf32>
    %cst_14 = arith.constant 0.000000e+00 : f32
    %49 = vector.broadcast %cst_14 : f32 to vector<105x8xf32>
    %50 = arith.cmpf ogt, %48, %49 : vector<105x8xf32>
    %cst_15 = arith.constant 0.000000e+00 : f32
    %51 = vector.broadcast %cst_15 : f32 to vector<105x8xf32>
    %52 = arith.minimumf %48, %51 : vector<105x8xf32>
    %53 = math.exp %52 : vector<105x8xf32>
    %cst_16 = arith.constant 1.000000e+00 : f32
    %54 = vector.broadcast %cst_16 : f32 to vector<105x8xf32>
    %55 = arith.subf %53, %54 : vector<105x8xf32>
    %56 = arith.select %50, %48, %55 : vector<105x8xi1>, vector<105x8xf32>
    %c16 = arith.constant 16 : index
    %c0_17 = arith.constant 0 : index
    %57 = vector.load %arg3[%c16, %c0_17] : memref<288x32xf32, #tpu.memory_space<vmem>>, vector<1x8xf32>
    %58 = vector.broadcast %57 : vector<1x8xf32> to vector<105x8xf32>
    %59 = arith.mulf %56, %58 : vector<105x8xf32>
    %c24 = arith.constant 24 : index
    %c0_18 = arith.constant 0 : index
    %60 = vector.load %arg3[%c24, %c0_18] : memref<288x32xf32, #tpu.memory_space<vmem>>, vector<1x8xf32>
    %61 = vector.broadcast %60 : vector<1x8xf32> to vector<105x8xf32>
    %62 = arith.addf %59, %61 : vector<105x8xf32>
    %63 = arith.truncf %62 : vector<105x8xf32> to vector<105x8xbf16>
    %c128 = arith.constant 128 : index
    %c0_19 = arith.constant 0 : index
    %64 = vector.load %arg2[%c128, %c0_19] : memref<416x64xbf16, #tpu.memory_space<vmem>>, vector<8x16xbf16>
    %cst_20 = arith.constant dense<0.000000e+00> : vector<105x16xf32>
    %65 = tpu.matmul %63, %64, %cst_20 {dimension_numbers = #tpu.dot_dimension_numbers<[1], [0], [0], [1], [0, 0, 1, 1], [], []>} : vector<105x8xbf16>, vector<8x16xbf16>, vector<105x16xf32> -> vector<105x16xf32>
    %c32 = arith.constant 32 : index
    %c0_21 = arith.constant 0 : index
    %66 = vector.load %arg3[%c32, %c0_21] : memref<288x32xf32, #tpu.memory_space<vmem>>, vector<1x16xf32>
    %67 = vector.broadcast %66 : vector<1x16xf32> to vector<105x16xf32>
    %68 = arith.addf %65, %67 : vector<105x16xf32>
    %69 = arith.truncf %68 : vector<105x16xf32> to vector<105x16xbf16>
    %c144 = arith.constant 144 : index
    %c0_22 = arith.constant 0 : index
    %70 = vector.load %arg2[%c144, %c0_22] : memref<416x64xbf16, #tpu.memory_space<vmem>>, vector<16x32xbf16>
    %cst_23 = arith.constant dense<0.000000e+00> : vector<105x32xf32>
    %71 = tpu.matmul %69, %70, %cst_23 {dimension_numbers = #tpu.dot_dimension_numbers<[1], [0], [0], [1], [0, 0, 1, 1], [], []>} : vector<105x16xbf16>, vector<16x32xbf16>, vector<105x32xf32> -> vector<105x32xf32>
    %cst_24 = arith.constant 0.000000e+00 : f32
    %72 = vector.broadcast %cst_24 : f32 to vector<105x32xf32>
    %73 = arith.cmpf ogt, %71, %72 : vector<105x32xf32>
    %cst_25 = arith.constant 0.000000e+00 : f32
    %74 = vector.broadcast %cst_25 : f32 to vector<105x32xf32>
    %75 = arith.minimumf %71, %74 : vector<105x32xf32>
    %76 = math.exp %75 : vector<105x32xf32>
    %cst_26 = arith.constant 1.000000e+00 : f32
    %77 = vector.broadcast %cst_26 : f32 to vector<105x32xf32>
    %78 = arith.subf %76, %77 : vector<105x32xf32>
    %79 = arith.select %73, %71, %78 : vector<105x32xi1>, vector<105x32xf32>
    %c40 = arith.constant 40 : index
    %c0_27 = arith.constant 0 : index
    %80 = vector.load %arg3[%c40, %c0_27] : memref<288x32xf32, #tpu.memory_space<vmem>>, vector<1x32xf32>
    %81 = vector.broadcast %80 : vector<1x32xf32> to vector<105x32xf32>
    %82 = arith.mulf %79, %81 : vector<105x32xf32>
    %c48 = arith.constant 48 : index
    %c0_28 = arith.constant 0 : index
    %83 = vector.load %arg3[%c48, %c0_28] : memref<288x32xf32, #tpu.memory_space<vmem>>, vector<1x32xf32>
    %84 = vector.broadcast %83 : vector<1x32xf32> to vector<105x32xf32>
    %85 = arith.addf %82, %84 : vector<105x32xf32>
    %86 = vector.extract_strided_slice %85 {offsets = [0, 0], sizes = [105, 16], strides = [1, 1]} : vector<105x32xf32> to vector<105x16xf32>
    %87 = vector.extract_strided_slice %85 {offsets = [0, 16], sizes = [105, 16], strides = [1, 1]} : vector<105x32xf32> to vector<105x16xf32>
    %88 = arith.addf %86, %87 : vector<105x16xf32>
    %cst_29 = arith.constant 5.000000e-01 : f32
    %89 = vector.broadcast %cst_29 : f32 to vector<105x16xf32>
    %90 = arith.mulf %89, %88 : vector<105x16xf32>
    %cst_30 = arith.constant 0.000000e+00 : f32
    %91 = vector.broadcast %cst_30 : f32 to vector<4x16xf32>
    %92 = tpu.concatenate %91, %90, %91 in 0 : vector<4x16xf32>, vector<105x16xf32>, vector<4x16xf32> -> vector<113x16xf32>
    %93 = vector.extract_strided_slice %92 {offsets = [0, 0], sizes = [106, 16], strides = [1, 1]} : vector<113x16xf32> to vector<106x16xf32>
    %94 = vector.extract_strided_slice %92 {offsets = [1, 0], sizes = [106, 16], strides = [1, 1]} : vector<113x16xf32> to vector<106x16xf32>
    %95 = vector.extract_strided_slice %92 {offsets = [2, 0], sizes = [106, 16], strides = [1, 1]} : vector<113x16xf32> to vector<106x16xf32>
    %96 = vector.extract_strided_slice %92 {offsets = [3, 0], sizes = [106, 16], strides = [1, 1]} : vector<113x16xf32> to vector<106x16xf32>
    %97 = vector.extract_strided_slice %92 {offsets = [4, 0], sizes = [106, 16], strides = [1, 1]} : vector<113x16xf32> to vector<106x16xf32>
    %98 = vector.extract_strided_slice %92 {offsets = [5, 0], sizes = [106, 16], strides = [1, 1]} : vector<113x16xf32> to vector<106x16xf32>
    %99 = vector.extract_strided_slice %92 {offsets = [6, 0], sizes = [106, 16], strides = [1, 1]} : vector<113x16xf32> to vector<106x16xf32>
    %100 = vector.extract_strided_slice %92 {offsets = [7, 0], sizes = [106, 16], strides = [1, 1]} : vector<113x16xf32> to vector<106x16xf32>
    %101 = tpu.concatenate %93, %94, %95, %96, %97, %98, %99, %100 in 1 : vector<106x16xf32>, vector<106x16xf32>, vector<106x16xf32>, vector<106x16xf32>, vector<106x16xf32>, vector<106x16xf32>, vector<106x16xf32>, vector<106x16xf32> -> vector<106x128xf32>
    %102 = arith.truncf %101 : vector<106x128xf32> to vector<106x128xbf16>
    %c160 = arith.constant 160 : index
    %c0_31 = arith.constant 0 : index
    %103 = vector.load %arg2[%c160, %c0_31] : memref<416x64xbf16, #tpu.memory_space<vmem>>, vector<128x8xbf16>
    %cst_32 = arith.constant dense<0.000000e+00> : vector<106x8xf32>
    %104 = tpu.matmul %102, %103, %cst_32 {dimension_numbers = #tpu.dot_dimension_numbers<[1], [0], [0], [1], [0, 0, 1, 1], [], []>} : vector<106x128xbf16>, vector<128x8xbf16>, vector<106x8xf32> -> vector<106x8xf32>
    %c176 = arith.constant 176 : index
    %c0_33 = arith.constant 0 : index
    %105 = vector.load %arg3[%c176, %c0_33] : memref<288x32xf32, #tpu.memory_space<vmem>>, vector<106x8xf32>
    %106 = arith.addf %104, %105 : vector<106x8xf32>
    %cst_34 = arith.constant 0.000000e+00 : f32
    %107 = vector.broadcast %cst_34 : f32 to vector<106x8xf32>
    %108 = arith.cmpf ogt, %106, %107 : vector<106x8xf32>
    %cst_35 = arith.constant 0.000000e+00 : f32
    %109 = vector.broadcast %cst_35 : f32 to vector<106x8xf32>
    %110 = arith.minimumf %106, %109 : vector<106x8xf32>
    %111 = math.exp %110 : vector<106x8xf32>
    %cst_36 = arith.constant 1.000000e+00 : f32
    %112 = vector.broadcast %cst_36 : f32 to vector<106x8xf32>
    %113 = arith.subf %111, %112 : vector<106x8xf32>
    %114 = arith.select %108, %106, %113 : vector<106x8xi1>, vector<106x8xf32>
    %c16_37 = arith.constant 16 : index
    %c0_38 = arith.constant 0 : index
    %115 = vector.load %arg3[%c16_37, %c0_38] : memref<288x32xf32, #tpu.memory_space<vmem>>, vector<1x8xf32>
    %116 = vector.broadcast %115 : vector<1x8xf32> to vector<106x8xf32>
    %117 = arith.mulf %114, %116 : vector<106x8xf32>
    %c24_39 = arith.constant 24 : index
    %c0_40 = arith.constant 0 : index
    %118 = vector.load %arg3[%c24_39, %c0_40] : memref<288x32xf32, #tpu.memory_space<vmem>>, vector<1x8xf32>
    %119 = vector.broadcast %118 : vector<1x8xf32> to vector<106x8xf32>
    %120 = arith.addf %117, %119 : vector<106x8xf32>
    %121 = vector.extract_strided_slice %120 {offsets = [0, 0], sizes = [91, 8], strides = [1, 1]} : vector<106x8xf32> to vector<91x8xf32>
    %122 = vector.extract_strided_slice %120 {offsets = [1, 0], sizes = [91, 8], strides = [1, 1]} : vector<106x8xf32> to vector<91x8xf32>
    %123 = vector.extract_strided_slice %120 {offsets = [2, 0], sizes = [91, 8], strides = [1, 1]} : vector<106x8xf32> to vector<91x8xf32>
    %124 = vector.extract_strided_slice %120 {offsets = [3, 0], sizes = [91, 8], strides = [1, 1]} : vector<106x8xf32> to vector<91x8xf32>
    %125 = vector.extract_strided_slice %120 {offsets = [4, 0], sizes = [91, 8], strides = [1, 1]} : vector<106x8xf32> to vector<91x8xf32>
    %126 = vector.extract_strided_slice %120 {offsets = [5, 0], sizes = [91, 8], strides = [1, 1]} : vector<106x8xf32> to vector<91x8xf32>
    %127 = vector.extract_strided_slice %120 {offsets = [6, 0], sizes = [91, 8], strides = [1, 1]} : vector<106x8xf32> to vector<91x8xf32>
    %128 = vector.extract_strided_slice %120 {offsets = [7, 0], sizes = [91, 8], strides = [1, 1]} : vector<106x8xf32> to vector<91x8xf32>
    %129 = vector.extract_strided_slice %120 {offsets = [8, 0], sizes = [91, 8], strides = [1, 1]} : vector<106x8xf32> to vector<91x8xf32>
    %130 = vector.extract_strided_slice %120 {offsets = [9, 0], sizes = [91, 8], strides = [1, 1]} : vector<106x8xf32> to vector<91x8xf32>
    %131 = vector.extract_strided_slice %120 {offsets = [10, 0], sizes = [91, 8], strides = [1, 1]} : vector<106x8xf32> to vector<91x8xf32>
    %132 = vector.extract_strided_slice %120 {offsets = [11, 0], sizes = [91, 8], strides = [1, 1]} : vector<106x8xf32> to vector<91x8xf32>
    %133 = vector.extract_strided_slice %120 {offsets = [12, 0], sizes = [91, 8], strides = [1, 1]} : vector<106x8xf32> to vector<91x8xf32>
    %134 = vector.extract_strided_slice %120 {offsets = [13, 0], sizes = [91, 8], strides = [1, 1]} : vector<106x8xf32> to vector<91x8xf32>
    %135 = vector.extract_strided_slice %120 {offsets = [14, 0], sizes = [91, 8], strides = [1, 1]} : vector<106x8xf32> to vector<91x8xf32>
    %136 = vector.extract_strided_slice %120 {offsets = [15, 0], sizes = [91, 8], strides = [1, 1]} : vector<106x8xf32> to vector<91x8xf32>
    %137 = tpu.concatenate %121, %122, %123, %124, %125, %126, %127, %128, %129, %130, %131, %132, %133, %134, %135, %136 in 1 : vector<91x8xf32>, vector<91x8xf32>, vector<91x8xf32>, vector<91x8xf32>, vector<91x8xf32>, vector<91x8xf32>, vector<91x8xf32>, vector<91x8xf32>, vector<91x8xf32>, vector<91x8xf32>, vector<91x8xf32>, vector<91x8xf32>, vector<91x8xf32>, vector<91x8xf32>, vector<91x8xf32>, vector<91x8xf32> -> vector<91x128xf32>
    %138 = arith.truncf %137 : vector<91x128xf32> to vector<91x128xbf16>
    %c288 = arith.constant 288 : index
    %c0_41 = arith.constant 0 : index
    %139 = vector.load %arg2[%c288, %c0_41] : memref<416x64xbf16, #tpu.memory_space<vmem>>, vector<128x8xbf16>
    %cst_42 = arith.constant dense<0.000000e+00> : vector<91x8xf32>
    %140 = tpu.matmul %138, %139, %cst_42 {dimension_numbers = #tpu.dot_dimension_numbers<[1], [0], [0], [1], [0, 0, 1, 1], [], []>} : vector<91x128xbf16>, vector<128x8xbf16>, vector<91x8xf32> -> vector<91x8xf32>
    %cst_43 = arith.constant 0.000000e+00 : f32
    %141 = vector.broadcast %cst_43 : f32 to vector<91x8xf32>
    %142 = arith.cmpf ogt, %140, %141 : vector<91x8xf32>
    %cst_44 = arith.constant 0.000000e+00 : f32
    %143 = vector.broadcast %cst_44 : f32 to vector<91x8xf32>
    %144 = arith.minimumf %140, %143 : vector<91x8xf32>
    %145 = math.exp %144 : vector<91x8xf32>
    %cst_45 = arith.constant 1.000000e+00 : f32
    %146 = vector.broadcast %cst_45 : f32 to vector<91x8xf32>
    %147 = arith.subf %145, %146 : vector<91x8xf32>
    %148 = arith.select %142, %140, %147 : vector<91x8xi1>, vector<91x8xf32>
    %c56 = arith.constant 56 : index
    %c0_46 = arith.constant 0 : index
    %149 = vector.load %arg3[%c56, %c0_46] : memref<288x32xf32, #tpu.memory_space<vmem>>, vector<1x8xf32>
    %150 = vector.broadcast %149 : vector<1x8xf32> to vector<91x8xf32>
    %151 = arith.mulf %148, %150 : vector<91x8xf32>
    %c64_47 = arith.constant 64 : index
    %c0_48 = arith.constant 0 : index
    %152 = vector.load %arg3[%c64_47, %c0_48] : memref<288x32xf32, #tpu.memory_space<vmem>>, vector<1x8xf32>
    %153 = vector.broadcast %152 : vector<1x8xf32> to vector<91x8xf32>
    %154 = arith.addf %151, %153 : vector<91x8xf32>
    %c80 = arith.constant 80 : index
    %c0_49 = arith.constant 0 : index
    %155 = vector.load %arg3[%c80, %c0_49] : memref<288x32xf32, #tpu.memory_space<vmem>>, vector<91x8xf32>
    %156 = arith.mulf %154, %155 : vector<91x8xf32>
    %cst_50 = arith.constant dense<0.000000e+00> : vector<8xf32>
    %157 = vector.multi_reduction <add>, %156, %cst_50 [0] : vector<91x8xf32> to vector<8xf32>
    %158 = vector.shape_cast %157 : vector<8xf32> to vector<1x8xf32>
    %cst_51 = arith.constant dense<0.000000e+00> : vector<1xf32>
    %159 = vector.multi_reduction <add>, %158, %cst_51 [1] : vector<1x8xf32> to vector<1xf32>
    %160 = vector.shape_cast %159 : vector<1xf32> to vector<1x1xf32>
    %c72 = arith.constant 72 : index
    %c0_52 = arith.constant 0 : index
    %161 = vector.load %arg3[%c72, %c0_52] : memref<288x32xf32, #tpu.memory_space<vmem>>, vector<1x1xf32>
    %162 = arith.addf %160, %161 : vector<1x1xf32>
    %cst_53 = arith.constant 0.000000e+00 : f32
    %163 = vector.broadcast %cst_53 : f32 to vector<1x1xf32>
    %164 = arith.subf %163, %162 : vector<1x1xf32>
    %165 = math.exp %164 : vector<1x1xf32>
    %cst_54 = arith.constant 1.000000e+00 : f32
    %166 = vector.broadcast %cst_54 : f32 to vector<1x1xf32>
    %167 = arith.addf %166, %165 : vector<1x1xf32>
    %cst_55 = arith.constant 1.000000e+00 : f32
    %168 = vector.broadcast %cst_55 : f32 to vector<1x1xf32>
    %169 = arith.divf %168, %167 : vector<1x1xf32>
    %c0_56 = arith.constant 0 : index
    %c0_57 = arith.constant 0 : index
    %c0_58 = arith.constant 0 : index
    %170 = vector.load %arg4[%c0_56, %c0_57, %c0_58] : memref<2x1x1xf32, #tpu.memory_space<vmem>>, vector<1x1x1xf32>
    %171 = vector.shape_cast %170 : vector<1x1x1xf32> to vector<1x1xf32>
    %172 = vector.shape_cast %169 : vector<1x1xf32> to vector<1x1x1xf32>
    tpu.vector_store %arg4[%c0_56, %c0_57, %c0_58], %172 {strides = array<i32>} : memref<2x1x1xf32, #tpu.memory_space<vmem>>, vector<1x1x1xf32>,
    %173 = vector.extract_strided_slice %21 {offsets = [160, 0], sizes = [160, 8], strides = [1, 1]} : vector<320x8xf32> to vector<160x8xf32>
    %174 = vector.extract_strided_slice %173 {offsets = [0, 0], sizes = [112, 8], strides = [1, 1]} : vector<160x8xf32> to vector<112x8xf32>
    %175 = vector.extract_strided_slice %173 {offsets = [8, 0], sizes = [112, 8], strides = [1, 1]} : vector<160x8xf32> to vector<112x8xf32>
    %176 = vector.extract_strided_slice %173 {offsets = [16, 0], sizes = [112, 8], strides = [1, 1]} : vector<160x8xf32> to vector<112x8xf32>
    %177 = vector.extract_strided_slice %173 {offsets = [24, 0], sizes = [112, 8], strides = [1, 1]} : vector<160x8xf32> to vector<112x8xf32>
    %178 = vector.extract_strided_slice %173 {offsets = [32, 0], sizes = [112, 8], strides = [1, 1]} : vector<160x8xf32> to vector<112x8xf32>
    %179 = vector.extract_strided_slice %173 {offsets = [40, 0], sizes = [112, 8], strides = [1, 1]} : vector<160x8xf32> to vector<112x8xf32>
    %180 = vector.extract_strided_slice %173 {offsets = [48, 0], sizes = [112, 8], strides = [1, 1]} : vector<160x8xf32> to vector<112x8xf32>
    %181 = tpu.concatenate %174, %175, %176, %177, %178, %179, %180 in 1 : vector<112x8xf32>, vector<112x8xf32>, vector<112x8xf32>, vector<112x8xf32>, vector<112x8xf32>, vector<112x8xf32>, vector<112x8xf32> -> vector<112x56xf32>
    %182 = arith.truncf %181 : vector<112x56xf32> to vector<112x56xbf16>
    %c64_59 = arith.constant 64 : index
    %c0_60 = arith.constant 0 : index
    %183 = vector.load %arg2[%c64_59, %c0_60] : memref<416x64xbf16, #tpu.memory_space<vmem>>, vector<56x64xbf16>
    %cst_61 = arith.constant dense<0.000000e+00> : vector<112x64xf32>
    %184 = tpu.matmul %182, %183, %cst_61 {dimension_numbers = #tpu.dot_dimension_numbers<[1], [0], [0], [1], [0, 0, 1, 1], [], []>} : vector<112x56xbf16>, vector<56x64xbf16>, vector<112x64xf32> -> vector<112x64xf32>
    %185 = vector.extract_strided_slice %184 {offsets = [0, 0], sizes = [105, 8], strides = [1, 1]} : vector<112x64xf32> to vector<105x8xf32>
    %186 = vector.extract_strided_slice %184 {offsets = [1, 8], sizes = [105, 8], strides = [1, 1]} : vector<112x64xf32> to vector<105x8xf32>
    %187 = vector.extract_strided_slice %184 {offsets = [2, 16], sizes = [105, 8], strides = [1, 1]} : vector<112x64xf32> to vector<105x8xf32>
    %188 = vector.extract_strided_slice %184 {offsets = [3, 24], sizes = [105, 8], strides = [1, 1]} : vector<112x64xf32> to vector<105x8xf32>
    %189 = vector.extract_strided_slice %184 {offsets = [4, 32], sizes = [105, 8], strides = [1, 1]} : vector<112x64xf32> to vector<105x8xf32>
    %190 = vector.extract_strided_slice %184 {offsets = [5, 40], sizes = [105, 8], strides = [1, 1]} : vector<112x64xf32> to vector<105x8xf32>
    %191 = vector.extract_strided_slice %184 {offsets = [6, 48], sizes = [105, 8], strides = [1, 1]} : vector<112x64xf32> to vector<105x8xf32>
    %192 = vector.extract_strided_slice %184 {offsets = [7, 56], sizes = [105, 8], strides = [1, 1]} : vector<112x64xf32> to vector<105x8xf32>
    %193 = arith.addf %185, %186 : vector<105x8xf32>
    %194 = arith.addf %187, %188 : vector<105x8xf32>
    %195 = arith.addf %189, %190 : vector<105x8xf32>
    %196 = arith.addf %191, %192 : vector<105x8xf32>
    %197 = arith.addf %193, %194 : vector<105x8xf32>
    %198 = arith.addf %195, %196 : vector<105x8xf32>
    %199 = arith.addf %197, %198 : vector<105x8xf32>
    %cst_62 = arith.constant 0.000000e+00 : f32
    %200 = vector.broadcast %cst_62 : f32 to vector<105x8xf32>
    %201 = arith.cmpf ogt, %199, %200 : vector<105x8xf32>
    %cst_63 = arith.constant 0.000000e+00 : f32
    %202 = vector.broadcast %cst_63 : f32 to vector<105x8xf32>
    %203 = arith.minimumf %199, %202 : vector<105x8xf32>
    %204 = math.exp %203 : vector<105x8xf32>
    %cst_64 = arith.constant 1.000000e+00 : f32
    %205 = vector.broadcast %cst_64 : f32 to vector<105x8xf32>
    %206 = arith.subf %204, %205 : vector<105x8xf32>
    %207 = arith.select %201, %199, %206 : vector<105x8xi1>, vector<105x8xf32>
    %c16_65 = arith.constant 16 : index
    %c0_66 = arith.constant 0 : index
    %208 = vector.load %arg3[%c16_65, %c0_66] : memref<288x32xf32, #tpu.memory_space<vmem>>, vector<1x8xf32>
    %209 = vector.broadcast %208 : vector<1x8xf32> to vector<105x8xf32>
    %210 = arith.mulf %207, %209 : vector<105x8xf32>
    %c24_67 = arith.constant 24 : index
    %c0_68 = arith.constant 0 : index
    %211 = vector.load %arg3[%c24_67, %c0_68] : memref<288x32xf32, #tpu.memory_space<vmem>>, vector<1x8xf32>
    %212 = vector.broadcast %211 : vector<1x8xf32> to vector<105x8xf32>
    %213 = arith.addf %210, %212 : vector<105x8xf32>
    %214 = arith.truncf %213 : vector<105x8xf32> to vector<105x8xbf16>
    %c128_69 = arith.constant 128 : index
    %c0_70 = arith.constant 0 : index
    %215 = vector.load %arg2[%c128_69, %c0_70] : memref<416x64xbf16, #tpu.memory_space<vmem>>, vector<8x16xbf16>
    %cst_71 = arith.constant dense<0.000000e+00> : vector<105x16xf32>
    %216 = tpu.matmul %214, %215, %cst_71 {dimension_numbers = #tpu.dot_dimension_numbers<[1], [0], [0], [1], [0, 0, 1, 1], [], []>} : vector<105x8xbf16>, vector<8x16xbf16>, vector<105x16xf32> -> vector<105x16xf32>
    %c32_72 = arith.constant 32 : index
    %c0_73 = arith.constant 0 : index
    %217 = vector.load %arg3[%c32_72, %c0_73] : memref<288x32xf32, #tpu.memory_space<vmem>>, vector<1x16xf32>
    %218 = vector.broadcast %217 : vector<1x16xf32> to vector<105x16xf32>
    %219 = arith.addf %216, %218 : vector<105x16xf32>
    %220 = arith.truncf %219 : vector<105x16xf32> to vector<105x16xbf16>
    %c144_74 = arith.constant 144 : index
    %c0_75 = arith.constant 0 : index
    %221 = vector.load %arg2[%c144_74, %c0_75] : memref<416x64xbf16, #tpu.memory_space<vmem>>, vector<16x32xbf16>
    %cst_76 = arith.constant dense<0.000000e+00> : vector<105x32xf32>
    %222 = tpu.matmul %220, %221, %cst_76 {dimension_numbers = #tpu.dot_dimension_numbers<[1], [0], [0], [1], [0, 0, 1, 1], [], []>} : vector<105x16xbf16>, vector<16x32xbf16>, vector<105x32xf32> -> vector<105x32xf32>
    %cst_77 = arith.constant 0.000000e+00 : f32
    %223 = vector.broadcast %cst_77 : f32 to vector<105x32xf32>
    %224 = arith.cmpf ogt, %222, %223 : vector<105x32xf32>
    %cst_78 = arith.constant 0.000000e+00 : f32
    %225 = vector.broadcast %cst_78 : f32 to vector<105x32xf32>
    %226 = arith.minimumf %222, %225 : vector<105x32xf32>
    %227 = math.exp %226 : vector<105x32xf32>
    %cst_79 = arith.constant 1.000000e+00 : f32
    %228 = vector.broadcast %cst_79 : f32 to vector<105x32xf32>
    %229 = arith.subf %227, %228 : vector<105x32xf32>
    %230 = arith.select %224, %222, %229 : vector<105x32xi1>, vector<105x32xf32>
    %c40_80 = arith.constant 40 : index
    %c0_81 = arith.constant 0 : index
    %231 = vector.load %arg3[%c40_80, %c0_81] : memref<288x32xf32, #tpu.memory_space<vmem>>, vector<1x32xf32>
    %232 = vector.broadcast %231 : vector<1x32xf32> to vector<105x32xf32>
    %233 = arith.mulf %230, %232 : vector<105x32xf32>
    %c48_82 = arith.constant 48 : index
    %c0_83 = arith.constant 0 : index
    %234 = vector.load %arg3[%c48_82, %c0_83] : memref<288x32xf32, #tpu.memory_space<vmem>>, vector<1x32xf32>
    %235 = vector.broadcast %234 : vector<1x32xf32> to vector<105x32xf32>
    %236 = arith.addf %233, %235 : vector<105x32xf32>
    %237 = vector.extract_strided_slice %236 {offsets = [0, 0], sizes = [105, 16], strides = [1, 1]} : vector<105x32xf32> to vector<105x16xf32>
    %238 = vector.extract_strided_slice %236 {offsets = [0, 16], sizes = [105, 16], strides = [1, 1]} : vector<105x32xf32> to vector<105x16xf32>
    %239 = arith.addf %237, %238 : vector<105x16xf32>
    %cst_84 = arith.constant 5.000000e-01 : f32
    %240 = vector.broadcast %cst_84 : f32 to vector<105x16xf32>
    %241 = arith.mulf %240, %239 : vector<105x16xf32>
    %cst_85 = arith.constant 0.000000e+00 : f32
    %242 = vector.broadcast %cst_85 : f32 to vector<4x16xf32>
    %243 = tpu.concatenate %242, %241, %242 in 0 : vector<4x16xf32>, vector<105x16xf32>, vector<4x16xf32> -> vector<113x16xf32>
    %244 = vector.extract_strided_slice %243 {offsets = [0, 0], sizes = [106, 16], strides = [1, 1]} : vector<113x16xf32> to vector<106x16xf32>
    %245 = vector.extract_strided_slice %243 {offsets = [1, 0], sizes = [106, 16], strides = [1, 1]} : vector<113x16xf32> to vector<106x16xf32>
    %246 = vector.extract_strided_slice %243 {offsets = [2, 0], sizes = [106, 16], strides = [1, 1]} : vector<113x16xf32> to vector<106x16xf32>
    %247 = vector.extract_strided_slice %243 {offsets = [3, 0], sizes = [106, 16], strides = [1, 1]} : vector<113x16xf32> to vector<106x16xf32>
    %248 = vector.extract_strided_slice %243 {offsets = [4, 0], sizes = [106, 16], strides = [1, 1]} : vector<113x16xf32> to vector<106x16xf32>
    %249 = vector.extract_strided_slice %243 {offsets = [5, 0], sizes = [106, 16], strides = [1, 1]} : vector<113x16xf32> to vector<106x16xf32>
    %250 = vector.extract_strided_slice %243 {offsets = [6, 0], sizes = [106, 16], strides = [1, 1]} : vector<113x16xf32> to vector<106x16xf32>
    %251 = vector.extract_strided_slice %243 {offsets = [7, 0], sizes = [106, 16], strides = [1, 1]} : vector<113x16xf32> to vector<106x16xf32>
    %252 = tpu.concatenate %244, %245, %246, %247, %248, %249, %250, %251 in 1 : vector<106x16xf32>, vector<106x16xf32>, vector<106x16xf32>, vector<106x16xf32>, vector<106x16xf32>, vector<106x16xf32>, vector<106x16xf32>, vector<106x16xf32> -> vector<106x128xf32>
    %253 = arith.truncf %252 : vector<106x128xf32> to vector<106x128xbf16>
    %c160_86 = arith.constant 160 : index
    %c0_87 = arith.constant 0 : index
    %254 = vector.load %arg2[%c160_86, %c0_87] : memref<416x64xbf16, #tpu.memory_space<vmem>>, vector<128x8xbf16>
    %cst_88 = arith.constant dense<0.000000e+00> : vector<106x8xf32>
    %255 = tpu.matmul %253, %254, %cst_88 {dimension_numbers = #tpu.dot_dimension_numbers<[1], [0], [0], [1], [0, 0, 1, 1], [], []>} : vector<106x128xbf16>, vector<128x8xbf16>, vector<106x8xf32> -> vector<106x8xf32>
    %c176_89 = arith.constant 176 : index
    %c0_90 = arith.constant 0 : index
    %256 = vector.load %arg3[%c176_89, %c0_90] : memref<288x32xf32, #tpu.memory_space<vmem>>, vector<106x8xf32>
    %257 = arith.addf %255, %256 : vector<106x8xf32>
    %cst_91 = arith.constant 0.000000e+00 : f32
    %258 = vector.broadcast %cst_91 : f32 to vector<106x8xf32>
    %259 = arith.cmpf ogt, %257, %258 : vector<106x8xf32>
    %cst_92 = arith.constant 0.000000e+00 : f32
    %260 = vector.broadcast %cst_92 : f32 to vector<106x8xf32>
    %261 = arith.minimumf %257, %260 : vector<106x8xf32>
    %262 = math.exp %261 : vector<106x8xf32>
    %cst_93 = arith.constant 1.000000e+00 : f32
    %263 = vector.broadcast %cst_93 : f32 to vector<106x8xf32>
    %264 = arith.subf %262, %263 : vector<106x8xf32>
    %265 = arith.select %259, %257, %264 : vector<106x8xi1>, vector<106x8xf32>
    %c16_94 = arith.constant 16 : index
    %c0_95 = arith.constant 0 : index
    %266 = vector.load %arg3[%c16_94, %c0_95] : memref<288x32xf32, #tpu.memory_space<vmem>>, vector<1x8xf32>
    %267 = vector.broadcast %266 : vector<1x8xf32> to vector<106x8xf32>
    %268 = arith.mulf %265, %267 : vector<106x8xf32>
    %c24_96 = arith.constant 24 : index
    %c0_97 = arith.constant 0 : index
    %269 = vector.load %arg3[%c24_96, %c0_97] : memref<288x32xf32, #tpu.memory_space<vmem>>, vector<1x8xf32>
    %270 = vector.broadcast %269 : vector<1x8xf32> to vector<106x8xf32>
    %271 = arith.addf %268, %270 : vector<106x8xf32>
    %272 = vector.extract_strided_slice %271 {offsets = [0, 0], sizes = [91, 8], strides = [1, 1]} : vector<106x8xf32> to vector<91x8xf32>
    %273 = vector.extract_strided_slice %271 {offsets = [1, 0], sizes = [91, 8], strides = [1, 1]} : vector<106x8xf32> to vector<91x8xf32>
    %274 = vector.extract_strided_slice %271 {offsets = [2, 0], sizes = [91, 8], strides = [1, 1]} : vector<106x8xf32> to vector<91x8xf32>
    %275 = vector.extract_strided_slice %271 {offsets = [3, 0], sizes = [91, 8], strides = [1, 1]} : vector<106x8xf32> to vector<91x8xf32>
    %276 = vector.extract_strided_slice %271 {offsets = [4, 0], sizes = [91, 8], strides = [1, 1]} : vector<106x8xf32> to vector<91x8xf32>
    %277 = vector.extract_strided_slice %271 {offsets = [5, 0], sizes = [91, 8], strides = [1, 1]} : vector<106x8xf32> to vector<91x8xf32>
    %278 = vector.extract_strided_slice %271 {offsets = [6, 0], sizes = [91, 8], strides = [1, 1]} : vector<106x8xf32> to vector<91x8xf32>
    %279 = vector.extract_strided_slice %271 {offsets = [7, 0], sizes = [91, 8], strides = [1, 1]} : vector<106x8xf32> to vector<91x8xf32>
    %280 = vector.extract_strided_slice %271 {offsets = [8, 0], sizes = [91, 8], strides = [1, 1]} : vector<106x8xf32> to vector<91x8xf32>
    %281 = vector.extract_strided_slice %271 {offsets = [9, 0], sizes = [91, 8], strides = [1, 1]} : vector<106x8xf32> to vector<91x8xf32>
    %282 = vector.extract_strided_slice %271 {offsets = [10, 0], sizes = [91, 8], strides = [1, 1]} : vector<106x8xf32> to vector<91x8xf32>
    %283 = vector.extract_strided_slice %271 {offsets = [11, 0], sizes = [91, 8], strides = [1, 1]} : vector<106x8xf32> to vector<91x8xf32>
    %284 = vector.extract_strided_slice %271 {offsets = [12, 0], sizes = [91, 8], strides = [1, 1]} : vector<106x8xf32> to vector<91x8xf32>
    %285 = vector.extract_strided_slice %271 {offsets = [13, 0], sizes = [91, 8], strides = [1, 1]} : vector<106x8xf32> to vector<91x8xf32>
    %286 = vector.extract_strided_slice %271 {offsets = [14, 0], sizes = [91, 8], strides = [1, 1]} : vector<106x8xf32> to vector<91x8xf32>
    %287 = vector.extract_strided_slice %271 {offsets = [15, 0], sizes = [91, 8], strides = [1, 1]} : vector<106x8xf32> to vector<91x8xf32>
    %288 = tpu.concatenate %272, %273, %274, %275, %276, %277, %278, %279, %280, %281, %282, %283, %284, %285, %286, %287 in 1 : vector<91x8xf32>, vector<91x8xf32>, vector<91x8xf32>, vector<91x8xf32>, vector<91x8xf32>, vector<91x8xf32>, vector<91x8xf32>, vector<91x8xf32>, vector<91x8xf32>, vector<91x8xf32>, vector<91x8xf32>, vector<91x8xf32>, vector<91x8xf32>, vector<91x8xf32>, vector<91x8xf32>, vector<91x8xf32> -> vector<91x128xf32>
    %289 = arith.truncf %288 : vector<91x128xf32> to vector<91x128xbf16>
    %c288_98 = arith.constant 288 : index
    %c0_99 = arith.constant 0 : index
    %290 = vector.load %arg2[%c288_98, %c0_99] : memref<416x64xbf16, #tpu.memory_space<vmem>>, vector<128x8xbf16>
    %cst_100 = arith.constant dense<0.000000e+00> : vector<91x8xf32>
    %291 = tpu.matmul %289, %290, %cst_100 {dimension_numbers = #tpu.dot_dimension_numbers<[1], [0], [0], [1], [0, 0, 1, 1], [], []>} : vector<91x128xbf16>, vector<128x8xbf16>, vector<91x8xf32> -> vector<91x8xf32>
    %cst_101 = arith.constant 0.000000e+00 : f32
    %292 = vector.broadcast %cst_101 : f32 to vector<91x8xf32>
    %293 = arith.cmpf ogt, %291, %292 : vector<91x8xf32>
    %cst_102 = arith.constant 0.000000e+00 : f32
    %294 = vector.broadcast %cst_102 : f32 to vector<91x8xf32>
    %295 = arith.minimumf %291, %294 : vector<91x8xf32>
    %296 = math.exp %295 : vector<91x8xf32>
    %cst_103 = arith.constant 1.000000e+00 : f32
    %297 = vector.broadcast %cst_103 : f32 to vector<91x8xf32>
    %298 = arith.subf %296, %297 : vector<91x8xf32>
    %299 = arith.select %293, %291, %298 : vector<91x8xi1>, vector<91x8xf32>
    %c56_104 = arith.constant 56 : index
    %c0_105 = arith.constant 0 : index
    %300 = vector.load %arg3[%c56_104, %c0_105] : memref<288x32xf32, #tpu.memory_space<vmem>>, vector<1x8xf32>
    %301 = vector.broadcast %300 : vector<1x8xf32> to vector<91x8xf32>
    %302 = arith.mulf %299, %301 : vector<91x8xf32>
    %c64_106 = arith.constant 64 : index
    %c0_107 = arith.constant 0 : index
    %303 = vector.load %arg3[%c64_106, %c0_107] : memref<288x32xf32, #tpu.memory_space<vmem>>, vector<1x8xf32>
    %304 = vector.broadcast %303 : vector<1x8xf32> to vector<91x8xf32>
    %305 = arith.addf %302, %304 : vector<91x8xf32>
    %c80_108 = arith.constant 80 : index
    %c0_109 = arith.constant 0 : index
    %306 = vector.load %arg3[%c80_108, %c0_109] : memref<288x32xf32, #tpu.memory_space<vmem>>, vector<91x8xf32>
    %307 = arith.mulf %305, %306 : vector<91x8xf32>
    %cst_110 = arith.constant dense<0.000000e+00> : vector<8xf32>
    %308 = vector.multi_reduction <add>, %307, %cst_110 [0] : vector<91x8xf32> to vector<8xf32>
    %309 = vector.shape_cast %308 : vector<8xf32> to vector<1x8xf32>
    %cst_111 = arith.constant dense<0.000000e+00> : vector<1xf32>
    %310 = vector.multi_reduction <add>, %309, %cst_111 [1] : vector<1x8xf32> to vector<1xf32>
    %311 = vector.shape_cast %310 : vector<1xf32> to vector<1x1xf32>
    %c72_112 = arith.constant 72 : index
    %c0_113 = arith.constant 0 : index
    %312 = vector.load %arg3[%c72_112, %c0_113] : memref<288x32xf32, #tpu.memory_space<vmem>>, vector<1x1xf32>
    %313 = arith.addf %311, %312 : vector<1x1xf32>
    %cst_114 = arith.constant 0.000000e+00 : f32
    %314 = vector.broadcast %cst_114 : f32 to vector<1x1xf32>
    %315 = arith.subf %314, %313 : vector<1x1xf32>
    %316 = math.exp %315 : vector<1x1xf32>
    %cst_115 = arith.constant 1.000000e+00 : f32
    %317 = vector.broadcast %cst_115 : f32 to vector<1x1xf32>
    %318 = arith.addf %317, %316 : vector<1x1xf32>
    %cst_116 = arith.constant 1.000000e+00 : f32
    %319 = vector.broadcast %cst_116 : f32 to vector<1x1xf32>
    %320 = arith.divf %319, %318 : vector<1x1xf32>
    %c1_117 = arith.constant 1 : index
    %c0_118 = arith.constant 0 : index
    %c0_119 = arith.constant 0 : index
    %321 = vector.load %arg4[%c1_117, %c0_118, %c0_119] : memref<2x1x1xf32, #tpu.memory_space<vmem>>, vector<1x1x1xf32>
    %322 = vector.shape_cast %321 : vector<1x1x1xf32> to vector<1x1xf32>
    %323 = vector.shape_cast %320 : vector<1x1xf32> to vector<1x1x1xf32>
    tpu.vector_store %arg4[%c1_117, %c0_118, %c0_119], %323 {strides = array<i32>} : memref<2x1x1xf32, #tpu.memory_space<vmem>>, vector<1x1x1xf32>,
    return
  }
  func.func @transform_0(%arg0: i32) -> (i32, i32, i32) {
    %c0_i32 = arith.constant 0 : i32
    %c0_i32_0 = arith.constant 0 : i32
    %c0_i32_1 = arith.constant 0 : i32
    return %arg0, %c0_i32, %c0_i32_0 : i32, i32, i32
  }
  func.func @transform_1(%arg0: i32) -> (i32, i32) {
    %c0_i32 = arith.constant 0 : i32
    %c0_i32_0 = arith.constant 0 : i32
    %c0_i32_1 = arith.constant 0 : i32
    return %c0_i32, %c0_i32_0 : i32, i32
  }
  func.func @transform_2(%arg0: i32) -> (i32, i32) {
    %c0_i32 = arith.constant 0 : i32
    %c0_i32_0 = arith.constant 0 : i32
    %c0_i32_1 = arith.constant 0 : i32
    return %c0_i32, %c0_i32_0 : i32, i32
  }
  func.func @transform_3(%arg0: i32) -> (i32, i32, i32) {
    %c0_i32 = arith.constant 0 : i32
    %c0_i32_0 = arith.constant 0 : i32
    %c0_i32_1 = arith.constant 0 : i32
    return %arg0, %c0_i32, %c0_i32_0 : i32, i32, i32
  }
}

</mosaic_0001>

<bundles_post_ra>
// kernel: tpu_custom_call.1
= control target key start
LH: loop header
LB: loop body
LE: loop exit
PB: predicated region body
PF: predicated region fallthrough
CT: control target
= control target key end

     0   :  { %vm165_vm0 = vcmask 1043456   ;;  %vm15744_vm1 = vcmask 457728   ;;  %s9848_s10 = smov 8   ;;  %s9849_s11 = smov 16   ;;  %s15740_s1 = inlined_call_operand.vmem [shape: bf16[416,64], index: 1, kind: input, shape index: {}]   ;;  %s15741_s2 = inlined_call_operand.vmem [shape: f32[288,32], index: 2, kind: input, shape index: {}]   ;;  %s15742_s0 = inlined_call_operand.vmem [shape: f32[2,160,56], index: 0, kind: input, shape index: {}]   ;;  %s15743_s3 = inlined_call_operand.vmem [shape: f32[2,1,1], index: 3, kind: output, shape index: {}]  }
   0x1   :  { %v82_v0 = vld [vmem:[%s15740_s1 + $0x18] sm:$0xf]  ;;  %v7646_v4 = vld [vmem:[%s15740_s1 + $0x10] sm:$0xff]  ;;  %v7645_v5 = vld [vmem:[%s15740_s1 + $0x8] sm:$0xff]  ;;  %s9850_s12 = smov 24   ;;  %s9851_s13 = smov 32  }
   0x2   :  { %v96_v1 = vunpack.c.l.b16 %v82_v0  ;;  %v7644_v6 = vld [vmem:[%s15740_s1] sm:$0xff]  ;;  %v16_v8 = vld [vmem:[%s15742_s0 + $0x8] sm:$0xff]  ;;  %v17_v10 = vld [vmem:[%s15742_s0 + $0x10] sm:$0xff]  ;;  %s9852_s14 = smov 40   ;;  %s9853_s15 = smov 48  }
   0x3   :  { %v15_v7 = vld [vmem:[%s15742_s0] sm:$0xff]  ;;  %v18_v11 = vld [vmem:[%s15742_s0 + $0x18] sm:$0xff]  ;;  %v20_v14 = vld [vmem:[%s15742_s0 + $0x28] sm:$0xff]  ;;  %s9854_s24 = smov 120   ;;  %s9855_s6 = smov 112  }
   0x4   :  { %v100_v2 = vpack.c.b16 %v96_v1, %v96_v1  ;;  %v56_v9 = vpack.c.bf16 %v16_v8, %v15_v7  ;;  %v57_v12 = vpack.c.bf16 %v18_v11, %v17_v10  ;;  %v19_v13 = vld [vmem:[%s15742_s0 + $0x20] sm:$0xff]  ;;  %v21_v16 = vld [vmem:[%s15742_s0 + $0x30] sm:$0xff]  ;;  %v22_v17 = vld [vmem:[%s15742_s0 + $0x38] sm:$0xff]  ;;  %s9856_s18 = smov 96   ;;  %s9857_s19 = smov 80  }
   0x5   :  { %v58_v15 = vpack.c.bf16 %v20_v14, %v19_v13  ;;  %v59_v18 = vpack.c.bf16 %v22_v17, %v21_v16  ;;  %v23_v19 = vld [vmem:[%s15742_s0 + $0x40] sm:$0xff]  ;;  %v24_v20 = vld [vmem:[%s15742_s0 + $0x48] sm:$0xff]  ;;  %v25_v22 = vld [vmem:[%s15742_s0 + $0x50] sm:$0xff]  ;;  %s9858_s20 = smov 64   ;;  %s9860_s26 = smov 56  }
   0x6   :  { %v167_v3 = vsel %vm165_vm0, %v100_v2, 0  ;;  %v60_v21 = vpack.c.bf16 %v24_v20, %v23_v19  ;;  %v26_v23 = vld [vmem:[%s15742_s0 + $0x58] sm:$0xff]  ;;  %v27_v25 = vld [vmem:[%s15742_s0 + $0x60] sm:$0xff]  ;;  %v28_v26 = vld [vmem:[%s15742_s0 + $0x68] sm:$0xff]  ;;  %s9861_s27 = smov 72   ;;  %s9863_s28 = smov 104  }
   0x7   :  { %173 = vmatpush.bf16.msra.mxu0 %v167_v3  ;;  %7687 = vmatpush.bf16.msra.mxu2 %v167_v3  ;;  %v61_v24 = vpack.c.bf16 %v26_v23, %v25_v22  ;;  %v62_v27 = vpack.c.bf16 %v28_v26, %v27_v25  ;;  %v29_v28 = vld [vmem:[%s15742_s0 + $0x70] sm:$0xff]  ;;  %v30_v29 = vld [vmem:[%s15742_s0 + $0x78] sm:$0xff]  ;;  %v31_v31 = vld [vmem:[%s15742_s0 + $0x80] sm:$0xff] }
   0x8   :  { %v63_v30 = vpack.c.bf16 %v30_v29, %v29_v28  ;;  %v32_v32 = vld [vmem:[%s15742_s0 + $0x88] sm:$0xff]  ;;  %v33_v38 = vld [vmem:[%s15742_s0 + $0x90] sm:$0xff]  ;;  %v34_v39 = vld [vmem:[%s15742_s0 + $0x98] sm:$0xff] }
   0x9   :  { %v64_v33 = vpack.c.bf16 %v32_v32, %v31_v31  ;;  %v65_v40 = vpack.c.bf16 %v34_v39, %v33_v38  ;;  %v9972_v50 = vld [vmem:[%s15741_s2] ss:$0 sm:$0xff]  ;;  %v9978_v55 = vld [vmem:[%s15741_s2 + $0x8] ss:$0 sm:$0xff] }
   0xb   :  { %174 = vmatpush.bf16.msra.mxu0 %v7646_v4  ;;  %7688 = vmatpush.bf16.msra.mxu2 %v7646_v4 }
   0xf   :  { %175 = vmatpush.bf16.msra.mxu0 %v7645_v5  ;;  %7689 = vmatpush.bf16.msra.mxu2 %v7645_v5 }
  0x13   :  { %176 = vmatpush.bf16.msra.mxu0 %v7644_v6  ;;  %7690 = vmatpush.bf16.msra.mxu2 %v7644_v6 }
  0x16   :  { %7273 = vmatmul.msk.bf16.vlgmr.msra.gmra.mxu0 %vm15744_vm1, %v56_v9 }
  0x26   :  { %7274 = vmatmul.msk.bf16.gmra.mxu0 %vm15744_vm1, %v57_v12 }
  0x36   :  { %7275 = vmatmul.msk.bf16.gmra.mxu0 %vm15744_vm1, %v58_v15 }
  0x46   :  { %7276 = vmatmul.msk.bf16.gmra.mxu0 %vm15744_vm1, %v59_v18 }
  0x56   :  { %7277 = vmatmul.msk.bf16.gmra.mxu0 %vm15744_vm1, %v60_v21 }
  0x66   :  { %7278 = vmatmul.msk.bf16.gmra.mxu0 %vm15744_vm1, %v61_v24 }
  0x76   :  { %7279 = vmatmul.msk.bf16.gmra.mxu0 %vm15744_vm1, %v62_v27 }
  0x86   :  { %7280 = vmatmul.msk.bf16.gmra.mxu0 %vm15744_vm1, %v63_v30 }
  0x93   :  { %v9959_v34 = vpop.f32.mrf.mxu0 }
  0x96   :  { %7281 = vmatmul.msk.bf16.gmra.mxu0 %vm15744_vm1, %v64_v33 }
  0x9b   :  { %v180_v35 = vpop.f32.mrf.mxu0 }
  0x9c   :  { %v319_v36 = vmin.f32 %v180_v35, 0.0  ;;  %vm279_vm2 = vcmp.gt.f32.partialorder %v180_v35, 0.0 }
  0x9e   :  { %v360_v37 = vmul.f32 1.442695, %v319_v36 }
  0xa0   :  { %9534 = vpow2.f32 %v360_v37 }
  0xa3   :  { %v183_v41 = vpop.f32.mrf.mxu0 }
  0xa4   :  { %v320_v42 = vmin.f32 %v183_v41, 0.0  ;;  %vm280_vm3 = vcmp.gt.f32.partialorder %v183_v41, 0.0 }
  0xa6   :  { %v9535_v43 = vpop.eup %9534  ;;  %v362_v44 = vmul.f32 1.442695, %v320_v42  ;;  %7282 = vmatmul.msk.bf16.gmra.mxu0 %vm15744_vm1, %v65_v40 }
  0xa7   :  { %v7294_v45 = vadd.f32 -1.0, %v9535_v43 }
  0xa8   :  { %9536 = vpow2.f32 %v362_v44 }
  0xa9   :  { %v479_v48 = vsel %vm279_vm2, %v180_v35, %v7294_v45 }
  0xaa   :  { %v521_v53 = vmul.f32 %v9972_v50, %v479_v48 }
  0xab   :  { %v185_v46 = vpop.f32.mrf.mxu0 }
  0xac   :  { %v321_v47 = vmin.f32 %v185_v46, 0.0  ;;  %v9982_v59 = vadd.f32 %v9978_v55, %v521_v53  ;;  %vm281_vm4 = vcmp.gt.f32.partialorder %v185_v46, 0.0 }
  0xae   :  { %v9537_v49 = vpop.eup %9536  ;;  %v364_v51 = vmul.f32 1.442695, %v321_v47 }
  0xaf   :  { %v7295_v52 = vadd.f32 -1.0, %v9537_v49 }
  0xb0   :  { %9538 = vpow2.f32 %v364_v51 }
  0xb1   :  { %v480_v54 = vsel %vm280_vm3, %v183_v41, %v7295_v52 }
  0xb2   :  { %v522_v56 = vmul.f32 %v9972_v50, %v480_v54 }
  0xb3   :  { %v188_v57 = vpop.f32.mrf.mxu0 }
  0xb4   :  { %v322_v58 = vmin.f32 %v188_v57, 0.0  ;;  %v9985_v60 = vadd.f32 %v9978_v55, %v522_v56  ;;  %vm282_vm5 = vcmp.gt.f32.partialorder %v188_v57, 0.0 }
  0xb6   :  { %v9539_v61 = vpop.eup %9538  ;;  %v366_v62 = vmul.f32 1.442695, %v322_v58  ;;  %v7708_v63 = vpack.i.bf16 %v9985_v60, %v9982_v59 }
  0xb7   :  { %v7296_v0 = vadd.f32 -1.0, %v9539_v61 }
  0xb8   :  { %9540 = vpow2.f32 %v366_v62  ;;  %7709 = vrot.lane.b32.xlu0 %v7708_v63, %s9848_s10 }
  0xb9   :  { %v481_v1 = vsel %vm281_vm4, %v185_v46, %v7296_v0 }
  0xba   :  { %v523_v2 = vmul.f32 %v9972_v50, %v481_v1 }
  0xbb   :  { %v190_v3 = vpop.f32.mrf.mxu0 }
  0xbc   :  { %v9992_v4 = vadd.f32 %v9978_v55, %v523_v2  ;;  %v323_v5 = vmin.f32 %v190_v3, 0.0  ;;  %vm283_vm6 = vcmp.gt.f32.partialorder %v190_v3, 0.0 }
  0xbe   :  { %v9541_v6 = vpop.eup %9540  ;;  %v368_v7 = vmul.f32 1.442695, %v323_v5  ;;  %v7713_v8 = vpack.i.bf16 %v9992_v4, %v9985_v60 }
  0xbf   :  { %v7297_v9 = vadd.f32 -1.0, %v9541_v6 }
  0xc0   :  { %9542 = vpow2.f32 %v368_v7  ;;  %7714 = vrot.lane.b32.xlu1 %v7713_v8, %s9849_s11 }
  0xc1   :  { %v482_v10 = vsel %vm282_vm5, %v188_v57, %v7297_v9 }
  0xc2   :  { %v524_v11 = vmul.f32 %v9972_v50, %v482_v10 }
  0xc3   :  { %v193_v12 = vpop.f32.mrf.mxu0 }
  0xc4   :  { %v9999_v13 = vadd.f32 %v9978_v55, %v524_v11  ;;  %v324_v14 = vmin.f32 %v193_v12, 0.0  ;;  %vm284_vm7 = vcmp.gt.f32.partialorder %v193_v12, 0.0 }
  0xc6   :  { %v9543_v15 = vpop.eup %9542  ;;  %v370_v16 = vmul.f32 1.442695, %v324_v14  ;;  %v7723_v17 = vpack.i.bf16 %v9999_v13, %v9992_v4 }
  0xc7   :  { %v7298_v18 = vadd.f32 -1.0, %v9543_v15 }
  0xc8   :  { %9544 = vpow2.f32 %v370_v16  ;;  %7724 = vrot.lane.b32.xlu2 %v7723_v17, %s9850_s12  ;;  %7719 = vrot.lane.b32.xlu0 %v7723_v17, %s9848_s10 }
  0xc9   :  { %v483_v19 = vsel %vm283_vm6, %v190_v3, %v7298_v18 }
  0xca   :  { %v525_v20 = vmul.f32 %v9972_v50, %v483_v19 }
  0xcb   :  { %v195_v21 = vpop.f32.mrf.mxu0 }
  0xcc   :  { %v10007_v22 = vadd.f32 %v9978_v55, %v525_v20  ;;  %v325_v23 = vmin.f32 %v195_v21, 0.0  ;;  %vm285_vm8 = vcmp.gt.f32.partialorder %v195_v21, 0.0 }
  0xce   :  { %v9545_v24 = vpop.eup %9544  ;;  %v372_v25 = vmul.f32 1.442695, %v325_v23  ;;  %v7733_v26 = vpack.i.bf16 %v10007_v22, %v9999_v13 }
  0xcf   :  { %v7299_v27 = vadd.f32 -1.0, %v9545_v24 }
  0xd0   :  { %9546 = vpow2.f32 %v372_v25  ;;  %7734 = vrot.lane.b32.xlu0 %v7733_v26, %s9851_s13  ;;  %7729 = vrot.lane.b32.xlu2 %v7733_v26, %s9849_s11 }
  0xd1   :  { %v484_v28 = vsel %vm284_vm7, %v193_v12, %v7299_v27  ;;  %vm278_vm7 = vcmp.gt.f32.partialorder %v9959_v34, 0.0 }
  0xd2   :  { %v526_v29 = vmul.f32 %v9972_v50, %v484_v28 }
  0xd3   :  { %v198_v30 = vpop.f32.mrf.mxu0 }
  0xd4   :  { %v10015_v31 = vadd.f32 %v9978_v55, %v526_v29  ;;  %v326_v32 = vmin.f32 %v198_v30, 0.0  ;;  %vm286_vm9 = vcmp.gt.f32.partialorder %v198_v30, 0.0 }
  0xd6   :  { %v9547_v33 = vpop.eup %9546  ;;  %v374_v35 = vmul.f32 1.442695, %v326_v32  ;;  %v7743_v36 = vpack.i.bf16 %v10015_v31, %v10007_v22 }
  0xd7   :  { %v7300_v37 = vadd.f32 -1.0, %v9547_v33 }
  0xd8   :  { %9548 = vpow2.f32 %v374_v35  ;;  %7744 = vrot.lane.b32.xlu0 %v7743_v36, %s9850_s12  ;;  %7739 = vrot.lane.b32.xlu1 %v7743_v36, %s9848_s10 }
  0xd9   :  { %v485_v38 = vsel %vm285_vm8, %v195_v21, %v7300_v37  ;;  %vm15825_vm8 = vcmask 64512  }
  0xda   :  { %v527_v39 = vmul.f32 %v9972_v50, %v485_v38 }
  0xdb   :  { %v200_v40 = vpop.f32.mrf.mxu0 }
  0xdc   :  { %v10023_v41 = vadd.f32 %v9978_v55, %v527_v39  ;;  %v327_v42 = vmin.f32 %v200_v40, 0.0  ;;  %vm287_vm10 = vcmp.gt.f32.partialorder %v200_v40, 0.0 }
  0xde   :  { %v9549_v43 = vpop.eup %9548  ;;  %v376_v44 = vmul.f32 1.442695, %v327_v42  ;;  %v7763_v45 = vpack.i.bf16 %v10023_v41, %v10015_v31 }
  0xdf   :  { %v7301_v46 = vadd.f32 -1.0, %v9549_v43 }
  0xe0   :  { %9550 = vpow2.f32 %v376_v44  ;;  %7749 = vrot.lane.b32.xlu1 %v7743_v36, %s9852_s14  ;;  %7764 = vrot.lane.b32.xlu2 %v7763_v45, %s9853_s15 }
  0xe1   :  { %v486_v47 = vsel %vm286_vm9, %v198_v30, %v7301_v46  ;;  %7754 = vrot.lane.b32.xlu0 %v7763_v45, %s9849_s11  ;;  %vm15823_vm9 = vcmask 130048  }
  0xe2   :  { %v528_v48 = vmul.f32 %v9972_v50, %v486_v47 }
  0xe3   :  { %v203_v49 = vpop.f32.mrf.mxu0 }
  0xe4   :  { %v10032_v51 = vadd.f32 %v9978_v55, %v528_v48  ;;  %v328_v52 = vmin.f32 %v203_v49, 0.0  ;;  %vm288_vm11 = vcmp.gt.f32.partialorder %v203_v49, 0.0 }
  0xe6   :  { %v9551_v53 = vpop.eup %9550  ;;  %v378_v54 = vmul.f32 1.442695, %v328_v52  ;;  %v7778_v56 = vpack.i.bf16 %v10032_v51, %v10023_v41 }
  0xe7   :  { %v7302_v57 = vadd.f32 -1.0, %v9551_v53 }
  0xe8   :  { %9552 = vpow2.f32 %v378_v54  ;;  %7759 = vrot.lane.b32.xlu1 %v7763_v45, %s9851_s13  ;;  %7779 = vrot.lane.b32.xlu2 %v7778_v56, %s9852_s14 }
  0xe9   :  { %v487_v58 = vsel %vm287_vm10, %v200_v40, %v7302_v57  ;;  %vm15824_vm10 = vcmask 195584  }
  0xea   :  { %v529_v61 = vmul.f32 %v9972_v50, %v487_v58 }
  0xeb   :  { %v205_v62 = vpop.f32.mrf.mxu0 }
  0xec   :  { %v10040_v63 = vadd.f32 %v9978_v55, %v529_v61  ;;  %v329_v0 = vmin.f32 %v205_v62, 0.0  ;;  %vm289_vm12 = vcmp.gt.f32.partialorder %v205_v62, 0.0 }
  0xee   :  { %v9553_v1 = vpop.eup %9552  ;;  %v380_v2 = vmul.f32 1.442695, %v329_v0  ;;  %v7793_v3 = vpack.i.bf16 %v10040_v63, %v10032_v51 }
  0xef   :  { %v7303_v5 = vadd.f32 -1.0, %v9553_v1 }
  0xf0   :  { %9554 = vpow2.f32 %v380_v2  ;;  %7769 = vrot.lane.b32.xlu1 %v7778_v56, %s9848_s10  ;;  %7794 = vrot.lane.b32.xlu0 %v7793_v3, %s9853_s15 }
  0xf1   :  { %v488_v6 = vsel %vm288_vm11, %v203_v49, %v7303_v5  ;;  %7789 = vrot.lane.b32.xlu2 %v7793_v3, %s9851_s13  ;;  %vm918_vm11 = vcmask 261120  }
  0xf2   :  { %v530_v7 = vmul.f32 %v9972_v50, %v488_v6 }
  0xf3   :  { %v208_v8 = vpop.f32.mrf.mxu0 }
  0xf4   :  { %v10049_v9 = vadd.f32 %v9978_v55, %v530_v7  ;;  %v330_v10 = vmin.f32 %v208_v8, 0.0  ;;  %vm290_vm13 = vcmp.gt.f32.partialorder %v208_v8, 0.0 }
  0xf6   :  { %v9555_v11 = vpop.eup %9554  ;;  %v382_v12 = vmul.f32 1.442695, %v330_v10  ;;  %v7808_v14 = vpack.i.bf16 %v10049_v9, %v10040_v63 }
  0xf7   :  { %v7304_v15 = vadd.f32 -1.0, %v9555_v11 }
  0xf8   :  { %9556 = vpow2.f32 %v382_v12  ;;  %7774 = vrot.lane.b32.xlu1 %v7778_v56, %s9850_s12  ;;  %7809 = vrot.lane.b32.xlu0 %v7808_v14, %s9852_s14 }
  0xf9   :  { %v489_v16 = vsel %vm289_vm12, %v205_v62, %v7304_v15  ;;  %7799 = vrot.lane.b32.xlu2 %v7808_v14, %s9848_s10  ;;  %v976_v15 = vld [vmem:[%s15740_s1 + $0x38] sm:$0xf]  ;;  %vm15745_vm12 = vcmask 326656  }
  0xfa   :  { %v531_v17 = vmul.f32 %v9972_v50, %v489_v16 }
  0xfb   :  { %v210_v18 = vpop.f32.mrf.mxu0 }
  0xfc   :  { %v10058_v19 = vadd.f32 %v9978_v55, %v531_v17  ;;  %v331_v20 = vmin.f32 %v210_v18, 0.0  ;;  %vm291_vm14 = vcmp.gt.f32.partialorder %v210_v18, 0.0 }
  0xfe   :  { %v9557_v21 = vpop.eup %9556  ;;  %v384_v23 = vmul.f32 1.442695, %v331_v20  ;;  %v7818_v24 = vpack.i.bf16 %v10058_v19, %v10049_v9  ;;  %v990_v20 = vunpack.c.l.b16 %v976_v15 }
  0xff   :  { %v7305_v25 = vadd.f32 -1.0, %v9557_v21 }
 0x100   :  { %9558 = vpow2.f32 %v384_v23  ;;  %7784 = vrot.lane.b32.xlu1 %v7793_v3, %s9849_s11  ;;  %7819 = vrot.lane.b32.xlu0 %v7818_v24, %s9851_s13 }
 0x101   :  { %v490_v26 = vsel %vm290_vm13, %v208_v8, %v7305_v25  ;;  %7804 = vrot.lane.b32.xlu2 %v7808_v14, %s9850_s12  ;;  %vm948_vm13 = vcmask 392192  }
 0x102   :  { %v532_v27 = vmul.f32 %v9972_v50, %v490_v26 }
 0x103   :  { %v213_v28 = vpop.f32.mrf.mxu0 }
 0x104   :  { %v10067_v29 = vadd.f32 %v9978_v55, %v532_v27  ;;  %v332_v30 = vmin.f32 %v213_v28, 0.0  ;;  %vm292_vm15 = vcmp.gt.f32.partialorder %v213_v28, 0.0 }
 0x106   :  { %v9559_v32 = vpop.eup %9558  ;;  %v386_v33 = vmul.f32 1.442695, %v332_v30  ;;  %v7833_v35 = vpack.i.bf16 %v10067_v29, %v10058_v19 }
 0x107   :  { %v7306_v36 = vadd.f32 -1.0, %v9559_v32 }
 0x108   :  { %9560 = vpow2.f32 %v386_v33  ;;  %7824 = vrot.lane.b32.xlu1 %v7818_v24, %s9853_s15  ;;  %7834 = vrot.lane.b32.xlu0 %v7833_v35, %s9850_s12  ;;  %v7649_v33 = vld [vmem:[%s15740_s1 + $0x30] sm:$0xff] }
 0x109   :  { %v491_v37 = vsel %vm291_vm14, %v210_v18, %v7306_v36  ;;  %7814 = vrot.lane.b32.xlu2 %v7818_v24, %s9849_s11  ;;  %v994_v24 = vpack.c.b16 %v990_v20, %v990_v20  ;;  %vm15822_vm14 = vcmask 1046528  }
 0x10a   :  { %v533_v38 = vmul.f32 %v9972_v50, %v491_v37 }
 0x10b   :  { %v215_v39 = vpop.f32.mrf.mxu0  ;;  %v1020_v27 = vsel %vm165_vm0, %v994_v24, 0 }
 0x10c   :  { %v10076_v40 = vadd.f32 %v9978_v55, %v533_v38  ;;  %v333_v42 = vmin.f32 %v215_v39, 0.0  ;;  %vm293_vm2 = vcmp.gt.f32.partialorder %v215_v39, 0.0  ;;  %1026 = vmatpush.bf16.msra.mxu1 %v1020_v27 }
 0x10e   :  { %v9561_v43 = vpop.eup %9560  ;;  %v388_v44 = vmul.f32 1.442695, %v333_v42  ;;  %v7843_v45 = vpack.i.bf16 %v10076_v40, %v10067_v29  ;;  %v318_v42 = vmin.f32 %v9959_v34, 0.0 }
 0x10f   :  { %v7307_v46 = vadd.f32 -1.0, %v9561_v43 }
 0x110   :  { %9562 = vpow2.f32 %v388_v44  ;;  %7839 = vrot.lane.b32.xlu1 %v7833_v35, %s9852_s14  ;;  %7844 = vrot.lane.b32.xlu0 %v7843_v45, %s9849_s11 }
 0x111   :  { %v492_v47 = vsel %vm292_vm15, %v213_v28, %v7307_v46  ;;  %7829 = vrot.lane.b32.xlu2 %v7833_v35, %s9848_s10  ;;  %1027 = vmatpush.bf16.msra.mxu1 %v7649_v33  ;;  %vm1178_vm15 = vcmask 1045504  }
 0x112   :  { %v534_v48 = vmul.f32 %v9972_v50, %v492_v47 }
 0x113   :  { %v218_v49 = vpop.f32.mrf.mxu0 }
 0x114   :  { %v576_v52 = vadd.f32 %v9978_v55, %v534_v48  ;;  %v334_v53 = vmin.f32 %v218_v49, 0.0  ;;  %vm294_vm3 = vcmp.gt.f32.partialorder %v218_v49, 0.0  ;;  %v358_v48 = vmul.f32 1.442695, %v318_v42 }
 0x116   :  { %v9563_v54 = vpop.eup %9562  ;;  %v390_v56 = vmul.f32 1.442695, %v334_v53  ;;  %v7863_v57 = vpack.i.bf16 %v576_v52, %v10076_v40 }
 0x117   :  { %v7308_v58 = vadd.f32 -1.0, %v9563_v54 }
 0x118   :  { %9564 = vpow2.f32 %v390_v56  ;;  %7849 = vrot.lane.b32.xlu1 %v7843_v45, %s9851_s13  ;;  %7854 = vrot.lane.b32.xlu0 %v7863_v57, %s9848_s10 }
 0x119   :  { %v493_v61 = vsel %vm293_vm2, %v215_v39, %v7308_v58  ;;  %7864 = vrot.lane.b32.xlu2 %v7863_v57, %s9852_s14  ;;  %v7648_v39 = vld [vmem:[%s15740_s1 + $0x28] sm:$0xff] }
 0x11a   :  { %v535_v62 = vmul.f32 %v9972_v50, %v493_v61  ;;  %1028 = vmatpush.bf16.msra.mxu1 %v7648_v39 }
 0x11b   :  { %v220_v0 = vpop.f32.mrf.mxu0 }
 0x11c   :  { %v577_v1 = vadd.f32 %v9978_v55, %v535_v62  ;;  %v335_v2 = vmin.f32 %v220_v0, 0.0  ;;  %vm295_vm4 = vcmp.gt.f32.partialorder %v220_v0, 0.0 }
 0x11e   :  { %v9565_v3 = vpop.eup %9564  ;;  %v392_v5 = vmul.f32 1.442695, %v335_v2  ;;  %v7873_v6 = vpack.i.bf16 %v577_v1, %v576_v52 }
 0x11f   :  { %v7309_v7 = vadd.f32 -1.0, %v9565_v3 }
 0x120   :  { %9566 = vpow2.f32 %v392_v5  ;;  %7859 = vrot.lane.b32.xlu1 %v7863_v57, %s9850_s12 }
 0x121   :  { %v494_v8 = vsel %vm294_vm3, %v218_v49, %v7309_v7  ;;  %7874 = vrot.lane.b32.xlu2 %v7873_v6, %s9851_s13  ;;  %v7647_v49 = vld [vmem:[%s15740_s1 + $0x20] sm:$0xff] }
 0x122   :  { %v536_v10 = vmul.f32 %v9972_v50, %v494_v8  ;;  %v10098_v23 = vpop.permute.xlu2 %7724  ;;  %1029 = vmatpush.bf16.msra.mxu1 %v7647_v49 }
 0x123   :  { %v223_v11 = vpop.f32.mrf.mxu0  ;;  %v7726_v27 = vunpack.i.l.bf16 %v10098_v23 }
 0x124   :  { %v578_v12 = vadd.f32 %v9978_v55, %v536_v10  ;;  %v336_v14 = vmin.f32 %v223_v11, 0.0  ;;  %vm296_vm5 = vcmp.gt.f32.partialorder %v223_v11, 0.0 }
 0x126   :  { %v9567_v16 = vpop.eup %9566  ;;  %v394_v17 = vmul.f32 1.442695, %v336_v14  ;;  %v7888_v18 = vpack.i.bf16 %v578_v12, %v577_v1 }
 0x127   :  { %v7310_v21 = vadd.f32 -1.0, %v9567_v16 }
 0x128   :  { %9568 = vpow2.f32 %v394_v17  ;;  %7869 = vrot.lane.b32.xlu1 %v7873_v6, %s9849_s11  ;;  %7889 = vrot.lane.b32.xlu0 %v7888_v18, %s9852_s14 }
 0x129   :  { %v495_v25 = vsel %vm295_vm4, %v220_v0, %v7310_v21  ;;  %7879 = vrot.lane.b32.xlu2 %v7843_v45, %s9853_s15 }
 0x12a   :  { %v537_v26 = vmul.f32 %v9972_v50, %v495_v25  ;;  %v10116_v45 = vpop.permute.xlu2 %7729  ;;  %v7710_v46 = vpop.permute.xlu0 %7709 }
 0x12b   :  { %v225_v28 = vpop.f32.mrf.mxu0 }
 0x12c   :  { %v337_v30 = vmin.f32 %v225_v28, 0.0  ;;  %v579_v32 = vadd.f32 %v9978_v55, %v537_v26  ;;  %vm297_vm6 = vcmp.gt.f32.partialorder %v225_v28, 0.0  ;;  %v7727_v26 = vunpack.i.h.bf16 %v10098_v23 }
 0x12e   :  { %v9569_v35 = vpop.eup %9568  ;;  %v396_v36 = vmul.f32 1.442695, %v337_v30  ;;  %v7893_v37 = vpack.i.bf16 %v579_v32, %v578_v12  ;;  %v7711_v12 = vunpack.i.l.bf16 %v7710_v46 }
 0x12f   :  { %v7311_v38 = vadd.f32 -1.0, %v9569_v35 }
 0x130   :  { %9570 = vpow2.f32 %v396_v36  ;;  %7894 = vrot.lane.b32.xlu0 %v7893_v37, %s9851_s13 }
 0x131   :  { %v496_v43 = vsel %vm296_vm5, %v223_v11, %v7311_v38  ;;  %7884 = vrot.lane.b32.xlu2 %v7888_v18, %s9850_s12  ;;  %9572 = vpow2.f32 %v358_v48  ;;  %v7712_v11 = vunpack.i.h.bf16 %v7710_v46 }
 0x132   :  { %v538_v44 = vmul.f32 %v9972_v50, %v496_v43  ;;  %v7715_v3 = vpop.permute.xlu1 %7714 }
 0x133   :  { %v7717_v15 = vunpack.i.h.bf16 %v7715_v3  ;;  %v7716_v16 = vunpack.i.l.bf16 %v7715_v3  ;;  %v875_v18 = vsel %vm15825_vm8, %v9982_v59, %v7712_v11 }
 0x134   :  { %v580_v47 = vadd.f32 %v9978_v55, %v538_v44 }
 0x136   :  { %v9571_v52 = vpop.eup %9570  ;;  %v7903_v53 = vpack.i.bf16 %v580_v47, %v579_v32 }
 0x137   :  { %v7312_v54 = vadd.f32 -1.0, %v9571_v52  ;;  %v9573_v1 = vpop.eup %9572 }
 0x138   :  { %7899 = vrot.lane.b32.xlu0 %v7873_v6, %s9853_s15  ;;  %7904 = vrot.lane.b32.xlu1 %v7903_v53, %s9852_s14  ;;  %v7293_v2 = vadd.f32 -1.0, %v9573_v1 }
 0x139   :  { %v497_v56 = vsel %vm297_vm6, %v225_v28, %v7312_v54 }
 0x13a   :  { %v539_v57 = vmul.f32 %v9972_v50, %v497_v56  ;;  %v7765_v58 = vpop.permute.xlu2 %7764  ;;  %v7720_v61 = vpop.permute.xlu0 %7719  ;;  %v478_v6 = vsel %vm278_vm7, %v9959_v34, %v7293_v2 }
 0x13b   :  { %v520_v8 = vmul.f32 %v9972_v50, %v478_v6  ;;  %v890_v50 = vsel %vm15823_vm9, %v875_v18, %v7717_v15  ;;  %v7766_v38 = vunpack.i.l.bf16 %v7765_v58  ;;  %v7722_v44 = vunpack.i.h.bf16 %v7720_v61 }
 0x13c   :  { %v581_v62 = vadd.f32 %v9978_v55, %v539_v57  ;;  %v905_v59 = vsel %vm15824_vm10, %v890_v50, %v7727_v26  ;;  %v7721_v46 = vunpack.i.l.bf16 %v7720_v61 }
 0x13d   :  { %v562_v17 = vadd.f32 %v9978_v55, %v520_v8  ;;  %v877_v53 = vsel %vm15825_vm8, %v9992_v4, %v7722_v44 }
 0x13e   :  { %v7913_v0 = vpack.i.bf16 %v581_v62, %v580_v47  ;;  %v876_v54 = vsel %vm15825_vm8, %v9985_v60, %v7721_v46  ;;  %v7731_v62 = vunpack.i.l.bf16 %v10116_v45 }
 0x13f   :  { %v874_v34 = vsel %vm15825_vm8, %v562_v17, %v7711_v12 }
 0x140   :  { %7909 = vrot.lane.b32.xlu1 %v7893_v37, %s9853_s15  ;;  %7914 = vrot.lane.b32.xlu2 %v7913_v0, %s9853_s15  ;;  %v889_v20 = vsel %vm15823_vm9, %v874_v34, %v7716_v16  ;;  %v7767_v37 = vunpack.i.h.bf16 %v7765_v58  ;;  %v7732_v58 = vunpack.i.h.bf16 %v10116_v45  ;;  %v891_v1 = vsel %vm15823_vm9, %v876_v54, %v7731_v62 }
 0x141   :  { %v904_v28 = vsel %vm15824_vm10, %v889_v20, %v7726_v27 }
 0x142   :  { %v10128_v5 = vpop.permute.xlu2 %7779  ;;  %v7735_v7 = vpop.permute.xlu0 %7734  ;;  %v892_v2 = vsel %vm15823_vm9, %v877_v53, %v7732_v58 }
 0x143   :  { %v7737_v21 = vunpack.i.h.bf16 %v7735_v7  ;;  %v7736_v24 = vunpack.i.l.bf16 %v7735_v7  ;;  %v7782_v7 = vunpack.i.h.bf16 %v10128_v5  ;;  %v7781_v8 = vunpack.i.l.bf16 %v10128_v5 }
 0x145   :  { %v920_v35 = vsel %vm918_vm11, %v905_v59, %v7737_v21  ;;  %v919_v36 = vsel %vm918_vm11, %v904_v28, %v7736_v24 }
 0x14a   :  { %v10133_v10 = vpop.permute.xlu1 %7739  ;;  %v7745_v25 = vpop.permute.xlu0 %7744 }
 0x14b   :  { %v10135_v14 = vpop.permute.xlu2 %7789  ;;  %v7747_v56 = vunpack.i.h.bf16 %v7745_v25  ;;  %v7746_v57 = vunpack.i.l.bf16 %v7745_v25  ;;  %v7742_v25 = vunpack.i.h.bf16 %v10133_v10  ;;  %v7741_v26 = vunpack.i.l.bf16 %v10133_v10 }
 0x14d   :  { %v907_v3 = vsel %vm15824_vm10, %v892_v2, %v7747_v56  ;;  %v906_v6 = vsel %vm15824_vm10, %v891_v1, %v7746_v57 }
 0x152   :  { %v7750_v55 = vpop.permute.xlu1 %7749 }
 0x153   :  { %v7752_v30 = vunpack.i.h.bf16 %v7750_v55  ;;  %v7751_v32 = vunpack.i.l.bf16 %v7750_v55  ;;  %v10147_v33 = vpop.permute.xlu2 %7799  ;;  %v7755_v48 = vpop.permute.xlu0 %7754 }
 0x154   :  { %v7757_v27 = vunpack.i.h.bf16 %v7755_v48  ;;  %v7756_v55 = vunpack.i.l.bf16 %v7755_v48 }
 0x155   :  { %v934_v23 = vsel %vm15745_vm12, %v919_v36, %v7751_v32  ;;  %v935_v39 = vsel %vm15745_vm12, %v920_v35, %v7752_v30  ;;  %v879_v35 = vsel %vm15825_vm8, %v10007_v22, %v7742_v25  ;;  %v878_v36 = vsel %vm15825_vm8, %v9999_v13, %v7741_v26 }
 0x156   :  { %v949_v42 = vsel %vm948_vm13, %v934_v23, %v7766_v38  ;;  %v950_v43 = vsel %vm948_vm13, %v935_v39, %v7767_v37  ;;  %v894_v38 = vsel %vm15823_vm9, %v879_v35, %v7757_v27  ;;  %v893_v23 = vsel %vm15823_vm9, %v878_v36, %v7756_v55 }
 0x157   :  { %v963_v47 = vpack.c.bf16 %v950_v43, %v949_v42  ;;  %v7792_v42 = vunpack.i.h.bf16 %v10135_v14  ;;  %v7791_v43 = vunpack.i.l.bf16 %v10135_v14  ;;  %v7802_v36 = vunpack.i.h.bf16 %v10147_v33 }
 0x159   :  { %7345 = vmatmul.msk.bf16.vlgmr.msra.gmra.mxu1 %vm15744_vm1, %v963_v47 }
 0x15a   :  { %v7760_v49 = vpop.permute.xlu1 %7759 }
 0x15b   :  { %v10156_v52 = vpop.permute.xlu2 %7804  ;;  %v7762_v61 = vunpack.i.h.bf16 %v7760_v49  ;;  %v7761_v0 = vunpack.i.l.bf16 %v7760_v49 }
 0x15d   :  { %v922_v4 = vsel %vm918_vm11, %v907_v3, %v7762_v61  ;;  %v921_v60 = vsel %vm918_vm11, %v906_v6, %v7761_v0 }
 0x15e   :  { %v936_v17 = vsel %vm15745_vm12, %v921_v60, %v7781_v8  ;;  %v937_v18 = vsel %vm15745_vm12, %v922_v4, %v7782_v7  ;;  %v7807_v7 = vunpack.i.h.bf16 %v10156_v52  ;;  %v7806_v8 = vunpack.i.l.bf16 %v10156_v52 }
 0x162   :  { %v7770_v11 = vpop.permute.xlu1 %7769  ;;  %v7795_v45 = vpop.permute.xlu0 %7794 }
 0x163   :  { %v7797_v12 = vunpack.i.h.bf16 %v7795_v45  ;;  %v7796_v15 = vunpack.i.l.bf16 %v7795_v45  ;;  %v10172_v16 = vpop.permute.xlu2 %7814  ;;  %v7772_v54 = vunpack.i.h.bf16 %v7770_v11  ;;  %v7771_v56 = vunpack.i.l.bf16 %v7770_v11 }
 0x165   :  { %v951_v34 = vsel %vm948_vm13, %v936_v17, %v7796_v15  ;;  %v952_v50 = vsel %vm948_vm13, %v937_v18, %v7797_v12  ;;  %v881_v3 = vsel %vm15825_vm8, %v10023_v41, %v7772_v54  ;;  %v880_v6 = vsel %vm15825_vm8, %v10015_v31, %v7771_v56 }
 0x166   :  { %v964_v20 = vpack.c.bf16 %v952_v50, %v951_v34 }
 0x169   :  { %7346 = vmatmul.msk.bf16.gmra.mxu1 %vm15744_vm1, %v964_v20 }
 0x16a   :  { %v7775_v21 = vpop.permute.xlu1 %7774  ;;  %v7810_v24 = vpop.permute.xlu0 %7809 }
 0x16b   :  { %v10179_v5 = vpop.permute.xlu2 %7829  ;;  %v7777_v28 = vunpack.i.h.bf16 %v7775_v21  ;;  %v7776_v59 = vunpack.i.l.bf16 %v7775_v21  ;;  %v7812_v46 = vunpack.i.h.bf16 %v7810_v24  ;;  %v7811_v47 = vunpack.i.l.bf16 %v7810_v24 }
 0x16d   :  { %v909_v10 = vsel %vm15824_vm10, %v894_v38, %v7777_v28  ;;  %v908_v39 = vsel %vm15824_vm10, %v893_v23, %v7776_v59 }
 0x16e   :  { %v923_v44 = vsel %vm918_vm11, %v908_v39, %v7791_v43  ;;  %v924_v22 = vsel %vm918_vm11, %v909_v10, %v7792_v42  ;;  %v7817_v10 = vunpack.i.h.bf16 %v10172_v16  ;;  %v7816_v39 = vunpack.i.l.bf16 %v10172_v16 }
 0x16f   :  { %v938_v57 = vsel %vm15745_vm12, %v923_v44, %v7811_v47  ;;  %v939_v58 = vsel %vm15745_vm12, %v924_v22, %v7812_v46  ;;  %v883_v46 = vsel %vm15825_vm8, %v10040_v63, %v7802_v36 }
 0x172   :  { %v7785_v30 = vpop.permute.xlu1 %7784  ;;  %v7820_v37 = vpop.permute.xlu0 %7819 }
 0x173   :  { %v10183_v32 = vpop.permute.xlu2 %7864  ;;  %v7787_v62 = vunpack.i.h.bf16 %v7785_v30  ;;  %v7786_v61 = vunpack.i.l.bf16 %v7785_v30  ;;  %v7822_v18 = vunpack.i.h.bf16 %v7820_v37  ;;  %v7821_v31 = vunpack.i.l.bf16 %v7820_v37 }
 0x174   :  { %v7801_v37 = vunpack.i.l.bf16 %v10147_v33  ;;  %v898_v33 = vsel %vm15823_vm9, %v883_v46, %v7817_v10  ;;  %v7867_v56 = vunpack.i.h.bf16 %v10183_v32 }
 0x175   :  { %v896_v4 = vsel %vm15823_vm9, %v881_v3, %v7787_v62  ;;  %v895_v60 = vsel %vm15823_vm9, %v880_v6, %v7786_v61  ;;  %v7832_v3 = vunpack.i.h.bf16 %v10179_v5  ;;  %v7831_v6 = vunpack.i.l.bf16 %v10179_v5 }
 0x176   :  { %v910_v45 = vsel %vm15824_vm10, %v895_v60, %v7806_v8  ;;  %v911_v12 = vsel %vm15824_vm10, %v896_v4, %v7807_v7  ;;  %v882_v47 = vsel %vm15825_vm8, %v10032_v51, %v7801_v37 }
 0x177   :  { %v926_v34 = vsel %vm918_vm11, %v911_v12, %v7822_v18  ;;  %v925_v50 = vsel %vm918_vm11, %v910_v45, %v7821_v31  ;;  %v885_v8 = vsel %vm15825_vm8, %v10058_v19, %v7832_v3 }
 0x17a   :  { %v7825_v13 = vpop.permute.xlu1 %7824  ;;  %v7835_v1 = vpop.permute.xlu0 %7834 }
 0x17b   :  { %v7827_v48 = vunpack.i.h.bf16 %v7825_v13  ;;  %v7826_v49 = vunpack.i.l.bf16 %v7825_v13  ;;  %v10197_v53 = vpop.permute.xlu2 %7874  ;;  %v7837_v42 = vunpack.i.h.bf16 %v7835_v1  ;;  %v7836_v43 = vunpack.i.l.bf16 %v7835_v1 }
 0x17c   :  { %v897_v13 = vsel %vm15823_vm9, %v882_v47, %v7816_v39  ;;  %v7877_v31 = vunpack.i.h.bf16 %v10197_v53 }
 0x17d   :  { %v953_v14 = vsel %vm948_vm13, %v938_v57, %v7826_v49  ;;  %v954_v0 = vsel %vm948_vm13, %v939_v58, %v7827_v48  ;;  %v913_v48 = vsel %vm15824_vm10, %v898_v33, %v7837_v42  ;;  %v912_v49 = vsel %vm15824_vm10, %v897_v13, %v7836_v43 }
 0x17e   :  { %v965_v2 = vpack.c.bf16 %v954_v0, %v953_v14  ;;  %v7866_v57 = vunpack.i.l.bf16 %v10183_v32 }
 0x180   :  { %7347 = vmatmul.msk.bf16.gmra.mxu1 %vm15744_vm1, %v965_v2 }
 0x182   :  { %v7840_v11 = vpop.permute.xlu1 %7839  ;;  %v7845_v24 = vpop.permute.xlu0 %7844 }
 0x183   :  { %v7842_v15 = vunpack.i.h.bf16 %v7840_v11  ;;  %v7841_v41 = vunpack.i.l.bf16 %v7840_v11  ;;  %v7880_v17 = vpop.permute.xlu2 %7879  ;;  %v7847_v32 = vunpack.i.h.bf16 %v7845_v24  ;;  %v7846_v4 = vunpack.i.l.bf16 %v7845_v24 }
 0x184   :  { %v7882_v20 = vunpack.i.h.bf16 %v7880_v17  ;;  %v7881_v21 = vunpack.i.l.bf16 %v7880_v17  ;;  %v884_v11 = vsel %vm15825_vm8, %v10049_v9, %v7831_v6 }
 0x185   :  { %v940_v25 = vsel %vm15745_vm12, %v925_v50, %v7841_v41  ;;  %v941_v52 = vsel %vm15745_vm12, %v926_v34, %v7842_v15  ;;  %v900_v12 = vsel %vm15823_vm9, %v885_v8, %v7847_v32  ;;  %v899_v15 = vsel %vm15823_vm9, %v884_v11, %v7846_v4 }
 0x186   :  { %v955_v26 = vsel %vm948_vm13, %v940_v25, %v7881_v21  ;;  %v956_v27 = vsel %vm948_vm13, %v941_v52, %v7882_v20  ;;  %v7876_v34 = vunpack.i.l.bf16 %v10197_v53 }
 0x187   :  { %v966_v28 = vpack.c.bf16 %v956_v27, %v955_v26 }
 0x18a   :  { %v7850_v55 = vpop.permute.xlu1 %7849  ;;  %v10221_v59 = vpop.permute.xlu0 %7854 }
 0x18b   :  { %v7852_v44 = vunpack.i.h.bf16 %v7850_v55  ;;  %v7851_v22 = vunpack.i.l.bf16 %v7850_v55  ;;  %v7857_v26 = vunpack.i.h.bf16 %v10221_v59  ;;  %v7856_v27 = vunpack.i.l.bf16 %v10221_v59  ;;  %v7885_v55 = vpop.permute.xlu2 %7884 }
 0x18c   :  { %v7887_v42 = vunpack.i.h.bf16 %v7885_v55  ;;  %v7886_v43 = vunpack.i.l.bf16 %v7885_v55  ;;  %v7242_v55 = vld [vmem:[%s15742_s0 + $0xa8] sm:$0xff] }
 0x18d   :  { %v928_v16 = vsel %vm918_vm11, %v913_v48, %v7852_v44  ;;  %v927_v54 = vsel %vm918_vm11, %v912_v49, %v7851_v22  ;;  %v886_v36 = vsel %vm15825_vm8, %v10067_v29, %v7856_v27  ;;  %v7241_v27 = vld [vmem:[%s15742_s0 + $0xa0] sm:$0xff] }
 0x18e   :  { %v942_v61 = vsel %vm15745_vm12, %v927_v54, %v7866_v57  ;;  %v943_v14 = vsel %vm15745_vm12, %v928_v16, %v7867_v56 }
 0x190   :  { %7348 = vmatmul.msk.bf16.gmra.mxu1 %vm15744_vm1, %v966_v28 }
 0x192   :  { %v7860_v30 = vpop.permute.xlu1 %7859 }
 0x193   :  { %v7862_v60 = vunpack.i.h.bf16 %v7860_v30  ;;  %v7861_v7 = vunpack.i.l.bf16 %v7860_v30 }
 0x195   :  { %v915_v41 = vsel %vm15824_vm10, %v900_v12, %v7862_v60  ;;  %v914_v5 = vsel %vm15824_vm10, %v899_v15, %v7861_v7 }
 0x196   :  { %v929_v20 = vsel %vm918_vm11, %v914_v5, %v7876_v34  ;;  %v930_v9 = vsel %vm918_vm11, %v915_v41, %v7877_v31 }
 0x19a   :  { %v7890_v35 = vpop.permute.xlu0 %7889  ;;  %v10225_v38 = vpop.permute.xlu1 %7869 }
 0x19b   :  { %v7892_v17 = vunpack.i.h.bf16 %v7890_v35  ;;  %v7891_v18 = vunpack.i.l.bf16 %v7890_v35  ;;  %v7872_v28 = vunpack.i.h.bf16 %v10225_v38  ;;  %v7871_v30 = vunpack.i.l.bf16 %v10225_v38  ;;  %v7915_v22 = vpop.permute.xlu2 %7914 }
 0x19c   :  { %v887_v35 = vsel %vm15825_vm8, %v10076_v40, %v7857_v26  ;;  %v7917_v48 = vunpack.i.h.bf16 %v7915_v22  ;;  %v7916_v49 = vunpack.i.l.bf16 %v7915_v22 }
 0x19d   :  { %v944_v21 = vsel %vm15745_vm12, %v929_v20, %v7891_v18  ;;  %v945_v24 = vsel %vm15745_vm12, %v930_v9, %v7892_v17  ;;  %v902_v37 = vsel %vm15823_vm9, %v887_v35, %v7872_v28  ;;  %v901_v10 = vsel %vm15823_vm9, %v886_v36, %v7871_v30 }
 0x19e   :  { %v916_v46 = vsel %vm15824_vm10, %v901_v10, %v7886_v43  ;;  %v917_v40 = vsel %vm15824_vm10, %v902_v37, %v7887_v42 }
 0x1a2   :  { %v10227_v23 = vpop.permute.xlu0 %7894 }
 0x1a3   :  { %v7897_v59 = vunpack.i.h.bf16 %v10227_v23  ;;  %v7896_v39 = vunpack.i.l.bf16 %v10227_v23 }
 0x1a5   :  { %v932_v47 = vsel %vm918_vm11, %v917_v40, %v7897_v59  ;;  %v931_v29 = vsel %vm918_vm11, %v916_v46, %v7896_v39  ;;  %v7243_v46 = vld [vmem:[%s15742_s0 + $0xb0] sm:$0xff]  ;;  %v7244_v40 = vld [vmem:[%s15742_s0 + $0xb8] sm:$0xff] }
 0x1aa   :  { %v7900_v63 = vpop.permute.xlu0 %7899  ;;  %v7905_v58 = vpop.permute.xlu1 %7904 }
 0x1ab   :  { %v7902_v62 = vunpack.i.h.bf16 %v7900_v63  ;;  %v7901_v51 = vunpack.i.l.bf16 %v7900_v63  ;;  %v7907_v44 = vunpack.i.h.bf16 %v7905_v58  ;;  %v7906_v38 = vunpack.i.l.bf16 %v7905_v58 }
 0x1ad   :  { %v957_v0 = vsel %vm948_vm13, %v942_v61, %v7901_v51  ;;  %v958_v1 = vsel %vm948_vm13, %v943_v14, %v7902_v62  ;;  %v946_v33 = vsel %vm15745_vm12, %v931_v29, %v7906_v38  ;;  %v947_v13 = vsel %vm15745_vm12, %v932_v47, %v7907_v44 }
 0x1ae   :  { %v967_v2 = vpack.c.bf16 %v958_v1, %v957_v0  ;;  %v961_v23 = vsel %vm948_vm13, %v946_v33, %v7916_v49  ;;  %v962_v16 = vsel %vm948_vm13, %v947_v13, %v7917_v48  ;;  %v67_v33 = vpack.c.bf16 %v7244_v40, %v7243_v46  ;;  %v7245_v13 = vld [vmem:[%s15742_s0 + $0xc0] sm:$0xff]  ;;  %v7246_v48 = vld [vmem:[%s15742_s0 + $0xc8] sm:$0xff] }
 0x1af   :  { %v969_v54 = vpack.c.bf16 %v962_v16, %v961_v23  ;;  %v68_v49 = vpack.c.bf16 %v7246_v48, %v7245_v13 }
 0x1b0   :  { %7349 = vmatmul.msk.bf16.gmra.mxu1 %vm15744_vm1, %v967_v2 }
 0x1b2   :  { %v7910_v45 = vpop.permute.xlu1 %7909 }
 0x1b3   :  { %v7912_v50 = vunpack.i.h.bf16 %v7910_v45  ;;  %v7911_v19 = vunpack.i.l.bf16 %v7910_v45 }
 0x1b5   :  { %v959_v25 = vsel %vm948_vm13, %v944_v21, %v7911_v19  ;;  %v960_v52 = vsel %vm948_vm13, %v945_v24, %v7912_v50 }
 0x1b6   :  { %v968_v53 = vpack.c.bf16 %v960_v52, %v959_v25 }
 0x1c0   :  { %7350 = vmatmul.msk.bf16.gmra.mxu1 %vm15744_vm1, %v968_v53  ;;  %v66_v53 = vpack.c.bf16 %v7242_v55, %v7241_v27 }
 0x1c2   :  { %7283 = vmatmul.msk.bf16.gmra.mxu0 %vm15744_vm1, %v66_v53 }
 0x1d0   :  { %7351 = vmatmul.msk.bf16.gmra.mxu1 %vm15744_vm1, %v969_v54 }
 0x1d2   :  { %7284 = vmatmul.msk.bf16.gmra.mxu0 %vm15744_vm1, %v67_v33 }
 0x1d6   :  { %v10288_v56 = vpop.f32.mrf.mxu1 }
 0x1d7   :  { %v1081_v63 = vrot.slane %v10288_v56, 1 }
 0x1de   :  { %v10290_v57 = vpop.f32.mrf.mxu1 }
 0x1df   :  { %v1082_v58 = vrot.slane %v10290_v57, 1 }
 0x1e1   :  { %v1083_v62 = vsel %vm15822_vm14, %v1081_v63, %v1082_v58 }
 0x1e2   :  { %1108 = vrot.lane.b32.xlu0 %v1083_v62, %s9854_s24  ;;  %7285 = vmatmul.msk.bf16.gmra.mxu0 %vm15744_vm1, %v68_v49 }
 0x1e6   :  { %v1036_v51 = vpop.f32.mrf.mxu1 }
 0x1e7   :  { %v1084_v61 = vrot.slane %v1036_v51, 1 }
 0x1e9   :  { %v1085_v14 = vsel %vm15822_vm14, %v1082_v58, %v1084_v61 }
 0x1ea   :  { %1110 = vrot.lane.b32.xlu1 %v1085_v14, %s9854_s24 }
 0x1ee   :  { %v10298_v0 = vpop.f32.mrf.mxu1 }
 0x1ef   :  { %v1086_v1 = vrot.slane %v10298_v0, 1 }
 0x1f1   :  { %v1087_v2 = vsel %vm15822_vm14, %v1084_v61, %v1086_v1  ;;  %v7248_v61 = vld [vmem:[%s15742_s0 + $0xd8] sm:$0xff] }
 0x1f2   :  { %1112 = vrot.lane.b32.xlu2 %v1087_v2, %s9854_s24 }
 0x1fd   :  { %v10303_v3 = vpop.f32.mrf.mxu1 }
 0x1fe   :  { %v1088_v6 = vrot.slane %v10303_v3, 1 }
 0x200   :  { %v1089_v32 = vsel %vm15822_vm14, %v1086_v1, %v1088_v6 }
 0x201   :  { %1114 = vrot.lane.b32.xlu0 %v1089_v32, %s9854_s24 }
 0x205   :  { %v10308_v4 = vpop.f32.mrf.mxu1 }
 0x206   :  { %v1090_v60 = vrot.slane %v10308_v4, 1 }
 0x208   :  { %v1091_v7 = vsel %vm15822_vm14, %v1088_v6, %v1090_v60 }
 0x209   :  { %1116 = vrot.lane.b32.xlu1 %v1091_v7, %s9854_s24  ;;  %v7250_v7 = vld [vmem:[%s15742_s0 + $0xe8] sm:$0xff] }
 0x20d   :  { %v10313_v8 = vpop.f32.mrf.mxu1 }
 0x20e   :  { %v1092_v11 = vrot.slane %v10313_v8, 1 }
 0x210   :  { %v1093_v45 = vsel %vm15822_vm14, %v1090_v60, %v1092_v11  ;;  %v7249_v60 = vld [vmem:[%s15742_s0 + $0xe0] sm:$0xff] }
 0x211   :  { %1118 = vrot.lane.b32.xlu2 %v1093_v45, %s9854_s24  ;;  %v70_v45 = vpack.c.bf16 %v7250_v7, %v7249_v60 }
 0x215   :  { %v10318_v12 = vpop.f32.mrf.mxu1 }
 0x216   :  { %v1094_v15 = vrot.slane %v10318_v12, 1 }
 0x218   :  { %v1095_v41 = vsel %vm15822_vm14, %v1092_v11, %v1094_v15 }
 0x219   :  { %1120 = vrot.lane.b32.xlu0 %v1095_v41, %s9854_s24  ;;  %v7252_v41 = vld [vmem:[%s15742_s0 + $0xf8] sm:$0xff] }
 0x22d   :  { %v10323_v5 = vpop.f32.mrf.mxu1 }
 0x22e   :  { %v1096_v17 = vrot.slane %v10323_v5, 1 }
 0x230   :  { %v1097_v18 = vsel %vm15822_vm14, %v1094_v15, %v1096_v17 }
 0x231   :  { %1122 = vrot.lane.b32.xlu1 %v1097_v18, %s9854_s24 }
 0x235   :  { %v10328_v31 = vpop.f32.mrf.mxu1 }
 0x236   :  { %v1098_v34 = vrot.slane %v10328_v31, 1 }
 0x238   :  { %v1099_v50 = vsel %vm15822_vm14, %v1096_v17, %v1098_v34 }
 0x239   :  { %1124 = vrot.lane.b32.xlu2 %v1099_v50, %s9854_s24 }
 0x23d   :  { %v10333_v19 = vpop.f32.mrf.mxu1 }
 0x23e   :  { %v1100_v20 = vrot.slane %v10333_v19, 1 }
 0x240   :  { %v1101_v9 = vsel %vm15822_vm14, %v1098_v34, %v1100_v20 }
 0x241   :  { %1126 = vrot.lane.b32.xlu0 %v1101_v9, %s9854_s24 }
 0x245   :  { %v10338_v21 = vpop.f32.mrf.mxu1 }
 0x246   :  { %v1102_v24 = vrot.slane %v10338_v21, 1 }
 0x248   :  { %v1103_v25 = vsel %vm15822_vm14, %v1100_v20, %v1102_v24 }
 0x249   :  { %1128 = vrot.lane.b32.xlu1 %v1103_v25, %s9854_s24 }
 0x24c   :  { %v1113_v37 = vpop.permute.xlu2 %1112 }
 0x24d   :  { %v10343_v52 = vpop.f32.mrf.mxu1  ;;  %v10361_v59 = vadd.f32 %v1113_v37, %v1036_v51  ;;  %v7247_v51 = vld [vmem:[%s15742_s0 + $0xd0] sm:$0xff] }
 0x24e   :  { %v1104_v26 = vrot.slane %v10343_v52, 1  ;;  %v69_v6 = vpack.c.bf16 %v7248_v61, %v7247_v51  ;;  %v7257_v61 = vld [vmem:[%s15742_s0 + $0x120] sm:$0xff] }
 0x24f   :  { %v1182_v44 = vrot.slane %v10361_v59, 2 }
 0x250   :  { %v1105_v28 = vsel %vm15822_vm14, %v1102_v24, %v1104_v26  ;;  %7286 = vmatmul.msk.bf16.gmra.mxu0 %vm15744_vm1, %v69_v6  ;;  %v7260_v6 = vld [vmem:[%s15742_s0 + $0x138] sm:$0xff] }
 0x251   :  { %1130 = vrot.lane.b32.xlu2 %v1105_v28, %s9854_s24 }
 0x254   :  { %v1109_v10 = vpop.permute.xlu0 %1108 }
 0x255   :  { %v10355_v30 = vpop.f32.mrf.mxu1  ;;  %v10364_v39 = vadd.f32 %v1109_v10, %v10288_v56  ;;  %v7254_v10 = vld [vmem:[%s15742_s0 + $0x108] sm:$0xff] }
 0x256   :  { %v1106_v35 = vrot.slane %v10355_v30, 1 }
 0x257   :  { %v1179_v38 = vrot.slane %v10364_v39, 2 }
 0x258   :  { %1134 = vrot.lane.b32.xlu1 %v1106_v35, %s9854_s24  ;;  %v1107_v36 = vsel %vm15822_vm14, %v1104_v26, %v1106_v35 }
 0x259   :  { %1132 = vrot.lane.b32.xlu0 %v1107_v36, %s9854_s24 }
 0x25c   :  { %v1111_v42 = vpop.permute.xlu1 %1110 }
 0x25d   :  { %v10367_v43 = vadd.f32 %v1111_v42, %v10290_v57 }
 0x25f   :  { %v1180_v22 = vrot.slane %v10367_v43, 2 }
 0x260   :  { %7287 = vmatmul.msk.bf16.gmra.mxu0 %vm15744_vm1, %v70_v45 }
 0x261   :  { %v1181_v47 = vsel %vm1178_vm15, %v1179_v38, %v1180_v22  ;;  %v1183_v29 = vsel %vm1178_vm15, %v1180_v22, %v1182_v44 }
 0x262   :  { %1206 = vrot.lane.b32.xlu2 %v1181_v47, %s9855_s6  ;;  %1208 = vrot.lane.b32.xlu0 %v1183_v29, %s9855_s6 }
 0x26b   :  { %v1119_v56 = vpop.permute.xlu2 %1118 }
 0x26c   :  { %v10397_v63 = vadd.f32 %v1119_v56, %v10308_v4  ;;  %v7256_v56 = vld [vmem:[%s15742_s0 + $0x118] sm:$0xff] }
 0x26e   :  { %v1188_v14 = vrot.slane %v10397_v63, 2 }
 0x273   :  { %v1115_v23 = vpop.permute.xlu0 %1114 }
 0x274   :  { %v10390_v16 = vadd.f32 %v1115_v23, %v10298_v0 }
 0x276   :  { %v1184_v54 = vrot.slane %v10390_v16, 2 }
 0x278   :  { %v1185_v57 = vsel %vm1178_vm15, %v1182_v44, %v1184_v54 }
 0x279   :  { %1210 = vrot.lane.b32.xlu1 %v1185_v57, %s9855_s6 }
 0x27b   :  { %v1117_v58 = vpop.permute.xlu1 %1116 }
 0x27c   :  { %v10400_v62 = vadd.f32 %v1117_v58, %v10303_v3 }
 0x27e   :  { %v1186_v0 = vrot.slane %v10400_v62, 2 }
 0x280   :  { %v1187_v1 = vsel %vm1178_vm15, %v1184_v54, %v1186_v0  ;;  %v1189_v2 = vsel %vm1178_vm15, %v1186_v0, %v1188_v14  ;;  %v7255_v54 = vld [vmem:[%s15742_s0 + $0x110] sm:$0xff] }
 0x281   :  { %1212 = vrot.lane.b32.xlu2 %v1187_v1, %s9855_s6  ;;  %1214 = vrot.lane.b32.xlu0 %v1189_v2, %s9855_s6  ;;  %v7259_v2 = vld [vmem:[%s15742_s0 + $0x130] sm:$0xff] }
 0x28b   :  { %v1121_v3 = vpop.permute.xlu0 %1120 }
 0x28c   :  { %v10416_v32 = vadd.f32 %v1121_v3, %v10313_v8  ;;  %v7251_v8 = vld [vmem:[%s15742_s0 + $0xf0] sm:$0xff] }
 0x28d   :  { %v71_v18 = vpack.c.bf16 %v7252_v41, %v7251_v8 }
 0x28e   :  { %v1190_v4 = vrot.slane %v10416_v32, 2 }
 0x28f   :  { %7288 = vmatmul.msk.bf16.gmra.mxu0 %vm15744_vm1, %v71_v18 }
 0x290   :  { %v1191_v11 = vsel %vm1178_vm15, %v1188_v14, %v1190_v4  ;;  %v7258_v14 = vld [vmem:[%s15742_s0 + $0x128] sm:$0xff] }
 0x291   :  { %1216 = vrot.lane.b32.xlu1 %v1191_v11, %s9855_s6  ;;  %v74_v1 = vpack.c.bf16 %v7258_v14, %v7257_v61 }
 0x293   :  { %v1125_v15 = vpop.permute.xlu2 %1124 }
 0x294   :  { %v10435_v17 = vadd.f32 %v1125_v15, %v10323_v5 }
 0x296   :  { %v1194_v20 = vrot.slane %v10435_v17, 2 }
 0x2a3   :  { %v1123_v34 = vpop.permute.xlu1 %1122 }
 0x2a4   :  { %v10438_v50 = vadd.f32 %v1123_v34, %v10318_v12 }
 0x2a6   :  { %v1192_v9 = vrot.slane %v10438_v50, 2 }
 0x2a8   :  { %v1193_v24 = vsel %vm1178_vm15, %v1190_v4, %v1192_v9  ;;  %v1195_v25 = vsel %vm1178_vm15, %v1192_v9, %v1194_v20  ;;  %v75_v4 = vpack.c.bf16 %v7260_v6, %v7259_v2 }
 0x2a9   :  { %1218 = vrot.lane.b32.xlu2 %v1193_v24, %s9855_s6  ;;  %1220 = vrot.lane.b32.xlu0 %v1195_v25, %s9855_s6 }
 0x2aa   :  { %7292 = vmatmul.msk.bf16.vlgmr.msra.gmra.mxu2 %vm15744_vm1, %v75_v4 }
 0x2ab   :  { %v1131_v27 = vpop.permute.xlu2 %1130 }
 0x2ac   :  { %v10454_v53 = vadd.f32 %v1131_v27, %v10338_v21 }
 0x2ae   :  { %v1200_v36 = vrot.slane %v10454_v53, 2 }
 0x2b3   :  { %v1127_v5 = vpop.permute.xlu0 %1126 }
 0x2b4   :  { %v10448_v26 = vadd.f32 %v1127_v5, %v10328_v31  ;;  %v7253_v31 = vld [vmem:[%s15742_s0 + $0x100] sm:$0xff]  ;;  %s9862_s0 = smov 88  }
 0x2b5   :  { %v72_v42 = vpack.c.bf16 %v7254_v10, %v7253_v31 }
 0x2b6   :  { %v1196_v12 = vrot.slane %v10448_v26, 2 }
 0x2b7   :  { %7289 = vmatmul.msk.bf16.gmra.mxu0 %vm15744_vm1, %v72_v42 }
 0x2b8   :  { %v1197_v55 = vsel %vm1178_vm15, %v1194_v20, %v1196_v12  ;;  %v7650_v20 = vld [vmem:[%s15740_s1 + $0x48] sm:$0xff] }
 0x2b9   :  { %1222 = vrot.lane.b32.xlu1 %v1197_v55, %s9855_s6  ;;  %1596 = vmatpush.bf16.msrb.mxu0 %v7650_v20 }
 0x2ba   :  { %7691 = vmatpush.bf16.msra.mxu3 %v7650_v20  ;;  %v1482_v20 = vld [vmem:[%s15740_s1 + $0x40] sm:$0xf] }
 0x2bb   :  { %v1129_v28 = vpop.permute.xlu1 %1128 }
 0x2bc   :  { %v10457_v35 = vadd.f32 %v1129_v28, %v10333_v19  ;;  %v1207_v13 = vpop.permute.xlu2 %1206 }
 0x2be   :  { %v1198_v37 = vrot.slane %v10457_v35, 2 }
 0x2c0   :  { %v1199_v21 = vsel %vm1178_vm15, %v1196_v12, %v1198_v37  ;;  %v1201_v44 = vsel %vm1178_vm15, %v1198_v37, %v1200_v36 }
 0x2c1   :  { %1224 = vrot.lane.b32.xlu2 %v1199_v21, %s9855_s6  ;;  %1226 = vrot.lane.b32.xlu0 %v1201_v44, %s9855_s6 }
 0x2ca   :  { %v1135_v19 = vpop.permute.xlu1 %1134 }
 0x2cb   :  { %v10473_v38 = vadd.f32 %v1135_v19, %v10355_v30  ;;  %v1133_v22 = vpop.permute.xlu0 %1132  ;;  %v10486_v30 = vadd.f32 %v1207_v13, %v10364_v39  ;;  %v73_v39 = vpack.c.bf16 %v7256_v56, %v7255_v54 }
 0x2cc   :  { %v10476_v46 = vadd.f32 %v1133_v22, %v10343_v52 }
 0x2cd   :  { %v1204_v40 = vrot.slane %v10473_v38, 2  ;;  %v1276_v49 = vrot.slane %v10486_v30, 4  ;;  %7290 = vmatmul.msk.bf16.gmra.mxu0 %vm15744_vm1, %v73_v39 }
 0x2ce   :  { %v1202_v47 = vrot.slane %v10476_v46, 2 }
 0x2cf   :  { %1232 = vrot.lane.b32.xlu0 %v1204_v40, %s9855_s6 }
 0x2d0   :  { %v1205_v29 = vsel %vm1178_vm15, %v1202_v47, %v1204_v40  ;;  %v1203_v33 = vsel %vm1178_vm15, %v1200_v36, %v1202_v47 }
 0x2d1   :  { %1230 = vrot.lane.b32.xlu2 %v1205_v29, %s9855_s6  ;;  %1228 = vrot.lane.b32.xlu1 %v1203_v33, %s9855_s6 }
 0x2d4   :  { %v1209_v52 = vpop.permute.xlu0 %1208 }
 0x2d5   :  { %v10489_v48 = vadd.f32 %v1209_v52, %v10367_v43  ;;  %v10501_v43 = vpop.f32.mrf.mxu0 }
 0x2d7   :  { %v1277_v23 = vrot.slane %v10489_v48, 4 }
 0x2d9   :  { %v1278_v57 = vsel %vm165_vm0, %v1276_v49, %v1277_v23 }
 0x2da   :  { %1303 = vrot.lane.b32.xlu1 %v1278_v57, %s9856_s18 }
 0x2db   :  { %v1213_v51 = vpop.permute.xlu2 %1212 }
 0x2dc   :  { %v10513_v0 = vadd.f32 %v1213_v51, %v10390_v16 }
 0x2dd   :  { %v10504_v58 = vpop.f32.mrf.mxu0  ;;  %7291 = vmatmul.msk.bf16.gmra.mxu0 %vm15744_vm1, %v74_v1 }
 0x2de   :  { %v1281_v16 = vrot.slane %v10513_v0, 4  ;;  %v339_v56 = vmin.f32 %v10504_v58, 0.0  ;;  %vm299_vm5 = vcmp.gt.f32.partialorder %v10504_v58, 0.0 }
 0x2e0   :  { %v400_v2 = vmul.f32 1.442695, %v339_v56 }
 0x2e5   :  { %v10530_v15 = vpop.f32.mrf.mxu0 }
 0x2e6   :  { %v340_v29 = vmin.f32 %v10530_v15, 0.0  ;;  %vm300_vm4 = vcmp.gt.f32.partialorder %v10530_v15, 0.0 }
 0x2eb   :  { %v1211_v3 = vpop.permute.xlu1 %1210 }
 0x2ec   :  { %v10522_v60 = vadd.f32 %v1211_v3, %v10361_v59 }
 0x2ed   :  { %v10540_v34 = vpop.f32.mrf.mxu0 }
 0x2ee   :  { %v1279_v7 = vrot.slane %v10522_v60, 4  ;;  %v341_v19 = vmin.f32 %v10540_v34, 0.0  ;;  %vm301_vm2 = vcmp.gt.f32.partialorder %v10540_v34, 0.0 }
 0x2f0   :  { %v1282_v11 = vsel %vm165_vm0, %v1279_v7, %v1281_v16  ;;  %v1280_v45 = vsel %vm165_vm0, %v1277_v23, %v1279_v7  ;;  %v404_v52 = vmul.f32 1.442695, %v341_v19 }
 0x2f1   :  { %1307 = vrot.lane.b32.xlu0 %v1282_v11, %s9856_s18  ;;  %1305 = vrot.lane.b32.xlu2 %v1280_v45, %s9856_s18 }
 0x2f2   :  { %9574 = vpow2.f32 %v404_v52 }
 0x2f3   :  { %v1215_v59 = vpop.permute.xlu0 %1214 }
 0x2f4   :  { %v10535_v8 = vadd.f32 %v1215_v59, %v10400_v62 }
 0x2f5   :  { %v10551_v5 = vpop.f32.mrf.mxu0 }
 0x2f6   :  { %v1283_v41 = vrot.slane %v10535_v8, 4  ;;  %v342_v47 = vmin.f32 %v10551_v5, 0.0  ;;  %vm302_vm3 = vcmp.gt.f32.partialorder %v10551_v5, 0.0 }
 0x2f8   :  { %v1284_v18 = vsel %vm165_vm0, %v1281_v16, %v1283_v41  ;;  %v406_v23 = vmul.f32 1.442695, %v342_v47  ;;  %v9575_v3 = vpop.eup %9574 }
 0x2f9   :  { %1309 = vrot.lane.b32.xlu1 %v1284_v18, %s9856_s18  ;;  %v7316_v45 = vadd.f32 -1.0, %v9575_v3 }
 0x2fa   :  { %9576 = vpow2.f32 %v406_v23 }
 0x2fd   :  { %v10559_v36 = vpop.f32.mrf.mxu0 }
 0x2fe   :  { %v343_v51 = vmin.f32 %v10559_v36, 0.0  ;;  %vm303_vm7 = vcmp.gt.f32.partialorder %v10559_v36, 0.0 }
 0x300   :  { %v408_v4 = vmul.f32 1.442695, %v343_v51  ;;  %v9577_v16 = vpop.eup %9576 }
 0x303   :  { %v1219_v9 = vpop.permute.xlu2 %1218  ;;  %v1217_v24 = vpop.permute.xlu1 %1216 }
 0x304   :  { %v10546_v25 = vadd.f32 %v1219_v9, %v10416_v32  ;;  %v10549_v62 = vadd.f32 %v1217_v24, %v10397_v63  ;;  %v501_v9 = vsel %vm301_vm2, %v10540_v34, %v7316_v45 }
 0x305   :  { %v10561_v32 = vpop.f32.mrf.mxu0 }
 0x306   :  { %v1287_v12 = vrot.slane %v10546_v25, 4  ;;  %v1285_v27 = vrot.slane %v10549_v62, 4  ;;  %v344_v1 = vmin.f32 %v10561_v32, 0.0  ;;  %vm304_vm2 = vcmp.gt.f32.partialorder %v10561_v32, 0.0 }
 0x308   :  { %v1288_v55 = vsel %vm165_vm0, %v1285_v27, %v1287_v12  ;;  %v1286_v28 = vsel %vm165_vm0, %v1283_v41, %v1285_v27  ;;  %v410_v7 = vmul.f32 1.442695, %v344_v1  ;;  %v7317_v41 = vadd.f32 -1.0, %v9577_v16 }
 0x309   :  { %1313 = vrot.lane.b32.xlu0 %v1288_v55, %s9856_s18  ;;  %1311 = vrot.lane.b32.xlu2 %v1286_v28, %s9856_s18  ;;  %v1507_v27 = vsel %vm165_vm0, %v1482_v20, 0  ;;  %v4299_v28 = vld [vmem:[%s15740_s1 + $0x38] sm:$0xf] }
 0x30a   :  { %1516 = vmatpush.bf16.msrb.mxu2 %v1507_v27  ;;  %v4313_v47 = vunpack.c.l.b16 %v4299_v28 }
 0x30d   :  { %v10569_v42 = vpop.f32.mrf.mxu0 }
 0x30e   :  { %v345_v39 = vmin.f32 %v10569_v42, 0.0  ;;  %vm305_vm6 = vcmp.gt.f32.partialorder %v10569_v42, 0.0 }
 0x31b   :  { %v1221_v63 = vpop.permute.xlu0 %1220  ;;  %v1225_v21 = vpop.permute.xlu2 %1224 }
 0x31c   :  { %v10564_v37 = vadd.f32 %v1221_v63, %v10438_v50  ;;  %v10572_v44 = vadd.f32 %v1225_v21, %v10448_v26  ;;  %v10578_v50 = vpop.f32.mrf.mxu0  ;;  %v10626_v21 = vld [vmem:[%s15741_s2] ss:$0 sm:$0xff] }
 0x31d   :  { %v543_v19 = vmul.f32 %v10626_v21, %v501_v9  ;;  %v346_v51 = vmin.f32 %v10578_v50, 0.0 }
 0x31e   :  { %v1289_v31 = vrot.slane %v10564_v37, 4  ;;  %v1293_v33 = vrot.slane %v10572_v44, 4 }
 0x31f   :  { %v414_v45 = vmul.f32 1.442695, %v346_v51 }
 0x320   :  { %v1290_v10 = vsel %vm165_vm0, %v1287_v12, %v1289_v31 }
 0x321   :  { %1315 = vrot.lane.b32.xlu1 %v1290_v10, %s9856_s18 }
 0x324   :  { %v10595_v14 = vpop.f32.mrf.mxu0 }
 0x32b   :  { %v1223_v22 = vpop.permute.xlu1 %1222  ;;  %v1231_v59 = vpop.permute.xlu2 %1230 }
 0x32c   :  { %v10576_v40 = vadd.f32 %v1223_v22, %v10435_v17  ;;  %v402_v17 = vmul.f32 1.442695, %v340_v29  ;;  %v10610_v24 = vadd.f32 %v1231_v59, %v10476_v46  ;;  %v10612_v12 = vpop.f32.mrf.mxu0 }
 0x32e   :  { %v1291_v13 = vrot.slane %v10576_v40, 4  ;;  %9578 = vpow2.f32 %v402_v17 }
 0x32f   :  { %9580 = vpow2.f32 %v400_v2 }
 0x330   :  { %v1294_v26 = vsel %vm165_vm0, %v1291_v13, %v1293_v33  ;;  %v1292_v49 = vsel %vm165_vm0, %v1289_v31, %v1291_v13  ;;  %v502_v31 = vsel %vm302_vm3, %v10551_v5, %v7317_v41  ;;  %v1299_v5 = vrot.slane %v10610_v24, 4 }
 0x331   :  { %1319 = vrot.lane.b32.xlu0 %v1294_v26, %s9856_s18  ;;  %1317 = vrot.lane.b32.xlu2 %v1292_v49, %s9856_s18  ;;  %v544_v52 = vmul.f32 %v10626_v21, %v502_v31  ;;  %v347_v26 = vmin.f32 %v10595_v14, 0.0  ;;  %v4317_v49 = vpack.c.b16 %v4313_v47, %v4313_v47  ;;  %vm307_vm3 = vcmp.gt.f32.partialorder %v10595_v14, 0.0 }
 0x333   :  { %v1227_v54 = vpop.permute.xlu0 %1226  ;;  %v4343_v1 = vsel %vm165_vm0, %v4317_v49, 0 }
 0x334   :  { %v10590_v57 = vadd.f32 %v1227_v54, %v10457_v35  ;;  %v412_v35 = vmul.f32 1.442695, %v345_v39  ;;  %v9579_v11 = vpop.eup %9578  ;;  %v10643_v39 = vld [vmem:[%s15741_s2 + $0x8] ss:$0 sm:$0xff]  ;;  %4349 = vmatpush.bf16.msrb.mxu1 %v4343_v1 }
 0x335   :  { %v7315_v18 = vadd.f32 -1.0, %v9579_v11  ;;  %v9581_v63 = vpop.eup %9580  ;;  %v10659_v16 = vadd.f32 %v10643_v39, %v544_v52 }
 0x336   :  { %v1295_v61 = vrot.slane %v10590_v57, 4  ;;  %9582 = vpow2.f32 %v412_v35  ;;  %v7314_v13 = vadd.f32 -1.0, %v9581_v63 }
 0x337   :  { %9584 = vpow2.f32 %v408_v4  ;;  %v500_v46 = vsel %vm300_vm4, %v10530_v15, %v7315_v18  ;;  %v10656_v4 = vpop.f32.mrf.mxu0  ;;  %vm306_vm4 = vcmp.gt.f32.partialorder %v10578_v50, 0.0 }
 0x338   :  { %v1296_v6 = vsel %vm165_vm0, %v1293_v33, %v1295_v61  ;;  %9586 = vpow2.f32 %v410_v7  ;;  %v542_v23 = vmul.f32 %v10626_v21, %v500_v46  ;;  %v416_v7 = vmul.f32 1.442695, %v347_v26 }
 0x339   :  { %1321 = vrot.lane.b32.xlu1 %v1296_v6, %s9856_s18  ;;  %v348_v26 = vmin.f32 %v10612_v12, 0.0 }
 0x33a   :  { %v10675_v9 = vadd.f32 %v10643_v39, %v542_v23  ;;  %9588 = vpow2.f32 %v416_v7 }
 0x33b   :  { %9590 = vpow2.f32 %v414_v45  ;;  %v418_v7 = vmul.f32 1.442695, %v348_v26 }
 0x33c   :  { %v9583_v34 = vpop.eup %9582 }
 0x33d   :  { %v9585_v29 = vpop.eup %9584  ;;  %v7320_v17 = vadd.f32 -1.0, %v9583_v34 }
 0x33e   :  { %v9587_v15 = vpop.eup %9586  ;;  %v7318_v2 = vadd.f32 -1.0, %v9585_v29 }
 0x33f   :  { %v7319_v6 = vadd.f32 -1.0, %v9587_v15  ;;  %v505_v11 = vsel %vm305_vm6, %v10569_v42, %v7320_v17 }
 0x340   :  { %v503_v41 = vsel %vm303_vm7, %v10559_v36, %v7318_v2  ;;  %v547_v27 = vmul.f32 %v10626_v21, %v505_v11  ;;  %vm309_vm7 = vcmp.gt.f32.partialorder %v10656_v4, 0.0 }
 0x341   :  { %v1233_v55 = vpop.permute.xlu0 %1232  ;;  %v504_v18 = vsel %vm304_vm2, %v10561_v32, %v7319_v6  ;;  %v545_v32 = vmul.f32 %v10626_v21, %v503_v41  ;;  %vm308_vm2 = vcmp.gt.f32.partialorder %v10612_v12, 0.0 }
 0x342   :  { %v10620_v10 = vadd.f32 %v1233_v55, %v10473_v38  ;;  %v10691_v46 = vadd.f32 %v10643_v39, %v547_v27 }
 0x343   :  { %v1229_v22 = vpop.permute.xlu1 %1228  ;;  %v10698_v47 = vadd.f32 %v10643_v39, %v545_v32 }
 0x344   :  { %v1301_v38 = vrot.slane %v10620_v10, 4  ;;  %v10633_v33 = vadd.f32 %v1229_v22, %v10454_v53  ;;  %v10646_v53 = vadd.f32 %v10643_v39, %v543_v19  ;;  %v10695_v19 = vpop.f32.mrf.mxu0  ;;  %v9589_v22 = vpop.eup %9588 }
 0x345   :  { %v9591_v15 = vpop.eup %9590  ;;  %v7322_v52 = vadd.f32 -1.0, %v9589_v22  ;;  %v350_v22 = vmin.f32 %v10695_v19, 0.0 }
 0x346   :  { %v1297_v54 = vrot.slane %v10633_v33, 4  ;;  %v1302_v56 = vsel %vm165_vm0, %v1299_v5, %v1301_v38  ;;  %v10680_v42 = vpack.i.bf16 %v10659_v16, %v10646_v53  ;;  %v7923_v63 = vpack.i.bf16 %v10646_v53, %v10675_v9 }
 0x347   :  { %1327 = vrot.lane.b32.xlu1 %v1302_v56, %s9856_s18  ;;  %v10724_v56 = vld [vmem:[%s15741_s2 + $0x10] ss:$0 sm:$0xff]  ;;  %v507_v6 = vsel %vm307_vm3, %v10595_v14, %v7322_v52 }
 0x348   :  { %v1300_v3 = vsel %vm165_vm0, %v1297_v54, %v1299_v5  ;;  %v1298_v35 = vsel %vm165_vm0, %v1295_v61, %v1297_v54  ;;  %v499_v61 = vsel %vm299_vm5, %v10504_v58, %v7314_v13  ;;  %v349_v13 = vmin.f32 %v10656_v4, 0.0 }
 0x349   :  { %1325 = vrot.lane.b32.xlu0 %v1300_v3, %s9856_s18  ;;  %1323 = vrot.lane.b32.xlu2 %v1298_v35, %s9856_s18  ;;  %v541_v58 = vmul.f32 %v10626_v21, %v499_v61  ;;  %v7321_v54 = vadd.f32 -1.0, %v9591_v15  ;;  %v10734_v3 = vld [vmem:[%s15741_s2 + $0x18] ss:$0 sm:$0xff]  ;;  %v549_v41 = vmul.f32 %v10626_v21, %v507_v6 }
 0x34a   :  { %v420_v1 = vmul.f32 1.442695, %v349_v13 }
 0x34b   :  { %v1306_v59 = vpop.permute.xlu2 %1305  ;;  %v10704_v5 = vadd.f32 %v10643_v39, %v541_v58  ;;  %v506_v45 = vsel %vm306_vm4, %v10578_v50, %v7321_v54  ;;  %v7933_v50 = vpack.i.bf16 %v10698_v47, %v10659_v16  ;;  %v10750_v58 = vadd.f32 %v10643_v39, %v549_v41 }
 0x34c   :  { %v1346_v20 = vadd.f32 %v1306_v59, %v10489_v48  ;;  %v1304_v55 = vpop.permute.xlu1 %1303  ;;  %v546_v48 = vmul.f32 %v10626_v21, %v504_v18  ;;  %v10736_v35 = vpop.f32.mrf.mxu0  ;;  %v422_v54 = vmul.f32 1.442695, %v350_v22 }
 0x34d   :  { %v1345_v36 = vadd.f32 %v1304_v55, %v10486_v30  ;;  %v7918_v49 = vpack.i.bf16 %v10675_v9, %v10704_v5  ;;  %v548_v55 = vmul.f32 %v10626_v21, %v506_v45  ;;  %vm311_vm3 = vcmp.gt.f32.partialorder %v10736_v35, 0.0 }
 0x34e   :  { %v1374_v28 = vmin.f32 %v1346_v20, 0.0  ;;  %v10701_v29 = vadd.f32 %v10643_v39, %v546_v48  ;;  %vm1360_vm5 = vcmp.gt.f32.partialorder %v1346_v20, 0.0 }
 0x34f   :  { %7929 = vrot.lane.b32.xlu1 %v10680_v42, %s9850_s12  ;;  %v1373_v34 = vmin.f32 %v1345_v36, 0.0  ;;  %vm1359_vm6 = vcmp.gt.f32.partialorder %v1345_v36, 0.0 }
 0x350   :  { %v1389_v31 = vmul.f32 1.442695, %v1374_v28  ;;  %v10719_v23 = vpack.i.bf16 %v10701_v29, %v10698_v47 }
 0x351   :  { %1329 = vrot.lane.b32.xlu2 %v1301_v38, %s9856_s18  ;;  %7924 = vrot.lane.b32.xlu0 %v7923_v63, %s9849_s11  ;;  %v1387_v30 = vmul.f32 1.442695, %v1373_v34  ;;  %v10708_v38 = vpack.i.bf16 %v10691_v46, %v10701_v29  ;;  %v10758_v63 = vadd.f32 %v10643_v39, %v548_v55 }
 0x352   :  { %9592 = vpow2.f32 %v1389_v31 }
 0x353   :  { %9594 = vpow2.f32 %v1387_v30  ;;  %v10765_v15 = vpack.i.bf16 %v10750_v58, %v10758_v63 }
 0x354   :  { %9596 = vpow2.f32 %v420_v1  ;;  %v10755_v32 = vpop.f32.mrf.mxu0 }
 0x355   :  { %9598 = vpow2.f32 %v418_v7 }
 0x357   :  { %7944 = vrot.lane.b32.xlu1 %v10708_v38, %s9853_s15 }
 0x358   :  { %v9593_v17 = vpop.eup %9592 }
 0x359   :  { %v7353_v51 = vadd.f32 -1.0, %v9593_v17  ;;  %7919 = vrot.lane.b32.xlu2 %v7918_v49, %s9848_s10  ;;  %7939 = vrot.lane.b32.xlu0 %v10719_v23, %s9852_s14  ;;  %v9595_v2 = vpop.eup %9594  ;;  %v10772_v49 = vpack.i.bf16 %v10758_v63, %v10691_v46 }
 0x35a   :  { %v7352_v61 = vadd.f32 -1.0, %v9595_v2  ;;  %v9597_v48 = vpop.eup %9596 }
 0x35b   :  { %v1430_v11 = vsel %vm1360_vm5, %v1346_v20, %v7353_v51  ;;  %v9599_v30 = vpop.eup %9598  ;;  %v7324_v13 = vadd.f32 -1.0, %v9597_v48  ;;  %vm310_vm5 = vcmp.gt.f32.partialorder %v10695_v19, 0.0 }
 0x35c   :  { %v1446_v59 = vmul.f32 %v10724_v56, %v1430_v11  ;;  %v1429_v18 = vsel %vm1359_vm6, %v1345_v36, %v7352_v61  ;;  %v351_v36 = vmin.f32 %v10736_v35, 0.0  ;;  %v7669_v11 = vld [vmem:[%s15740_s1 + $0x30] sm:$0xff]  ;;  %v10785_v61 = vpop.f32.mrf.mxu0 }
 0x35d   :  { %v1445_v27 = vmul.f32 %v10724_v56, %v1429_v18  ;;  %v509_v51 = vsel %vm309_vm7, %v10656_v4, %v7324_v13  ;;  %4350 = vmatpush.bf16.msrb.mxu1 %v7669_v11  ;;  %vm312_vm7 = vcmp.gt.f32.partialorder %v10755_v32, 0.0 }
 0x35e   :  { %v1462_v14 = vadd.f32 %v10734_v3, %v1446_v59  ;;  %v424_v26 = vmul.f32 1.442695, %v351_v36 }
 0x35f   :  { %7959 = vrot.lane.b32.xlu1 %v10719_v23, %s9850_s12  ;;  %v1461_v20 = vadd.f32 %v10734_v3, %v1445_v27 }
 0x360   :  { %9600 = vpow2.f32 %v424_v26 }
 0x361   :  { %7934 = vrot.lane.b32.xlu2 %v7933_v50, %s9851_s13  ;;  %7954 = vrot.lane.b32.xlu0 %v7933_v50, %s9849_s11  ;;  %v1475_v28 = vpack.c.bf16 %v1462_v14, %v1461_v20  ;;  %v353_v20 = vmin.f32 %v10785_v61, 0.0 }
 0x363   :  { %v1308_v31 = vpop.permute.xlu0 %1307  ;;  %7366 = vmatmul.msk.bf16.vlgmr.msrb.gmra.mxu2 %vm15825_vm8, %v1475_v28  ;;  %v1312_v1 = vpop.permute.xlu2 %1311 }
 0x364   :  { %v1347_v34 = vadd.f32 %v1308_v31, %v10522_v60  ;;  %v7323_v60 = vadd.f32 -1.0, %v9599_v30  ;;  %v10789_v45 = vadd.f32 %v1312_v1, %v10535_v8  ;;  %v352_v8 = vmin.f32 %v10755_v32, 0.0  ;;  %v10812_v30 = vpop.f32.mrf.mxu0 }
 0x366   :  { %v1375_v52 = vmin.f32 %v1347_v34, 0.0  ;;  %v508_v6 = vsel %vm308_vm2, %v10612_v12, %v7323_v60  ;;  %v1377_v14 = vmin.f32 %v10789_v45, 0.0  ;;  %vm1361_vm4 = vcmp.gt.f32.partialorder %v1347_v34, 0.0 }
 0x367   :  { %7974 = vrot.lane.b32.xlu1 %v10765_v15, %s9853_s15  ;;  %v550_v59 = vmul.f32 %v10626_v21, %v508_v6  ;;  %vm313_vm2 = vcmp.gt.f32.partialorder %v10785_v61, 0.0 }
 0x368   :  { %v1391_v17 = vmul.f32 1.442695, %v1375_v52  ;;  %v1395_v36 = vmul.f32 1.442695, %v1377_v14  ;;  %v428_v52 = vmul.f32 1.442695, %v353_v20 }
 0x369   :  { %7949 = vrot.lane.b32.xlu2 %v10680_v42, %s9848_s10  ;;  %7969 = vrot.lane.b32.xlu0 %v10772_v49, %s9852_s14  ;;  %v551_v42 = vmul.f32 %v10626_v21, %v509_v51  ;;  %v10804_v55 = vadd.f32 %v10643_v39, %v550_v59 }
 0x36a   :  { %9602 = vpow2.f32 %v1391_v17 }
 0x36b   :  { %v1310_v2 = vpop.permute.xlu1 %1309  ;;  %9604 = vpow2.f32 %v422_v54  ;;  %v10795_v18 = vadd.f32 %v10643_v39, %v551_v42  ;;  %v10819_v13 = vpack.i.bf16 %v10804_v55, %v10750_v58 }
 0x36c   :  { %v1348_v7 = vadd.f32 %v1310_v2, %v10513_v0  ;;  %v9601_v0 = vpop.eup %9600 }
 0x36d   :  { %v7326_v28 = vadd.f32 -1.0, %v9601_v0  ;;  %v10810_v48 = vpack.i.bf16 %v10795_v18, %v10804_v55 }
 0x36e   :  { %v1376_v4 = vmin.f32 %v1348_v7, 0.0  ;;  %vm1362_vm6 = vcmp.gt.f32.partialorder %v1348_v7, 0.0 }
 0x36f   :  { %7989 = vrot.lane.b32.xlu1 %v10772_v49, %s9850_s12  ;;  %v511_v60 = vsel %vm311_vm3, %v10736_v35, %v7326_v28  ;;  %vm1363_vm3 = vcmp.gt.f32.partialorder %v10789_v45, 0.0 }
 0x370   :  { %v1393_v12 = vmul.f32 1.442695, %v1376_v4  ;;  %v9603_v41 = vpop.eup %9602  ;;  %v553_v1 = vmul.f32 %v10626_v21, %v511_v60 }
 0x371   :  { %7964 = vrot.lane.b32.xlu2 %v10708_v38, %s9851_s13  ;;  %7984 = vrot.lane.b32.xlu0 %v10708_v38, %s9849_s11  ;;  %v9605_v27 = vpop.eup %9604  ;;  %v7354_v50 = vadd.f32 -1.0, %v9603_v41  ;;  %v426_v38 = vmul.f32 1.442695, %v352_v8  ;;  %v10839_v41 = vpop.f32.mrf.mxu0  ;;  %v354_v8 = vmin.f32 %v10812_v30, 0.0 }
 0x372   :  { %9606 = vpow2.f32 %v1393_v12  ;;  %v7325_v31 = vadd.f32 -1.0, %v9605_v27  ;;  %v10835_v59 = vadd.f32 %v10643_v39, %v553_v1  ;;  %v355_v20 = vmin.f32 %v10839_v41, 0.0 }
 0x373   :  { %v1431_v22 = vsel %vm1361_vm4, %v1347_v34, %v7354_v50  ;;  %9608 = vpow2.f32 %v1395_v36 }
 0x374   :  { %v510_v34 = vsel %vm310_vm5, %v10695_v19, %v7325_v31  ;;  %v1447_v54 = vmul.f32 %v10724_v56, %v1431_v22  ;;  %9610 = vpow2.f32 %v426_v38  ;;  %v7668_v31 = vld [vmem:[%s15740_s1 + $0x28] sm:$0xff]  ;;  %v10861_v38 = vpop.f32.mrf.mxu2  ;;  %vm314_vm5 = vcmp.gt.f32.partialorder %v10812_v30, 0.0 }
 0x375   :  { %9612 = vpow2.f32 %v428_v52  ;;  %4351 = vmatpush.bf16.msrb.mxu1 %v7668_v31 }
 0x376   :  { %v1463_v42 = vadd.f32 %v10734_v3, %v1447_v54 }
 0x377   :  { %8004 = vrot.lane.b32.xlu1 %v10810_v48, %s9853_s15 }
 0x378   :  { %v9607_v26 = vpop.eup %9606 }
 0x379   :  { %v7355_v17 = vadd.f32 -1.0, %v9607_v26  ;;  %7979 = vrot.lane.b32.xlu2 %v10719_v23, %s9848_s10  ;;  %7999 = vrot.lane.b32.xlu0 %v10819_v13, %s9852_s14  ;;  %v552_v23 = vmul.f32 %v10626_v21, %v510_v34  ;;  %v9609_v4 = vpop.eup %9608  ;;  %v432_v26 = vmul.f32 1.442695, %v355_v20 }
 0x37a   :  { %v7356_v27 = vadd.f32 -1.0, %v9609_v4 }
 0x37b   :  { %v1432_v51 = vsel %vm1362_vm6, %v1348_v7, %v7355_v17  ;;  %v1314_v2 = vpop.permute.xlu0 %1313  ;;  %v9611_v7 = vpop.eup %9610  ;;  %v10842_v14 = vadd.f32 %v10643_v39, %v552_v23  ;;  %vm315_vm6 = vcmp.gt.f32.partialorder %v10839_v41, 0.0 }
 0x37c   :  { %v1448_v35 = vmul.f32 %v10724_v56, %v1432_v51  ;;  %v1350_v6 = vadd.f32 %v1314_v2, %v10549_v62  ;;  %v9613_v62 = vpop.eup %9612  ;;  %v7327_v28 = vadd.f32 -1.0, %v9611_v7  ;;  %v1433_v22 = vsel %vm1363_vm3, %v10789_v45, %v7356_v27 }
 0x37d   :  { %v10852_v50 = vpack.i.bf16 %v10835_v59, %v10842_v14  ;;  %v7328_v36 = vadd.f32 -1.0, %v9613_v62  ;;  %v10868_v52 = vpack.i.bf16 %v10842_v14, %v10795_v18  ;;  %v1449_v45 = vmul.f32 %v10724_v56, %v1433_v22 }
 0x37e   :  { %v1378_v11 = vmin.f32 %v1350_v6, 0.0  ;;  %v1464_v19 = vadd.f32 %v10734_v3, %v1448_v35  ;;  %v512_v17 = vsel %vm312_vm7, %v10755_v32, %v7327_v28  ;;  %vm1364_vm4 = vcmp.gt.f32.partialorder %v1350_v6, 0.0 }
 0x37f   :  { %8019 = vrot.lane.b32.xlu1 %v10819_v13, %s9850_s12  ;;  %v513_v34 = vsel %vm313_vm2, %v10785_v61, %v7328_v36  ;;  %v554_v1 = vmul.f32 %v10626_v21, %v512_v17  ;;  %vm316_vm3 = vcmp.gt.f32.partialorder %v10861_v38, 0.0 }
 0x380   :  { %v1397_v0 = vmul.f32 1.442695, %v1378_v11  ;;  %v1476_v12 = vpack.c.bf16 %v1464_v19, %v1463_v42  ;;  %v555_v2 = vmul.f32 %v10626_v21, %v513_v34 }
 0x381   :  { %7994 = vrot.lane.b32.xlu2 %v10765_v15, %s9851_s13  ;;  %8014 = vrot.lane.b32.xlu0 %v10765_v15, %s9849_s11  ;;  %v430_v15 = vmul.f32 1.442695, %v354_v8  ;;  %v596_v42 = vadd.f32 %v10643_v39, %v554_v1 }
 0x382   :  { %9614 = vpow2.f32 %v1397_v0  ;;  %7367 = vmatmul.msk.bf16.gmra.mxu2 %vm15825_vm8, %v1476_v12  ;;  %v597_v19 = vadd.f32 %v10643_v39, %v555_v2  ;;  %v10887_v0 = vpop.f32.mrf.mxu2 }
 0x383   :  { %9616 = vpow2.f32 %v430_v15  ;;  %v357_v27 = vmin.f32 %v10887_v0, 0.0 }
 0x384   :  { %9618 = vpow2.f32 %v432_v26  ;;  %v10895_v8 = vpack.i.bf16 %v597_v19, %v596_v42 }
 0x385   :  { %v436_v22 = vmul.f32 1.442695, %v357_v27 }
 0x387   :  { %8034 = vrot.lane.b32.xlu1 %v10852_v50, %s9853_s15 }
 0x388   :  { %v9615_v60 = vpop.eup %9614 }
 0x389   :  { %v7357_v54 = vadd.f32 -1.0, %v9615_v60  ;;  %8009 = vrot.lane.b32.xlu2 %v10772_v49, %s9848_s10  ;;  %8029 = vrot.lane.b32.xlu0 %v10868_v52, %s9852_s14  ;;  %v1465_v49 = vadd.f32 %v10734_v3, %v1449_v45 }
 0x38b   :  { %v1434_v51 = vsel %vm1364_vm4, %v1350_v6, %v7357_v54  ;;  %v1318_v35 = vpop.permute.xlu2 %1317  ;;  %v9617_v6 = vpop.eup %9616  ;;  %vm317_vm4 = vcmp.gt.f32.partialorder %v10887_v0, 0.0 }
 0x38c   :  { %v1450_v32 = vmul.f32 %v10724_v56, %v1434_v51  ;;  %v1352_v61 = vadd.f32 %v1318_v35, %v10564_v37  ;;  %v9619_v12 = vpop.eup %9618  ;;  %v356_v37 = vmin.f32 %v10861_v38, 0.0  ;;  %v7329_v20 = vadd.f32 -1.0, %v9617_v6 }
 0x38d   :  { %v7330_v36 = vadd.f32 -1.0, %v9619_v12 }
 0x38e   :  { %v1380_v23 = vmin.f32 %v1352_v61, 0.0  ;;  %v1466_v11 = vadd.f32 %v10734_v3, %v1450_v32  ;;  %v434_v31 = vmul.f32 1.442695, %v356_v37  ;;  %v514_v26 = vsel %vm314_vm5, %v10812_v30, %v7329_v20  ;;  %v7667_v30 = vld [vmem:[%s15740_s1 + $0x20] sm:$0xff] }
 0x38f   :  { %8049 = vrot.lane.b32.xlu1 %v10868_v52, %s9850_s12  ;;  %v515_v17 = vsel %vm315_vm6, %v10839_v41, %v7330_v36  ;;  %v556_v34 = vmul.f32 %v10626_v21, %v514_v26  ;;  %vm1366_vm7 = vcmp.gt.f32.partialorder %v1352_v61, 0.0  ;;  %4352 = vmatpush.bf16.msrb.mxu1 %v7667_v30  ;;  %v338_v37 = vmin.f32 %v10501_v43, 0.0 }
 0x390   :  { %v1401_v4 = vmul.f32 1.442695, %v1380_v23  ;;  %v1477_v7 = vpack.c.bf16 %v1466_v11, %v1465_v49  ;;  %v557_v54 = vmul.f32 %v10626_v21, %v515_v17  ;;  %vm298_vm6 = vcmp.gt.f32.partialorder %v10501_v43, 0.0 }
 0x391   :  { %8024 = vrot.lane.b32.xlu2 %v10810_v48, %s9851_s13  ;;  %8044 = vrot.lane.b32.xlu0 %v10810_v48, %s9849_s11  ;;  %v10902_v48 = vpack.i.bf16 %v596_v42, %v10835_v59  ;;  %v598_v51 = vadd.f32 %v10643_v39, %v556_v34 }
 0x392   :  { %7368 = vmatmul.msk.bf16.gmra.mxu2 %vm15825_vm8, %v1477_v7  ;;  %9620 = vpow2.f32 %v1401_v4 }
 0x393   :  { %v1316_v62 = vpop.permute.xlu1 %1315  ;;  %9622 = vpow2.f32 %v434_v31  ;;  %v398_v31 = vmul.f32 1.442695, %v338_v37 }
 0x394   :  { %v1351_v28 = vadd.f32 %v1316_v62, %v10546_v25 }
 0x396   :  { %v1379_v15 = vmin.f32 %v1351_v28, 0.0  ;;  %vm1365_vm2 = vcmp.gt.f32.partialorder %v1351_v28, 0.0 }
 0x397   :  { %8064 = vrot.lane.b32.xlu1 %v10895_v8, %s9853_s15 }
 0x398   :  { %v1399_v60 = vmul.f32 1.442695, %v1379_v15  ;;  %v9621_v25 = vpop.eup %9620 }
 0x399   :  { %8039 = vrot.lane.b32.xlu2 %v10819_v13, %s9848_s10  ;;  %8059 = vrot.lane.b32.xlu0 %v10902_v48, %s9852_s14  ;;  %v7359_v45 = vadd.f32 -1.0, %v9621_v25  ;;  %v9623_v41 = vpop.eup %9622  ;;  %v10919_v13 = vadd.f32 %v10643_v39, %v557_v54 }
 0x39a   :  { %9624 = vpow2.f32 %v1399_v60 }
 0x39b   :  { %9626 = vpow2.f32 %v436_v22  ;;  %v1436_v2 = vsel %vm1366_vm7, %v1352_v61, %v7359_v45  ;;  %v10929_v6 = vpack.i.bf16 %v10919_v13, %v598_v51  ;;  %v7331_v61 = vadd.f32 -1.0, %v9623_v41 }
 0x39c   :  { %v1452_v23 = vmul.f32 %v10724_v56, %v1436_v2 }
 0x39e   :  { %v1468_v20 = vadd.f32 %v10734_v3, %v1452_v23 }
 0x39f   :  { %8079 = vrot.lane.b32.xlu1 %v10902_v48, %s9850_s12 }
 0x3a0   :  { %v9625_v1 = vpop.eup %9624 }
 0x3a1   :  { %v9627_v35 = vpop.eup %9626  ;;  %v7358_v32 = vadd.f32 -1.0, %v9625_v1  ;;  %8054 = vrot.lane.b32.xlu2 %v10852_v50, %s9851_s13  ;;  %8074 = vrot.lane.b32.xlu0 %v10852_v50, %s9849_s11  ;;  %v8088_v50 = vpack.i.bf16 %v598_v51, %v597_v19 }
 0x3a2   :  { %v7332_v12 = vadd.f32 -1.0, %v9627_v35 }
 0x3a3   :  { %v1435_v49 = vsel %vm1365_vm2, %v1351_v28, %v7358_v32  ;;  %v1324_v11 = vpop.permute.xlu2 %1323  ;;  %v1320_v42 = vpop.permute.xlu0 %1319  ;;  %v516_v28 = vsel %vm316_vm3, %v10861_v38, %v7331_v61 }
 0x3a4   :  { %v1451_v4 = vmul.f32 %v10724_v56, %v1435_v49  ;;  %v1353_v7 = vadd.f32 %v1320_v42, %v10576_v40  ;;  %v517_v40 = vsel %vm317_vm4, %v10887_v0, %v7332_v12  ;;  %v558_v15 = vmul.f32 %v10626_v21, %v516_v28 }
 0x3a5   :  { %v559_v22 = vmul.f32 %v10626_v21, %v517_v40  ;;  %v10950_v0 = vadd.f32 %v1324_v11, %v10590_v57 }
 0x3a6   :  { %v1381_v62 = vmin.f32 %v1353_v7, 0.0  ;;  %v1467_v27 = vadd.f32 %v10734_v3, %v1451_v4  ;;  %vm1367_vm5 = vcmp.gt.f32.partialorder %v1353_v7, 0.0 }
 0x3a7   :  { %8094 = vrot.lane.b32.xlu1 %v10929_v6, %s9853_s15  ;;  %v601_v25 = vadd.f32 %v10643_v39, %v559_v22  ;;  %vm1369_vm2 = vcmp.gt.f32.partialorder %v10950_v0, 0.0 }
 0x3a8   :  { %v1403_v36 = vmul.f32 1.442695, %v1381_v62  ;;  %v1478_v19 = vpack.c.bf16 %v1468_v20, %v1467_v27 }
 0x3a9   :  { %8069 = vrot.lane.b32.xlu2 %v10868_v52, %s9848_s10  ;;  %8089 = vrot.lane.b32.xlu0 %v8088_v50, %s9852_s14  ;;  %v600_v52 = vadd.f32 %v10643_v39, %v558_v15 }
 0x3aa   :  { %9628 = vpow2.f32 %v1403_v36  ;;  %7369 = vmatmul.msk.bf16.gmra.mxu2 %vm15825_vm8, %v1478_v19 }
 0x3ab   :  { %v1322_v26 = vpop.permute.xlu1 %1321  ;;  %v1330_v60 = vpop.permute.xlu2 %1329  ;;  %9630 = vpow2.f32 %v398_v31  ;;  %v8123_v30 = vpack.i.bf16 %v601_v25, %v600_v52  ;;  %v8118_v51 = vpack.i.bf16 %v600_v52, %v10919_v13 }
 0x3ac   :  { %v1354_v38 = vadd.f32 %v1322_v26, %v10572_v44  ;;  %v1383_v44 = vmin.f32 %v10950_v0, 0.0  ;;  %v10977_v62 = vadd.f32 %v1330_v60, %v10620_v10 }
 0x3ae   :  { %v1382_v17 = vmin.f32 %v1354_v38, 0.0  ;;  %v1407_v1 = vmul.f32 1.442695, %v1383_v44  ;;  %vm1368_vm7 = vcmp.gt.f32.partialorder %v1354_v38, 0.0 }
 0x3af   :  { %8109 = vrot.lane.b32.xlu1 %v8088_v50, %s9850_s12 }
 0x3b0   :  { %v1405_v34 = vmul.f32 1.442695, %v1382_v17  ;;  %v9629_v54 = vpop.eup %9628 }
 0x3b1   :  { %8084 = vrot.lane.b32.xlu2 %v10895_v8, %s9851_s13  ;;  %8104 = vrot.lane.b32.xlu0 %v10895_v8, %s9849_s11  ;;  %v7360_v45 = vadd.f32 -1.0, %v9629_v54  ;;  %v9631_v41 = vpop.eup %9630 }
 0x3b2   :  { %9632 = vpow2.f32 %v1405_v34  ;;  %v7313_v32 = vadd.f32 -1.0, %v9631_v41 }
 0x3b3   :  { %v7920_v57 = vpop.permute.xlu2 %7919  ;;  %v1437_v2 = vsel %vm1367_vm5, %v1353_v7, %v7360_v45  ;;  %9634 = vpow2.f32 %v1407_v1  ;;  %vm1372_vm5 = vcmp.gt.f32.partialorder %v10977_v62, 0.0 }
 0x3b4   :  { %v1453_v49 = vmul.f32 %v10724_v56, %v1437_v2  ;;  %v498_v4 = vsel %vm298_vm6, %v10501_v43, %v7313_v32  ;;  %v7921_v36 = vunpack.i.l.bf16 %v7920_v57 }
 0x3b5   :  { %v540_v37 = vmul.f32 %v10626_v21, %v498_v4  ;;  %v1386_v21 = vmin.f32 %v10977_v62, 0.0 }
 0x3b7   :  { %8124 = vrot.lane.b32.xlu1 %v8123_v30, %s9853_s15  ;;  %v582_v19 = vadd.f32 %v10643_v39, %v540_v37  ;;  %v1413_v52 = vmul.f32 1.442695, %v1386_v21 }
 0x3b8   :  { %v9633_v35 = vpop.eup %9632 }
 0x3b9   :  { %v7361_v23 = vadd.f32 -1.0, %v9633_v35  ;;  %v1328_v8 = vpop.permute.xlu1 %1327  ;;  %8099 = vrot.lane.b32.xlu2 %v10902_v48, %s9848_s10  ;;  %8119 = vrot.lane.b32.xlu0 %v8118_v51, %s9852_s14  ;;  %v1469_v48 = vadd.f32 %v10734_v3, %v1453_v49  ;;  %v9635_v28 = vpop.eup %9634 }
 0x3ba   :  { %v10970_v7 = vadd.f32 %v1328_v8, %v10610_v24  ;;  %v7362_v15 = vadd.f32 -1.0, %v9635_v28 }
 0x3bb   :  { %v1438_v13 = vsel %vm1368_vm7, %v1354_v38, %v7361_v23  ;;  %v1326_v11 = vpop.permute.xlu0 %1325  ;;  %v7935_v42 = vpop.permute.xlu2 %7934  ;;  %v4202_v38 = vsel %vm15825_vm8, %v582_v19, %v7921_v36 }
 0x3bc   :  { %v1454_v61 = vmul.f32 %v10724_v56, %v1438_v13  ;;  %v1356_v12 = vadd.f32 %v1326_v11, %v10633_v33  ;;  %v1385_v20 = vmin.f32 %v10970_v7, 0.0  ;;  %v7922_v33 = vunpack.i.h.bf16 %v7920_v57 }
 0x3bd   :  { %v1439_v34 = vsel %vm1369_vm2, %v10950_v0, %v7362_v15  ;;  %v7936_v41 = vunpack.i.l.bf16 %v7935_v42  ;;  %v7937_v1 = vunpack.i.h.bf16 %v7935_v42  ;;  %vm1371_vm4 = vcmp.gt.f32.partialorder %v10970_v7, 0.0 }
 0x3be   :  { %v1470_v50 = vadd.f32 %v10734_v3, %v1454_v61  ;;  %v1384_v27 = vmin.f32 %v1356_v12, 0.0  ;;  %v1411_v22 = vmul.f32 1.442695, %v1385_v20  ;;  %v4203_v17 = vsel %vm15825_vm8, %v10704_v5, %v7922_v33 }
 0x3bf   :  { %v1455_v51 = vmul.f32 %v10724_v56, %v1439_v34  ;;  %vm1370_vm3 = vcmp.gt.f32.partialorder %v1356_v12, 0.0 }
 0x3c0   :  { %v1479_v43 = vpack.c.bf16 %v1470_v50, %v1469_v48  ;;  %v1409_v40 = vmul.f32 1.442695, %v1384_v27 }
 0x3c1   :  { %v7930_v24 = vpop.permute.xlu1 %7929  ;;  %8114 = vrot.lane.b32.xlu2 %v10929_v6, %s9851_s13  ;;  %v1471_v42 = vadd.f32 %v10734_v3, %v1455_v51 }
 0x3c2   :  { %7370 = vmatmul.msk.bf16.gmra.mxu2 %vm15825_vm8, %v1479_v43  ;;  %9636 = vpow2.f32 %v1409_v40  ;;  %v7931_v39 = vunpack.i.l.bf16 %v7930_v24  ;;  %v7932_v54 = vunpack.i.h.bf16 %v7930_v24 }
 0x3c3   :  { %v7925_v10 = vpop.permute.xlu0 %7924  ;;  %v7950_v31 = vpop.permute.xlu2 %7949  ;;  %9638 = vpow2.f32 %v1411_v22 }
 0x3c4   :  { %v7927_v26 = vunpack.i.h.bf16 %v7925_v10  ;;  %v7926_v60 = vunpack.i.l.bf16 %v7925_v10  ;;  %9640 = vpow2.f32 %v1413_v52  ;;  %v7952_v24 = vunpack.i.h.bf16 %v7950_v31 }
 0x3c5   :  { %v7951_v33 = vunpack.i.l.bf16 %v7950_v31 }
 0x3c6   :  { %v4216_v6 = vsel %vm15823_vm9, %v4202_v38, %v7926_v60  ;;  %v4217_v25 = vsel %vm15823_vm9, %v4203_v17, %v7927_v26  ;;  %v4205_v60 = vsel %vm15825_vm8, %v10646_v53, %v7952_v24 }
 0x3c7   :  { %v4230_v45 = vsel %vm15824_vm10, %v4216_v6, %v7931_v39  ;;  %v4231_v5 = vsel %vm15824_vm10, %v4217_v25, %v7932_v54  ;;  %v4204_v38 = vsel %vm15825_vm8, %v10675_v9, %v7951_v33 }
 0x3c8   :  { %v9637_v44 = vpop.eup %9636  ;;  %v4244_v0 = vsel %vm918_vm11, %v4230_v45, %v7936_v41  ;;  %v4245_v4 = vsel %vm918_vm11, %v4231_v5, %v7937_v1 }
 0x3c9   :  { %v7945_v57 = vpop.permute.xlu1 %7944  ;;  %v7363_v30 = vadd.f32 -1.0, %v9637_v44  ;;  %v9639_v61 = vpop.eup %9638 }
 0x3ca   :  { %v7947_v13 = vunpack.i.h.bf16 %v7945_v57  ;;  %v7946_v11 = vunpack.i.l.bf16 %v7945_v57  ;;  %v9641_v43 = vpop.eup %9640  ;;  %v7364_v28 = vadd.f32 -1.0, %v9639_v61 }
 0x3cb   :  { %v7940_v2 = vpop.permute.xlu0 %7939  ;;  %v7965_v35 = vpop.permute.xlu2 %7964  ;;  %v1440_v32 = vsel %vm1370_vm3, %v1356_v12, %v7363_v30  ;;  %v7365_v10 = vadd.f32 -1.0, %v9641_v43 }
 0x3cc   :  { %v7942_v23 = vunpack.i.h.bf16 %v7940_v2  ;;  %v7941_v8 = vunpack.i.l.bf16 %v7940_v2  ;;  %v1456_v49 = vmul.f32 %v10724_v56, %v1440_v32  ;;  %v1441_v26 = vsel %vm1371_vm4, %v10970_v7, %v7364_v28 }
 0x3cd   :  { %v1442_v6 = vsel %vm1372_vm5, %v10977_v62, %v7365_v10  ;;  %v1457_v52 = vmul.f32 %v10724_v56, %v1441_v26  ;;  %v7967_v9 = vunpack.i.h.bf16 %v7965_v35  ;;  %v7966_v44 = vunpack.i.l.bf16 %v7965_v35 }
 0x3ce   :  { %v4259_v48 = vsel %vm15745_vm12, %v4245_v4, %v7942_v23  ;;  %v4258_v50 = vsel %vm15745_vm12, %v4244_v0, %v7941_v8  ;;  %v1472_v37 = vadd.f32 %v10734_v3, %v1456_v49  ;;  %v1458_v54 = vmul.f32 %v10724_v56, %v1442_v6 }
 0x3cf   :  { %v4272_v12 = vsel %vm948_vm13, %v4258_v50, %v7946_v11  ;;  %v4273_v27 = vsel %vm948_vm13, %v4259_v48, %v7947_v13  ;;  %v1473_v5 = vadd.f32 %v10734_v3, %v1457_v52 }
 0x3d0   :  { %v4286_v20 = vpack.c.bf16 %v4273_v27, %v4272_v12  ;;  %v1480_v40 = vpack.c.bf16 %v1472_v37, %v1471_v42  ;;  %v1474_v56 = vadd.f32 %v10734_v3, %v1458_v54 }
 0x3d1   :  { %v7960_v36 = vpop.permute.xlu1 %7959 }
 0x3d2   :  { %7500 = vmatmul.msk.bf16.vlgmr.msrb.gmra.mxu1 %vm15744_vm1, %v4286_v20  ;;  %7371 = vmatmul.msk.bf16.gmra.mxu2 %vm15825_vm8, %v1480_v40  ;;  %v7962_v39 = vunpack.i.h.bf16 %v7960_v36  ;;  %v7961_v25 = vunpack.i.l.bf16 %v7960_v36  ;;  %v1481_v13 = vpack.c.bf16 %v1474_v56, %v1473_v5 }
 0x3d3   :  { %v7955_v19 = vpop.permute.xlu0 %7954  ;;  %v7980_v21 = vpop.permute.xlu2 %7979 }
 0x3d4   :  { %v7957_v15 = vunpack.i.h.bf16 %v7955_v19  ;;  %v7956_v22 = vunpack.i.l.bf16 %v7955_v19  ;;  %v7982_v11 = vunpack.i.h.bf16 %v7980_v21  ;;  %v7981_v4 = vunpack.i.l.bf16 %v7980_v21 }
 0x3d6   :  { %v4219_v31 = vsel %vm15823_vm9, %v4205_v60, %v7957_v15  ;;  %v4218_v17 = vsel %vm15823_vm9, %v4204_v38, %v7956_v22  ;;  %v4207_v3 = vsel %vm15825_vm8, %v10698_v47, %v7982_v11  ;;  %v4206_v37 = vsel %vm15825_vm8, %v10659_v16, %v7981_v4  ;;  %v11041_v47 = vld [vmem:[%s15741_s2 + $0x20] ss:$0 sm:$0xff] }
 0x3d7   :  { %v4232_v7 = vsel %vm15824_vm10, %v4218_v17, %v7961_v25  ;;  %v4233_v53 = vsel %vm15824_vm10, %v4219_v31, %v7962_v39 }
 0x3d8   :  { %v4246_v1 = vsel %vm918_vm11, %v4232_v7, %v7966_v44  ;;  %v4247_v2 = vsel %vm918_vm11, %v4233_v53, %v7967_v9 }
 0x3d9   :  { %v7975_v34 = vpop.permute.xlu1 %7974 }
 0x3da   :  { %v7977_v62 = vunpack.i.h.bf16 %v7975_v34  ;;  %v7976_v51 = vunpack.i.l.bf16 %v7975_v34 }
 0x3db   :  { %v7970_v45 = vpop.permute.xlu0 %7969  ;;  %v7995_v57 = vpop.permute.xlu2 %7994 }
 0x3dc   :  { %v7972_v30 = vunpack.i.h.bf16 %v7970_v45  ;;  %v7971_v41 = vunpack.i.l.bf16 %v7970_v45  ;;  %v7997_v33 = vunpack.i.h.bf16 %v7995_v57  ;;  %v7996_v19 = vunpack.i.l.bf16 %v7995_v57 }
 0x3de   :  { %v4260_v32 = vsel %vm15745_vm12, %v4246_v1, %v7971_v41  ;;  %v4261_v0 = vsel %vm15745_vm12, %v4247_v2, %v7972_v30 }
 0x3df   :  { %v4274_v35 = vsel %vm948_vm13, %v4260_v32, %v7976_v51  ;;  %v4275_v23 = vsel %vm948_vm13, %v4261_v0, %v7977_v62 }
 0x3e0   :  { %v4287_v8 = vpack.c.bf16 %v4275_v23, %v4274_v35 }
 0x3e1   :  { %v7990_v49 = vpop.permute.xlu1 %7989 }
 0x3e2   :  { %7501 = vmatmul.msk.bf16.gmra.mxu1 %vm15744_vm1, %v4287_v8  ;;  %7372 = vmatmul.msk.bf16.gmra.mxu2 %vm15825_vm8, %v1481_v13  ;;  %v7992_v43 = vunpack.i.h.bf16 %v7990_v49  ;;  %v7991_v28 = vunpack.i.l.bf16 %v7990_v49 }
 0x3e3   :  { %v7985_v61 = vpop.permute.xlu0 %7984  ;;  %v8010_v48 = vpop.permute.xlu2 %8009 }
 0x3e4   :  { %v7987_v50 = vunpack.i.h.bf16 %v7985_v61  ;;  %v7986_v42 = vunpack.i.l.bf16 %v7985_v61  ;;  %v8012_v54 = vunpack.i.h.bf16 %v8010_v48  ;;  %v8011_v9 = vunpack.i.l.bf16 %v8010_v48 }
 0x3e6   :  { %v4221_v12 = vsel %vm15823_vm9, %v4207_v3, %v7987_v50  ;;  %v4220_v27 = vsel %vm15823_vm9, %v4206_v37, %v7986_v42  ;;  %v1518_v20 = vpop.f32.mrf.mxu2  ;;  %v4209_v41 = vsel %vm15825_vm8, %v10691_v46, %v8012_v54  ;;  %v4208_v5 = vsel %vm15825_vm8, %v10701_v29, %v8011_v9 }
 0x3e7   :  { %v4234_v40 = vsel %vm15824_vm10, %v4220_v27, %v7991_v28  ;;  %v4235_v24 = vsel %vm15824_vm10, %v4221_v12, %v7992_v43  ;;  %v1519_v25 = vadd.f32 %v11041_v47, %v1518_v20 }
 0x3e8   :  { %v4248_v60 = vsel %vm918_vm11, %v4234_v40, %v7996_v19  ;;  %v4249_v38 = vsel %vm918_vm11, %v4235_v24, %v7997_v33 }
 0x3e9   :  { %v8005_v36 = vpop.permute.xlu1 %8004 }
 0x3ea   :  { %v8007_v22 = vunpack.i.h.bf16 %v8005_v36  ;;  %v8006_v26 = vunpack.i.l.bf16 %v8005_v36 }
 0x3eb   :  { %v8000_v21 = vpop.permute.xlu0 %7999  ;;  %v8025_v15 = vpop.permute.xlu2 %8024 }
 0x3ec   :  { %v8002_v16 = vunpack.i.h.bf16 %v8000_v21  ;;  %v8001_v10 = vunpack.i.l.bf16 %v8000_v21  ;;  %v8027_v23 = vunpack.i.h.bf16 %v8025_v15  ;;  %v8026_v8 = vunpack.i.l.bf16 %v8025_v15 }
 0x3ee   :  { %v4262_v31 = vsel %vm15745_vm12, %v4248_v60, %v8001_v10  ;;  %v4263_v17 = vsel %vm15745_vm12, %v4249_v38, %v8002_v16  ;;  %v1520_v6 = vpop.f32.mrf.mxu2 }
 0x3ef   :  { %v4276_v52 = vsel %vm948_vm13, %v4262_v31, %v8006_v26  ;;  %v4277_v39 = vsel %vm948_vm13, %v4263_v17, %v8007_v22  ;;  %v1521_v34 = vadd.f32 %v11041_v47, %v1520_v6 }
 0x3f0   :  { %v4288_v7 = vpack.c.bf16 %v4277_v39, %v4276_v52 }
 0x3f1   :  { %v8020_v53 = vpop.permute.xlu1 %8019  ;;  %v1553_v44 = vpack.c.bf16 %v1521_v34, %v1519_v25 }
 0x3f2   :  { %7502 = vmatmul.msk.bf16.gmra.mxu1 %vm15744_vm1, %v4288_v7  ;;  %v8022_v2 = vunpack.i.h.bf16 %v8020_v53  ;;  %v8021_v32 = vunpack.i.l.bf16 %v8020_v53 }
 0x3f3   :  { %v8015_v45 = vpop.permute.xlu0 %8014  ;;  %7377 = vmatmul.msk.bf16.vlgmr.msrb.gmra.mxu0 %vm15823_vm9, %v1553_v44  ;;  %v8040_v62 = vpop.permute.xlu2 %8039 }
 0x3f4   :  { %v8017_v57 = vunpack.i.h.bf16 %v8015_v45  ;;  %v8016_v30 = vunpack.i.l.bf16 %v8015_v45  ;;  %v8042_v20 = vunpack.i.h.bf16 %v8040_v62  ;;  %v8041_v43 = vunpack.i.l.bf16 %v8040_v62 }
 0x3f6   :  { %v4223_v51 = vsel %vm15823_vm9, %v4209_v41, %v8017_v57  ;;  %v4222_v1 = vsel %vm15823_vm9, %v4208_v5, %v8016_v30  ;;  %v4211_v33 = vsel %vm15825_vm8, %v10750_v58, %v8042_v20  ;;  %v4210_v19 = vsel %vm15825_vm8, %v10758_v63, %v8041_v43 }
 0x3f7   :  { %v4236_v56 = vsel %vm15824_vm10, %v4222_v1, %v8021_v32  ;;  %v4237_v35 = vsel %vm15824_vm10, %v4223_v51, %v8022_v2 }
 0x3f8   :  { %v4250_v29 = vsel %vm918_vm11, %v4236_v56, %v8026_v8  ;;  %v4251_v61 = vsel %vm918_vm11, %v4237_v35, %v8027_v23 }
 0x3f9   :  { %v8035_v0 = vpop.permute.xlu1 %8034 }
 0x3fa   :  { %v8037_v49 = vunpack.i.h.bf16 %v8035_v0  ;;  %v8036_v13 = vunpack.i.l.bf16 %v8035_v0 }
 0x3fb   :  { %v8030_v46 = vpop.permute.xlu0 %8029  ;;  %v8055_v37 = vpop.permute.xlu2 %8054 }
 0x3fc   :  { %v8032_v11 = vunpack.i.h.bf16 %v8030_v46  ;;  %v8031_v4 = vunpack.i.l.bf16 %v8030_v46  ;;  %v8057_v22 = vunpack.i.h.bf16 %v8055_v37  ;;  %v8056_v26 = vunpack.i.l.bf16 %v8055_v37 }
 0x3fe   :  { %v4264_v48 = vsel %vm15745_vm12, %v4250_v29, %v8031_v4  ;;  %v4265_v50 = vsel %vm15745_vm12, %v4251_v61, %v8032_v11 }
 0x3ff   :  { %v4278_v42 = vsel %vm948_vm13, %v4264_v48, %v8036_v13  ;;  %v4279_v3 = vsel %vm948_vm13, %v4265_v50, %v8037_v49 }
 0x400   :  { %v4289_v12 = vpack.c.bf16 %v4279_v3, %v4278_v42 }
 0x401   :  { %v8050_v27 = vpop.permute.xlu1 %8049 }
 0x402   :  { %7503 = vmatmul.msk.bf16.gmra.mxu1 %vm15744_vm1, %v4289_v12  ;;  %v8052_v10 = vunpack.i.h.bf16 %v8050_v27  ;;  %v8051_v15 = vunpack.i.l.bf16 %v8050_v27 }
 0x403   :  { %v8045_v28 = vpop.permute.xlu0 %8044  ;;  %v8070_v17 = vpop.permute.xlu2 %8069 }
 0x404   :  { %v8047_v36 = vunpack.i.h.bf16 %v8045_v28  ;;  %v8046_v40 = vunpack.i.l.bf16 %v8045_v28  ;;  %v8072_v62 = vunpack.i.h.bf16 %v8070_v17  ;;  %v8071_v51 = vunpack.i.l.bf16 %v8070_v17 }
 0x405   :  { %v1523_v24 = vpop.f32.mrf.mxu2 }
 0x406   :  { %v4225_v21 = vsel %vm15823_vm9, %v4211_v33, %v8047_v36  ;;  %v4224_v16 = vsel %vm15823_vm9, %v4210_v19, %v8046_v40  ;;  %v1524_v53 = vadd.f32 %v11041_v47, %v1523_v24  ;;  %v4213_v35 = vsel %vm15825_vm8, %v10795_v18, %v8072_v62 }
 0x407   :  { %v4238_v38 = vsel %vm15824_vm10, %v4224_v16, %v8051_v15  ;;  %v4239_v31 = vsel %vm15824_vm10, %v4225_v21, %v8052_v10  ;;  %v4212_v23 = vsel %vm15825_vm8, %v10804_v55, %v8071_v51 }
 0x408   :  { %v4252_v34 = vsel %vm918_vm11, %v4238_v38, %v8056_v26  ;;  %v4253_v7 = vsel %vm918_vm11, %v4239_v31, %v8057_v22 }
 0x409   :  { %v8065_v60 = vpop.permute.xlu1 %8064 }
 0x40a   :  { %v8067_v52 = vunpack.i.h.bf16 %v8065_v60  ;;  %v8066_v58 = vunpack.i.l.bf16 %v8065_v60 }
 0x40b   :  { %v8060_v6 = vpop.permute.xlu0 %8059  ;;  %v8085_v2 = vpop.permute.xlu2 %8084 }
 0x40c   :  { %v8062_v39 = vunpack.i.h.bf16 %v8060_v6  ;;  %v8061_v25 = vunpack.i.l.bf16 %v8060_v6  ;;  %v8087_v11 = vunpack.i.h.bf16 %v8085_v2  ;;  %v8086_v4 = vunpack.i.l.bf16 %v8085_v2 }
 0x40d   :  { %v1525_v63 = vpop.f32.mrf.mxu2 }
 0x40e   :  { %v1526_v54 = vadd.f32 %v11041_v47, %v1525_v63  ;;  %v4266_v9 = vsel %vm15745_vm12, %v4252_v34, %v8061_v25  ;;  %v4267_v44 = vsel %vm15745_vm12, %v4253_v7, %v8062_v39 }
 0x40f   :  { %v4280_v45 = vsel %vm948_vm13, %v4266_v9, %v8066_v58  ;;  %v4281_v57 = vsel %vm948_vm13, %v4267_v44, %v8067_v52 }
 0x410   :  { %v1554_v30 = vpack.c.bf16 %v1526_v54, %v1524_v53  ;;  %v4290_v41 = vpack.c.bf16 %v4281_v57, %v4280_v45 }
 0x411   :  { %v8080_v5 = vpop.permute.xlu1 %8079 }
 0x412   :  { %7378 = vmatmul.msk.bf16.gmra.mxu0 %vm15823_vm9, %v1554_v30  ;;  %7504 = vmatmul.msk.bf16.gmra.mxu1 %vm15744_vm1, %v4290_v41  ;;  %v8082_v8 = vunpack.i.h.bf16 %v8080_v5  ;;  %v8081_v49 = vunpack.i.l.bf16 %v8080_v5 }
 0x413   :  { %v8075_v1 = vpop.permute.xlu0 %8074  ;;  %v8100_v20 = vpop.permute.xlu2 %8099 }
 0x414   :  { %v8077_v32 = vunpack.i.h.bf16 %v8075_v1  ;;  %v8076_v0 = vunpack.i.l.bf16 %v8075_v1  ;;  %v8102_v10 = vunpack.i.h.bf16 %v8100_v20  ;;  %v8101_v15 = vunpack.i.l.bf16 %v8100_v20 }
 0x415   :  { %v1528_v56 = vpop.f32.mrf.mxu2 }
 0x416   :  { %v4227_v13 = vsel %vm15823_vm9, %v4213_v35, %v8077_v32  ;;  %v4226_v46 = vsel %vm15823_vm9, %v4212_v23, %v8076_v0  ;;  %v1529_v43 = vadd.f32 %v11041_v47, %v1528_v56  ;;  %v4215_v38 = vsel %vm15825_vm8, %v10835_v59, %v8102_v10 }
 0x417   :  { %v4241_v61 = vsel %vm15824_vm10, %v4227_v13, %v8082_v8  ;;  %v4240_v48 = vsel %vm15824_vm10, %v4226_v46, %v8081_v49  ;;  %v4214_v31 = vsel %vm15825_vm8, %v10842_v14, %v8101_v15 }
 0x418   :  { %v4254_v55 = vsel %vm918_vm11, %v4240_v48, %v8086_v4  ;;  %v4255_v12 = vsel %vm918_vm11, %v4241_v61, %v8087_v11 }
 0x419   :  { %v8095_v29 = vpop.permute.xlu1 %8094 }
 0x41a   :  { %v8097_v42 = vunpack.i.h.bf16 %v8095_v29  ;;  %v8096_v3 = vunpack.i.l.bf16 %v8095_v29 }
 0x41b   :  { %v8090_v50 = vpop.permute.xlu0 %8089  ;;  %v8115_v52 = vpop.permute.xlu2 %8114 }
 0x41c   :  { %v8092_v18 = vunpack.i.h.bf16 %v8090_v50  ;;  %v8091_v37 = vunpack.i.l.bf16 %v8090_v50  ;;  %v8117_v25 = vunpack.i.h.bf16 %v8115_v52  ;;  %v8116_v63 = vunpack.i.l.bf16 %v8115_v52 }
 0x41d   :  { %v1530_v27 = vpop.f32.mrf.mxu2 }
 0x41e   :  { %v4269_v28 = vsel %vm15745_vm12, %v4255_v12, %v8092_v18  ;;  %v4268_v36 = vsel %vm15745_vm12, %v4254_v55, %v8091_v37  ;;  %v1531_v40 = vadd.f32 %v11041_v47, %v1530_v27 }
 0x41f   :  { %v4283_v24 = vsel %vm948_vm13, %v4269_v28, %v8097_v42  ;;  %v4282_v33 = vsel %vm948_vm13, %v4268_v36, %v8096_v3 }
 0x420   :  { %v1555_v19 = vpack.c.bf16 %v1531_v40, %v1529_v43  ;;  %v4291_v21 = vpack.c.bf16 %v4283_v24, %v4282_v33 }
 0x421   :  { %v8110_v16 = vpop.permute.xlu1 %8109 }
 0x422   :  { %7379 = vmatmul.msk.bf16.gmra.mxu0 %vm15823_vm9, %v1555_v19  ;;  %7505 = vmatmul.msk.bf16.gmra.mxu1 %vm15744_vm1, %v4291_v21  ;;  %v8112_v17 = vunpack.i.h.bf16 %v8110_v16  ;;  %v8111_v6 = vunpack.i.l.bf16 %v8110_v16 }
 0x423   :  { %v8105_v22 = vpop.permute.xlu0 %8104 }
 0x424   :  { %v8107_v26 = vunpack.i.h.bf16 %v8105_v22  ;;  %v8106_v60 = vunpack.i.l.bf16 %v8105_v22 }
 0x426   :  { %v4229_v58 = vsel %vm15823_vm9, %v4215_v38, %v8107_v26  ;;  %v4228_v39 = vsel %vm15823_vm9, %v4214_v31, %v8106_v60 }
 0x427   :  { %v4243_v7 = vsel %vm15824_vm10, %v4229_v58, %v8112_v17  ;;  %v4242_v53 = vsel %vm15824_vm10, %v4228_v39, %v8111_v6 }
 0x428   :  { %v4256_v14 = vsel %vm918_vm11, %v4242_v53, %v8116_v63  ;;  %v4257_v57 = vsel %vm918_vm11, %v4243_v7, %v8117_v25 }
 0x429   :  { %v8125_v34 = vpop.permute.xlu1 %8124 }
 0x42a   :  { %v8127_v9 = vunpack.i.h.bf16 %v8125_v34  ;;  %v8126_v59 = vunpack.i.l.bf16 %v8125_v34 }
 0x42b   :  { %v8120_v54 = vpop.permute.xlu0 %8119 }
 0x42c   :  { %v8122_v44 = vunpack.i.h.bf16 %v8120_v54  ;;  %v8121_v45 = vunpack.i.l.bf16 %v8120_v54 }
 0x42d   :  { %v1533_v5 = vpop.f32.mrf.mxu2 }
 0x42e   :  { %v4270_v30 = vsel %vm15745_vm12, %v4256_v14, %v8121_v45  ;;  %v4271_v41 = vsel %vm15745_vm12, %v4257_v57, %v8122_v44  ;;  %v1534_v32 = vadd.f32 %v11041_v47, %v1533_v5  ;;  %vm15746_vm12 = vcmask 916480  }
 0x42f   :  { %v4284_v62 = vsel %vm948_vm13, %v4270_v30, %v8126_v59  ;;  %v4285_v51 = vsel %vm948_vm13, %v4271_v41, %v8127_v9 }
 0x430   :  { %v4292_v1 = vpack.c.bf16 %v4285_v51, %v4284_v62 }
 0x432   :  { %7506 = vmatmul.msk.bf16.gmra.mxu1 %vm15744_vm1, %v4292_v1  ;;  %vm15747_vm1 = vcmask 785408  }
 0x435   :  { %v1535_v2 = vpop.f32.mrf.mxu2 }
 0x436   :  { %v1536_v0 = vadd.f32 %v11041_v47, %v1535_v2 }
 0x438   :  { %v1556_v56 = vpack.c.bf16 %v1536_v0, %v1534_v32 }
 0x43a   :  { %7380 = vmatmul.msk.bf16.vlgmr.msra.gmra.mxu3 %vm15823_vm9, %v1556_v56 }
 0x445   :  { %v1538_v35 = vpop.f32.mrf.mxu2 }
 0x446   :  { %v1539_v8 = vadd.f32 %v11041_v47, %v1538_v35 }
 0x44d   :  { %v1540_v23 = vpop.f32.mrf.mxu2 }
 0x44e   :  { %v1541_v49 = vadd.f32 %v11041_v47, %v1540_v23 }
 0x44f   :  { %v4354_v13 = vpop.f32.mrf.mxu1 }
 0x450   :  { %v1557_v46 = vpack.c.bf16 %v1541_v49, %v1539_v8  ;;  %v4403_v29 = vrot.slane %v4354_v13, 1 }
 0x452   :  { %7381 = vmatmul.msk.bf16.gmra.mxu3 %vm15823_vm9, %v1557_v46 }
 0x455   :  { %v1543_v11 = vpop.f32.mrf.mxu2 }
 0x456   :  { %v1544_v42 = vadd.f32 %v11041_v47, %v1543_v11 }
 0x457   :  { %v4356_v4 = vpop.f32.mrf.mxu1 }
 0x458   :  { %v4404_v61 = vrot.slane %v4356_v4, 1 }
 0x45a   :  { %v4405_v48 = vsel %vm15822_vm14, %v4403_v29, %v4404_v61 }
 0x45b   :  { %4430 = vrot.lane.b32.xlu2 %v4405_v48, %s9854_s24 }
 0x45d   :  { %v1545_v50 = vpop.f32.mrf.mxu2 }
 0x45e   :  { %v1546_v3 = vadd.f32 %v11041_v47, %v1545_v50 }
 0x45f   :  { %v11129_v18 = vpop.f32.mrf.mxu1 }
 0x460   :  { %v4406_v37 = vrot.slane %v11129_v18, 1  ;;  %v1558_v55 = vpack.c.bf16 %v1546_v3, %v1544_v42 }
 0x462   :  { %v4407_v12 = vsel %vm15822_vm14, %v4404_v61, %v4406_v37  ;;  %7382 = vmatmul.msk.bf16.gmra.mxu3 %vm15823_vm9, %v1558_v55 }
 0x463   :  { %4432 = vrot.lane.b32.xlu0 %v4407_v12, %s9854_s24 }
 0x465   :  { %v1548_v27 = vpop.f32.mrf.mxu2 }
 0x466   :  { %v1549_v40 = vadd.f32 %v11041_v47, %v1548_v27 }
 0x467   :  { %v4361_v20 = vpop.f32.mrf.mxu1 }
 0x468   :  { %v4408_v43 = vrot.slane %v4361_v20, 1 }
 0x46a   :  { %v4409_v28 = vsel %vm15822_vm14, %v4406_v37, %v4408_v43 }
 0x46b   :  { %4434 = vrot.lane.b32.xlu1 %v4409_v28, %s9854_s24 }
 0x46d   :  { %v1550_v36 = vpop.f32.mrf.mxu2 }
 0x46e   :  { %v1551_v24 = vadd.f32 %v11041_v47, %v1550_v36  ;;  %v11214_v36 = vld [vmem:[%s15741_s2 + $0x28] ss:$0 sm:$0xff] }
 0x46f   :  { %v11139_v33 = vpop.f32.mrf.mxu1 }
 0x470   :  { %v4410_v19 = vrot.slane %v11139_v33, 1  ;;  %v1559_v21 = vpack.c.bf16 %v1551_v24, %v1549_v40  ;;  %v11165_v39 = vpop.f32.mrf.mxu0 }
 0x471   :  { %v1647_v45 = vmin.f32 %v11165_v39, 0.0  ;;  %vm1633_vm7 = vcmp.gt.f32.partialorder %v11165_v39, 0.0 }
 0x472   :  { %v4411_v16 = vsel %vm15822_vm14, %v4408_v43, %v4410_v19  ;;  %7383 = vmatmul.msk.bf16.gmra.mxu3 %vm15823_vm9, %v1559_v21 }
 0x473   :  { %4436 = vrot.lane.b32.xlu2 %v4411_v16, %s9854_s24  ;;  %v1661_v62 = vmul.f32 1.442695, %v1647_v45 }
 0x477   :  { %v11145_v10 = vpop.f32.mrf.mxu1 }
 0x478   :  { %v4412_v15 = vrot.slane %v11145_v10, 1  ;;  %v1600_v25 = vpop.f32.mrf.mxu0 }
 0x479   :  { %v1648_v53 = vmin.f32 %v1600_v25, 0.0  ;;  %vm1634_vm6 = vcmp.gt.f32.partialorder %v1600_v25, 0.0 }
 0x47a   :  { %v4413_v22 = vsel %vm15822_vm14, %v4410_v19, %v4412_v15 }
 0x47b   :  { %4438 = vrot.lane.b32.xlu0 %v4413_v22, %s9854_s24  ;;  %v1663_v9 = vmul.f32 1.442695, %v1648_v53 }
 0x47d   :  { %9642 = vpow2.f32 %v1663_v9 }
 0x47e   :  { %9644 = vpow2.f32 %v1661_v62 }
 0x47f   :  { %v11150_v47 = vpop.f32.mrf.mxu1 }
 0x480   :  { %v4414_v26 = vrot.slane %v11150_v47, 1 }
 0x482   :  { %v4415_v60 = vsel %vm15822_vm14, %v4412_v15, %v4414_v26 }
 0x483   :  { %4440 = vrot.lane.b32.xlu1 %v4415_v60, %s9854_s24  ;;  %v9643_v35 = vpop.eup %9642  ;;  %v11230_v60 = vld [vmem:[%s15741_s2 + $0x30] ss:$0 sm:$0xff] }
 0x484   :  { %v9645_v12 = vpop.eup %9644 }
 0x485   :  { %v7384_v19 = vadd.f32 -1.0, %v9645_v12 }
 0x487   :  { %v11155_v38 = vpop.f32.mrf.mxu1 }
 0x488   :  { %v4416_v31 = vrot.slane %v11155_v38, 1 }
 0x48a   :  { %v4417_v17 = vsel %vm15822_vm14, %v4414_v26, %v4416_v31 }
 0x48b   :  { %4442 = vrot.lane.b32.xlu2 %v4417_v17, %s9854_s24 }
 0x48f   :  { %v11160_v6 = vpop.f32.mrf.mxu1  ;;  %v11167_v63 = vpop.f32.mrf.mxu0 }
 0x490   :  { %v4418_v52 = vrot.slane %v11160_v6, 1  ;;  %v1649_v23 = vmin.f32 %v11167_v63, 0.0  ;;  %vm1635_vm3 = vcmp.gt.f32.partialorder %v11167_v63, 0.0 }
 0x492   :  { %v4419_v58 = vsel %vm15822_vm14, %v4416_v31, %v4418_v52  ;;  %v1665_v48 = vmul.f32 1.442695, %v1649_v23 }
 0x493   :  { %4444 = vrot.lane.b32.xlu0 %v4419_v58, %s9854_s24  ;;  %v1703_v58 = vsel %vm1633_vm7, %v11165_v39, %v7384_v19 }
 0x494   :  { %v1719_v39 = vmul.f32 %v11214_v36, %v1703_v58 }
 0x497   :  { %v11171_v7 = vpop.f32.mrf.mxu0  ;;  %v11187_v0 = vpop.f32.mrf.mxu1 }
 0x498   :  { %15841 = vst [vmem:[#allocation2_spill] sm:$0xff] %v11187_v0  ;;  %v1650_v8 = vmin.f32 %v11171_v7, 0.0  ;;  %v4420_v29 = vrot.slane %v11187_v0, 1  ;;  %vm1636_vm4 = vcmp.gt.f32.partialorder %v11171_v7, 0.0 }
 0x49a   :  { %v1667_v50 = vmul.f32 1.442695, %v1650_v8 }
 0x49f   :  { %v11175_v44 = vpop.f32.mrf.mxu0  ;;  %v11218_v40 = vpop.f32.mrf.mxu1 }
 0x4a0   :  { %v1651_v57 = vmin.f32 %v11175_v44, 0.0  ;;  %15843 = vst [vmem:[#allocation4_spill] sm:$0xff] %v11218_v40  ;;  %v15750_v26 = vrot.slane %v11218_v40, 1  ;;  %vm1637_vm2 = vcmp.gt.f32.partialorder %v11175_v44, 0.0 }
 0x4a2   :  { %v1669_v2 = vmul.f32 1.442695, %v1651_v57 }
 0x4a4   :  { %9646 = vpow2.f32 %v1669_v2 }
 0x4a5   :  { %9648 = vpow2.f32 %v1665_v48 }
 0x4a6   :  { %9650 = vpow2.f32 %v1667_v50 }
 0x4a7   :  { %v11204_v37 = vpop.f32.mrf.mxu0 }
 0x4a8   :  { %v1652_v24 = vmin.f32 %v11204_v37, 0.0 }
 0x4aa   :  { %v9647_v28 = vpop.eup %9646  ;;  %v1671_v17 = vmul.f32 1.442695, %v1652_v24 }
 0x4ab   :  { %v7388_v16 = vadd.f32 -1.0, %v9647_v28 }
 0x4b5   :  { %v4431_v59 = vpop.permute.xlu2 %4430 }
 0x4b6   :  { %v11178_v14 = vadd.f32 %v4431_v59, %v4354_v13  ;;  %v1707_v59 = vsel %vm1637_vm2, %v11175_v44, %v7388_v16 }
 0x4b8   :  { %v4500_v51 = vrot.slane %v11178_v14, 2 }
 0x4bd   :  { %v11169_v34 = vpop.f32.mrf.mxu3 }
 0x4be   :  { %v1653_v15 = vmin.f32 %v11169_v34, 0.0  ;;  %vm1639_vm2 = vcmp.gt.f32.partialorder %v11169_v34, 0.0 }
 0x4c0   :  { %v1673_v45 = vmul.f32 1.442695, %v1653_v15 }
 0x4c5   :  { %v11173_v54 = vpop.f32.mrf.mxu3 }
 0x4c6   :  { %v1654_v13 = vmin.f32 %v11173_v54, 0.0  ;;  %vm1640_vm5 = vcmp.gt.f32.partialorder %v11173_v54, 0.0 }
 0x4c8   :  { %v1675_v55 = vmul.f32 1.442695, %v1654_v13  ;;  %v11259_v13 = vadd.f32 %v11230_v60, %v1719_v39 }
 0x4ca   :  { %9652 = vpow2.f32 %v1675_v55 }
 0x4cb   :  { %9654 = vpow2.f32 %v1671_v17 }
 0x4cd   :  { %v4437_v32 = vpop.permute.xlu2 %4436 }
 0x4ce   :  { %v11193_v49 = vadd.f32 %v4437_v32, %v4361_v20  ;;  %v4421_v20 = vsel %vm15822_vm14, %v4418_v52, %v4420_v29  ;;  %v9649_v52 = vpop.eup %9648 }
 0x4cf   :  { %v9651_v9 = vpop.eup %9650  ;;  %v7386_v62 = vadd.f32 -1.0, %v9649_v52 }
 0x4d0   :  { %15842 = vst [vmem:[#allocation3_spill] sm:$0xff] %v11193_v49  ;;  %v4505_v42 = vrot.slane %v11193_v49, 2  ;;  %v9653_v57 = vpop.eup %9652 }
 0x4d1   :  { %v7391_v32 = vadd.f32 -1.0, %v9653_v57  ;;  %v9655_v48 = vpop.eup %9654 }
 0x4d3   :  { %v1710_v50 = vsel %vm1640_vm5, %v11173_v54, %v7391_v32 }
 0x4d5   :  { %v11181_v30 = vpop.f32.mrf.mxu3  ;;  %v4433_v41 = vpop.permute.xlu0 %4432 }
 0x4d6   :  { %v11183_v5 = vadd.f32 %v4433_v41, %v4356_v4  ;;  %v7385_v4 = vadd.f32 -1.0, %v9643_v35  ;;  %v4423_v41 = vsel %vm15822_vm14, %v4420_v29, %v15750_v26  ;;  %v1655_v44 = vmin.f32 %v11181_v30, 0.0 }
 0x4d8   :  { %v4501_v1 = vrot.slane %v11183_v5, 2  ;;  %v1704_v27 = vsel %vm1634_vm6, %v1600_v25, %v7385_v4  ;;  %v1677_v4 = vmul.f32 1.442695, %v1655_v44  ;;  %vm1638_vm6 = vcmp.gt.f32.partialorder %v11204_v37, 0.0 }
 0x4d9   :  { %v1720_v21 = vmul.f32 %v11214_v36, %v1704_v27 }
 0x4da   :  { %v4502_v56 = vsel %vm1178_vm15, %v4500_v51, %v4501_v1  ;;  %v7387_v51 = vadd.f32 -1.0, %v9651_v9 }
 0x4db   :  { %4527 = vrot.lane.b32.xlu2 %v4502_v56, %s9855_s6  ;;  %v11237_v53 = vadd.f32 %v11230_v60, %v1720_v21 }
 0x4dd   :  { %v11196_v46 = vpop.f32.mrf.mxu3  ;;  %v4435_v11 = vpop.permute.xlu1 %4434 }
 0x4de   :  { %v11200_v61 = vadd.f32 %v4435_v11, %v11129_v18  ;;  %v1656_v56 = vmin.f32 %v11196_v46, 0.0  ;;  %v1705_v11 = vsel %vm1635_vm3, %v11167_v63, %v7386_v62  ;;  %vm1641_vm3 = vcmp.gt.f32.partialorder %v11181_v30, 0.0 }
 0x4df   :  { %v1721_v27 = vmul.f32 %v11214_v36, %v1705_v11 }
 0x4e0   :  { %v4503_v3 = vrot.slane %v11200_v61, 2 }
 0x4e1   :  { %v11284_v19 = vadd.f32 %v11230_v60, %v1721_v27 }
 0x4e2   :  { %v4506_v43 = vsel %vm1178_vm15, %v4503_v3, %v4505_v42  ;;  %v4504_v18 = vsel %vm1178_vm15, %v4501_v1, %v4503_v3  ;;  %v1723_v1 = vmul.f32 %v11214_v36, %v1707_v59  ;;  %v1679_v3 = vmul.f32 1.442695, %v1656_v56 }
 0x4e3   :  { %4446 = vrot.lane.b32.xlu2 %v4421_v20, %s9854_s24  ;;  %4531 = vrot.lane.b32.xlu1 %v4506_v43, %s9855_s6  ;;  %v1726_v20 = vmul.f32 %v11214_v36, %v1710_v50 }
 0x4e4   :  { %4529 = vrot.lane.b32.xlu0 %v4504_v18, %s9855_s6  ;;  %v11264_v29 = vadd.f32 %v11230_v60, %v1723_v1 }
 0x4e5   :  { %v11224_v22 = vpop.f32.mrf.mxu3  ;;  %v11288_v16 = vadd.f32 %v11230_v60, %v1726_v20 }
 0x4e6   :  { %v1657_v31 = vmin.f32 %v11224_v22, 0.0  ;;  %vm1643_vm7 = vcmp.gt.f32.partialorder %v11224_v22, 0.0 }
 0x4e8   :  { %v1681_v25 = vmul.f32 1.442695, %v1657_v31 }
 0x4ea   :  { %9656 = vpow2.f32 %v1681_v25 }
 0x4eb   :  { %1765 = vrot.lane.b32.xlu1 %v11237_v53, %s9855_s6  ;;  %9658 = vpow2.f32 %v1673_v45 }
 0x4ec   :  { %4448 = vrot.lane.b32.xlu0 %v4423_v41, %s9854_s24  ;;  %9660 = vpow2.f32 %v1677_v4 }
 0x4ed   :  { %v4439_v2 = vpop.permute.xlu0 %4438  ;;  %v11250_v35 = vpop.f32.mrf.mxu3  ;;  %9662 = vpow2.f32 %v1679_v3 }
 0x4ee   :  { %v11253_v23 = vadd.f32 %v4439_v2, %v11139_v33  ;;  %v1706_v33 = vsel %vm1636_vm4, %v11171_v7, %v7387_v51  ;;  %v1658_v54 = vmin.f32 %v11250_v35, 0.0  ;;  %vm1642_vm4 = vcmp.gt.f32.partialorder %v11196_v46, 0.0 }
 0x4ef   :  { %v1722_v7 = vmul.f32 %v11214_v36, %v1706_v33  ;;  %vm1644_vm5 = vcmp.gt.f32.partialorder %v11250_v35, 0.0 }
 0x4f0   :  { %15844 = vst [vmem:[#allocation5_spill] sm:$0xff] %v11253_v23  ;;  %v4507_v8 = vrot.slane %v11253_v23, 2  ;;  %v9657_v12 = vpop.eup %9656  ;;  %v1683_v21 = vmul.f32 1.442695, %v1658_v54 }
 0x4f1   :  { %v9659_v63 = vpop.eup %9658  ;;  %v7394_v43 = vadd.f32 -1.0, %v9657_v12  ;;  %v11291_v15 = vadd.f32 %v11230_v60, %v1722_v7 }
 0x4f2   :  { %v4508_v55 = vsel %vm1178_vm15, %v4505_v42, %v4507_v8  ;;  %v7389_v42 = vadd.f32 -1.0, %v9655_v48  ;;  %v7390_v28 = vadd.f32 -1.0, %v9659_v63  ;;  %v9661_v58 = vpop.eup %9660  ;;  %9664 = vpow2.f32 %v1683_v21 }
 0x4f3   :  { %4533 = vrot.lane.b32.xlu2 %v4508_v55, %s9855_s6  ;;  %1771 = vrot.lane.b32.xlu1 %v11264_v29, %s9855_s6  ;;  %v1713_v17 = vsel %vm1643_vm7, %v11224_v22, %v7394_v43  ;;  %v9663_v59 = vpop.eup %9662  ;;  %v7392_v57 = vadd.f32 -1.0, %v9661_v58 }
 0x4f4   :  { %1763 = vrot.lane.b32.xlu0 %v11259_v13, %s9855_s6  ;;  %v1708_v31 = vsel %vm1638_vm6, %v11204_v37, %v7389_v42  ;;  %v1709_v25 = vsel %vm1639_vm2, %v11169_v34, %v7390_v28  ;;  %v1729_v45 = vmul.f32 %v11214_v36, %v1713_v17  ;;  %v7393_v39 = vadd.f32 -1.0, %v9663_v59  ;;  %v11368_v28 = vpop.permute.xlu2 %4442 }
 0x4f5   :  { %v1628_v18 = vpop.f32.mrf.mxu3  ;;  %v4441_v9 = vpop.permute.xlu1 %4440  ;;  %v1724_v37 = vmul.f32 %v11214_v36, %v1708_v31  ;;  %v1725_v22 = vmul.f32 %v11214_v36, %v1709_v25  ;;  %v1711_v32 = vsel %vm1641_vm3, %v11181_v30, %v7392_v57  ;;  %vm15821_vm2 = vcmask 1044480  }
 0x4f6   :  { %v1659_v24 = vmin.f32 %v1628_v18, 0.0  ;;  %v11307_v34 = vadd.f32 %v4441_v9, %v11145_v10  ;;  %v11314_v44 = vadd.f32 %v11230_v60, %v1729_v45  ;;  %v1712_v11 = vsel %vm1642_vm4, %v11196_v46, %v7393_v39 }
 0x4f7   :  { %v11310_v51 = vadd.f32 %v11230_v60, %v1724_v37  ;;  %v11317_v2 = vadd.f32 %v11230_v60, %v1725_v22  ;;  %v1727_v30 = vmul.f32 %v11214_v36, %v1711_v32  ;;  %v1728_v48 = vmul.f32 %v11214_v36, %v1712_v11 }
 0x4f8   :  { %v1685_v52 = vmul.f32 1.442695, %v1659_v24  ;;  %15845 = vst [vmem:[#allocation6_spill] sm:$0xff] %v11307_v34  ;;  %v15749_v10 = vrot.slane %v11307_v34, 2  ;;  %v9665_v56 = vpop.eup %9664  ;;  %vm1645_vm6 = vcmp.gt.f32.partialorder %v1628_v18, 0.0  ;;  %vm2239_vm3 = vcmask 1041408  }
 0x4f9   :  { %v7395_v33 = vadd.f32 -1.0, %v9665_v56  ;;  %v11339_v55 = vadd.f32 %v11230_v60, %v1727_v30  ;;  %v11344_v27 = vadd.f32 %v11230_v60, %v1728_v48  ;;  %vm15826_vm4 = vcmask 1042432  }
 0x4fa   :  { %9666 = vpow2.f32 %v1685_v52  ;;  %v11336_v46 = vsel %vm1178_vm15, %v4507_v8, %v15749_v10 }
 0x4fb   :  { %1767 = vrot.lane.b32.xlu2 %v11284_v19, %s9855_s6  ;;  %1777 = vrot.lane.b32.xlu1 %v11288_v16, %s9855_s6  ;;  %15846 = vst [vmem:[#allocation7_spill] sm:$0xff] %v11336_v46  ;;  %v1714_v12 = vsel %vm1644_vm5, %v11250_v35, %v7395_v33  ;;  %vm2310_vm5 = vcmask 1040384  }
 0x4fc   :  { %1769 = vrot.lane.b32.xlu0 %v11291_v15, %s9855_s6  ;;  %v1730_v54 = vmul.f32 %v11214_v36, %v1714_v12  ;;  %v7658_v12 = vld [vmem:[%s15740_s1 + $0x88] sm:$0xff] }
 0x4fd   :  { %v1630_v41 = vpop.f32.mrf.mxu3  ;;  %2569 = vmatpush.bf16.msra.mxu2 %v7658_v12 }
 0x4fe   :  { %v1660_v62 = vmin.f32 %v1630_v41, 0.0  ;;  %vm1646_vm7 = vcmp.gt.f32.partialorder %v1630_v41, 0.0  ;;  %v11359_v43 = vadd.f32 %v11230_v60, %v1730_v54 }
 0x500   :  { %v1687_v1 = vmul.f32 1.442695, %v1660_v62  ;;  %v9667_v4 = vpop.eup %9666 }
 0x501   :  { %v7396_v50 = vadd.f32 -1.0, %v9667_v4 }
 0x502   :  { %9668 = vpow2.f32 %v1687_v1 }
 0x503   :  { %1773 = vrot.lane.b32.xlu2 %v11310_v51, %s9855_s6  ;;  %1783 = vrot.lane.b32.xlu1 %v11314_v44, %s9855_s6  ;;  %v1715_v7 = vsel %vm1645_vm6, %v1628_v18, %v7396_v50  ;;  %vm15769_vm6 = vcmask 523264  }
 0x504   :  { %1775 = vrot.lane.b32.xlu0 %v11317_v2, %s9855_s6  ;;  %v1731_v35 = vmul.f32 %v11214_v36, %v1715_v7 }
 0x505   :  { %v11374_v21 = vpop.permute.xlu0 %4444 }
 0x506   :  { %v11362_v18 = vadd.f32 %v11230_v60, %v1731_v35 }
 0x508   :  { %v9669_v3 = vpop.eup %9668 }
 0x509   :  { %v7397_v63 = vadd.f32 -1.0, %v9669_v3 }
 0x50b   :  { %1779 = vrot.lane.b32.xlu2 %v11339_v55, %s9855_s6  ;;  %v1716_v8 = vsel %vm1646_vm7, %v1630_v41, %v7397_v63  ;;  %vm15748_vm7 = vcmask 654336  }
 0x50c   :  { %1781 = vrot.lane.b32.xlu0 %v11344_v27, %s9855_s6  ;;  %v1732_v20 = vmul.f32 %v11214_v36, %v1716_v8 }
 0x50e   :  { %v11354_v42 = vadd.f32 %v11230_v60, %v1732_v20 }
 0x510   :  { %1789 = vrot.lane.b32.xlu1 %v11354_v42, %s9855_s6 }
 0x513   :  { %1785 = vrot.lane.b32.xlu2 %v11359_v43, %s9855_s6 }
 0x514   :  { %1787 = vrot.lane.b32.xlu0 %v11362_v18, %s9855_s6 }
 0x535   :  { %v11370_v36 = vpop.permute.xlu2 %4527 }
 0x53d   :  { %v11372_v24 = vpop.permute.xlu2 %4446 }
 0x53e   :  { %15847 = vst [vmem:[#allocation8_spill] sm:$0xff] %v11372_v24 }
 0x54d   :  { %v11376_v31 = vpop.permute.xlu2 %4533 }
 0x54e   :  { %15848 = vst [vmem:[#allocation9_spill] sm:$0xff] %v11376_v31 }
 0x555   :  { %v11378_v17 = vpop.permute.xlu1 %4531  ;;  %v1768_v58 = vpop.permute.xlu2 %1767 }
 0x556   :  { %v11380_v60 = vpop.permute.xlu0 %4529  ;;  %v1807_v59 = vadd.f32 %v1768_v58, %v11284_v19 }
 0x558   :  { %v1821_v45 = vmul.f32 0.5, %v1807_v59 }
 0x55a   :  { %v1850_v39 = vrot.slane %v1821_v45, 4 }
 0x55d   :  { %v1766_v52 = vpop.permute.xlu1 %1765 }
 0x55e   :  { %v11382_v25 = vpop.permute.xlu0 %4448  ;;  %v1806_v9 = vadd.f32 %v1766_v52, %v11237_v53 }
 0x55f   :  { %15849 = vst [vmem:[#allocation10_spill] sm:$0xff] %v11382_v25 }
 0x560   :  { %v1820_v37 = vmul.f32 0.5, %v1806_v9 }
 0x562   :  { %v1848_v57 = vrot.slane %v1820_v37, 4 }
 0x564   :  { %v11388_v32 = vsel %vm165_vm0, %v1848_v57, %v1850_v39 }
 0x565   :  { %v1772_v62 = vpop.permute.xlu1 %1771  ;;  %v2034_v48 = vrot.slane %v11388_v32, 3  ;;  %v1965_v3 = vrot.slane %v11388_v32, 2  ;;  %v1896_v59 = vrot.slane %v11388_v32, 1  ;;  %v2243_v37 = vrot.slane %v11388_v32, 6 }
 0x566   :  { %v1764_v22 = vpop.permute.xlu0 %1763  ;;  %v1809_v11 = vadd.f32 %v1772_v62, %v11264_v29 }
 0x567   :  { %v1805_v41 = vadd.f32 %v1764_v22, %v11259_v13 }
 0x568   :  { %v11407_v63 = vmul.f32 0.5, %v1809_v11  ;;  %v2173_v11 = vrot.slane %v11388_v32, 5 }
 0x569   :  { %v1819_v1 = vmul.f32 0.5, %v1805_v41 }
 0x56b   :  { %v1847_v56 = vrot.slane %v1819_v1, 4 }
 0x56d   :  { %v11392_v4 = vsel %vm165_vm0, %v1847_v56, %v1848_v57  ;;  %v11395_v53 = vsel %vm165_vm0, 0.0, %v1847_v56 }
 0x56e   :  { %v1770_v19 = vpop.permute.xlu0 %1769  ;;  %v2031_v13 = vrot.slane %v11395_v53, 3  ;;  %v2032_v30 = vrot.slane %v11392_v4, 3  ;;  %v1962_v29 = vrot.slane %v11395_v53, 2  ;;  %v1963_v50 = vrot.slane %v11392_v4, 2 }
 0x56f   :  { %v1808_v33 = vadd.f32 %v1770_v19, %v11291_v15  ;;  %v1893_v15 = vrot.slane %v11395_v53, 1  ;;  %v1894_v9 = vrot.slane %v11392_v4, 1  ;;  %v2240_v22 = vrot.slane %v11395_v53, 6 }
 0x570   :  { %v2033_v7 = vsel %vm15821_vm2, %v2031_v13, %v2032_v30  ;;  %v2035_v8 = vsel %vm15821_vm2, %v2032_v30, %v2034_v48  ;;  %v1964_v35 = vsel %vm1178_vm15, %v1962_v29, %v1963_v50  ;;  %v1966_v52 = vsel %vm1178_vm15, %v1963_v50, %v1965_v3 }
 0x571   :  { %v1822_v54 = vmul.f32 0.5, %v1808_v33  ;;  %v8138_v20 = vpack.i.bf16 %v2035_v8, %v2033_v7  ;;  %v8133_v58 = vpack.i.bf16 %v1966_v52, %v1964_v35  ;;  %v2241_v57 = vrot.slane %v11392_v4, 6 }
 0x572   :  { %v2170_v41 = vrot.slane %v11395_v53, 5  ;;  %v1895_v62 = vsel %vm15822_vm14, %v1893_v15, %v1894_v9  ;;  %v1897_v1 = vsel %vm15822_vm14, %v1894_v9, %v1896_v59  ;;  %v2171_v56 = vrot.slane %v11392_v4, 5  ;;  %v7657_v15 = vld [vmem:[%s15740_s1 + $0x80] sm:$0xff] }
 0x573   :  { %v1852_v45 = vrot.slane %v1822_v54, 4  ;;  %8139 = vrot.lane.b32.xlu1 %v8138_v20, %s9853_s15  ;;  %8134 = vrot.lane.b32.xlu0 %v8133_v58, %s9851_s13  ;;  %v1854_v19 = vrot.slane %v11407_v63, 4  ;;  %v8128_v13 = vpack.i.bf16 %v1897_v1, %v1895_v62  ;;  %v2242_v30 = vsel %vm2239_vm3, %v2240_v22, %v2241_v57 }
 0x574   :  { %v2244_v33 = vsel %vm2239_vm3, %v2241_v57, %v2243_v37  ;;  %v2172_v29 = vsel %vm15826_vm4, %v2170_v41, %v2171_v56  ;;  %v2174_v50 = vsel %vm15826_vm4, %v2171_v56, %v2173_v11  ;;  %v2100_v8 = vrot.slane %v11395_v53, 4  ;;  %2570 = vmatpush.bf16.msra.mxu2 %v7657_v15 }
 0x575   :  { %v11436_v12 = vsel %vm165_vm0, %v1850_v39, %v1852_v45  ;;  %v11441_v7 = vsel %vm165_vm0, %v1852_v45, %v1854_v19  ;;  %8129 = vrot.lane.b32.xlu2 %v8128_v13, %s9849_s11  ;;  %v2101_v20 = vrot.slane %v11392_v4, 4  ;;  %v2103_v35 = vrot.slane %v11388_v32, 4  ;;  %v1774_v39 = vpop.permute.xlu2 %1773 }
 0x576   :  { %v1776_v54 = vpop.permute.xlu0 %1775  ;;  %v8153_v52 = vpack.i.bf16 %v2244_v33, %v2242_v30  ;;  %v8148_v58 = vpack.i.bf16 %v2174_v50, %v2172_v29  ;;  %v1967_v22 = vrot.slane %v11436_v12, 2  ;;  %v1969_v57 = vrot.slane %v11441_v7, 2 }
 0x577   :  { %v2102_v9 = vsel %vm165_vm0, %v2100_v8, %v2101_v20  ;;  %v2104_v45 = vsel %vm165_vm0, %v2101_v20, %v2103_v35  ;;  %v1811_v41 = vadd.f32 %v1776_v54, %v11317_v2  ;;  %v1898_v62 = vrot.slane %v11436_v12, 1 }
 0x578   :  { %v1810_v1 = vadd.f32 %v1774_v39, %v11310_v51  ;;  %v8143_v56 = vpack.i.bf16 %v2104_v45, %v2102_v9  ;;  %v2311_v13 = vrot.slane %v11395_v53, 7  ;;  %v2312_v30 = vrot.slane %v11392_v4, 7 }
 0x579   :  { %v1900_v33 = vrot.slane %v11441_v7, 1  ;;  %v1968_v29 = vsel %vm1178_vm15, %v1965_v3, %v1967_v22  ;;  %v1970_v2 = vsel %vm1178_vm15, %v1967_v22, %v1969_v57  ;;  %v11466_v50 = vmul.f32 0.5, %v1811_v41 }
 0x57a   :  { %v1899_v51 = vsel %vm15822_vm14, %v1896_v59, %v1898_v62  ;;  %v2314_v15 = vrot.slane %v11388_v32, 7  ;;  %v1824_v54 = vmul.f32 0.5, %v1810_v1  ;;  %v2313_v20 = vsel %vm2310_vm5, %v2311_v13, %v2312_v30 }
 0x57b   :  { %8154 = vrot.lane.b32.xlu1 %v8153_v52, %s9856_s18  ;;  %8149 = vrot.lane.b32.xlu0 %v8148_v58, %s9857_s19  ;;  %v1901_v8 = vsel %vm15822_vm14, %v1898_v62, %v1900_v33  ;;  %v8168_v39 = vpack.i.bf16 %v1970_v2, %v1968_v29  ;;  %v2175_v58 = vrot.slane %v11436_v12, 5  ;;  %v2177_v9 = vrot.slane %v11441_v7, 5 }
 0x57c   :  { %v2315_v3 = vsel %vm2310_vm5, %v2312_v30, %v2314_v15  ;;  %v8163_v52 = vpack.i.bf16 %v1901_v8, %v1899_v51  ;;  %v1858_v45 = vrot.slane %v11466_v50, 4  ;;  %v2105_v59 = vrot.slane %v11436_v12, 4  ;;  %v7656_v8 = vld [vmem:[%s15740_s1 + $0x78] sm:$0xff] }
 0x57d   :  { %8144 = vrot.lane.b32.xlu2 %v8143_v56, %s9858_s20  ;;  %v2107_v22 = vrot.slane %v11441_v7, 4  ;;  %v1856_v41 = vrot.slane %v1824_v54, 4  ;;  %v8158_v62 = vpack.i.bf16 %v2315_v3, %v2313_v20  ;;  %v2036_v1 = vrot.slane %v11436_v12, 3  ;;  %2571 = vmatpush.bf16.msra.mxu2 %v7656_v8 }
 0x57e   :  { %v2038_v56 = vrot.slane %v11441_v7, 3  ;;  %v2176_v13 = vsel %vm15826_vm4, %v2173_v11, %v2175_v58  ;;  %v2178_v30 = vsel %vm15826_vm4, %v2175_v58, %v2177_v9  ;;  %v2106_v2 = vsel %vm165_vm0, %v2103_v35, %v2105_v59 }
 0x57f   :  { %v11490_v29 = vsel %vm165_vm0, %v1856_v41, %v1858_v45  ;;  %v2108_v51 = vsel %vm165_vm0, %v2105_v59, %v2107_v22  ;;  %v11501_v11 = vsel %vm165_vm0, %v1854_v19, %v1856_v41  ;;  %v8183_v54 = vpack.i.bf16 %v2178_v30, %v2176_v13 }
 0x580   :  { %v2037_v20 = vsel %vm15821_vm2, %v2034_v48, %v2036_v1  ;;  %v8178_v35 = vpack.i.bf16 %v2108_v51, %v2106_v2  ;;  %v1904_v3 = vrot.slane %v11490_v29, 1  ;;  %v2318_v63 = vrot.slane %v11441_v7, 7  ;;  %v1778_v2 = vpop.permute.xlu1 %1777 }
 0x581   :  { %v1902_v19 = vrot.slane %v11501_v11, 1  ;;  %v2245_v59 = vrot.slane %v11436_v12, 6  ;;  %v2247_v48 = vrot.slane %v11441_v7, 6 }
 0x583   :  { %8169 = vrot.lane.b32.xlu1 %v8168_v39, %s9851_s13  ;;  %8164 = vrot.lane.b32.xlu0 %v8163_v52, %s9849_s11  ;;  %v2039_v39 = vsel %vm15821_vm2, %v2036_v1, %v2038_v56  ;;  %v2316_v52 = vrot.slane %v11436_v12, 7  ;;  %v1905_v41 = vsel %vm15822_vm14, %v1902_v19, %v1904_v3  ;;  %v1903_v13 = vsel %vm15822_vm14, %v1900_v33, %v1902_v19 }
 0x584   :  { %v8173_v58 = vpack.i.bf16 %v2039_v39, %v2037_v20  ;;  %v8198_v30 = vpack.i.bf16 %v1905_v41, %v1903_v13  ;;  %v2246_v51 = vsel %vm2239_vm3, %v2243_v37, %v2245_v59  ;;  %v2248_v8 = vsel %vm2239_vm3, %v2245_v59, %v2247_v48 }
 0x585   :  { %8159 = vrot.lane.b32.xlu2 %v8158_v62, %s9855_s6  ;;  %v2317_v62 = vsel %vm2310_vm5, %v2314_v15, %v2316_v52  ;;  %v2319_v1 = vsel %vm2310_vm5, %v2316_v52, %v2318_v63  ;;  %v2111_v20 = vrot.slane %v11490_v29, 4  ;;  %v2042_v39 = vrot.slane %v11490_v29, 3  ;;  %v1780_v15 = vpop.permute.xlu2 %1779 }
 0x586   :  { %v2109_v33 = vrot.slane %v11501_v11, 4  ;;  %v8188_v52 = vpack.i.bf16 %v2248_v8, %v2246_v51  ;;  %v2040_v19 = vrot.slane %v11501_v11, 3  ;;  %v1973_v37 = vrot.slane %v11490_v29, 2 }
 0x587   :  { %v1813_v59 = vadd.f32 %v1780_v15, %v11339_v55  ;;  %v2322_v8 = vrot.slane %v11490_v29, 7  ;;  %v2251_v15 = vrot.slane %v11490_v29, 6 }
 0x588   :  { %v2043_v41 = vsel %vm15821_vm2, %v2040_v19, %v2042_v39  ;;  %v1784_v50 = vpop.permute.xlu1 %1783 }
 0x58b   :  { %8184 = vrot.lane.b32.xlu1 %v8183_v54, %s9857_s19  ;;  %8179 = vrot.lane.b32.xlu0 %v8178_v35, %s9858_s20  ;;  %v8193_v54 = vpack.i.bf16 %v2319_v1, %v2317_v62  ;;  %v1812_v35 = vadd.f32 %v1778_v2, %v11288_v16  ;;  %v7655_v62 = vld [vmem:[%s15740_s1 + $0x70] sm:$0xff]  ;;  %v1971_v16 = vrot.slane %v11501_v11, 2  ;;  %v2110_v1 = vsel %vm165_vm0, %v2107_v22, %v2109_v33 }
 0x58c   :  { %2572 = vmatpush.bf16.msra.mxu2 %v7655_v62 }
 0x58d   :  { %8174 = vrot.lane.b32.xlu2 %v8173_v58, %s9853_s15  ;;  %v2112_v58 = vsel %vm165_vm0, %v2109_v33, %v2111_v20  ;;  %v1826_v13 = vmul.f32 0.5, %v1812_v35  ;;  %v1974_v55 = vsel %vm1178_vm15, %v1971_v16, %v1973_v37  ;;  %v1972_v22 = vsel %vm1178_vm15, %v1969_v57, %v1971_v16 }
 0x58e   :  { %v8213_v2 = vpack.i.bf16 %v2112_v58, %v2110_v1  ;;  %v8203_v35 = vpack.i.bf16 %v1974_v55, %v1972_v22  ;;  %v2181_v58 = vrot.slane %v11490_v29, 5  ;;  %v2179_v16 = vrot.slane %v11501_v11, 5 }
 0x58f   :  { %v1860_v33 = vrot.slane %v1826_v13, 4 }
 0x591   :  { %v11563_v62 = vsel %vm165_vm0, %v1858_v45, %v1860_v33  ;;  %v2182_v45 = vsel %vm15826_vm4, %v2179_v16, %v2181_v58 }
 0x592   :  { %v1975_v22 = vrot.slane %v11563_v62, 2 }
 0x593   :  { %8199 = vrot.lane.b32.xlu1 %v8198_v30, %s9849_s11  ;;  %8194 = vrot.lane.b32.xlu0 %v8193_v54, %s9855_s6  ;;  %v2041_v30 = vsel %vm15821_vm2, %v2038_v56, %v2040_v19  ;;  %v1827_v54 = vmul.f32 0.5, %v1813_v59  ;;  %v2320_v56 = vrot.slane %v11501_v11, 7  ;;  %v1782_v19 = vpop.permute.xlu0 %1781 }
 0x594   :  { %v8208_v51 = vpack.i.bf16 %v2043_v41, %v2041_v30  ;;  %v1814_v30 = vadd.f32 %v1782_v19, %v11344_v27 }
 0x595   :  { %8189 = vrot.lane.b32.xlu2 %v8188_v52, %s9856_s18  ;;  %v2249_v52 = vrot.slane %v11501_v11, 6  ;;  %v2323_v59 = vsel %vm2310_vm5, %v2320_v56, %v2322_v8  ;;  %v1862_v41 = vrot.slane %v1827_v54, 4  ;;  %v2321_v1 = vsel %vm2310_vm5, %v2318_v63, %v2320_v56 }
 0x596   :  { %v2044_v54 = vrot.slane %v11563_v62, 3  ;;  %v2180_v63 = vsel %vm15826_vm4, %v2177_v9, %v2179_v16  ;;  %v1828_v56 = vmul.f32 0.5, %v1814_v30  ;;  %v1976_v9 = vsel %vm1178_vm15, %v1973_v37, %v1975_v22 }
 0x597   :  { %v2252_v57 = vsel %vm2239_vm3, %v2249_v52, %v2251_v15  ;;  %v11570_v13 = vsel %vm165_vm0, %v1860_v33, %v1862_v41  ;;  %v8218_v33 = vpack.i.bf16 %v2182_v45, %v2180_v63 }
 0x598   :  { %v2046_v27 = vrot.slane %v11570_v13, 3  ;;  %v2045_v19 = vsel %vm15821_vm2, %v2042_v39, %v2044_v54  ;;  %v1908_v16 = vrot.slane %v11570_v13, 1  ;;  %v1864_v30 = vrot.slane %v1828_v56, 4 }
 0x599   :  { %v2255_v45 = vrot.slane %v11570_v13, 6  ;;  %v2185_v63 = vrot.slane %v11570_v13, 5 }
 0x59b   :  { %8214 = vrot.lane.b32.xlu1 %v8213_v2, %s9858_s20  ;;  %8209 = vrot.lane.b32.xlu0 %v8208_v51, %s9853_s15  ;;  %v2250_v2 = vsel %vm2239_vm3, %v2247_v48, %v2249_v52  ;;  %v8228_v51 = vpack.i.bf16 %v2323_v59, %v2321_v1  ;;  %v1815_v48 = vadd.f32 %v1784_v50, %v11314_v44  ;;  %v1906_v52 = vrot.slane %v11563_v62, 1  ;;  %v7654_v44 = vld [vmem:[%s15740_s1 + $0x68] sm:$0xff] }
 0x59c   :  { %v8223_v55 = vpack.i.bf16 %v2252_v57, %v2250_v2  ;;  %v2047_v59 = vsel %vm15821_vm2, %v2044_v54, %v2046_v27  ;;  %2573 = vmatpush.bf16.msra.mxu2 %v7654_v44  ;;  %v2253_v50 = vrot.slane %v11563_v62, 6 }
 0x59d   :  { %8204 = vrot.lane.b32.xlu2 %v8203_v35, %s9851_s13  ;;  %v1977_v35 = vrot.slane %v11570_v13, 2  ;;  %v11597_v1 = vmul.f32 0.5, %v1815_v48  ;;  %v8243_v39 = vpack.i.bf16 %v2047_v59, %v2045_v19  ;;  %v1909_v37 = vsel %vm15822_vm14, %v1906_v52, %v1908_v16 }
 0x59e   :  { %v11611_v48 = vsel %vm165_vm0, %v1862_v41, %v1864_v30  ;;  %v2254_v56 = vsel %vm2239_vm3, %v2251_v15, %v2253_v50  ;;  %v2115_v41 = vrot.slane %v11570_v13, 4  ;;  %v1786_v15 = vpop.permute.xlu2 %1785 }
 0x59f   :  { %v1978_v57 = vsel %vm1178_vm15, %v1975_v22, %v1977_v35  ;;  %v1866_v54 = vrot.slane %v11597_v1, 4  ;;  %v1979_v44 = vrot.slane %v11611_v48, 2 }
 0x5a0   :  { %v8238_v2 = vpack.i.bf16 %v1978_v57, %v1976_v9  ;;  %v1788_v9 = vpop.permute.xlu0 %1787 }
 0x5a3   :  { %8229 = vrot.lane.b32.xlu1 %v8228_v51, %s9855_s6  ;;  %8224 = vrot.lane.b32.xlu0 %v8223_v55, %s9856_s18  ;;  %v1907_v51 = vsel %vm15822_vm14, %v1904_v3, %v1906_v52  ;;  %v2183_v55 = vrot.slane %v11563_v62, 5  ;;  %v2113_v3 = vrot.slane %v11563_v62, 4  ;;  %v11619_v52 = vsel %vm165_vm0, %v1864_v30, %v1866_v54 }
 0x5a4   :  { %v8233_v22 = vpack.i.bf16 %v1909_v37, %v1907_v51  ;;  %v1910_v51 = vrot.slane %v11611_v48, 1  ;;  %v1912_v37 = vrot.slane %v11619_v52, 1 }
 0x5a5   :  { %8219 = vrot.lane.b32.xlu2 %v8218_v33, %s9857_s19  ;;  %v2256_v33 = vsel %vm2239_vm3, %v2253_v50, %v2255_v45  ;;  %v2184_v19 = vsel %vm15826_vm4, %v2181_v58, %v2183_v55  ;;  %v2186_v59 = vsel %vm15826_vm4, %v2183_v55, %v2185_v63  ;;  %v2116_v30 = vsel %vm165_vm0, %v2113_v3, %v2115_v41  ;;  %v7653_v50 = vld [vmem:[%s15740_s1 + $0x60] sm:$0xff] }
 0x5a6   :  { %v8258_v57 = vpack.i.bf16 %v2256_v33, %v2254_v56  ;;  %v8253_v1 = vpack.i.bf16 %v2186_v59, %v2184_v19  ;;  %v1817_v58 = vadd.f32 %v1788_v9, %v11362_v18  ;;  %2574 = vmatpush.bf16.msra.mxu2 %v7653_v50  ;;  %v1911_v33 = vsel %vm15822_vm14, %v1908_v16, %v1910_v51 }
 0x5a7   :  { %v1913_v19 = vsel %vm15822_vm14, %v1910_v51, %v1912_v37  ;;  %v2117_v16 = vrot.slane %v11611_v48, 4  ;;  %v2048_v51 = vrot.slane %v11611_v48, 3  ;;  %v2050_v50 = vrot.slane %v11619_v52, 3 }
 0x5a8   :  { %v11645_v56 = vmul.f32 0.5, %v1817_v58 }
 0x5ab   :  { %8244 = vrot.lane.b32.xlu1 %v8243_v39, %s9853_s15  ;;  %8239 = vrot.lane.b32.xlu0 %v8238_v2, %s9851_s13  ;;  %v2114_v39 = vsel %vm165_vm0, %v2111_v20, %v2113_v3  ;;  %v1981_v2 = vrot.slane %v11619_v52, 2  ;;  %v1816_v20 = vadd.f32 %v1786_v15, %v11359_v43  ;;  %v1980_v3 = vsel %vm1178_vm15, %v1977_v35, %v1979_v44 }
 0x5ac   :  { %v8248_v55 = vpack.i.bf16 %v2116_v30, %v2114_v39  ;;  %v2326_v43 = vrot.slane %v11570_v13, 7  ;;  %v2187_v15 = vrot.slane %v11611_v48, 5  ;;  %v1870_v39 = vrot.slane %v11645_v56, 4 }
 0x5ad   :  { %8234 = vrot.lane.b32.xlu2 %v8233_v22, %s9849_s11  ;;  %v2324_v22 = vrot.slane %v11563_v62, 7  ;;  %v1982_v18 = vsel %vm1178_vm15, %v1979_v44, %v1981_v2  ;;  %v1830_v59 = vmul.f32 0.5, %v1816_v20  ;;  %v8268_v44 = vpack.i.bf16 %v1913_v19, %v1911_v33 }
 0x5ae   :  { %v8273_v9 = vpack.i.bf16 %v1982_v18, %v1980_v3  ;;  %v2119_v30 = vrot.slane %v11619_v52, 4  ;;  %v2188_v20 = vsel %vm15826_vm4, %v2185_v63, %v2187_v15  ;;  %v2118_v3 = vsel %vm165_vm0, %v2115_v41, %v2117_v16 }
 0x5af   :  { %v2325_v35 = vsel %vm2310_vm5, %v2322_v8, %v2324_v22  ;;  %v1868_v58 = vrot.slane %v1830_v59, 4  ;;  %v2049_v63 = vsel %vm15821_vm2, %v2046_v27, %v2048_v51  ;;  %v2051_v59 = vsel %vm15821_vm2, %v2048_v51, %v2050_v50 }
 0x5b0   :  { %v2120_v18 = vsel %vm165_vm0, %v2117_v16, %v2119_v30  ;;  %v2328_v41 = vrot.slane %v11611_v48, 7  ;;  %v8278_v27 = vpack.i.bf16 %v2051_v59, %v2049_v63  ;;  %v2257_v16 = vrot.slane %v11611_v48, 6 }
 0x5b1   :  { %v11677_v33 = vsel %vm165_vm0, %v1866_v54, %v1868_v58  ;;  %v2330_v54 = vrot.slane %v11619_v52, 7 }
 0x5b2   :  { %v2329_v51 = vsel %vm2310_vm5, %v2326_v43, %v2328_v41 }
 0x5b3   :  { %8259 = vrot.lane.b32.xlu1 %v8258_v57, %s9856_s18  ;;  %8254 = vrot.lane.b32.xlu0 %v8253_v1, %s9857_s19  ;;  %v2327_v57 = vsel %vm2310_vm5, %v2324_v22, %v2326_v43  ;;  %v2189_v1 = vrot.slane %v11619_v52, 5  ;;  %v11671_v22 = vsel %vm165_vm0, %v1868_v58, %v1870_v39  ;;  %v2259_v58 = vrot.slane %v11619_v52, 6 }
 0x5b4   :  { %v8263_v8 = vpack.i.bf16 %v2327_v57, %v2325_v35  ;;  %v8283_v35 = vpack.i.bf16 %v2120_v18, %v2118_v3  ;;  %v7652_v57 = vld [vmem:[%s15740_s1 + $0x58] sm:$0xff]  ;;  %v2054_v43 = vrot.slane %v11671_v22, 3 }
 0x5b5   :  { %8249 = vrot.lane.b32.xlu2 %v8248_v55, %s9858_s20  ;;  %v2190_v55 = vsel %vm15826_vm4, %v2187_v15, %v2189_v1  ;;  %2575 = vmatpush.bf16.msra.mxu2 %v7652_v57  ;;  %v1790_v15 = vpop.permute.xlu1 %1789  ;;  %v2260_v63 = vsel %vm2239_vm3, %v2257_v16, %v2259_v58 }
 0x5b6   :  { %v8288_v19 = vpack.i.bf16 %v2190_v55, %v2188_v20  ;;  %v2331_v20 = vsel %vm2310_vm5, %v2328_v41, %v2330_v54  ;;  %v1818_v3 = vadd.f32 %v1790_v15, %v11354_v42  ;;  %v2052_v42 = vrot.slane %v11677_v33, 3 }
 0x5b7   :  { %v8298_v59 = vpack.i.bf16 %v2331_v20, %v2329_v51  ;;  %v1983_v15 = vrot.slane %v11677_v33, 2 }
 0x5b8   :  { %v1832_v41 = vmul.f32 0.5, %v1818_v3  ;;  %v2053_v51 = vsel %vm15821_vm2, %v2050_v50, %v2052_v42 }
 0x5b9   :  { %v1984_v50 = vsel %vm1178_vm15, %v1981_v2, %v1983_v15  ;;  %v2191_v2 = vrot.slane %v11677_v33, 5 }
 0x5bb   :  { %8274 = vrot.lane.b32.xlu1 %v8273_v9, %s9851_s13  ;;  %8269 = vrot.lane.b32.xlu0 %v8268_v44, %s9849_s11  ;;  %v1916_v9 = vrot.slane %v11671_v22, 1  ;;  %v1914_v44 = vrot.slane %v11677_v33, 1 }
 0x5bd   :  { %8264 = vrot.lane.b32.xlu2 %v8263_v8, %s9855_s6  ;;  %v1917_v8 = vsel %vm15822_vm14, %v1914_v44, %v1916_v9  ;;  %v1915_v55 = vsel %vm15822_vm14, %v1912_v37, %v1914_v44  ;;  %v2121_v37 = vrot.slane %v11677_v33, 4  ;;  %v1985_v44 = vrot.slane %v11671_v22, 2 }
 0x5be   :  { %v8303_v18 = vpack.i.bf16 %v1917_v8, %v1915_v55  ;;  %v1872_v55 = vrot.slane %v1832_v41, 4  ;;  %v2193_v41 = vrot.slane %v11671_v22, 5 }
 0x5c3   :  { %8289 = vrot.lane.b32.xlu1 %v8288_v19, %s9857_s19  ;;  %8284 = vrot.lane.b32.xlu0 %v8283_v35, %s9858_s20  ;;  %v2258_v19 = vsel %vm2239_vm3, %v2255_v45, %v2257_v16  ;;  %v2123_v35 = vrot.slane %v11671_v22, 4  ;;  %v2122_v16 = vsel %vm165_vm0, %v2119_v30, %v2121_v37  ;;  %v1873_v30 = vsel %vm165_vm0, %v1870_v39, %v1872_v55 }
 0x5c4   :  { %v8293_v57 = vpack.i.bf16 %v2260_v63, %v2258_v19  ;;  %v2334_v19 = vrot.slane %v11671_v22, 7  ;;  %v7651_v63 = vld [vmem:[%s15740_s1 + $0x50] sm:$0xff]  ;;  %v11744_v39 = vsel %vm15821_vm2, %v1873_v30, 0.0  ;;  %v2194_v55 = vsel %vm15826_vm4, %v2191_v2, %v2193_v41 }
 0x5c5   :  { %8279 = vrot.lane.b32.xlu2 %v8278_v27, %s9853_s15  ;;  %v2124_v45 = vsel %vm165_vm0, %v2121_v37, %v2123_v35  ;;  %v2055_v27 = vsel %vm15821_vm2, %v2052_v42, %v2054_v43  ;;  %v2332_v37 = vrot.slane %v11677_v33, 7  ;;  %2576 = vmatpush.bf16.msra.mxu2 %v7651_v63  ;;  %v2261_v42 = vrot.slane %v11677_v33, 6 }
 0x5c6   :  { %v8318_v20 = vpack.i.bf16 %v2124_v45, %v2122_v16  ;;  %v8313_v3 = vpack.i.bf16 %v2055_v27, %v2053_v51  ;;  %v1918_v30 = vrot.slane %v11744_v39, 1 }
 0x5c7   :  { %v2335_v56 = vsel %vm2310_vm5, %v2332_v37, %v2334_v19  ;;  %v2333_v27 = vsel %vm2310_vm5, %v2330_v54, %v2332_v37  ;;  %v2262_v16 = vsel %vm2239_vm3, %v2259_v58, %v2261_v42  ;;  %v2192_v54 = vsel %vm15826_vm4, %v2189_v1, %v2191_v2 }
 0x5c8   :  { %v8333_v51 = vpack.i.bf16 %v2335_v56, %v2333_v27  ;;  %v8323_v63 = vpack.i.bf16 %v2194_v55, %v2192_v54  ;;  %v2195_v1 = vrot.slane %v11744_v39, 5 }
 0x5cb   :  { %8304 = vrot.lane.b32.xlu1 %v8303_v18, %s9849_s11  ;;  %8299 = vrot.lane.b32.xlu0 %v8298_v59, %s9855_s6  ;;  %v1986_v18 = vsel %vm1178_vm15, %v1983_v15, %v1985_v44  ;;  %v2263_v59 = vrot.slane %v11671_v22, 6 }
 0x5cd   :  { %8294 = vrot.lane.b32.xlu2 %v8293_v57, %s9856_s18  ;;  %v8308_v57 = vpack.i.bf16 %v1986_v18, %v1984_v50  ;;  %v2264_v45 = vsel %vm2239_vm3, %v2261_v42, %v2263_v59  ;;  %v1987_v18 = vrot.slane %v11744_v39, 2  ;;  %v2265_v42 = vrot.slane %v11744_v39, 6 }
 0x5cf   :  { %v11720_v8 = vpop.permute.xlu2 %8129  ;;  %v1988_v50 = vsel %vm1178_vm15, %v1985_v44, %v1987_v18 }
 0x5d0   :  { %v8343_v56 = vpack.i.bf16 %v1987_v18, %v1988_v50  ;;  %v8132_v44 = vunpack.i.h.bf16 %v11720_v8  ;;  %v8131_v2 = vunpack.i.l.bf16 %v11720_v8 }
 0x5d2   :  { %v2382_v8 = vsel %vm15823_vm9, %v11395_v53, %v8131_v2 }
 0x5d3   :  { %8319 = vrot.lane.b32.xlu1 %v8318_v20, %s9858_s20  ;;  %8314 = vrot.lane.b32.xlu0 %v8313_v3, %s9853_s15  ;;  %v8328_v20 = vpack.i.bf16 %v2264_v45, %v2262_v16  ;;  %v2056_v3 = vrot.slane %v11744_v39, 3  ;;  %v1919_v45 = vsel %vm15822_vm14, %v1916_v9, %v1918_v30 }
 0x5d4   :  { %v8338_v27 = vpack.i.bf16 %v1918_v30, %v1919_v45 }
 0x5d5   :  { %8309 = vrot.lane.b32.xlu2 %v8308_v57, %s9851_s13  ;;  %v2057_v58 = vsel %vm15821_vm2, %v2054_v43, %v2056_v3  ;;  %v2125_v43 = vrot.slane %v11744_v39, 4 }
 0x5d6   :  { %v8348_v57 = vpack.i.bf16 %v2056_v3, %v2057_v58  ;;  %v2196_v3 = vsel %vm15826_vm4, %v2193_v41, %v2195_v1 }
 0x5d7   :  { %v11750_v15 = vpop.permute.xlu2 %8144  ;;  %v2126_v18 = vsel %vm165_vm0, %v2123_v35, %v2125_v43  ;;  %v8358_v41 = vpack.i.bf16 %v2195_v1, %v2196_v3 }
 0x5d8   :  { %v8353_v35 = vpack.i.bf16 %v2125_v43, %v2126_v18  ;;  %v8147_v2 = vunpack.i.h.bf16 %v11750_v15  ;;  %v8146_v1 = vunpack.i.l.bf16 %v11750_v15 }
 0x5db   :  { %8334 = vrot.lane.b32.xlu1 %v8333_v51, %s9855_s6  ;;  %8329 = vrot.lane.b32.xlu0 %v8328_v20, %s9856_s18  ;;  %v2266_v51 = vsel %vm2239_vm3, %v2263_v59, %v2265_v42 }
 0x5dc   :  { %v8363_v54 = vpack.i.bf16 %v2265_v42, %v2266_v51  ;;  %v2336_v42 = vrot.slane %v11744_v39, 7 }
 0x5dd   :  { %8324 = vrot.lane.b32.xlu2 %v8323_v63, %s9857_s19  ;;  %v2383_v63 = vsel %vm15823_vm9, %v11392_v4, %v8132_v44  ;;  %v9859_v4 = vmov 0.0  }
 0x5df   :  { %v11765_v37 = vpop.permute.xlu2 %8159 }
 0x5e0   :  { %v8162_v3 = vunpack.i.h.bf16 %v11765_v37  ;;  %v8161_v18 = vunpack.i.l.bf16 %v11765_v37 }
 0x5e3   :  { %8349 = vrot.lane.b32.xlu1 %v8348_v57, %s9853_s15  ;;  %8344 = vrot.lane.b32.xlu0 %v8343_v56, %s9851_s13  ;;  %v11794_v56 = vrot.slane %v9859_v4, 7 }
 0x5e5   :  { %v8140_v16 = vpop.permute.xlu1 %8139  ;;  %v8135_v20 = vpop.permute.xlu0 %8134  ;;  %8339 = vrot.lane.b32.xlu2 %v8338_v27, %s9849_s11  ;;  %15850 = vst [vmem:[#allocation11_spill] sm:$0xff] %v11794_v56 }
 0x5e6   :  { %v8137_v9 = vunpack.i.h.bf16 %v8135_v20  ;;  %v8136_v55 = vunpack.i.l.bf16 %v8135_v20  ;;  %v8142_v30 = vunpack.i.h.bf16 %v8140_v16  ;;  %v8141_v59 = vunpack.i.l.bf16 %v8140_v16 }
 0x5e7   :  { %v11787_v58 = vpop.permute.xlu2 %8174 }
 0x5e8   :  { %v2397_v50 = vsel %vm918_vm11, %v2383_v63, %v8137_v9  ;;  %v2396_v57 = vsel %vm918_vm11, %v2382_v8, %v8136_v55 }
 0x5e9   :  { %v2411_v53 = vsel %vm948_vm13, %v2397_v50, %v8142_v30  ;;  %v2410_v45 = vsel %vm948_vm13, %v2396_v57, %v8141_v59  ;;  %v2337_v59 = vsel %vm2310_vm5, %v2334_v19, %v2336_v42  ;;  %v2339_v50 = vsel %vm2310_vm5, %v2336_v42, %v11794_v56 }
 0x5ea   :  { %v2425_v9 = vsel %vm15769_vm6, %v2410_v45, %v8146_v1  ;;  %v2426_v55 = vsel %vm15769_vm6, %v2411_v53, %v8147_v2 }
 0x5eb   :  { %8364 = vrot.lane.b32.xlu1 %v8363_v54, %s9856_s18  ;;  %8359 = vrot.lane.b32.xlu0 %v8358_v41, %s9857_s19 }
 0x5ed   :  { %v8155_v44 = vpop.permute.xlu1 %8154  ;;  %v8150_v51 = vpop.permute.xlu0 %8149  ;;  %8354 = vrot.lane.b32.xlu2 %v8353_v35, %s9858_s20  ;;  %v8368_v35 = vpack.i.bf16 %v2339_v50, %v2337_v59 }
 0x5ee   :  { %v8157_v27 = vunpack.i.h.bf16 %v8155_v44  ;;  %v8156_v16 = vunpack.i.l.bf16 %v8155_v44  ;;  %v8152_v43 = vunpack.i.h.bf16 %v8150_v51  ;;  %v8151_v20 = vunpack.i.l.bf16 %v8150_v51 }
 0x5ef   :  { %v8190_v54 = vpop.permute.xlu2 %8189 }
 0x5f0   :  { %v2440_v15 = vsel %vm15748_vm7, %v2425_v9, %v8151_v20  ;;  %v2441_v63 = vsel %vm15748_vm7, %v2426_v55, %v8152_v43  ;;  %v8177_v9 = vunpack.i.h.bf16 %v11787_v58  ;;  %v8176_v55 = vunpack.i.l.bf16 %v11787_v58 }
 0x5f1   :  { %v2455_v8 = vsel %vm15747_vm1, %v2440_v15, %v8156_v16  ;;  %v2456_v30 = vsel %vm15747_vm1, %v2441_v63, %v8157_v27  ;;  %v8191_v58 = vunpack.i.l.bf16 %v8190_v54 }
 0x5f2   :  { %v2470_v57 = vsel %vm15746_vm12, %v2455_v8, %v8161_v18  ;;  %v2471_v37 = vsel %vm15746_vm12, %v2456_v30, %v8162_v3 }
 0x5f3   :  { %v2484_v41 = vpack.c.bf16 %v2471_v37, %v2470_v57 }
 0x5f5   :  { %v8170_v4 = vpop.permute.xlu1 %8169  ;;  %v8165_v53 = vpop.permute.xlu0 %8164  ;;  %2577 = vmatmul.bf16.vlgmr.msra.gmra.mxu2 %v2484_v41  ;;  %8369 = vrot.lane.b32.xlu2 %v8368_v35, %s9855_s6  ;;  %v8192_v41 = vunpack.i.h.bf16 %v8190_v54 }
 0x5f6   :  { %v8167_v45 = vunpack.i.h.bf16 %v8165_v53  ;;  %v8166_v44 = vunpack.i.l.bf16 %v8165_v53  ;;  %v8172_v1 = vunpack.i.h.bf16 %v8170_v4  ;;  %v8171_v27 = vunpack.i.l.bf16 %v8170_v4 }
 0x5f7   :  { %v8205_v2 = vpop.permute.xlu2 %8204 }
 0x5f8   :  { %v2385_v19 = vsel %vm15823_vm9, %v11436_v12, %v8167_v45  ;;  %v2384_v42 = vsel %vm15823_vm9, %v11388_v32, %v8166_v44 }
 0x5f9   :  { %v2399_v51 = vsel %vm918_vm11, %v2385_v19, %v8172_v1  ;;  %v2398_v43 = vsel %vm918_vm11, %v2384_v42, %v8171_v27 }
 0x5fa   :  { %v2412_v12 = vsel %vm948_vm13, %v2398_v43, %v8176_v55  ;;  %v2413_v30 = vsel %vm948_vm13, %v2399_v51, %v8177_v9  ;;  %v8207_v55 = vunpack.i.h.bf16 %v8205_v2 }
 0x5fd   :  { %v8185_v16 = vpop.permute.xlu1 %8184  ;;  %v8180_v20 = vpop.permute.xlu0 %8179 }
 0x5fe   :  { %v8182_v3 = vunpack.i.h.bf16 %v8180_v20  ;;  %v8181_v18 = vunpack.i.l.bf16 %v8180_v20  ;;  %v8187_v15 = vunpack.i.h.bf16 %v8185_v16  ;;  %v8186_v63 = vunpack.i.l.bf16 %v8185_v16 }
 0x5ff   :  { %v8220_v8 = vpop.permute.xlu2 %8219 }
 0x600   :  { %v2427_v32 = vsel %vm15769_vm6, %v2412_v12, %v8181_v18  ;;  %v2428_v59 = vsel %vm15769_vm6, %v2413_v30, %v8182_v3  ;;  %v8206_v3 = vunpack.i.l.bf16 %v8205_v2  ;;  %v8221_v2 = vunpack.i.l.bf16 %v8220_v8 }
 0x601   :  { %v2442_v57 = vsel %vm15748_vm7, %v2427_v32, %v8186_v63  ;;  %v2443_v37 = vsel %vm15748_vm7, %v2428_v59, %v8187_v15 }
 0x602   :  { %v2457_v45 = vsel %vm15747_vm1, %v2442_v57, %v8191_v58  ;;  %v2458_v44 = vsel %vm15747_vm1, %v2443_v37, %v8192_v41  ;;  %v8222_v41 = vunpack.i.h.bf16 %v8220_v8 }
 0x605   :  { %v8200_v50 = vpop.permute.xlu1 %8199  ;;  %v8195_v35 = vpop.permute.xlu0 %8194 }
 0x606   :  { %v8197_v4 = vunpack.i.h.bf16 %v8195_v35  ;;  %v8196_v53 = vunpack.i.l.bf16 %v8195_v35  ;;  %v8202_v42 = vunpack.i.h.bf16 %v8200_v50  ;;  %v8201_v16 = vunpack.i.l.bf16 %v8200_v50 }
 0x607   :  { %v8235_v1 = vpop.permute.xlu2 %8234 }
 0x608   :  { %v2472_v27 = vsel %vm15746_vm12, %v2457_v45, %v8196_v53  ;;  %v2473_v19 = vsel %vm15746_vm12, %v2458_v44, %v8197_v4  ;;  %v2387_v54 = vsel %vm15823_vm9, %v11501_v11, %v8202_v42  ;;  %v2386_v20 = vsel %vm15823_vm9, %v11441_v7, %v8201_v16 }
 0x609   :  { %v2485_v51 = vpack.c.bf16 %v2473_v19, %v2472_v27  ;;  %v2400_v32 = vsel %vm918_vm11, %v2386_v20, %v8206_v3  ;;  %v2401_v59 = vsel %vm918_vm11, %v2387_v54, %v8207_v55  ;;  %v8237_v8 = vunpack.i.h.bf16 %v8235_v1 }
 0x60a   :  { %v8236_v20 = vunpack.i.l.bf16 %v8235_v1 }
 0x60b   :  { %2582 = vmatmul.bf16.gmra.mxu2 %v2485_v51 }
 0x60d   :  { %v8215_v43 = vpop.permute.xlu1 %8214  ;;  %v8210_v9 = vpop.permute.xlu0 %8209 }
 0x60e   :  { %v8212_v18 = vunpack.i.h.bf16 %v8210_v9  ;;  %v8211_v15 = vunpack.i.l.bf16 %v8210_v9  ;;  %v8217_v12 = vunpack.i.h.bf16 %v8215_v43  ;;  %v8216_v30 = vunpack.i.l.bf16 %v8215_v43 }
 0x60f   :  { %v8250_v63 = vpop.permute.xlu2 %8249 }
 0x610   :  { %v2415_v50 = vsel %vm948_vm13, %v2401_v59, %v8212_v18  ;;  %v2414_v57 = vsel %vm948_vm13, %v2400_v32, %v8211_v15  ;;  %v2389_v15 = vsel %vm15823_vm9, %v11563_v62, %v8237_v8 }
 0x611   :  { %v2429_v37 = vsel %vm15769_vm6, %v2414_v57, %v8216_v30  ;;  %v2430_v7 = vsel %vm15769_vm6, %v2415_v50, %v8217_v12  ;;  %v2388_v12 = vsel %vm15823_vm9, %v11490_v29, %v8236_v20 }
 0x612   :  { %v2444_v44 = vsel %vm15748_vm7, %v2429_v37, %v8221_v2  ;;  %v2445_v27 = vsel %vm15748_vm7, %v2430_v7, %v8222_v41  ;;  %v8252_v7 = vunpack.i.h.bf16 %v8250_v63  ;;  %v8251_v41 = vunpack.i.l.bf16 %v8250_v63 }
 0x615   :  { %v8230_v11 = vpop.permute.xlu1 %8229  ;;  %v8225_v4 = vpop.permute.xlu0 %8224 }
 0x616   :  { %v8232_v58 = vunpack.i.h.bf16 %v8230_v11  ;;  %v8231_v35 = vunpack.i.l.bf16 %v8230_v11  ;;  %v8227_v53 = vunpack.i.h.bf16 %v8225_v4  ;;  %v8226_v45 = vunpack.i.l.bf16 %v8225_v4 }
 0x617   :  { %v8265_v19 = vpop.permute.xlu2 %8264 }
 0x618   :  { %v2459_v42 = vsel %vm15747_vm1, %v2444_v44, %v8226_v45  ;;  %v2460_v16 = vsel %vm15747_vm1, %v2445_v27, %v8227_v53  ;;  %v8267_v45 = vunpack.i.h.bf16 %v8265_v19  ;;  %v8266_v44 = vunpack.i.l.bf16 %v8265_v19 }
 0x619   :  { %v2474_v51 = vsel %vm15746_vm12, %v2459_v42, %v8231_v35  ;;  %v2475_v43 = vsel %vm15746_vm12, %v2460_v16, %v8232_v58 }
 0x61a   :  { %v2486_v54 = vpack.c.bf16 %v2475_v43, %v2474_v51 }
 0x61c   :  { %2587 = vmatmul.bf16.gmra.mxu2 %v2486_v54 }
 0x61d   :  { %v8245_v9 = vpop.permute.xlu1 %8244  ;;  %v8240_v55 = vpop.permute.xlu0 %8239 }
 0x61e   :  { %v8242_v3 = vunpack.i.h.bf16 %v8240_v55  ;;  %v8241_v18 = vunpack.i.l.bf16 %v8240_v55  ;;  %v8247_v30 = vunpack.i.h.bf16 %v8245_v9  ;;  %v8246_v32 = vunpack.i.l.bf16 %v8245_v9 }
 0x61f   :  { %v8280_v59 = vpop.permute.xlu2 %8279 }
 0x620   :  { %v2403_v50 = vsel %vm918_vm11, %v2389_v15, %v8242_v3  ;;  %v2402_v57 = vsel %vm918_vm11, %v2388_v12, %v8241_v18 }
 0x621   :  { %v2417_v1 = vsel %vm948_vm13, %v2403_v50, %v8247_v30  ;;  %v2416_v11 = vsel %vm948_vm13, %v2402_v57, %v8246_v32 }
 0x622   :  { %v2431_v29 = vsel %vm15769_vm6, %v2416_v11, %v8251_v41  ;;  %v2432_v53 = vsel %vm15769_vm6, %v2417_v1, %v8252_v7  ;;  %v8282_v11 = vunpack.i.h.bf16 %v8280_v59 }
 0x625   :  { %v8260_v37 = vpop.permute.xlu1 %8259  ;;  %v8255_v62 = vpop.permute.xlu0 %8254 }
 0x626   :  { %v8262_v2 = vunpack.i.h.bf16 %v8260_v37  ;;  %v8261_v58 = vunpack.i.l.bf16 %v8260_v37  ;;  %v8257_v35 = vunpack.i.h.bf16 %v8255_v62  ;;  %v8256_v4 = vunpack.i.l.bf16 %v8255_v62 }
 0x627   :  { %v8295_v54 = vpop.permute.xlu2 %8294  ;;  %v8281_v37 = vunpack.i.l.bf16 %v8280_v59 }
 0x628   :  { %v2446_v27 = vsel %vm15748_vm7, %v2431_v29, %v8256_v4  ;;  %v2447_v42 = vsel %vm15748_vm7, %v2432_v53, %v8257_v35 }
 0x629   :  { %v2461_v16 = vsel %vm15747_vm1, %v2446_v27, %v8261_v58  ;;  %v2462_v51 = vsel %vm15747_vm1, %v2447_v42, %v8262_v2 }
 0x62a   :  { %v2476_v63 = vsel %vm15746_vm12, %v2461_v16, %v8266_v44  ;;  %v2477_v43 = vsel %vm15746_vm12, %v2462_v51, %v8267_v45  ;;  %v8297_v45 = vunpack.i.h.bf16 %v8295_v54  ;;  %v8296_v44 = vunpack.i.l.bf16 %v8295_v54 }
 0x62b   :  { %v2487_v8 = vpack.c.bf16 %v2477_v43, %v2476_v63 }
 0x62d   :  { %v8275_v20 = vpop.permute.xlu1 %8274  ;;  %v8270_v9 = vpop.permute.xlu0 %8269  ;;  %2592 = vmatmul.bf16.gmra.mxu2 %v2487_v8 }
 0x62e   :  { %v8272_v55 = vunpack.i.h.bf16 %v8270_v9  ;;  %v8271_v3 = vunpack.i.l.bf16 %v8270_v9  ;;  %v8277_v19 = vunpack.i.h.bf16 %v8275_v20  ;;  %v8276_v18 = vunpack.i.l.bf16 %v8275_v20 }
 0x62f   :  { %v8310_v32 = vpop.permute.xlu2 %8309 }
 0x630   :  { %v2391_v15 = vsel %vm15823_vm9, %v11611_v48, %v8272_v55  ;;  %v2390_v12 = vsel %vm15823_vm9, %v11570_v13, %v8271_v3 }
 0x631   :  { %v2405_v50 = vsel %vm918_vm11, %v2391_v15, %v8277_v19  ;;  %v2404_v57 = vsel %vm918_vm11, %v2390_v12, %v8276_v18  ;;  %v8312_v15 = vunpack.i.h.bf16 %v8310_v32  ;;  %v8311_v12 = vunpack.i.l.bf16 %v8310_v32 }
 0x632   :  { %v2418_v62 = vsel %vm948_vm13, %v2404_v57, %v8281_v37  ;;  %v2419_v48 = vsel %vm948_vm13, %v2405_v50, %v8282_v11 }
 0x635   :  { %v8290_v30 = vpop.permute.xlu1 %8289  ;;  %v8285_v1 = vpop.permute.xlu0 %8284 }
 0x636   :  { %v8287_v7 = vunpack.i.h.bf16 %v8285_v1  ;;  %v8286_v41 = vunpack.i.l.bf16 %v8285_v1  ;;  %v8292_v2 = vunpack.i.h.bf16 %v8290_v30  ;;  %v8291_v58 = vunpack.i.l.bf16 %v8290_v30 }
 0x637   :  { %v8325_v16 = vpop.permute.xlu2 %8324 }
 0x638   :  { %v2433_v35 = vsel %vm15769_vm6, %v2418_v62, %v8286_v41  ;;  %v2434_v13 = vsel %vm15769_vm6, %v2419_v48, %v8287_v7  ;;  %v8327_v62 = vunpack.i.h.bf16 %v8325_v16  ;;  %v8326_v32 = vunpack.i.l.bf16 %v8325_v16 }
 0x639   :  { %v2448_v29 = vsel %vm15748_vm7, %v2433_v35, %v8291_v58  ;;  %v2449_v53 = vsel %vm15748_vm7, %v2434_v13, %v8292_v2 }
 0x63a   :  { %v2463_v51 = vsel %vm15747_vm1, %v2448_v29, %v8296_v44  ;;  %v2464_v63 = vsel %vm15747_vm1, %v2449_v53, %v8297_v45 }
 0x63d   :  { %v8305_v4 = vpop.permute.xlu1 %8304  ;;  %v8300_v59 = vpop.permute.xlu0 %8299 }
 0x63e   :  { %v8302_v27 = vunpack.i.h.bf16 %v8300_v59  ;;  %v8301_v42 = vunpack.i.l.bf16 %v8300_v59  ;;  %v8307_v20 = vunpack.i.h.bf16 %v8305_v4  ;;  %v8306_v9 = vunpack.i.l.bf16 %v8305_v4 }
 0x63f   :  { %v8340_v7 = vpop.permute.xlu2 %8339 }
 0x640   :  { %v2478_v43 = vsel %vm15746_vm12, %v2463_v51, %v8301_v42  ;;  %v2479_v8 = vsel %vm15746_vm12, %v2464_v63, %v8302_v27  ;;  %v2393_v54 = vsel %vm15823_vm9, %v11677_v33, %v8307_v20  ;;  %v2392_v19 = vsel %vm15823_vm9, %v11619_v52, %v8306_v9 }
 0x641   :  { %v2488_v55 = vpack.c.bf16 %v2479_v8, %v2478_v43  ;;  %v2406_v11 = vsel %vm918_vm11, %v2392_v19, %v8311_v12  ;;  %v2407_v37 = vsel %vm918_vm11, %v2393_v54, %v8312_v15  ;;  %v8342_v16 = vunpack.i.h.bf16 %v8340_v7 }
 0x642   :  { %v8341_v43 = vunpack.i.l.bf16 %v8340_v7 }
 0x643   :  { %2597 = vmatmul.bf16.gmra.mxu2 %v2488_v55 }
 0x644   :  { %v2394_v54 = vsel %vm15823_vm9, %v11671_v22, %v8341_v43 }
 0x645   :  { %v8320_v3 = vpop.permute.xlu1 %8319  ;;  %v8315_v18 = vpop.permute.xlu0 %8314 }
 0x646   :  { %v8317_v30 = vunpack.i.h.bf16 %v8315_v18  ;;  %v8316_v50 = vunpack.i.l.bf16 %v8315_v18  ;;  %v8322_v57 = vunpack.i.h.bf16 %v8320_v3  ;;  %v8321_v1 = vunpack.i.l.bf16 %v8320_v3 }
 0x647   :  { %v8355_v63 = vpop.permute.xlu2 %8354  ;;  %v2395_v3 = vsel %vm15823_vm9, %v11744_v39, %v8342_v16 }
 0x648   :  { %v2421_v41 = vsel %vm948_vm13, %v2407_v37, %v8317_v30  ;;  %v2420_v2 = vsel %vm948_vm13, %v2406_v11, %v8316_v50  ;;  %v8356_v11 = vunpack.i.l.bf16 %v8355_v63 }
 0x649   :  { %v2436_v33 = vsel %vm15769_vm6, %v2421_v41, %v8322_v57  ;;  %v2435_v52 = vsel %vm15769_vm6, %v2420_v2, %v8321_v1  ;;  %v8357_v1 = vunpack.i.h.bf16 %v8355_v63 }
 0x64a   :  { %v2450_v53 = vsel %vm15748_vm7, %v2435_v52, %v8326_v32  ;;  %v2451_v45 = vsel %vm15748_vm7, %v2436_v33, %v8327_v62 }
 0x64d   :  { %v8335_v58 = vpop.permute.xlu1 %8334  ;;  %v8330_v13 = vpop.permute.xlu0 %8329 }
 0x64e   :  { %v8337_v48 = vunpack.i.h.bf16 %v8335_v58  ;;  %v8336_v35 = vunpack.i.l.bf16 %v8335_v58  ;;  %v8332_v4 = vunpack.i.h.bf16 %v8330_v13  ;;  %v8331_v29 = vunpack.i.l.bf16 %v8330_v13 }
 0x64f   :  { %v8370_v37 = vpop.permute.xlu2 %8369 }
 0x650   :  { %v2465_v44 = vsel %vm15747_vm1, %v2450_v53, %v8331_v29  ;;  %v2466_v59 = vsel %vm15747_vm1, %v2451_v45, %v8332_v4  ;;  %v8372_v58 = vunpack.i.h.bf16 %v8370_v37  ;;  %v8371_v62 = vunpack.i.l.bf16 %v8370_v37 }
 0x651   :  { %v2480_v27 = vsel %vm15746_vm12, %v2465_v44, %v8336_v35  ;;  %v2481_v42 = vsel %vm15746_vm12, %v2466_v59, %v8337_v48  ;;  %v2508_v44 = vld [vmem:[%s15741_s2 + $0xb8] sm:$0xff] }
 0x652   :  { %v2489_v51 = vpack.c.bf16 %v2481_v42, %v2480_v27  ;;  %v2507_v27 = vld [vmem:[%s15741_s2 + $0xb0] sm:$0xff] }
 0x654   :  { %2602 = vmatmul.bf16.gmra.mxu2 %v2489_v51 }
 0x655   :  { %v8350_v8 = vpop.permute.xlu1 %8349  ;;  %v8345_v20 = vpop.permute.xlu0 %8344 }
 0x656   :  { %v8347_v9 = vunpack.i.h.bf16 %v8345_v20  ;;  %v8346_v55 = vunpack.i.l.bf16 %v8345_v20  ;;  %v8352_v19 = vunpack.i.h.bf16 %v8350_v8  ;;  %v8351_v18 = vunpack.i.l.bf16 %v8350_v8  ;;  %v2509_v20 = vld [vmem:[%s15741_s2 + $0xc0] sm:$0xff] }
 0x658   :  { %v2409_v15 = vsel %vm918_vm11, %v2395_v3, %v8347_v9  ;;  %v2408_v12 = vsel %vm918_vm11, %v2394_v54, %v8346_v55 }
 0x659   :  { %v2423_v30 = vsel %vm948_vm13, %v2409_v15, %v8352_v19  ;;  %v2422_v50 = vsel %vm948_vm13, %v2408_v12, %v8351_v18  ;;  %v2510_v18 = vld [vmem:[%s15741_s2 + $0xc8] sm:$0xff] }
 0x65a   :  { %v2437_v22 = vsel %vm15769_vm6, %v2422_v50, %v8356_v11  ;;  %v2438_v52 = vsel %vm15769_vm6, %v2423_v30, %v8357_v1 }
 0x65d   :  { %v8365_v57 = vpop.permute.xlu1 %8364  ;;  %v8360_v39 = vpop.permute.xlu0 %8359 }
 0x65e   :  { %v8367_v7 = vunpack.i.h.bf16 %v8365_v57  ;;  %v8366_v41 = vunpack.i.l.bf16 %v8365_v57  ;;  %v8362_v2 = vunpack.i.h.bf16 %v8360_v39  ;;  %v8361_v33 = vunpack.i.l.bf16 %v8360_v39 }
 0x660   :  { %v2452_v32 = vsel %vm15748_vm7, %v2437_v22, %v8361_v33  ;;  %v2453_v48 = vsel %vm15748_vm7, %v2438_v52, %v8362_v2  ;;  %v11930_v2 = vld [vmem:[%s15741_s2 + $0x10] ss:$0 sm:$0xff] }
 0x661   :  { %v2467_v35 = vsel %vm15747_vm1, %v2452_v32, %v8366_v41  ;;  %v2468_v13 = vsel %vm15747_vm1, %v2453_v48, %v8367_v7  ;;  %v2511_v22 = vld [vmem:[%s15741_s2 + $0xd0] sm:$0xff] }
 0x662   :  { %v2482_v4 = vsel %vm15746_vm12, %v2467_v35, %v8371_v62  ;;  %v2483_v29 = vsel %vm15746_vm12, %v2468_v13, %v8372_v58  ;;  %v11941_v35 = vld [vmem:[%s15741_s2 + $0x18] ss:$0 sm:$0xff] }
 0x663   :  { %v2490_v53 = vpack.c.bf16 %v2483_v29, %v2482_v4 }
 0x665   :  { %2607 = vmatmul.bf16.gmra.mxu2 %v2490_v53 }
 0x678   :  { %v2578_v45 = vpop.f32.mrf.mxu2 }
 0x679   :  { %v2579_v51 = vadd.f32 %v2578_v45, %v2507_v27 }
 0x67b   :  { %v2627_v16 = vmin.f32 %v2579_v51, 0.0  ;;  %vm2613_vm1 = vcmp.gt.f32.partialorder %v2579_v51, 0.0 }
 0x67d   :  { %v2641_v8 = vmul.f32 1.442695, %v2627_v16 }
 0x680   :  { %v2580_v59 = vpop.f32.mrf.mxu2 }
 0x681   :  { %v2581_v42 = vadd.f32 %v2580_v59, %v2508_v44 }
 0x683   :  { %v2628_v63 = vmin.f32 %v2581_v42, 0.0  ;;  %vm2614_vm12 = vcmp.gt.f32.partialorder %v2581_v42, 0.0 }
 0x685   :  { %v2643_v43 = vmul.f32 1.442695, %v2628_v63 }
 0x687   :  { %9670 = vpow2.f32 %v2643_v43 }
 0x688   :  { %9672 = vpow2.f32 %v2641_v8 }
 0x68d   :  { %v9671_v54 = vpop.eup %9670 }
 0x68e   :  { %v2583_v9 = vpop.f32.mrf.mxu2  ;;  %v9673_v15 = vpop.eup %9672  ;;  %v7431_v12 = vadd.f32 -1.0, %v9671_v54 }
 0x68f   :  { %v2584_v55 = vadd.f32 %v2583_v9, %v2509_v20  ;;  %v7430_v57 = vadd.f32 -1.0, %v9673_v15 }
 0x690   :  { %v2684_v11 = vsel %vm2614_vm12, %v2581_v42, %v7431_v12  ;;  %v2512_v42 = vld [vmem:[%s15741_s2 + $0xd8] sm:$0xff] }
 0x691   :  { %v2629_v3 = vmin.f32 %v2584_v55, 0.0  ;;  %v2683_v39 = vsel %vm2613_vm1, %v2579_v51, %v7430_v57  ;;  %v2698_v33 = vmul.f32 %v11930_v2, %v2684_v11  ;;  %vm2615_vm7 = vcmp.gt.f32.partialorder %v2584_v55, 0.0  ;;  %v2513_v57 = vld [vmem:[%s15741_s2 + $0xe0] sm:$0xff] }
 0x692   :  { %v2697_v32 = vmul.f32 %v11930_v2, %v2683_v39 }
 0x693   :  { %v2645_v19 = vmul.f32 1.442695, %v2629_v3  ;;  %v11944_v13 = vadd.f32 %v11941_v35, %v2698_v33 }
 0x694   :  { %v11952_v44 = vadd.f32 %v11941_v35, %v2697_v32 }
 0x695   :  { %9674 = vpow2.f32 %v2645_v19  ;;  %15851 = vst [vmem:[#allocation12_spill] sm:$0xff] %v11944_v13  ;;  %v2738_v51 = vrot.slane %v11944_v13, 1 }
 0x696   :  { %v2585_v30 = vpop.f32.mrf.mxu2  ;;  %15853 = vst [vmem:[#allocation14_spill] sm:$0xff] %v11952_v44  ;;  %v2737_v8 = vrot.slane %v11952_v44, 1 }
 0x697   :  { %v2586_v50 = vadd.f32 %v2585_v30, %v2510_v18 }
 0x699   :  { %v2630_v1 = vmin.f32 %v2586_v50, 0.0  ;;  %vm2616_vm1 = vcmp.gt.f32.partialorder %v2586_v50, 0.0 }
 0x69b   :  { %v9675_v37 = vpop.eup %9674  ;;  %v2647_v7 = vmul.f32 1.442695, %v2630_v1  ;;  %v2797_v1 = vrot.slane %v11944_v13, 2 }
 0x69c   :  { %v7432_v41 = vadd.f32 -1.0, %v9675_v37 }
 0x69d   :  { %9676 = vpow2.f32 %v2647_v7  ;;  %v2796_v7 = vrot.slane %v11952_v44, 2 }
 0x69e   :  { %v2685_v52 = vsel %vm2615_vm7, %v2584_v55, %v7432_v41  ;;  %v2739_v55 = vsel %vm15822_vm14, %v2737_v8, %v2738_v51 }
 0x69f   :  { %v2699_v58 = vmul.f32 %v11930_v2, %v2685_v52  ;;  %v2588_v62 = vpop.f32.mrf.mxu2  ;;  %v2798_v52 = vsel %vm1178_vm15, %v2796_v7, %v2797_v1 }
 0x6a0   :  { %v2589_v48 = vadd.f32 %v2588_v62, %v2511_v22 }
 0x6a1   :  { %v11947_v4 = vadd.f32 %v11941_v35, %v2699_v58 }
 0x6a2   :  { %v2631_v29 = vmin.f32 %v2589_v48, 0.0  ;;  %vm2617_vm12 = vcmp.gt.f32.partialorder %v2589_v48, 0.0 }
 0x6a3   :  { %15852 = vst [vmem:[#allocation13_spill] sm:$0xff] %v11947_v4  ;;  %v8373_v53 = vpack.i.bf16 %v11947_v4, %v11944_v13  ;;  %v9677_v45 = vpop.eup %9676  ;;  %v2740_v27 = vrot.slane %v11947_v4, 1  ;;  %v2799_v15 = vrot.slane %v11947_v4, 2 }
 0x6a4   :  { %v2649_v59 = vmul.f32 1.442695, %v2631_v29  ;;  %v7433_v63 = vadd.f32 -1.0, %v9677_v45 }
 0x6a5   :  { %8374 = vrot.lane.b32.xlu0 %v8373_v53, %s9858_s20  ;;  %v11962_v20 = vsel %vm15822_vm14, %v2738_v51, %v2740_v27  ;;  %v11976_v41 = vsel %vm1178_vm15, %v2797_v1, %v2799_v15 }
 0x6a6   :  { %9678 = vpow2.f32 %v2649_v59  ;;  %v2686_v3 = vsel %vm2616_vm1, %v2586_v50, %v7433_v63  ;;  %v8378_v54 = vpack.i.bf16 %v11962_v20, %v2739_v55  ;;  %v8383_v62 = vpack.i.bf16 %v11976_v41, %v2798_v52 }
 0x6a7   :  { %v2590_v16 = vpop.f32.mrf.mxu2  ;;  %v2700_v30 = vmul.f32 %v11930_v2, %v2686_v3  ;;  %v2856_v59 = vrot.slane %v11944_v13, 3  ;;  %v2855_v63 = vrot.slane %v11952_v44, 3 }
 0x6a8   :  { %v2591_v43 = vadd.f32 %v2590_v16, %v2512_v42 }
 0x6a9   :  { %v11979_v33 = vadd.f32 %v11941_v35, %v2700_v30 }
 0x6aa   :  { %v2632_v9 = vmin.f32 %v2591_v43, 0.0  ;;  %vm2618_vm7 = vcmp.gt.f32.partialorder %v2591_v43, 0.0 }
 0x6ab   :  { %15854 = vst [vmem:[#allocation15_spill] sm:$0xff] %v11979_v33  ;;  %v2742_v42 = vrot.slane %v11979_v33, 1 }
 0x6ac   :  { %v9679_v19 = vpop.eup %9678  ;;  %v2651_v18 = vmul.f32 1.442695, %v2632_v9  ;;  %v2857_v9 = vsel %vm15821_vm2, %v2855_v63, %v2856_v59 }
 0x6ad   :  { %v7434_v12 = vadd.f32 -1.0, %v9679_v19  ;;  %8379 = vrot.lane.b32.xlu0 %v8378_v54, %s9848_s10  ;;  %v12004_v3 = vsel %vm15822_vm14, %v2740_v27, %v2742_v42 }
 0x6ae   :  { %9680 = vpow2.f32 %v2651_v18  ;;  %v2917_v18 = vrot.slane %v11947_v4, 4 }
 0x6af   :  { %v2687_v11 = vsel %vm2617_vm12, %v2589_v48, %v7434_v12  ;;  %v2858_v48 = vrot.slane %v11947_v4, 3 }
 0x6b0   :  { %v2701_v50 = vmul.f32 %v11930_v2, %v2687_v11  ;;  %v2593_v37 = vpop.f32.mrf.mxu2  ;;  %v2915_v11 = vrot.slane %v11944_v13, 4 }
 0x6b1   :  { %v2594_v39 = vadd.f32 %v2593_v37, %v2513_v57  ;;  %v11996_v16 = vsel %vm15821_vm2, %v2856_v59, %v2858_v48  ;;  %v2914_v37 = vrot.slane %v11952_v44, 4 }
 0x6b2   :  { %v11982_v22 = vadd.f32 %v11941_v35, %v2701_v50  ;;  %v8388_v55 = vpack.i.bf16 %v11996_v16, %v2857_v9  ;;  %v12019_v7 = vsel %vm165_vm0, %v2915_v11, %v2917_v18 }
 0x6b3   :  { %v2633_v58 = vmin.f32 %v2594_v39, 0.0  ;;  %vm2619_vm1 = vcmp.gt.f32.partialorder %v2594_v39, 0.0 }
 0x6b4   :  { %15855 = vst [vmem:[#allocation16_spill] sm:$0xff] %v11982_v22  ;;  %v8448_v32 = vpack.i.bf16 %v11982_v22, %v11979_v33  ;;  %v9681_v29 = vpop.eup %9680  ;;  %v2744_v45 = vrot.slane %v11982_v22, 1  ;;  %v2803_v30 = vrot.slane %v11982_v22, 2  ;;  %v15755_v63 = vrot.slane %v11982_v22, 3 }
 0x6b5   :  { %v2653_v53 = vmul.f32 1.442695, %v2633_v58  ;;  %8384 = vrot.lane.b32.xlu0 %v8383_v62, %s9849_s11  ;;  %v7435_v51 = vadd.f32 -1.0, %v9681_v29  ;;  %v2916_v62 = vsel %vm165_vm0, %v2914_v37, %v2915_v11 }
 0x6b6   :  { %8449 = vrot.lane.b32.xlu1 %v8448_v32, %s9858_s20  ;;  %v11999_v8 = vsel %vm15822_vm14, %v2742_v42, %v2744_v45  ;;  %v15756_v42 = vrot.slane %v11947_v4, 5 }
 0x6b7   :  { %9682 = vpow2.f32 %v2653_v53  ;;  %v2688_v54 = vsel %vm2618_vm7, %v2591_v43, %v7435_v51  ;;  %v8453_v19 = vpack.i.bf16 %v11999_v8, %v12004_v3  ;;  %v2801_v43 = vrot.slane %v11979_v33, 2 }
 0x6b8   :  { %v12011_v1 = vpop.f32.mrf.mxu2  ;;  %v2702_v27 = vmul.f32 %v11930_v2, %v2688_v54  ;;  %v2860_v54 = vrot.slane %v11979_v33, 3 }
 0x6b9   :  { %v12023_v58 = vsel %vm1178_vm15, %v2801_v43, %v2803_v30  ;;  %v12034_v53 = vsel %vm1178_vm15, %v2799_v15, %v2801_v43 }
 0x6ba   :  { %v12027_v32 = vadd.f32 %v11941_v35, %v2702_v27  ;;  %v8458_v59 = vpack.i.bf16 %v12023_v58, %v12034_v53  ;;  %v12058_v11 = vsel %vm15821_vm2, %v2860_v54, %v15755_v63  ;;  %v12068_v37 = vsel %vm15821_vm2, %v2858_v48, %v2860_v54  ;;  %v2515_v63 = vld [vmem:[%s15741_s2 + $0xf0] sm:$0xff] }
 0x6bb   :  { %v3034_v48 = vrot.slane %v11944_v13, 6 }
 0x6bc   :  { %15856 = vst [vmem:[#allocation17_spill] sm:$0xff] %v12027_v32 }
 0x6bd   :  { %v9683_v12 = vpop.eup %9682  ;;  %8389 = vrot.lane.b32.xlu0 %v8388_v55, %s9850_s12  ;;  %v2974_v55 = vrot.slane %v11944_v13, 5 }
 0x6be   :  { %v7436_v57 = vadd.f32 -1.0, %v9683_v12  ;;  %8454 = vrot.lane.b32.xlu1 %v8453_v19, %s9848_s10  ;;  %v2973_v19 = vrot.slane %v11952_v44, 5 }
 0x6bf   :  { %v12052_v12 = vsel %vm15826_vm4, %v2974_v55, %v15756_v42 }
 0x6c0   :  { %v2689_v50 = vsel %vm2619_vm1, %v2594_v39, %v7436_v57  ;;  %v8393_v39 = vpack.i.bf16 %v12019_v7, %v2916_v62  ;;  %v2746_v57 = vrot.slane %v12027_v32, 1  ;;  %v2975_v27 = vsel %vm15826_vm4, %v2973_v19, %v2974_v55 }
 0x6c1   :  { %v2703_v52 = vmul.f32 %v11930_v2, %v2689_v50  ;;  %v8398_v50 = vpack.i.bf16 %v12052_v12, %v2975_v27  ;;  %v3033_v19 = vrot.slane %v11952_v44, 6  ;;  %v2805_v27 = vrot.slane %v12027_v32, 2 }
 0x6c2   :  { %v12073_v62 = vsel %vm15822_vm14, %v2744_v45, %v2746_v57  ;;  %v2919_v45 = vrot.slane %v11979_v33, 4 }
 0x6c3   :  { %v12030_v29 = vadd.f32 %v11941_v35, %v2703_v52  ;;  %v8463_v52 = vpack.i.bf16 %v12058_v11, %v12068_v37 }
 0x6c4   :  { %v12105_v26 = vsel %vm165_vm0, %v2917_v18, %v2919_v45  ;;  %v2864_v18 = vrot.slane %v12027_v32, 3 }
 0x6c5   :  { %15857 = vst [vmem:[#allocation18_spill] sm:$0xff] %v12030_v29  ;;  %8394 = vrot.lane.b32.xlu0 %v8393_v39, %s9851_s13  ;;  %v8523_v51 = vpack.i.bf16 %v12030_v29, %v12027_v32  ;;  %v15751_v15 = vrot.slane %v12030_v29, 1  ;;  %v15752_v39 = vrot.slane %v11947_v4, 6  ;;  %v15754_v54 = vrot.slane %v12030_v29, 2 }
 0x6c6   :  { %v2598_v9 = vpop.f32.mrf.mxu2  ;;  %8459 = vrot.lane.b32.xlu1 %v8458_v59, %s9849_s11 }
 0x6c7   :  { %8524 = vrot.lane.b32.xlu2 %v8523_v51, %s9858_s20  ;;  %v12064_v43 = vsel %vm15822_vm14, %v2746_v57, %v15751_v15  ;;  %v15753_v51 = vrot.slane %v11982_v22, 4  ;;  %v12089_v57 = vsel %vm2239_vm3, %v3034_v48, %v15752_v39  ;;  %v12110_v39 = vsel %vm1178_vm15, %v2803_v30, %v2805_v27 }
 0x6c8   :  { %v8528_v59 = vpack.i.bf16 %v12064_v43, %v12073_v62  ;;  %v3095_v30 = vrot.slane %v11944_v13, 7 }
 0x6cd   :  { %8399 = vrot.lane.b32.xlu0 %v8398_v50, %s9852_s14  ;;  %v12095_v50 = vsel %vm165_vm0, %v2919_v45, %v15753_v51  ;;  %v15760_v51 = vrot.slane %v11947_v4, 7  ;;  %v2516_v45 = vld [vmem:[%s15741_s2 + $0xf8] sm:$0xff] }
 0x6ce   :  { %v2600_v55 = vpop.f32.mrf.mxu2  ;;  %8464 = vrot.lane.b32.xlu1 %v8463_v52, %s9850_s12  ;;  %v3035_v52 = vsel %vm2239_vm3, %v3033_v19, %v3034_v48  ;;  %v8468_v15 = vpack.i.bf16 %v12095_v50, %v12105_v26  ;;  %v2517_v48 = vld [vmem:[%s15741_s2 + $0x100] sm:$0xff] }
 0x6cf   :  { %8529 = vrot.lane.b32.xlu2 %v8528_v59, %s9848_s10  ;;  %v12101_v59 = vsel %vm1178_vm15, %v2805_v27, %v15754_v54  ;;  %v8403_v10 = vpack.i.bf16 %v12089_v57, %v3035_v52  ;;  %v2978_v54 = vrot.slane %v11979_v33, 5  ;;  %v12140_v27 = vsel %vm2310_vm5, %v3095_v30, %v15760_v51 }
 0x6d0   :  { %v8533_v19 = vpack.i.bf16 %v12101_v59, %v12110_v39  ;;  %v12143_v56 = vadd.f32 %v2600_v55, %v2516_v45  ;;  %v12159_v51 = vadd.f32 %v2598_v9, %v2515_v63  ;;  %v15860_v45 = vrot.slane %v11947_v4, 5 }
 0x6d2   :  { %v12165_v46 = vsel %vm15826_vm4, %v15860_v45, %v2978_v54  ;;  %v2636_v63 = vmin.f32 %v12143_v56, 0.0  ;;  %vm2622_vm7 = vcmp.gt.f32.partialorder %v12143_v56, 0.0  ;;  %vm2621_vm6 = vcmp.gt.f32.partialorder %v12159_v51, 0.0 }
 0x6d5   :  { %8404 = vrot.lane.b32.xlu0 %v8403_v10, %s9853_s15  ;;  %v2514_v10 = vld [vmem:[%s15741_s2 + $0xe8] sm:$0xff] }
 0x6d6   :  { %8469 = vrot.lane.b32.xlu1 %v8468_v15, %s9851_s13  ;;  %v3094_v15 = vrot.slane %v11952_v44, 7  ;;  %v12151_v31 = vadd.f32 %v12011_v1, %v2514_v10 }
 0x6d7   :  { %v2603_v52 = vpop.f32.mrf.mxu2  ;;  %8534 = vrot.lane.b32.xlu2 %v8533_v19, %s9849_s11  ;;  %v15858_v19 = vrot.slane %v11982_v22, 5 }
 0x6d8   :  { %v12134_v42 = vadd.f32 %v2603_v52, %v2517_v48  ;;  %v3096_v48 = vsel %vm2310_vm5, %v3094_v15, %v3095_v30  ;;  %v15859_v52 = vrot.slane %v12030_v29, 3  ;;  %v15861_v30 = vrot.slane %v11982_v22, 3 }
 0x6d9   :  { %v12148_v23 = vsel %vm15826_vm4, %v2978_v54, %v15858_v19  ;;  %v8408_v55 = vpack.i.bf16 %v12140_v27, %v3096_v48  ;;  %v15764_v54 = vrot.slane %v11982_v22, 6  ;;  %v2634_v15 = vmin.f32 %v12151_v31, 0.0 }
 0x6da   :  { %v12157_v49 = vsel %vm15821_vm2, %v2864_v18, %v15859_v52  ;;  %v2637_v19 = vmin.f32 %v12134_v42, 0.0  ;;  %v8473_v1 = vpack.i.bf16 %v12148_v23, %v12165_v46  ;;  %v12173_v10 = vsel %vm15821_vm2, %v15861_v30, %v2864_v18 }
 0x6db   :  { %v8538_v9 = vpack.i.bf16 %v12157_v49, %v12173_v10  ;;  %v15765_v48 = vrot.slane %v12030_v29, 4  ;;  %v2635_v52 = vmin.f32 %v12159_v51, 0.0  ;;  %v3038_v18 = vrot.slane %v11979_v33, 6 }
 0x6dc   :  { %v2661_v45 = vmul.f32 1.442695, %v2637_v19  ;;  %v2659_v30 = vmul.f32 1.442695, %v2636_v63  ;;  %v2655_v44 = vmul.f32 1.442695, %v2634_v15 }
 0x6dd   :  { %8409 = vrot.lane.b32.xlu0 %v8408_v55, %s9860_s26  ;;  %v2923_v55 = vrot.slane %v12027_v32, 4  ;;  %v12190_v13 = vsel %vm2239_vm3, %v3038_v18, %v15764_v54  ;;  %v2657_v25 = vmul.f32 1.442695, %v2635_v52  ;;  %v15862_v19 = vrot.slane %v11947_v4, 6 }
 0x6de   :  { %8474 = vrot.lane.b32.xlu1 %v8473_v1, %s9852_s14  ;;  %9684 = vpow2.f32 %v2661_v45  ;;  %v15863_v15 = vrot.slane %v11982_v22, 4  ;;  %v15767_v52 = vrot.slane %v12030_v29, 5  ;;  %v2982_v45 = vrot.slane %v12027_v32, 5 }
 0x6df   :  { %8539 = vrot.lane.b32.xlu2 %v8538_v9, %s9850_s12  ;;  %v12195_v1 = vsel %vm165_vm0, %v2923_v55, %v15765_v48  ;;  %v8413_v9 = vpack.i.bf16 %v12004_v3, %v11962_v20  ;;  %v12202_v0 = vsel %vm2239_vm3, %v15862_v19, %v3038_v18  ;;  %9686 = vpow2.f32 %v2659_v30 }
 0x6e0   :  { %v8478_v63 = vpack.i.bf16 %v12190_v13, %v12202_v0  ;;  %v12209_v54 = vsel %vm165_vm0, %v15863_v15, %v2923_v55  ;;  %v3101_v3 = vrot.slane %v11982_v22, 7  ;;  %9688 = vpow2.f32 %v2655_v44 }
 0x6e1   :  { %v8543_v20 = vpack.i.bf16 %v12195_v1, %v12209_v54  ;;  %9690 = vpow2.f32 %v2657_v25  ;;  %v3099_v18 = vrot.slane %v11979_v33, 7  ;;  %v8418_v19 = vpack.i.bf16 %v12034_v53, %v11976_v41 }
 0x6e2   :  { %v15864_v25 = vrot.slane %v11947_v4, 7  ;;  %v15865_v48 = vrot.slane %v11982_v22, 5  ;;  %vm2623_vm12 = vcmp.gt.f32.partialorder %v12134_v42, 0.0  ;;  %vm2620_vm1 = vcmp.gt.f32.partialorder %v12151_v31, 0.0 }
 0x6e3   :  { %v12221_v55 = vsel %vm2310_vm5, %v3099_v18, %v3101_v3 }
 0x6e4   :  { %v9685_v30 = vpop.eup %9684  ;;  %v12240_v33 = vsel %vm15826_vm4, %v15865_v48, %v2982_v45  ;;  %v3042_v48 = vrot.slane %v12027_v32, 6 }
 0x6e5   :  { %8414 = vrot.lane.b32.xlu0 %v8413_v9, %s9861_s27  ;;  %v12226_v9 = vsel %vm15826_vm4, %v2982_v45, %v15767_v52  ;;  %v9687_v44 = vpop.eup %9686  ;;  %v7440_v24 = vadd.f32 -1.0, %v9685_v30 }
 0x6e6   :  { %8479 = vrot.lane.b32.xlu1 %v8478_v63, %s9853_s15  ;;  %v12233_v63 = vsel %vm2310_vm5, %v15864_v25, %v3099_v18  ;;  %v9689_v15 = vpop.eup %9688  ;;  %v8548_v41 = vpack.i.bf16 %v12226_v9, %v12240_v33  ;;  %v7439_v53 = vadd.f32 -1.0, %v9687_v44  ;;  %v3044_v18 = vrot.slane %v12030_v29, 6 }
 0x6e7   :  { %8544 = vrot.lane.b32.xlu2 %v8543_v20, %s9851_s13  ;;  %v8483_v20 = vpack.i.bf16 %v12221_v55, %v12233_v63  ;;  %v9691_v52 = vpop.eup %9690  ;;  %v7437_v25 = vadd.f32 -1.0, %v9689_v15  ;;  %v2693_v45 = vsel %vm2623_vm12, %v12134_v42, %v7440_v24  ;;  %v8488_v42 = vpack.i.bf16 %v12073_v62, %v11999_v8 }
 0x6e8   :  { %v7438_v4 = vadd.f32 -1.0, %v9691_v52  ;;  %v2692_v30 = vsel %vm2622_vm7, %v12143_v56, %v7439_v53  ;;  %v12257_v44 = vsel %vm2239_vm3, %v3042_v48, %v3044_v18  ;;  %v8423_v52 = vpack.i.bf16 %v12068_v37, %v11996_v16 }
 0x6e9   :  { %v2707_v24 = vmul.f32 %v11930_v2, %v2693_v45  ;;  %v15866_v56 = vrot.slane %v11982_v22, 6  ;;  %v3105_v16 = vrot.slane %v12030_v29, 7  ;;  %v3103_v62 = vrot.slane %v12027_v32, 7 }
 0x6ea   :  { %v2691_v15 = vsel %vm2621_vm6, %v12159_v51, %v7438_v4  ;;  %v8428_v45 = vpack.i.bf16 %v12105_v26, %v12019_v7  ;;  %vm15927_vm7 = vcmask 326656  }
 0x6eb   :  { %v2705_v8 = vmul.f32 %v11930_v2, %v2691_v15  ;;  %v12282_v37 = vadd.f32 %v11941_v35, %v2707_v24 }
 0x6ed   :  { %8419 = vrot.lane.b32.xlu0 %v8418_v19, %s9857_s19  ;;  %v2690_v19 = vsel %vm2620_vm1, %v12151_v31, %v7437_v25  ;;  %15867 = vst [vmem:[#allocation19_spill] sm:$0xff] %v12282_v37  ;;  %v12294_v25 = vsel %vm2310_vm5, %v3103_v62, %v3105_v16  ;;  %vm15928_vm1 = vmmov %vm15927_vm7 }
 0x6ee   :  { %8484 = vrot.lane.b32.xlu1 %v8483_v20, %s9860_s26  ;;  %v12270_v20 = vsel %vm2239_vm3, %v15866_v56, %v3042_v48  ;;  %v2704_v4 = vmul.f32 %v11930_v2, %v2690_v19  ;;  %v12297_v48 = vadd.f32 %v11941_v35, %v2705_v8  ;;  %v12304_v19 = vsel %vm2310_vm5, %v3101_v3, %v3103_v62 }
 0x6ef   :  { %8549 = vrot.lane.b32.xlu2 %v8548_v41, %s9852_s14  ;;  %v2706_v41 = vmul.f32 %v11930_v2, %v2692_v30  ;;  %v8553_v31 = vpack.i.bf16 %v12257_v44, %v12270_v20  ;;  %v8493_v30 = vpack.i.bf16 %v12110_v39, %v12023_v58  ;;  %v8558_v15 = vpack.i.bf16 %v12294_v25, %v12304_v19 }
 0x6f0   :  { %v12289_v53 = vadd.f32 %v11941_v35, %v2704_v4  ;;  %15870 = vst [vmem:[#allocation22_spill] sm:$0xff] %v12297_v48  ;;  %v3109_v26 = vrot.slane %v12297_v48, 7  ;;  %v15871_v39 = vrot.slane %v12030_v29, 1  ;;  %v15872_v62 = vrot.slane %v12030_v29, 2 }
 0x6f1   :  { %v12286_v51 = vadd.f32 %v11941_v35, %v2706_v41  ;;  %v8433_v41 = vpack.i.bf16 %v12165_v46, %v12052_v12  ;;  %v8438_v46 = vpack.i.bf16 %v12202_v0, %v12089_v57  ;;  %v8503_v12 = vpack.i.bf16 %v12209_v54, %v12095_v50  ;;  %v2518_v54 = vld [vmem:[%s15741_s2 + $0x108] sm:$0xff] }
 0x6f2   :  { %15869 = vst [vmem:[#allocation21_spill] sm:$0xff] %v12289_v53  ;;  %v2809_v8 = vrot.slane %v12289_v53, 2  ;;  %v8443_v0 = vpack.i.bf16 %v12233_v63, %v12140_v27  ;;  %v8508_v57 = vpack.i.bf16 %v12240_v33, %v12148_v23  ;;  %v15874_v23 = vrot.slane %v12030_v29, 4 }
 0x6f3   :  { %15868 = vst [vmem:[#allocation20_spill] sm:$0xff] %v12286_v51  ;;  %v3111_v24 = vrot.slane %v12286_v51, 7  ;;  %v8598_v33 = vpack.i.bf16 %v12297_v48, %v12289_v53 }
 0x6f5   :  { %8424 = vrot.lane.b32.xlu0 %v8423_v52, %s9862_s0  ;;  %v15771_v52 = vrot.slane %v12282_v37, 7  ;;  %v12323_v58 = vsel %vm2310_vm5, %v3109_v26, %v3111_v24 }
 0x6f6   :  { %8489 = vrot.lane.b32.xlu1 %v8488_v42, %s9861_s27  ;;  %v2750_v42 = vrot.slane %v12289_v53, 1 }
 0x6f7   :  { %8554 = vrot.lane.b32.xlu2 %v8553_v31, %s9853_s15  ;;  %v12318_v7 = vsel %vm2310_vm5, %v3111_v24, %v15771_v52  ;;  %v8498_v31 = vpack.i.bf16 %v12173_v10, %v12058_v11  ;;  %v15873_v10 = vrot.slane %v12030_v29, 3  ;;  %v8513_v24 = vpack.i.bf16 %v12270_v20, %v12190_v13 }
 0x6f8   :  { %v2751_v3 = vsel %vm15822_vm14, %v15871_v39, %v2750_v42  ;;  %v15777_v39 = vrot.slane %v12297_v48, 1 }
 0x6f9   :  { %v8563_v4 = vpack.i.bf16 %v2751_v3, %v12064_v43  ;;  %v2868_v43 = vrot.slane %v12289_v53, 3 }
 0x6fa   :  { %v12394_v13 = vsel %vm15822_vm14, %v2750_v42, %v15777_v39 }
 0x6fd   :  { %8429 = vrot.lane.b32.xlu0 %v8428_v45, %s9856_s18  ;;  %v2810_v45 = vsel %vm1178_vm15, %v15872_v62, %v2809_v8 }
 0x6fe   :  { %8494 = vrot.lane.b32.xlu1 %v8493_v30, %s9857_s19  ;;  %v8568_v11 = vpack.i.bf16 %v2810_v45, %v12101_v59  ;;  %v12354_v30 = vsel %vm15821_vm2, %v15873_v10, %v2868_v43  ;;  %v2927_v59 = vrot.slane %v12289_v53, 4  ;;  %v8518_v10 = vpack.i.bf16 %v12304_v19, %v12221_v55 }
 0x6ff   :  { %8559 = vrot.lane.b32.xlu2 %v8558_v15, %s9860_s26  ;;  %v8573_v50 = vpack.i.bf16 %v12354_v30, %v12157_v49  ;;  %v2605_v15 = vpop.f32.mrf.mxu2 }
 0x700   :  { %v2606_v63 = vadd.f32 %v2605_v15, %v2518_v54  ;;  %v12376_v49 = vsel %vm165_vm0, %v15874_v23, %v2927_v59  ;;  %v3046_v54 = vrot.slane %v12289_v53, 6 }
 0x702   :  { %v12439_v23 = vsel %vm2239_vm3, %v3044_v18, %v3046_v54  ;;  %vm2624_vm6 = vcmp.gt.f32.partialorder %v2606_v63, 0.0 }
 0x705   :  { %8434 = vrot.lane.b32.xlu0 %v8433_v41, %s9863_s28  ;;  %v8578_v41 = vpack.i.bf16 %v12376_v49, %v12195_v1  ;;  %v15876_v1 = vrot.slane %v12030_v29, 5  ;;  %v7666_v29 = vld [vmem:[%s15740_s1 + $0xc8] sm:$0xff] }
 0x706   :  { %8499 = vrot.lane.b32.xlu1 %v8498_v31, %s9862_s0  ;;  %v2638_v31 = vmin.f32 %v2606_v63, 0.0  ;;  %3712 = vmatpush.bf16.msrb.mxu3 %v7666_v29 }
 0x707   :  { %8564 = vrot.lane.b32.xlu2 %v8563_v4, %s9861_s27  ;;  %v2986_v4 = vrot.slane %v12289_v53, 5 }
 0x70d   :  { %8439 = vrot.lane.b32.xlu0 %v8438_v46, %s9855_s6  ;;  %v2663_v46 = vmul.f32 1.442695, %v2638_v31 }
 0x70e   :  { %8504 = vrot.lane.b32.xlu1 %v8503_v12, %s9856_s18  ;;  %v12403_v12 = vsel %vm15826_vm4, %v15876_v1, %v2986_v4 }
 0x70f   :  { %8569 = vrot.lane.b32.xlu2 %v8568_v11, %s9857_s19  ;;  %v8603_v11 = vpack.i.bf16 %v12394_v13, %v2751_v3  ;;  %v8583_v42 = vpack.i.bf16 %v12403_v12, %v12226_v9  ;;  %9692 = vpow2.f32 %v2663_v46 }
 0x715   :  { %8444 = vrot.lane.b32.xlu0 %v8443_v0, %s9854_s24  ;;  %v15776_v0 = vrot.slane %v12297_v48, 2 }
 0x716   :  { %8509 = vrot.lane.b32.xlu1 %v8508_v57, %s9863_s28  ;;  %v12409_v57 = vpop.f32.mrf.mxu1 }
 0x717   :  { %8574 = vrot.lane.b32.xlu2 %v8573_v50, %s9862_s0  ;;  %v12369_v27 = vpop.permute.xlu0 %8374  ;;  %15877 = vst [vmem:[#allocation24_spill] sm:$0xff] %v12409_v57  ;;  %v3107_v50 = vrot.slane %v12289_v53, 7  ;;  %v12425_v19 = vsel %vm1178_vm15, %v2809_v8, %v15776_v0  ;;  %v4424_v1 = vrot.slane %v12409_v57, 1  ;;  %v2874_v57 = vrot.slane %v12282_v37, 3 }
 0x719   :  { %v12432_v9 = vsel %vm2310_vm5, %v3105_v16, %v3107_v50  ;;  %v8588_v16 = vpack.i.bf16 %v12439_v23, %v12257_v44 }
 0x71a   :  { %v8593_v8 = vpack.i.bf16 %v12432_v9, %v12294_v25 }
 0x71d   :  { %8599 = vrot.lane.b32.xlu0 %v8598_v33, %s9858_s20  ;;  %v8608_v33 = vpack.i.bf16 %v12425_v19, %v2810_v45 }
 0x71e   :  { %8514 = vrot.lane.b32.xlu1 %v8513_v24, %s9855_s6  ;;  %v9693_v24 = vpop.eup %9692  ;;  %v12449_v31 = vpop.f32.mrf.mxu1 }
 0x71f   :  { %8579 = vrot.lane.b32.xlu2 %v8578_v41, %s9856_s18  ;;  %v12389_v62 = vpop.permute.xlu0 %8379  ;;  %v15775_v41 = vrot.slane %v12297_v48, 3  ;;  %15878 = vst [vmem:[#allocation25_spill] sm:$0xff] %v12449_v31  ;;  %v7441_v46 = vadd.f32 -1.0, %v9693_v24  ;;  %v15773_v44 = vrot.slane %v12449_v31, 1  ;;  %v15880_v24 = vrot.slane %v11218_v40, 1 }
 0x721   :  { %v12396_v20 = vpop.permute.xlu2 %8524  ;;  %v12459_v25 = vsel %vm15821_vm2, %v2868_v43, %v15775_v41  ;;  %v4425_v43 = vsel %vm15822_vm14, %v15880_v24, %v4424_v1  ;;  %v15772_v24 = vrot.slane %v12297_v48, 5 }
 0x722   :  { %15875 = vst [vmem:[#allocation23_spill] sm:$0xff] %v12396_v20 }
 0x725   :  { %8604 = vrot.lane.b32.xlu0 %v8603_v11, %s9848_s10 }
 0x726   :  { %8519 = vrot.lane.b32.xlu1 %v8518_v10, %s9854_s24  ;;  %v2694_v10 = vsel %vm2624_vm6, %v2606_v63, %v7441_v46  ;;  %v12483_v63 = vadd.f32 %v11368_v28, %v11150_v47  ;;  %vm15929_vm6 = vcmask 457728  }
 0x727   :  { %8584 = vrot.lane.b32.xlu2 %v8583_v42, %s9863_s28  ;;  %v12418_v3 = vpop.permute.xlu0 %8384  ;;  %v8613_v42 = vpack.i.bf16 %v12459_v25, %v12354_v30  ;;  %v4427_v30 = vsel %vm15822_vm14, %v4424_v1, %v15773_v44 }
 0x728   :  { %v12420_v55 = vpop.permute.xlu1 %8449  ;;  %15882 = vst [vmem:[#allocation28_spill] sm:$0xff] %v12483_v63  ;;  %v4511_v28 = vrot.slane %v12483_v63, 2 }
 0x729   :  { %v12427_v15 = vpop.permute.xlu2 %8529 }
 0x72d   :  { %8609 = vrot.lane.b32.xlu0 %v8608_v33, %s9849_s11  ;;  %v15774_v33 = vrot.slane %v12297_v48, 4 }
 0x72e   :  { %8594 = vrot.lane.b32.xlu1 %v8593_v8, %s9854_s24  ;;  %v12474_v8 = vadd.f32 %v11374_v21, %v11155_v38 }
 0x72f   :  { %8589 = vrot.lane.b32.xlu2 %v8588_v16, %s9855_s6  ;;  %v12452_v18 = vpop.permute.xlu0 %8389  ;;  %v2708_v16 = vmul.f32 %v11930_v2, %v2694_v10  ;;  %v12495_v38 = vsel %vm165_vm0, %v2927_v59, %v15774_v33 }
 0x730   :  { %v12454_v45 = vpop.permute.xlu1 %8454  ;;  %15881 = vst [vmem:[#allocation27_spill] sm:$0xff] %v12474_v8  ;;  %v15770_v1 = vrot.slane %v12474_v8, 2  ;;  %v8618_v10 = vpack.i.bf16 %v12495_v38, %v12376_v49 }
 0x731   :  { %v12462_v11 = vpop.permute.xlu2 %8534  ;;  %v12501_v47 = vadd.f32 %v11941_v35, %v2708_v16 }
 0x732   :  { %15879 = vst [vmem:[#allocation26_spill] sm:$0xff] %v12462_v11  ;;  %v4514_v16 = vsel %vm1178_vm15, %v4511_v28, %v15770_v1  ;;  %v3110_v1 = vsel %vm2310_vm5, %v3107_v50, %v3109_v26  ;;  %v2815_v50 = vrot.slane %v12282_v37, 2  ;;  %v15899_v11 = vrot.slane %v12297_v48, 3 }
 0x733   :  { %15884 = vst [vmem:[#allocation30_spill] sm:$0xff] %v12501_v47  ;;  %v8668_v52 = vpack.i.bf16 %v12323_v58, %v3110_v1  ;;  %v12549_v44 = vrot.slane %v12501_v47, 2  ;;  %v12587_v53 = vrot.slane %v12501_v47, 3 }
 0x735   :  { %8614 = vrot.lane.b32.xlu0 %v8613_v42, %s9850_s12  ;;  %v12604_v63 = vsel %vm15821_vm2, %v2874_v57, %v12587_v53 }
 0x736   :  { %4450 = vrot.lane.b32.xlu1 %v4425_v43, %s9854_s24  ;;  %v15885_v43 = vrot.slane %v11307_v34, 2  ;;  %15889 = vst [vmem:[#allocation34_spill] sm:$0xff] %v12604_v63  ;;  %v15890_v34 = vrot.slane %v12297_v48, 1 }
 0x737   :  { %v12485_v46 = vpop.permute.xlu0 %8394  ;;  %4452 = vrot.lane.b32.xlu2 %v4427_v30, %s9854_s24  ;;  %v12516_v30 = vrot.slane %v12501_v47, 1 }
 0x738   :  { %v12488_v42 = vpop.permute.xlu1 %8459  ;;  %v4512_v59 = vsel %vm1178_vm15, %v15885_v43, %v4511_v28  ;;  %v2756_v43 = vrot.slane %v12282_v37, 1 }
 0x739   :  { %v12497_v21 = vpop.permute.xlu2 %8539 }
 0x73a   :  { %15883 = vst [vmem:[#allocation29_spill] sm:$0xff] %v12497_v21  ;;  %v12535_v28 = vsel %vm15822_vm14, %v2756_v43, %v12516_v30 }
 0x73d   :  { %8619 = vrot.lane.b32.xlu0 %v8618_v10, %s9851_s13  ;;  %v12528_v10 = vsel %vm15826_vm4, %v2986_v4, %v15772_v24  ;;  %v15778_v4 = vrot.slane %v12297_v48, 6  ;;  %v8713_v24 = vpack.i.bf16 %v12516_v30, %v12535_v28 }
 0x73e   :  { %4537 = vrot.lane.b32.xlu1 %v4512_v59, %s9855_s6 }
 0x73f   :  { %v12518_v56 = vpop.permute.xlu0 %8399  ;;  %4539 = vrot.lane.b32.xlu2 %v4514_v16, %s9855_s6  ;;  %v8623_v16 = vpack.i.bf16 %v12528_v10, %v12403_v12  ;;  %v12561_v26 = vsel %vm2239_vm3, %v3046_v54, %v15778_v4  ;;  %v8673_v54 = vpack.i.bf16 %v12282_v37, %v12286_v51 }
 0x740   :  { %v12521_v49 = vpop.permute.xlu1 %8464  ;;  %v8628_v0 = vpack.i.bf16 %v12561_v26, %v12439_v23 }
 0x741   :  { %v12531_v59 = vpop.permute.xlu2 %8544 }
 0x742   :  { %15886 = vst [vmem:[#allocation31_spill] sm:$0xff] %v12531_v59  ;;  %v15894_v59 = vrot.slane %v12297_v48, 2 }
 0x745   :  { %8624 = vrot.lane.b32.xlu0 %v8623_v16, %s9852_s14  ;;  %v2608_v16 = vpop.f32.mrf.mxu2 }
 0x746   :  { %8669 = vrot.lane.b32.xlu1 %v8668_v52, %s9854_s24  ;;  %v2519_v52 = vld [vmem:[%s15741_s2 + $0x110] sm:$0xff] }
 0x747   :  { %v12551_v33 = vpop.permute.xlu0 %8404  ;;  %8714 = vrot.lane.b32.xlu2 %v8713_v24, %s9848_s10  ;;  %v12571_v24 = vsel %vm1178_vm15, %v2815_v50, %v12549_v44  ;;  %v12575_v39 = vadd.f32 %v2608_v16, %v2519_v52  ;;  %v2754_v52 = vrot.slane %v12286_v51, 1 }
 0x748   :  { %v12554_v12 = vpop.permute.xlu1 %8469  ;;  %v8718_v4 = vpack.i.bf16 %v12549_v44, %v12571_v24 }
 0x749   :  { %v12567_v41 = vpop.permute.xlu2 %8549  ;;  %v2755_v29 = vsel %vm15822_vm14, %v15890_v34, %v2754_v52  ;;  %v7664_v34 = vld [vmem:[%s15740_s1 + $0xb8] sm:$0xff]  ;;  %vm2625_vm12 = vcmp.gt.f32.partialorder %v12575_v39, 0.0 }
 0x74a   :  { %15887 = vst [vmem:[#allocation32_spill] sm:$0xff] %v12567_v41 }
 0x74d   :  { %8629 = vrot.lane.b32.xlu0 %v8628_v0, %s9853_s15  ;;  %v2639_v0 = vmin.f32 %v12575_v39, 0.0  ;;  %v2610_v41 = vpop.f32.mrf.mxu2 }
 0x74e   :  { %8674 = vrot.lane.b32.xlu1 %v8673_v54, %s9858_s20  ;;  %v12600_v54 = vsel %vm15822_vm14, %v2754_v52, %v2756_v43  ;;  %v8723_v43 = vpack.i.bf16 %v12587_v53, %v12604_v63  ;;  %v2813_v52 = vrot.slane %v12286_v51, 2 }
 0x74f   :  { %v12589_v23 = vpop.permute.xlu0 %8409  ;;  %8719 = vrot.lane.b32.xlu2 %v8718_v4, %s9849_s11  ;;  %v8633_v4 = vpack.i.bf16 %v3110_v1, %v12432_v9  ;;  %v2665_v40 = vmul.f32 1.442695, %v2639_v0  ;;  %v8678_v20 = vpack.i.bf16 %v12600_v54, %v2755_v29  ;;  %v12619_v9 = vrot.slane %v12501_v47, 4 }
 0x750   :  { %v12594_v16 = vpop.permute.xlu1 %8474  ;;  %v12634_v63 = vsel %vm1178_vm15, %v2813_v52, %v2815_v50  ;;  %v2814_v22 = vsel %vm1178_vm15, %v15894_v59, %v2813_v52  ;;  %v7663_v50 = vld [vmem:[%s15740_s1 + $0xb0] sm:$0xff]  ;;  %v7662_v59 = vld [vmem:[%s15740_s1 + $0xa8] sm:$0xff]  ;;  %v2872_v52 = vrot.slane %v12286_v51, 3 }
 0x751   :  { %v12597_v8 = vpop.permute.xlu2 %8554  ;;  %15891 = vst [vmem:[#allocation35_spill] sm:$0xff] %v12619_v9  ;;  %9694 = vpow2.f32 %v2665_v40  ;;  %v8638_v40 = vpack.i.bf16 %v2755_v29, %v12394_v13  ;;  %v12658_v13 = vrot.slane %v12501_v47, 5 }
 0x752   :  { %15888 = vst [vmem:[#allocation33_spill] sm:$0xff] %v12597_v8  ;;  %v7665_v8 = vld [vmem:[%s15740_s1 + $0xc0] sm:$0xff] }
 0x753   :  { %3713 = vmatpush.bf16.msrb.mxu3 %v7665_v8  ;;  %15895 = vst [vmem:[#allocation38_spill] sm:$0xff] %v12658_v13 }
 0x755   :  { %8634 = vrot.lane.b32.xlu0 %v8633_v4, %s9860_s26  ;;  %v2933_v4 = vrot.slane %v12282_v37, 4 }
 0x756   :  { %8679 = vrot.lane.b32.xlu1 %v8678_v20, %s9848_s10 }
 0x757   :  { %v12624_v1 = vpop.permute.xlu0 %8414  ;;  %8724 = vrot.lane.b32.xlu2 %v8723_v43, %s9850_s12  ;;  %v12638_v8 = vsel %vm165_vm0, %v2933_v4, %v12619_v9  ;;  %3714 = vmatpush.bf16.msrb.mxu3 %v7664_v34  ;;  %v2520_v43 = vld [vmem:[%s15741_s2 + $0x118] sm:$0x3]  ;;  %v9695_v32 = vpop.eup %9694 }
 0x758   :  { %v12628_v0 = vpop.permute.xlu1 %8479  ;;  %15893 = vst [vmem:[#allocation37_spill] sm:$0xff] %v12638_v8  ;;  %v8728_v34 = vpack.i.bf16 %v12619_v9, %v12638_v8  ;;  %v12654_v21 = vadd.f32 %v2610_v41, %v2520_v43  ;;  %v2992_v41 = vrot.slane %v12282_v37, 5  ;;  %v7442_v43 = vadd.f32 -1.0, %v9695_v32  ;;  %v7661_v32 = vld [vmem:[%s15740_s1 + $0xa0] sm:$0xff] }
 0x759   :  { %v12631_v20 = vpop.permute.xlu2 %8559  ;;  %v12673_v8 = vsel %vm15821_vm2, %v2872_v52, %v2874_v57 }
 0x75a   :  { %15892 = vst [vmem:[#allocation36_spill] sm:$0xff] %v12631_v20  ;;  %v8683_v20 = vpack.i.bf16 %v12634_v63, %v2814_v22  ;;  %v12678_v9 = vsel %vm15826_vm4, %v2992_v41, %v12658_v13 }
 0x75b   :  { %3715 = vmatpush.bf16.msrb.mxu3 %v7663_v50  ;;  %v2640_v50 = vmin.f32 %v12654_v21, 0.0  ;;  %15898 = vst [vmem:[#allocation41_spill] sm:$0xff] %v12678_v9 }
 0x75d   :  { %8639 = vrot.lane.b32.xlu0 %v8638_v40, %s9861_s27 }
 0x75e   :  { %8684 = vrot.lane.b32.xlu1 %v8683_v20, %s9849_s11 }
 0x75f   :  { %v12663_v29 = vpop.permute.xlu0 %8419  ;;  %8729 = vrot.lane.b32.xlu2 %v8728_v34, %s9851_s13  ;;  %3716 = vmatpush.bf16.msrb.mxu3 %v7662_v59  ;;  %v8643_v34 = vpack.i.bf16 %v2814_v22, %v12425_v19  ;;  %v8733_v59 = vpack.i.bf16 %v12658_v13, %v12678_v9  ;;  %v12695_v22 = vadd.f32 %v11380_v60, %v11183_v5  ;;  %v2667_v19 = vmul.f32 1.442695, %v2640_v50 }
 0x760   :  { %v12667_v40 = vpop.permute.xlu1 %8484  ;;  %v2931_v5 = vrot.slane %v12286_v51, 4 }
 0x761   :  { %15896 = vst [vmem:[#allocation39_spill] sm:$0xff] %v12667_v40  ;;  %v12670_v20 = vpop.permute.xlu2 %8564  ;;  %v2873_v40 = vsel %vm15821_vm2, %v15899_v11, %v2872_v52  ;;  %v7660_v11 = vld [vmem:[%s15740_s1 + $0x98] sm:$0xff]  ;;  %v12701_v52 = vpop.f32.mrf.mxu1  ;;  %9696 = vpow2.f32 %v2667_v19 }
 0x762   :  { %15897 = vst [vmem:[#allocation40_spill] sm:$0xff] %v12670_v20  ;;  %v8688_v57 = vpack.i.bf16 %v12673_v8, %v2873_v40  ;;  %v2695_v20 = vsel %vm2625_vm12, %v12575_v39, %v7442_v43  ;;  %v12705_v39 = vadd.f32 %v11370_v36, %v11178_v14  ;;  %v4598_v36 = vrot.slane %v12695_v22, 4  ;;  %vm15930_vm12 = vmmov %vm15929_vm6 }
 0x763   :  { %15900 = vst [vmem:[#allocation42_spill] sm:$0xff] %v12695_v22  ;;  %3717 = vmatpush.bf16.msrb.mxu3 %v7661_v32  ;;  %v2709_v60 = vmul.f32 %v11930_v2, %v2695_v20  ;;  %v7659_v2 = vld [vmem:[%s15740_s1 + $0x90] sm:$0xff]  ;;  %v3052_v22 = vrot.slane %v12282_v37, 6 }
 0x764   :  { %15901 = vst [vmem:[#allocation43_spill] sm:$0xff] %v12701_v52  ;;  %v4597_v20 = vrot.slane %v12705_v39, 4 }
 0x765   :  { %8644 = vrot.lane.b32.xlu0 %v8643_v34, %s9857_s19  ;;  %15902 = vst [vmem:[#allocation44_spill] sm:$0xff] %v12705_v39  ;;  %v12716_v34 = vadd.f32 %v11378_v17, %v11200_v61  ;;  %v8648_v61 = vpack.i.bf16 %v2873_v40, %v12459_v25  ;;  %v15905_v17 = vrot.slane %v12297_v48, 4  ;;  %v12735_v14 = vadd.f32 %v11941_v35, %v2709_v60  ;;  %v15913_v39 = vld [vmem:[#allocation10_spill] sm:$0xff] }
 0x766   :  { %8689 = vrot.lane.b32.xlu1 %v8688_v57, %s9850_s12  ;;  %v12721_v57 = vsel %vm165_vm0, %v2931_v5, %v2933_v4  ;;  %v2990_v4 = vrot.slane %v12286_v51, 5  ;;  %v3115_v25 = vrot.slane %v12501_v47, 7  ;;  %v4599_v40 = vsel %vm165_vm0, %v4597_v20, %v4598_v36 }
 0x767   :  { %v12707_v43 = vpop.permute.xlu0 %8424  ;;  %8734 = vrot.lane.b32.xlu2 %v8733_v59, %s9852_s14  ;;  %15903 = vst [vmem:[#allocation45_spill] sm:$0xff] %v12716_v34  ;;  %3718 = vmatpush.bf16.msrb.mxu3 %v7660_v11  ;;  %v2932_v59 = vsel %vm165_vm0, %v15905_v17, %v2931_v5  ;;  %v3050_v11 = vrot.slane %v12286_v51, 6  ;;  %v15906_v35 = vrot.slane %v12701_v52, 1  ;;  %v15907_v5 = vrot.slane %v12449_v31, 1  ;;  %v15908_v17 = vld [vmem:[#allocation8_spill] sm:$0xff] }
 0x768   :  { %v12712_v50 = vpop.permute.xlu1 %8489  ;;  %15904 = vst [vmem:[#allocation46_spill] sm:$0xff] %v12721_v57  ;;  %v8693_v19 = vpack.i.bf16 %v12721_v57, %v2932_v59  ;;  %v12754_v51 = vadd.f32 %v15908_v17, %v11160_v6  ;;  %v15915_v17 = vrot.slane %v12297_v48, 6  ;;  %v15917_v52 = vrot.slane %v12282_v37, 7 }
 0x769   :  { %v12718_v32 = vpop.permute.xlu2 %8569  ;;  %v12750_v60 = vsel %vm15822_vm14, %v15907_v5, %v15906_v35  ;;  %v9697_v35 = vpop.eup %9696  ;;  %v15912_v5 = vld [vmem:[#allocation2_spill] sm:$0xff] }
 0x76a   :  { %15909 = vst [vmem:[#allocation8_spill] sm:$0xff] %v12754_v51  ;;  %v12770_v31 = vadd.f32 %v15913_v39, %v15912_v5  ;;  %v12788_v13 = vsel %vm2310_vm5, %v15917_v52, %v3115_v25  ;;  %v3191_v5 = vrot.slane %v12735_v14, 1  ;;  %v3229_v52 = vrot.slane %v12735_v14, 2 }
 0x76b   :  { %3719 = vmatpush.bf16.msrb.mxu3 %v7659_v2  ;;  %v12765_v2 = vsel %vm15826_vm4, %v2990_v4, %v2992_v41  ;;  %v12803_v51 = vadd.f32 -1.0, %v9697_v35  ;;  %v8773_v35 = vpack.i.bf16 %v12735_v14, %v12501_v47 }
 0x76c   :  { %15911 = vst [vmem:[#allocation47_spill] sm:$0xff] %v12765_v2 }
 0x76d   :  { %8649 = vrot.lane.b32.xlu0 %v8648_v61, %s9862_s0  ;;  %v15910_v61 = vrot.slane %v12297_v48, 5  ;;  %15914 = vst [vmem:[#allocation2_spill] sm:$0xff] %v12770_v31  ;;  %v15918_v48 = vrot.slane %v12716_v34, 4 }
 0x76e   :  { %8694 = vrot.lane.b32.xlu1 %v8693_v19, %s9851_s13  ;;  %v3054_v19 = vrot.slane %v12501_v47, 6  ;;  %v8387_v47 = vunpack.i.h.bf16 %v12418_v3 }
 0x76f   :  { %v12756_v9 = vpop.permute.xlu0 %8429  ;;  %4624 = vrot.lane.b32.xlu2 %v4599_v40, %s9856_s18  ;;  %v12762_v20 = vsel %vm15826_vm4, %v15910_v61, %v2990_v4  ;;  %v12777_v40 = vsel %vm2239_vm3, %v15915_v17, %v3050_v11  ;;  %v12780_v61 = vsel %vm2239_vm3, %v3050_v11, %v3052_v22  ;;  %v12795_v17 = vsel %vm165_vm0, %v4598_v36, %v15918_v48 }
 0x770   :  { %v12772_v6 = vpop.permute.xlu1 %8494  ;;  %15916 = vst [vmem:[#allocation10_spill] sm:$0xff] %v12780_v61  ;;  %v8653_v11 = vpack.i.bf16 %v2932_v59, %v12495_v38  ;;  %v8698_v41 = vpack.i.bf16 %v12765_v2, %v12762_v20  ;;  %v8658_v37 = vpack.i.bf16 %v12762_v20, %v12528_v10  ;;  %v8703_v39 = vpack.i.bf16 %v12780_v61, %v12777_v40  ;;  %v15924_v2 = vld [vmem:[#allocation14_spill] sm:$0xff] }
 0x771   :  { %v12783_v4 = vpop.permute.xlu2 %8574  ;;  %15919 = vst [vmem:[#allocation48_spill] sm:$0xff] %v12795_v17  ;;  %v12808_v34 = vsel %vm2239_vm3, %v3052_v22, %v3054_v19  ;;  %v15921_v38 = vrot.slane %v12735_v14, 6  ;;  %v8381_v22 = vunpack.i.l.bf16 %v12389_v62  ;;  %v15923_v48 = vrot.slane %v12735_v14, 7 }
 0x772   :  { %15920 = vst [vmem:[#allocation49_spill] sm:$0xff] %v12808_v34  ;;  %v8382_v59 = vunpack.i.h.bf16 %v12389_v62  ;;  %v8386_v10 = vunpack.i.l.bf16 %v12418_v3  ;;  %v8391_v61 = vunpack.i.l.bf16 %v12452_v18  ;;  %v8402_v3 = vunpack.i.h.bf16 %v12518_v56 }
 0x773   :  { %v12815_v36 = vsel %vm2239_vm3, %v3054_v19, %v15921_v38  ;;  %v12830_v19 = vsel %vm2310_vm5, %v3115_v25, %v15923_v48  ;;  %v3192_v38 = vsel %vm15822_vm14, %v12516_v30, %v3191_v5  ;;  %v8396_v48 = vunpack.i.l.bf16 %v12485_v46 }
 0x774   :  { %15922 = vst [vmem:[#allocation50_spill] sm:$0xff] %v12815_v36  ;;  %v8778_v62 = vpack.i.bf16 %v12815_v36, %v12808_v34  ;;  %v12854_v20 = vpack.i.bf16 %v3191_v5, %v3192_v38  ;;  %v3458_v31 = vsel %vm15825_vm8, %v15924_v2, %v8381_v22  ;;  %v8401_v36 = vunpack.i.l.bf16 %v12518_v56 }
 0x775   :  { %8654 = vrot.lane.b32.xlu0 %v8653_v11, %s9856_s18  ;;  %v3230_v11 = vsel %vm1178_vm15, %v12549_v44, %v3229_v52  ;;  %v3470_v57 = vsel %vm15823_vm9, %v3458_v31, %v8386_v10  ;;  %v8406_v5 = vunpack.i.l.bf16 %v12551_v33  ;;  %v8411_v22 = vunpack.i.l.bf16 %v12589_v23 }
 0x776   :  { %8699 = vrot.lane.b32.xlu1 %v8698_v41, %s9852_s14  ;;  %v8392_v41 = vunpack.i.h.bf16 %v12452_v18  ;;  %v12862_v30 = vpack.i.bf16 %v3229_v52, %v3230_v11  ;;  %v15925_v18 = vld [vmem:[#allocation12_spill] sm:$0xff]  ;;  %v3482_v2 = vsel %vm15824_vm10, %v3470_v57, %v8391_v61  ;;  %v15926_v31 = vrot.slane %v12735_v14, 3 }
 0x777   :  { %v12842_v25 = vpop.permute.xlu0 %8434  ;;  %8774 = vrot.lane.b32.xlu2 %v8773_v35, %s9858_s20  ;;  %v8397_v35 = vunpack.i.h.bf16 %v12485_v46  ;;  %v3459_v17 = vsel %vm15825_vm8, %v15925_v18, %v8382_v59  ;;  %v8407_v46 = vunpack.i.h.bf16 %v12551_v33  ;;  %v3494_v11 = vsel %vm918_vm11, %v3482_v2, %v8396_v48 }
 0x778   :  { %v12850_v44 = vpop.permute.xlu1 %8499  ;;  %v3471_v38 = vsel %vm15823_vm9, %v3459_v17, %v8387_v47  ;;  %v8412_v59 = vunpack.i.h.bf16 %v12589_v23  ;;  %v12880_v56 = vsel %vm15821_vm2, %v12587_v53, %v15926_v31  ;;  %v8377_v47 = vunpack.i.h.bf16 %v12369_v27 }
 0x779   :  { %v12860_v34 = vpop.permute.xlu2 %8579  ;;  %v3483_v52 = vsel %vm15824_vm10, %v3471_v38, %v8392_v41  ;;  %v8376_v57 = vunpack.i.l.bf16 %v12369_v27  ;;  %v3506_v61 = vsel %vm15927_vm7, %v3494_v11, %v8401_v36  ;;  %v8452_v17 = vunpack.i.h.bf16 %v12420_v55 }
 0x77a   :  { %v3495_v33 = vsel %vm918_vm11, %v3483_v52, %v8397_v35  ;;  %v8451_v23 = vunpack.i.l.bf16 %v12420_v55  ;;  %v3518_v41 = vsel %vm948_vm13, %v3506_v61, %v8406_v5  ;;  %v8532_v53 = vunpack.i.h.bf16 %v12427_v15 }
 0x77b   :  { %v3507_v10 = vsel %vm15928_vm1, %v3495_v33, %v8402_v3  ;;  %v8531_v27 = vunpack.i.l.bf16 %v12427_v15  ;;  %v3530_v36 = vsel %vm15929_vm6, %v3518_v41, %v8411_v22  ;;  %v8417_v3 = vunpack.i.h.bf16 %v12624_v1 }
 0x77c   :  { %v3519_v48 = vsel %vm948_vm13, %v3507_v10, %v8407_v46  ;;  %v8416_v5 = vunpack.i.l.bf16 %v12624_v1  ;;  %v8456_v38 = vunpack.i.l.bf16 %v12454_v45  ;;  %vm3554_vm7 = vcmask 588800  }
 0x77d   :  { %8659 = vrot.lane.b32.xlu0 %v8658_v37, %s9863_s28  ;;  %v8457_v37 = vunpack.i.h.bf16 %v12454_v45  ;;  %v3531_v18 = vsel %vm15930_vm12, %v3519_v48, %v8412_v59  ;;  %v8422_v2 = vunpack.i.h.bf16 %v12663_v29  ;;  %v8421_v46 = vunpack.i.l.bf16 %v12663_v29 }
 0x77e   :  { %8704 = vrot.lane.b32.xlu1 %v8703_v39, %s9853_s15  ;;  %vm15931_vm1 = vcmask 523264   ;;  %vm3579_vm6 = vcmask 719872   ;;  %v8427_v52 = vunpack.i.h.bf16 %v12707_v43  ;;  %v8426_v11 = vunpack.i.l.bf16 %v12707_v43 }
 0x77f   :  { %v8440_v35 = vpop.permute.xlu0 %8439  ;;  %8779 = vrot.lane.b32.xlu2 %v8778_v62, %s9853_s15  ;;  %v3542_v62 = vsel %vm15931_vm1, %v3530_v36, %v8376_v57  ;;  %vm15932_vm12 = vmmov %vm15931_vm1  ;;  %v8432_v59 = vunpack.i.h.bf16 %v12756_v9  ;;  %v8431_v45 = vunpack.i.l.bf16 %v12756_v9  ;;  %vm15830_vm2 = vcmask 850944   ;;  %v15936_v9 = vld [vmem:[#allocation15_spill] sm:$0xff] }
 0x780   :  { %v12901_v39 = vpop.permute.xlu1 %8504  ;;  %v3543_v1 = vsel %vm15932_vm12, %v3531_v18, %v8377_v47  ;;  %v3555_v31 = vsel %vm3554_vm7, %v3542_v62, %v8416_v5  ;;  %v8437_v33 = vunpack.i.h.bf16 %v12842_v25  ;;  %v8436_v57 = vunpack.i.l.bf16 %v12842_v25 }
 0x781   :  { %v12906_v22 = vpop.permute.xlu2 %8584  ;;  %v3556_v29 = vsel %vm3554_vm7, %v3543_v1, %v8417_v3  ;;  %vm15933_vm1 = vcmask 654336   ;;  %v8442_v43 = vunpack.i.h.bf16 %v8440_v35  ;;  %v8441_v41 = vunpack.i.l.bf16 %v8440_v35 }
 0x782   :  { %v3567_v61 = vsel %vm15933_vm1, %v3555_v31, %v8421_v46  ;;  %vm15934_vm14 = vmmov %vm15933_vm1  ;;  %v15935_v47 = vpack.i.bf16 %v12777_v40, %v12561_v26  ;;  %v3461_v48 = vsel %vm15825_vm8, %v15936_v9, %v8457_v37  ;;  %v8462_v36 = vunpack.i.h.bf16 %v12488_v42 }
 0x783   :  { %v3568_v10 = vsel %vm15934_vm14, %v3556_v29, %v8422_v2  ;;  %v3580_v18 = vsel %vm3579_vm6, %v3567_v61, %v8426_v11  ;;  %v15937_v3 = vpack.i.bf16 %v12318_v7, %v12323_v58  ;;  %v8461_v35 = vunpack.i.l.bf16 %v12488_v42  ;;  %v15943_v61 = vld [vmem:[#allocation13_spill] sm:$0xff] }
 0x784   :  { %v3581_v25 = vsel %vm3579_vm6, %v3568_v10, %v8427_v52  ;;  %vm15938_vm14 = vcmask 785408   ;;  %v15940_v37 = vpack.i.bf16 %v12830_v19, %v12788_v13  ;;  %vm15829_vm1 = vcmask 982016  }
 0x785   :  { %8664 = vrot.lane.b32.xlu0 %v15935_v47, %s9855_s6  ;;  %v3592_v5 = vsel %vm15938_vm14, %v3580_v18, %v8431_v45  ;;  %vm15939_vm12 = vmmov %vm15938_vm14  ;;  %v8467_v42 = vunpack.i.h.bf16 %v12521_v49  ;;  %v8466_v11 = vunpack.i.l.bf16 %v12521_v49  ;;  %vm15941_vm14 = vcmask 916480  }
 0x786   :  { %8709 = vrot.lane.b32.xlu1 %v15937_v3, %s9860_s26  ;;  %v3593_v26 = vsel %vm15939_vm12, %v3581_v25, %v8432_v59  ;;  %v3605_v2 = vsel %vm15830_vm2, %v3592_v5, %v8436_v57  ;;  %vm15942_vm12 = vmmov %vm15941_vm14  ;;  %v8472_v31 = vunpack.i.h.bf16 %v12554_v12  ;;  %v8471_v29 = vunpack.i.l.bf16 %v12554_v12  ;;  %v15944_v5 = vld [vmem:[#allocation39_spill] sm:$0xff] }
 0x787   :  { %v8445_v40 = vpop.permute.xlu0 %8444  ;;  %8784 = vrot.lane.b32.xlu2 %v15940_v37, %s9860_s26  ;;  %v3606_v46 = vsel %vm15830_vm2, %v3593_v26, %v8437_v33  ;;  %v3617_v59 = vsel %vm15941_vm14, %v3605_v2, %v8441_v41  ;;  %v3460_v10 = vsel %vm15825_vm8, %v15943_v61, %v8456_v38  ;;  %v8477_v47 = vunpack.i.h.bf16 %v12594_v16  ;;  %v15948_v2 = vld [vmem:[#allocation29_spill] sm:$0xff] }
 0x788   :  { %v8447_v62 = vunpack.i.h.bf16 %v8445_v40  ;;  %v8446_v58 = vunpack.i.l.bf16 %v8445_v40  ;;  %v12942_v52 = vpop.permute.xlu1 %8509  ;;  %v3618_v45 = vsel %vm15942_vm12, %v3606_v46, %v8442_v43  ;;  %v8476_v49 = vunpack.i.l.bf16 %v12594_v16  ;;  %v15945_v40 = vld [vmem:[#allocation7_spill] sm:$0xff]  ;;  %v15946_v16 = vld [vmem:[#allocation26_spill] sm:$0xff] }
 0x789   :  { %v12946_v1 = vpop.permute.xlu2 %8589  ;;  %v3472_v41 = vsel %vm15823_vm9, %v3460_v10, %v8461_v35  ;;  %v3473_v43 = vsel %vm15823_vm9, %v3461_v48, %v8462_v36  ;;  %v8482_v18 = vunpack.i.h.bf16 %v12628_v0  ;;  %v8481_v12 = vunpack.i.l.bf16 %v12628_v0 }
 0x78a   :  { %v3630_v33 = vsel %vm15829_vm1, %v3617_v59, %v8446_v58  ;;  %v3631_v57 = vsel %vm15829_vm1, %v3618_v45, %v8447_v62  ;;  %v3484_v25 = vsel %vm15824_vm10, %v3472_v41, %v8466_v11  ;;  %v3485_v3 = vsel %vm15824_vm10, %v3473_v43, %v8467_v42  ;;  %v15951_v59 = vld [vmem:[#allocation17_spill] sm:$0xff] }
 0x78b   :  { %v3642_v9 = vpack.c.bf16 %v3631_v57, %v3630_v33  ;;  %v8487_v26 = vunpack.i.h.bf16 %v15944_v5  ;;  %v8486_v38 = vunpack.i.l.bf16 %v15944_v5  ;;  %v8537_v35 = vunpack.i.h.bf16 %v15946_v16 }
 0x78c   :  { %v8536_v48 = vunpack.i.l.bf16 %v15946_v16  ;;  %v3496_v36 = vsel %vm918_vm11, %v3484_v25, %v8471_v29  ;;  %v3497_v0 = vsel %vm918_vm11, %v3485_v3, %v8472_v31  ;;  %v15947_v37 = vpack.i.bf16 %v12535_v28, %v12600_v54  ;;  %v15952_v28 = vld [vmem:[#allocation16_spill] sm:$0xff]  ;;  %v15961_v16 = vld [vmem:[#allocation31_spill] sm:$0xff] }
 0x78d   :  { %4535 = vrot.lane.b32.xlu0 %v15945_v40, %s9855_s6  ;;  %3720 = vmatmul.bf16.vlgmr.msrb.gmra.mxu3 %v3642_v9  ;;  %v8542_v46 = vunpack.i.h.bf16 %v15948_v2  ;;  %v8541_v62 = vunpack.i.l.bf16 %v15948_v2  ;;  %vm15949_vm14 = vcmask 326656   ;;  %v3463_v45 = vsel %vm15825_vm8, %v15951_v59, %v8532_v53 }
 0x78e   :  { %8739 = vrot.lane.b32.xlu1 %v15947_v37, %s9861_s27  ;;  %v3508_v58 = vsel %vm15949_vm14, %v3496_v36, %v8476_v49  ;;  %vm15950_vm12 = vmmov %vm15949_vm14  ;;  %v3462_v54 = vsel %vm15825_vm8, %v15952_v28, %v8531_v27  ;;  %vm15953_vm14 = vcmask 457728   ;;  %v8491_v10 = vunpack.i.l.bf16 %v12712_v50  ;;  %v15962_v36 = vld [vmem:[#allocation32_spill] sm:$0xff] }
 0x78f   :  { %v3509_v42 = vsel %vm15950_vm12, %v3497_v0, %v8477_v47  ;;  %v12980_v11 = vpop.permute.xlu0 %8599  ;;  %8789 = vrot.lane.b32.xlu2 %v12854_v20, %s9861_s27  ;;  %v3520_v31 = vsel %vm948_vm13, %v3508_v58, %v8481_v12  ;;  %vm15954_vm12 = vmmov %vm15953_vm14  ;;  %v8492_v20 = vunpack.i.h.bf16 %v12712_v50  ;;  %v3474_v15 = vsel %vm15823_vm9, %v3462_v54, %v8536_v48 }
 0x790   :  { %v3521_v29 = vsel %vm948_vm13, %v3509_v42, %v8482_v18  ;;  %v8515_v33 = vpop.permute.xlu1 %8514  ;;  %v3532_v57 = vsel %vm15953_vm14, %v3520_v31, %v8486_v38  ;;  %v3475_v53 = vsel %vm15823_vm9, %v3463_v45, %v8537_v35  ;;  %v8497_v27 = vunpack.i.h.bf16 %v12772_v6  ;;  %v15965_v45 = vld [vmem:[#allocation33_spill] sm:$0xff] }
 0x791   :  { %v3533_v61 = vsel %vm15954_vm12, %v3521_v29, %v8487_v26  ;;  %v12998_v47 = vpop.permute.xlu2 %4452  ;;  %v8496_v49 = vunpack.i.l.bf16 %v12772_v6  ;;  %v3486_v9 = vsel %vm15824_vm10, %v3474_v15, %v8541_v62  ;;  %v3487_v41 = vsel %vm15824_vm10, %v3475_v53, %v8542_v46  ;;  %v15968_v29 = vld [vmem:[#allocation36_spill] sm:$0xff] }
 0x792   :  { %v8502_v43 = vunpack.i.h.bf16 %v12850_v44  ;;  %v8501_v18 = vunpack.i.l.bf16 %v12850_v44  ;;  %vm2626_vm14 = vcmp.gt.f32.partialorder %v12654_v21, 0.0  ;;  %vm15955_vm12 = vcmask 523264  }
 0x793   :  { %v3544_v50 = vsel %vm15955_vm12, %v3532_v57, %v8451_v23  ;;  %vm15956_vm9 = vmmov %vm15955_vm12  ;;  %v8507_v6 = vunpack.i.h.bf16 %v12901_v39  ;;  %v8506_v25 = vunpack.i.l.bf16 %v12901_v39  ;;  %v8512_v44 = vunpack.i.h.bf16 %v12942_v52 }
 0x794   :  { %v3545_v12 = vsel %vm15956_vm9, %v3533_v61, %v8452_v17  ;;  %v3557_v3 = vsel %vm3554_vm7, %v3544_v50, %v8491_v10  ;;  %v8511_v26 = vunpack.i.l.bf16 %v12942_v52  ;;  %v15957_v23 = vpack.i.bf16 %v12788_v13, %v12318_v7 }
 0x795   :  { %v3558_v5 = vsel %vm3554_vm7, %v3545_v12, %v8492_v20  ;;  %vm15958_vm12 = vcmask 654336   ;;  %v8517_v38 = vunpack.i.h.bf16 %v8515_v33  ;;  %v8516_v40 = vunpack.i.l.bf16 %v8515_v33 }
 0x796   :  { %8769 = vrot.lane.b32.xlu0 %v15957_v23, %s9854_s24  ;;  %v3569_v55 = vsel %vm15958_vm12, %v3557_v3, %v8496_v49  ;;  %vm15959_vm9 = vmmov %vm15958_vm12  ;;  %v15960_v39 = vpack.i.bf16 %v12571_v24, %v12634_v63  ;;  %v8547_v35 = vunpack.i.h.bf16 %v15961_v16  ;;  %v8546_v52 = vunpack.i.l.bf16 %v15961_v16  ;;  %v15977_v3 = vld [vmem:[#allocation40_spill] sm:$0xff] }
 0x797   :  { %v3570_v17 = vsel %vm15959_vm9, %v3558_v5, %v8497_v27  ;;  %v3582_v48 = vsel %vm3579_vm6, %v3569_v55, %v8501_v18  ;;  %v13035_v13 = vpop.permute.xlu0 %8604  ;;  %8794 = vrot.lane.b32.xlu2 %v12862_v30, %s9857_s19  ;;  %v8552_v0 = vunpack.i.h.bf16 %v15962_v36  ;;  %v8551_v37 = vunpack.i.l.bf16 %v15962_v36  ;;  %v15969_v27 = vld [vmem:[#allocation34_spill] sm:$0xff] }
 0x798   :  { %8744 = vrot.lane.b32.xlu1 %v15960_v39, %s9857_s19  ;;  %v3583_v7 = vsel %vm3579_vm6, %v3570_v17, %v8502_v43  ;;  %vm15963_vm12 = vcmask 785408   ;;  %v8520_v2 = vpop.permute.xlu1 %8519  ;;  %v8557_v28 = vunpack.i.h.bf16 %v15965_v45  ;;  %v8556_v30 = vunpack.i.l.bf16 %v15965_v45 }
 0x799   :  { %v3594_v63 = vsel %vm15963_vm12, %v3582_v48, %v8506_v25  ;;  %vm15964_vm9 = vmmov %vm15963_vm12  ;;  %v8522_v46 = vunpack.i.h.bf16 %v8520_v2  ;;  %v8521_v62 = vunpack.i.l.bf16 %v8520_v2  ;;  %v13043_v58 = vpop.permute.xlu2 %4539  ;;  %vm15966_vm10 = vcmask 916480   ;;  %v15980_v48 = vld [vmem:[#allocation37_spill] sm:$0xff] }
 0x79a   :  { %v3595_v24 = vsel %vm15964_vm9, %v3583_v7, %v8507_v6  ;;  %v3607_v42 = vsel %vm15830_vm2, %v3594_v63, %v8511_v26  ;;  %vm15967_vm8 = vmmov %vm15966_vm10  ;;  %v8562_v33 = vunpack.i.h.bf16 %v15968_v29  ;;  %v8561_v57 = vunpack.i.l.bf16 %v15968_v29  ;;  %v15978_v26 = vld [vmem:[#allocation23_spill] sm:$0xff]  ;;  %v15986_v29 = vld [vmem:[#allocation48_spill] sm:$0xff] }
 0x79b   :  { %v3608_v59 = vsel %vm15830_vm2, %v3595_v24, %v8512_v44  ;;  %v3619_v54 = vsel %vm15966_vm10, %v3607_v42, %v8516_v40  ;;  %v3498_v10 = vsel %vm918_vm11, %v3486_v9, %v8546_v52  ;;  %v3499_v15 = vsel %vm918_vm11, %v3487_v41, %v8547_v35  ;;  %v15979_v52 = vld [vmem:[#allocation46_spill] sm:$0xff] }
 0x79c   :  { %v3620_v31 = vsel %vm15967_vm8, %v3608_v59, %v8517_v38  ;;  %v3632_v61 = vsel %vm15829_vm1, %v3619_v54, %v8521_v62  ;;  %v8748_v49 = vpack.i.bf16 %v15969_v27, %v12673_v8  ;;  %v2696_v43 = vsel %vm2626_vm14, %v12654_v21, %v12803_v51  ;;  %v15974_v21 = vld [vmem:[#allocation35_spill] sm:$0xff] }
 0x79d   :  { %v3633_v20 = vsel %vm15829_vm1, %v3620_v31, %v8522_v46  ;;  %vm15970_vm8 = vcmask 326656   ;;  %v15972_v9 = vrot.slane %v12735_v14, 3  ;;  %v15973_v51 = vrot.slane %v12735_v14, 4 }
 0x79e   :  { %v3643_v53 = vpack.c.bf16 %v3633_v20, %v3632_v61  ;;  %v3510_v18 = vsel %vm15970_vm8, %v3498_v10, %v8551_v37  ;;  %vm15971_vm10 = vmmov %vm15970_vm8  ;;  %4454 = vrot.lane.b32.xlu0 %v12750_v60, %s9854_s24  ;;  %vm15975_vm14 = vcmask 457728   ;;  %v8567_v5 = vunpack.i.h.bf16 %v15977_v3 }
 0x79f   :  { %v3511_v50 = vsel %vm15971_vm10, %v3499_v15, %v8552_v0  ;;  %v8798_v41 = vpack.i.bf16 %v15972_v9, %v12880_v56  ;;  %v3522_v12 = vsel %vm948_vm13, %v3510_v18, %v8556_v30  ;;  %v3306_v6 = vsel %vm165_vm0, %v15974_v21, %v15973_v51  ;;  %vm15976_vm12 = vmmov %vm15975_vm14  ;;  %v13081_v44 = vpop.permute.xlu0 %8609 }
 0x7a0   :  { %v3523_v8 = vsel %vm948_vm13, %v3511_v50, %v8557_v28  ;;  %3725 = vmatmul.bf16.gmra.mxu3 %v3643_v53  ;;  %8749 = vrot.lane.b32.xlu1 %v8748_v49, %s9862_s0  ;;  %v3534_v25 = vsel %vm15975_vm14, %v3522_v12, %v8561_v57  ;;  %v8566_v56 = vunpack.i.l.bf16 %v15977_v3  ;;  %v8527_v23 = vunpack.i.h.bf16 %v15978_v26  ;;  %v8595_v40 = vpop.permute.xlu1 %8594  ;;  %v15989_v53 = vld [vmem:[#allocation2_spill] sm:$0xff]  ;;  %v15992_v12 = vld [vmem:[#allocation8_spill] sm:$0xff] }
 0x7a1   :  { %v3535_v60 = vsel %vm15976_vm12, %v3523_v8, %v8562_v33  ;;  %8799 = vrot.lane.b32.xlu2 %v8798_v41, %s9862_s0  ;;  %v8526_v55 = vunpack.i.l.bf16 %v15978_v26  ;;  %v8572_v17 = vunpack.i.h.bf16 %v12718_v32  ;;  %v8571_v38 = vunpack.i.l.bf16 %v12718_v32  ;;  %v13090_v35 = vpop.permute.xlu2 %8714  ;;  %v15995_v26 = vld [vmem:[#allocation47_spill] sm:$0xff] }
 0x7a2   :  { %v8577_v39 = vunpack.i.h.bf16 %v12783_v4  ;;  %v8576_v16 = vunpack.i.l.bf16 %v12783_v4  ;;  %v8753_v7 = vpack.i.bf16 %v15980_v48, %v15979_v52  ;;  %v15981_v36 = vmov %v15973_v51  ;;  %v9843_v51 = vld [vmem:[%s15741_s2 + $0x18] ss:$0 sm:$0xff] }
 0x7a3   :  { %v8803_v0 = vpack.i.bf16 %v15981_v36, %v3306_v6  ;;  %vm15982_vm9 = vcmask 523264   ;;  %v8582_v24 = vunpack.i.h.bf16 %v12860_v34  ;;  %v8581_v32 = vunpack.i.l.bf16 %v12860_v34  ;;  %v15993_v6 = vld [vmem:[#allocation38_spill] sm:$0xff] }
 0x7a4   :  { %v3546_v37 = vsel %vm15982_vm9, %v3534_v25, %v8526_v55  ;;  %vm15983_vm8 = vmmov %vm15982_vm9  ;;  %v8587_v46 = vunpack.i.h.bf16 %v12906_v22  ;;  %v8586_v62 = vunpack.i.l.bf16 %v12906_v22  ;;  %vm15984_vm10 = vcmask 654336   ;;  %v9842_v22 = vld [vmem:[%s15741_s2 + $0x10] ss:$0 sm:$0xff]  ;;  %v15998_v36 = vld [vmem:[#allocation6_spill] sm:$0xff] }
 0x7a5   :  { %v3547_v63 = vsel %vm15983_vm8, %v3535_v60, %v8527_v23  ;;  %v3559_v2 = vsel %vm3554_vm7, %v3546_v37, %v8566_v56  ;;  %vm15985_vm14 = vmmov %vm15984_vm10  ;;  %v8592_v45 = vunpack.i.h.bf16 %v12946_v1  ;;  %v8591_v28 = vunpack.i.l.bf16 %v12946_v1  ;;  %v15994_v60 = vld [vmem:[#allocation4_spill] sm:$0xff]  ;;  %v15996_v23 = vld [vmem:[#allocation41_spill] sm:$0xff] }
 0x7a6   :  { %v3560_v4 = vsel %vm3554_vm7, %v3547_v63, %v8567_v5  ;;  %v3571_v42 = vsel %vm15984_vm10, %v3559_v2, %v8571_v38  ;;  %v8597_v54 = vunpack.i.h.bf16 %v8595_v40  ;;  %v8596_v31 = vunpack.i.l.bf16 %v8595_v40  ;;  %4626 = vrot.lane.b32.xlu0 %v15986_v29, %s9856_s18  ;;  %v15999_v63 = vld [vmem:[#allocation10_spill] sm:$0xff]  ;;  %v16005_v29 = vld [vmem:[#allocation27_spill] sm:$0xff] }
 0x7a7   :  { %v3572_v59 = vsel %vm15985_vm14, %v3560_v4, %v8572_v17  ;;  %v3584_v30 = vsel %vm3579_vm6, %v3571_v42, %v8576_v16  ;;  %v2710_v33 = vmul.f32 %v9842_v22, %v2696_v43  ;;  %vm15987_vm12 = vcmask 785408   ;;  %v13119_v20 = vpop.permute.xlu0 %8614  ;;  %v16001_v2 = vld [vmem:[#allocation50_spill] sm:$0xff] }
 0x7a8   :  { %v3585_v34 = vsel %vm3579_vm6, %v3572_v59, %v8577_v39  ;;  %v3596_v57 = vsel %vm15987_vm12, %v3584_v30, %v8581_v32  ;;  %vm15988_vm9 = vmmov %vm15987_vm12  ;;  %8754 = vrot.lane.b32.xlu1 %v8753_v7, %s9856_s18  ;;  %v3343_v1 = vrot.slane %v12735_v14, 5  ;;  %v4517_v27 = vrot.slane %v15989_v53, 2  ;;  %v4451_v49 = vpop.permute.xlu1 %4450 }
 0x7a9   :  { %v3597_v61 = vsel %vm15988_vm9, %v3585_v34, %v8582_v24  ;;  %8804 = vrot.lane.b32.xlu2 %v8803_v0, %s9856_s18  ;;  %v3609_v10 = vsel %vm15830_vm2, %v3596_v57, %v8586_v62  ;;  %vm15990_vm8 = vcmask 916480   ;;  %v13127_v50 = vpop.permute.xlu2 %8719  ;;  %v4515_v8 = vrot.slane %v15992_v12, 2  ;;  %v16000_v24 = vld [vmem:[#allocation49_spill] sm:$0xff] }
 0x7aa   :  { %v3610_v15 = vsel %vm15830_vm2, %v3597_v61, %v8587_v46  ;;  %v3621_v43 = vsel %vm15990_vm8, %v3609_v10, %v8591_v28  ;;  %vm15991_vm10 = vmmov %vm15990_vm8  ;;  %v2724_v21 = vadd.f32 %v9843_v51, %v2710_v33  ;;  %v3344_v25 = vsel %vm15826_vm4, %v15993_v6, %v3343_v1  ;;  %v16002_v46 = vld [vmem:[#allocation28_spill] sm:$0xff] }
 0x7ab   :  { %v3622_v18 = vsel %vm15991_vm10, %v3610_v15, %v8592_v45  ;;  %v3634_v9 = vsel %vm15829_vm1, %v3621_v43, %v8596_v31  ;;  %v13138_v3 = vadd.f32 %v4451_v49, %v15994_v60  ;;  %v4518_v5 = vsel %vm1178_vm15, %v4515_v8, %v4517_v27  ;;  %v16008_v49 = vld [vmem:[#allocation3_spill] sm:$0xff]  ;;  %v16009_v43 = vld [vmem:[#allocation9_spill] sm:$0xff] }
 0x7ac   :  { %v3635_v41 = vsel %vm15829_vm1, %v3622_v18, %v8597_v54  ;;  %v8758_v55 = vpack.i.bf16 %v15996_v23, %v15995_v26  ;;  %v8808_v17 = vpack.i.bf16 %v3343_v1, %v3344_v25  ;;  %v3382_v38 = vrot.slane %v2724_v21, 6  ;;  %v16003_v54 = vld [vmem:[#allocation43_spill] sm:$0xff] }
 0x7ad   :  { %v3644_v56 = vpack.c.bf16 %v3635_v41, %v3634_v9  ;;  %v4519_v39 = vrot.slane %v13138_v3, 2  ;;  %v15997_v48 = vrot.slane %v12735_v14, 6  ;;  %v8763_v32 = vpack.i.bf16 %v16000_v24, %v15999_v63 }
 0x7ae   :  { %4543 = vrot.lane.b32.xlu0 %v4518_v5, %s9855_s6  ;;  %v13164_v62 = vadd.f32 %v13043_v58, %v16002_v46  ;;  %v3420_v34 = vrot.slane %v2724_v21, 7  ;;  %v16004_v31 = vrot.slane %v16003_v54, 1  ;;  %v16006_v22 = vrot.slane %v16005_v29, 2 }
 0x7af   :  { %v13145_v40 = vpop.permute.xlu0 %8619  ;;  %v3383_v7 = vsel %vm2239_vm3, %v15997_v48, %v3382_v38  ;;  %v4520_v37 = vsel %vm1178_vm15, %v4517_v27, %v4519_v39  ;;  %v16007_v10 = vrot.slane %v12735_v14, 7  ;;  %v13200_v18 = vadd.f32 %v16009_v43, %v16008_v49  ;;  %v16010_v14 = vld [vmem:[#allocation45_spill] sm:$0xff] }
 0x7b0   :  { %3730 = vmatmul.bf16.gmra.mxu3 %v3644_v56  ;;  %8759 = vrot.lane.b32.xlu1 %v8758_v55, %s9863_s28  ;;  %v4538_v16 = vpop.permute.xlu1 %4537  ;;  %v8813_v4 = vpack.i.bf16 %v3383_v7, %v16001_v2  ;;  %v4608_v30 = vrot.slane %v13164_v62, 4  ;;  %v4516_v33 = vsel %vm1178_vm15, %v16006_v22, %v4515_v8  ;;  %v16011_v21 = vrot.slane %v16010_v14, 4 }
 0x7b1   :  { %8809 = vrot.lane.b32.xlu2 %v8808_v17, %s9863_s28  ;;  %v13149_v52 = vpop.permute.xlu2 %8724  ;;  %v13155_v0 = vadd.f32 %v4538_v16, %v15998_v36  ;;  %v3421_v15 = vsel %vm2310_vm5, %v16007_v10, %v3420_v34  ;;  %v4602_v51 = vrot.slane %v13200_v18, 4  ;;  %v8607_v7 = vunpack.i.h.bf16 %v13035_v13  ;;  %v16013_v34 = vld [vmem:[#allocation21_spill] sm:$0xff] }
 0x7b2   :  { %v8818_v27 = vpack.i.bf16 %v3421_v15, %v12830_v19  ;;  %v16012_v19 = vld [vmem:[#allocation24_spill] sm:$0xff]  ;;  %v8606_v36 = vunpack.i.l.bf16 %v13035_v13  ;;  %v8612_v63 = vunpack.i.h.bf16 %v13081_v44  ;;  %v8616_v2 = vunpack.i.l.bf16 %v13119_v20 }
 0x7b3   :  { %v4606_v59 = vrot.slane %v13155_v0, 4  ;;  %v4603_v6 = vsel %vm165_vm0, %v16011_v21, %v4602_v51  ;;  %v13215_v25 = vadd.f32 %v12998_v47, %v16012_v19  ;;  %v8622_v46 = vunpack.i.h.bf16 %v13145_v40 }
 0x7b4   :  { %vm16014_vm14 = vcmask 64512   ;;  %vm16017_vm9 = vcmask 130048   ;;  %vm16019_vm10 = vcmask 195584  }
 0x7b5   :  { %v4609_v58 = vsel %vm165_vm0, %v4606_v59, %v4608_v30  ;;  %v4521_v26 = vrot.slane %v13215_v25, 2  ;;  %v3465_v13 = vsel %vm16014_vm14, %v16013_v34, %v8607_v7  ;;  %vm16016_vm12 = vmmov %vm16014_vm14  ;;  %vm16021_vm14 = vcmask 326656  }
 0x7b6   :  { %4545 = vrot.lane.b32.xlu0 %v4520_v37, %s9855_s6  ;;  %vm16018_vm8 = vmmov %vm16017_vm9  ;;  %v8601_v34 = vunpack.i.l.bf16 %v12980_v11 }
 0x7b7   :  { %v13167_v42 = vpop.permute.xlu0 %8624  ;;  %v4522_v23 = vsel %vm1178_vm15, %v4519_v39, %v4521_v26  ;;  %v8611_v39 = vunpack.i.l.bf16 %v13081_v44  ;;  %vm16020_vm4 = vmmov %vm16019_vm10 }
 0x7b8   :  { %8764 = vrot.lane.b32.xlu1 %v8763_v32, %s9855_s6  ;;  %v13171_v45 = vpop.permute.xlu1 %8669  ;;  %v8617_v32 = vunpack.i.h.bf16 %v13119_v20  ;;  %v8627_v44 = vunpack.i.h.bf16 %v13167_v42  ;;  %v3477_v20 = vsel %vm16018_vm8, %v3465_v13, %v8612_v63  ;;  %vm16025_vm8 = vcmask 523264  }
 0x7b9   :  { %8814 = vrot.lane.b32.xlu2 %v8813_v4, %s9855_s6  ;;  %v13173_v28 = vpop.permute.xlu2 %8729 }
 0x7be   :  { %4634 = vrot.lane.b32.xlu0 %v4609_v58, %s9856_s18  ;;  %v8621_v58 = vunpack.i.l.bf16 %v13145_v40  ;;  %v3489_v40 = vsel %vm16020_vm4, %v3477_v20, %v8617_v32 }
 0x7bf   :  { %v8630_v57 = vpop.permute.xlu0 %8629  ;;  %v3501_v19 = vsel %vm918_vm11, %v3489_v40, %v8622_v46  ;;  %v8602_v46 = vunpack.i.h.bf16 %v12980_v11 }
 0x7c0   :  { %4456 = vrot.lane.b32.xlu1 %v16004_v31, %s9854_s24  ;;  %v13189_v61 = vpop.permute.xlu1 %8674  ;;  %v16015_v31 = vld [vmem:[#allocation18_spill] sm:$0xff]  ;;  %v8632_v15 = vunpack.i.h.bf16 %v8630_v57 }
 0x7c1   :  { %4541 = vrot.lane.b32.xlu2 %v4516_v33, %s9855_s6  ;;  %v13191_v1 = vpop.permute.xlu2 %8734  ;;  %v3464_v22 = vsel %vm16016_vm12, %v16015_v31, %v8606_v36  ;;  %v8626_v33 = vunpack.i.l.bf16 %v13167_v42  ;;  %vm16022_vm12 = vmmov %vm16021_vm14 }
 0x7c2   :  { %v3476_v10 = vsel %vm16017_vm9, %v3464_v22, %v8611_v39  ;;  %v3513_v42 = vsel %vm16022_vm12, %v3501_v19, %v8627_v44  ;;  %vm16023_vm9 = vcmask 457728  }
 0x7c3   :  { %v3488_v49 = vsel %vm16019_vm10, %v3476_v10, %v8616_v2  ;;  %v3525_v63 = vsel %vm948_vm13, %v3513_v42, %v8632_v15  ;;  %vm16024_vm4 = vmmov %vm16023_vm9 }
 0x7c4   :  { %vm16026_vm10 = vmmov %vm16025_vm8 }
 0x7c7   :  { %v8635_v9 = vpop.permute.xlu0 %8634 }
 0x7c8   :  { %8819 = vrot.lane.b32.xlu1 %v8818_v27, %s9854_s24  ;;  %v13202_v41 = vpop.permute.xlu1 %8679  ;;  %v8631_v27 = vunpack.i.l.bf16 %v8630_v57  ;;  %v8637_v43 = vunpack.i.h.bf16 %v8635_v9  ;;  %v8636_v21 = vunpack.i.l.bf16 %v8635_v9 }
 0x7c9   :  { %v13204_v8 = vpop.permute.xlu2 %4624 }
 0x7ca   :  { %v3537_v32 = vsel %vm16024_vm4, %v3525_v63, %v8637_v43 }
 0x7cb   :  { %v3549_v10 = vsel %vm16026_vm10, %v3537_v32, %v8602_v46 }
 0x7cf   :  { %v8640_v60 = vpop.permute.xlu0 %8639 }
 0x7d0   :  { %4628 = vrot.lane.b32.xlu1 %v4603_v6, %s9856_s18  ;;  %v13217_v5 = vpop.permute.xlu1 %8684  ;;  %v3500_v6 = vsel %vm918_vm11, %v3488_v49, %v8621_v58  ;;  %v8642_v9 = vunpack.i.h.bf16 %v8640_v60  ;;  %v8641_v2 = vunpack.i.l.bf16 %v8640_v60 }
 0x7d1   :  { %v13219_v56 = vpop.permute.xlu2 %8774 }
 0x7d2   :  { %v3562_v60 = vsel %vm3554_vm7, %v3549_v10, %v8642_v9 }
 0x7d7   :  { %v8645_v55 = vpop.permute.xlu0 %8644 }
 0x7d8   :  { %4547 = vrot.lane.b32.xlu1 %v4522_v23, %s9855_s6  ;;  %v13226_v17 = vpop.permute.xlu1 %8689  ;;  %v3512_v23 = vsel %vm16021_vm14, %v3500_v6, %v8626_v33  ;;  %v8647_v13 = vunpack.i.h.bf16 %v8645_v55  ;;  %v8646_v31 = vunpack.i.l.bf16 %v8645_v55  ;;  %vm16027_vm14 = vcmask 654336  }
 0x7d9   :  { %v13228_v38 = vpop.permute.xlu2 %8779  ;;  %v3524_v36 = vsel %vm948_vm13, %v3512_v23, %v8631_v27  ;;  %vm16028_vm12 = vmmov %vm16027_vm14 }
 0x7da   :  { %v3536_v39 = vsel %vm16023_vm9, %v3524_v36, %v8636_v21  ;;  %v3574_v11 = vsel %vm16028_vm12, %v3562_v60, %v8647_v13  ;;  %vm16029_vm9 = vcmask 785408   ;;  %v8672_v36 = vunpack.i.h.bf16 %v13171_v45 }
 0x7db   :  { %v3548_v33 = vsel %vm16025_vm8, %v3536_v39, %v8601_v34  ;;  %vm16030_vm4 = vmmov %vm16029_vm9  ;;  %vm16031_vm8 = vcmask 916480  }
 0x7dc   :  { %v3561_v27 = vsel %vm3554_vm7, %v3548_v33, %v8641_v2  ;;  %vm16032_vm10 = vmmov %vm16031_vm8 }
 0x7dd   :  { %v3573_v43 = vsel %vm16027_vm14, %v3561_v27, %v8646_v31  ;;  %vm16035_vm14 = vcmask 64512  }
 0x7de   :  { %vm16037_vm12 = vmmov %vm16035_vm14 }
 0x7df   :  { %v8650_v47 = vpop.permute.xlu0 %8649 }
 0x7e0   :  { %v13230_v16 = vpop.permute.xlu1 %8694  ;;  %v8652_v22 = vunpack.i.h.bf16 %v8650_v47  ;;  %v8651_v44 = vunpack.i.l.bf16 %v8650_v47 }
 0x7e1   :  { %v13232_v48 = vpop.permute.xlu2 %8784 }
 0x7e2   :  { %v3586_v55 = vsel %vm3579_vm6, %v3573_v43, %v8651_v44  ;;  %v3587_v47 = vsel %vm3579_vm6, %v3574_v11, %v8652_v22  ;;  %v16033_v22 = vld [vmem:[#allocation5_spill] sm:$0xff]  ;;  %v8722_v43 = vunpack.i.h.bf16 %v13127_v50  ;;  %v8721_v11 = vunpack.i.l.bf16 %v13127_v50 }
 0x7e3   :  { %v8731_v50 = vunpack.i.l.bf16 %v13173_v28 }
 0x7e7   :  { %v8655_v37 = vpop.permute.xlu0 %8654 }
 0x7e8   :  { %v13238_v24 = vpop.permute.xlu1 %8699  ;;  %v8657_v20 = vunpack.i.h.bf16 %v8655_v37  ;;  %v8656_v15 = vunpack.i.l.bf16 %v8655_v37 }
 0x7e9   :  { %v13242_v4 = vpop.permute.xlu2 %8789 }
 0x7ea   :  { %v3598_v6 = vsel %vm16029_vm9, %v3586_v55, %v8656_v15  ;;  %v3599_v19 = vsel %vm16030_vm4, %v3587_v47, %v8657_v20  ;;  %v8726_v55 = vunpack.i.l.bf16 %v13149_v52  ;;  %v8727_v47 = vunpack.i.h.bf16 %v13149_v52 }
 0x7eb   :  { %vm16038_vm9 = vcmask 130048  }
 0x7ec   :  { %vm16039_vm4 = vmmov %vm16038_vm9 }
 0x7ef   :  { %v8660_v7 = vpop.permute.xlu0 %8659 }
 0x7f0   :  { %v13262_v57 = vpop.permute.xlu1 %8704  ;;  %v8662_v49 = vunpack.i.h.bf16 %v8660_v7  ;;  %v8661_v40 = vunpack.i.l.bf16 %v8660_v7  ;;  %v8671_v7 = vunpack.i.l.bf16 %v13171_v45 }
 0x7f1   :  { %v13266_v58 = vpop.permute.xlu2 %8794 }
 0x7f2   :  { %v3611_v39 = vsel %vm15830_vm2, %v3598_v6, %v8661_v40  ;;  %v3612_v32 = vsel %vm15830_vm2, %v3599_v19, %v8662_v49  ;;  %v8717_v49 = vunpack.i.h.bf16 %v13090_v35  ;;  %v8716_v40 = vunpack.i.l.bf16 %v13090_v35  ;;  %v16036_v19 = vld [vmem:[#allocation19_spill] sm:$0xff] }
 0x7f4   :  { %v3468_v35 = vsel %vm16037_vm12, %v16036_v19, %v8716_v40  ;;  %v8687_v40 = vunpack.i.h.bf16 %v13217_v5  ;;  %v16046_v19 = vld [vmem:[#allocation20_spill] sm:$0xff] }
 0x7f7   :  { %v8665_v21 = vpop.permute.xlu0 %8664 }
 0x7f8   :  { %v8667_v37 = vunpack.i.h.bf16 %v8665_v21  ;;  %v8666_v23 = vunpack.i.l.bf16 %v8665_v21  ;;  %v13280_v42 = vpop.permute.xlu1 %8709  ;;  %v16034_v21 = vld [vmem:[#allocation30_spill] sm:$0xff] }
 0x7f9   :  { %v3469_v6 = vsel %vm16035_vm14, %v16034_v21, %v8717_v49  ;;  %vm16043_vm14 = vcmask 326656   ;;  %v16045_v21 = vld [vmem:[#allocation44_spill] sm:$0xff] }
 0x7fa   :  { %v3623_v9 = vsel %vm16031_vm8, %v3611_v39, %v8666_v23  ;;  %v3624_v2 = vsel %vm16032_vm10, %v3612_v32, %v8667_v37  ;;  %v8732_v37 = vunpack.i.h.bf16 %v13173_v28  ;;  %vm16041_vm8 = vcmask 195584   ;;  %vm16044_vm12 = vmmov %vm16043_vm14 }
 0x7fb   :  { %v13284_v63 = vpop.permute.xlu2 %8799  ;;  %v3636_v46 = vsel %vm15829_vm1, %v3623_v9, %v8671_v7  ;;  %v3637_v34 = vsel %vm15829_vm1, %v3624_v2, %v8672_v36  ;;  %v3480_v36 = vsel %vm16038_vm9, %v3468_v35, %v8721_v11  ;;  %v16040_v7 = vld [vmem:[#allocation25_spill] sm:$0xff]  ;;  %v8737_v2 = vunpack.i.h.bf16 %v13191_v1  ;;  %vm16042_vm10 = vmmov %vm16041_vm8 }
 0x7fc   :  { %v3645_v13 = vpack.c.bf16 %v3637_v34, %v3636_v46  ;;  %v3492_v9 = vsel %vm16041_vm8, %v3480_v36, %v8726_v55  ;;  %v8736_v46 = vunpack.i.l.bf16 %v13191_v1  ;;  %v8686_v1 = vunpack.i.l.bf16 %v13217_v5 }
 0x7fd   :  { %v8676_v11 = vunpack.i.l.bf16 %v13189_v61  ;;  %v8691_v5 = vunpack.i.l.bf16 %v13226_v17  ;;  %vm16047_vm9 = vcmask 64512   ;;  %vm16050_vm8 = vcmask 130048  }
 0x7fe   :  { %3735 = vmatmul.bf16.gmra.mxu3 %v3645_v13 }
 0x7ff   :  { %v4536_v31 = vpop.permute.xlu0 %4535 }
 0x800   :  { %v13293_v44 = vadd.f32 %v4536_v31, %v16033_v22  ;;  %v13295_v45 = vpop.permute.xlu1 %8739  ;;  %v8682_v31 = vunpack.i.h.bf16 %v13202_v41  ;;  %v8681_v22 = vunpack.i.l.bf16 %v13202_v41 }
 0x802   :  { %v4604_v10 = vrot.slane %v13293_v44, 4  ;;  %v3467_v35 = vsel %vm16047_vm9, %v16046_v19, %v8682_v31  ;;  %v8786_v19 = vunpack.i.l.bf16 %v13232_v48 }
 0x803   :  { %v13297_v33 = vpop.permute.xlu2 %8804 }
 0x804   :  { %v4605_v20 = vsel %vm165_vm0, %v4602_v51, %v4604_v10  ;;  %v4607_v51 = vsel %vm165_vm0, %v4604_v10, %v4606_v59  ;;  %v3481_v59 = vsel %vm16039_vm4, %v3469_v6, %v8722_v43  ;;  %v8677_v43 = vunpack.i.h.bf16 %v13189_v61  ;;  %vm16049_vm4 = vmmov %vm16047_vm9 }
 0x805   :  { %4630 = vrot.lane.b32.xlu2 %v4605_v20, %s9856_s18  ;;  %v3493_v13 = vsel %vm16042_vm10, %v3481_v59, %v8727_v47  ;;  %v3504_v20 = vsel %vm918_vm11, %v3492_v9, %v8731_v50  ;;  %v13360_v6 = vadd.f32 %v13204_v8, %v16045_v21  ;;  %vm16051_vm10 = vmmov %vm16050_vm8  ;;  %v8697_v8 = vunpack.i.h.bf16 %v13230_v16 }
 0x806   :  { %v3505_v49 = vsel %vm918_vm11, %v3493_v13, %v8732_v37  ;;  %v3516_v55 = vsel %vm16043_vm14, %v3504_v20, %v8736_v46  ;;  %v16048_v37 = vld [vmem:[#allocation22_spill] sm:$0xff]  ;;  %v3479_v59 = vsel %vm16051_vm10, %v3467_v35, %v8687_v40  ;;  %v8702_v46 = vunpack.i.h.bf16 %v13238_v24 }
 0x807   :  { %v3517_v47 = vsel %vm16044_vm12, %v3505_v49, %v8737_v2  ;;  %v3466_v50 = vsel %vm16049_vm4, %v16048_v37, %v8681_v22  ;;  %v8782_v2 = vunpack.i.h.bf16 %v13228_v38  ;;  %vm16052_vm14 = vcmask 195584  }
 0x808   :  { %v13304_v15 = vpop.permute.xlu0 %8769  ;;  %v3478_v36 = vsel %vm16050_vm8, %v3466_v50, %v8686_v1  ;;  %v8707_v22 = vunpack.i.h.bf16 %v13262_v57  ;;  %vm16053_vm12 = vmmov %vm16052_vm14  ;;  %v8712_v1 = vunpack.i.h.bf16 %v13280_v42  ;;  %vm16054_vm9 = vcmask 326656  }
 0x809   :  { %v3490_v31 = vsel %vm16052_vm14, %v3478_v36, %v8691_v5  ;;  %vm16055_vm4 = vmmov %vm16054_vm9  ;;  %vm16056_vm8 = vcmask 457728   ;;  %v8742_v36 = vunpack.i.h.bf16 %v13295_v45 }
 0x80a   :  { %v13306_v27 = vpop.permute.xlu1 %8744  ;;  %vm16057_vm10 = vmmov %vm16056_vm8 }
 0x80b   :  { %v13308_v60 = vpop.permute.xlu2 %8809  ;;  %vm16058_vm14 = vmmov %vm16056_vm8 }
 0x80d   :  { %4632 = vrot.lane.b32.xlu2 %v4607_v51, %s9856_s18 }
 0x810   :  { %v4455_v23 = vpop.permute.xlu0 %4454  ;;  %v13331_v32 = vpop.f32.mrf.mxu3 }
 0x811   :  { %v13329_v39 = vadd.f32 %v4455_v23, %v16040_v7  ;;  %v3763_v28 = vmin.f32 %v13331_v32, 0.0  ;;  %v8696_v23 = vunpack.i.l.bf16 %v13230_v16  ;;  %v8701_v7 = vunpack.i.l.bf16 %v13238_v24 }
 0x812   :  { %v13333_v52 = vpop.permute.xlu1 %8749  ;;  %v8711_v16 = vunpack.i.l.bf16 %v13280_v42  ;;  %v8787_v42 = vunpack.i.h.bf16 %v13232_v48  ;;  %v8777_v48 = vunpack.i.h.bf16 %v13219_v56 }
 0x813   :  { %v13339_v34 = vpop.permute.xlu2 %8814  ;;  %v4523_v10 = vrot.slane %v13329_v39, 2  ;;  %v3775_v51 = vmul.f32 1.442695, %v3763_v28  ;;  %v8706_v28 = vunpack.i.l.bf16 %v13262_v57  ;;  %v3502_v24 = vsel %vm918_vm11, %v3490_v31, %v8696_v23 }
 0x814   :  { %v3514_v57 = vsel %vm16054_vm9, %v3502_v24, %v8701_v7  ;;  %v4694_v7 = vmin.f32 %v13360_v6, 0.0  ;;  %vm16060_vm9 = vcmask 523264   ;;  %v8751_v61 = vunpack.i.l.bf16 %v13333_v52 }
 0x815   :  { %v4524_v41 = vsel %vm1178_vm15, %v4521_v26, %v4523_v10  ;;  %v8692_v26 = vunpack.i.h.bf16 %v13226_v17  ;;  %9698 = vpow2.f32 %v3775_v51  ;;  %v3526_v37 = vsel %vm948_vm13, %v3514_v57, %v8706_v28 }
 0x816   :  { %4549 = vrot.lane.b32.xlu1 %v4524_v41, %s9855_s6  ;;  %v8781_v41 = vunpack.i.l.bf16 %v13228_v38  ;;  %v8746_v28 = vunpack.i.l.bf16 %v13306_v27  ;;  %v8747_v57 = vunpack.i.h.bf16 %v13306_v27 }
 0x817   :  { %v3491_v40 = vsel %vm16053_vm12, %v3479_v59, %v8692_v26  ;;  %v3538_v26 = vsel %vm16056_vm8, %v3526_v37, %v8711_v16  ;;  %v8741_v59 = vunpack.i.l.bf16 %v13295_v45  ;;  %v3529_v16 = vsel %vm948_vm13, %v3517_v47, %v8782_v2  ;;  %vm16059_vm12 = vmmov %vm16056_vm8 }
 0x818   :  { %v13374_v9 = vpop.permute.xlu0 %4626  ;;  %v13379_v17 = vpop.f32.mrf.mxu3  ;;  %v3503_v21 = vsel %vm918_vm11, %v3491_v40, %v8697_v8  ;;  %vm16062_vm8 = vcmask 654336  }
 0x819   :  { %v3764_v20 = vmin.f32 %v13379_v17, 0.0  ;;  %v3515_v35 = vsel %vm16055_vm4, %v3503_v21, %v8702_v46  ;;  %v3528_v46 = vsel %vm948_vm13, %v3516_v55, %v8781_v41  ;;  %v3550_v55 = vsel %vm16060_vm9, %v3538_v26, %v8676_v11  ;;  %vm16061_vm4 = vmmov %vm16060_vm9 }
 0x81a   :  { %v13381_v13 = vpop.permute.xlu1 %8754  ;;  %v13417_v45 = vsel %vm16058_vm14, %v3528_v46, %v8786_v19  ;;  %v3563_v47 = vsel %vm3554_vm7, %v3550_v55, %v8741_v59  ;;  %vm3752_vm14 = vcmp.gt.f32.partialorder %v13379_v17, 0.0  ;;  %v16064_v46 = vld [vmem:[#allocation42_spill] sm:$0xff]  ;;  %vm16065_vm9 = vcmask 785408  }
 0x81b   :  { %v4542_v49 = vpop.permute.xlu2 %4541  ;;  %v3777_v5 = vmul.f32 1.442695, %v3764_v20  ;;  %v9699_v38 = vpop.eup %9698  ;;  %v3575_v11 = vsel %vm16062_vm8, %v3563_v47, %v8746_v28  ;;  %v8757_v27 = vunpack.i.h.bf16 %v13381_v13  ;;  %v13465_v28 = vadd.f32 %v13374_v9, %v16064_v46 }
 0x81c   :  { %v13391_v51 = vadd.f32 %v4542_v49, %v16005_v29  ;;  %v3527_v29 = vsel %vm948_vm13, %v3515_v35, %v8707_v22  ;;  %v8776_v22 = vunpack.i.l.bf16 %v13219_v56  ;;  %v13423_v49 = vsel %vm16059_vm12, %v3529_v16, %v8787_v42  ;;  %vm16063_vm12 = vmmov %vm16062_vm8  ;;  %v3853_v56 = vld [vmem:[%s15741_s2 + $0x60] sm:$0xff] }
 0x81d   :  { %9700 = vpow2.f32 %v3777_v5  ;;  %v3539_v23 = vsel %vm16057_vm10, %v3527_v29, %v8712_v1  ;;  %v7476_v24 = vadd.f32 -1.0, %v9699_v38  ;;  %vm3751_vm10 = vcmp.gt.f32.partialorder %v13331_v32, 0.0 }
 0x81e   :  { %v4610_v50 = vrot.slane %v13391_v51, 4  ;;  %v3551_v40 = vsel %vm16061_vm4, %v3539_v23, %v8677_v43  ;;  %v13442_v43 = vld [vmem:[%s15741_s2 + $0x38] ss:$0 sm:$0xff]  ;;  %v8752_v5 = vunpack.i.h.bf16 %v13333_v52  ;;  %v8756_v29 = vunpack.i.l.bf16 %v13381_v13  ;;  %v13460_v13 = vld [vmem:[%s15741_s2 + $0x40] ss:$0 sm:$0xff]  ;;  %vm16066_vm4 = vmmov %vm16065_vm9 }
 0x81f   :  { %v3564_v2 = vsel %vm3554_vm7, %v3551_v40, %v8742_v36  ;;  %v3811_v42 = vsel %vm3751_vm10, %v13331_v32, %v7476_v24  ;;  %v8771_v52 = vunpack.i.l.bf16 %v13304_v15  ;;  %v8792_v9 = vunpack.i.h.bf16 %v13242_v4 }
 0x820   :  { %v4611_v8 = vsel %vm165_vm0, %v4608_v30, %v4610_v50  ;;  %v4544_v31 = vpop.permute.xlu0 %4543  ;;  %v3576_v36 = vsel %vm16063_vm12, %v3564_v2, %v8747_v57  ;;  %v3852_v57 = vld [vmem:[%s15741_s2 + $0x58] sm:$0xff]  ;;  %vm16067_vm8 = vcmask 916480   ;;  %vm16069_vm12 = vcmask 523264  }
 0x821   :  { %4636 = vrot.lane.b32.xlu0 %v4611_v8, %s9856_s18  ;;  %v13420_v30 = vadd.f32 %v4544_v31, %v15992_v12  ;;  %v3825_v8 = vmul.f32 %v13442_v43, %v3811_v42  ;;  %vm16068_vm10 = vmmov %vm16067_vm8 }
 0x822   :  { %v8760_v20 = vpop.permute.xlu1 %8759 }
 0x823   :  { %v13429_v1 = vpop.f32.mrf.mxu3  ;;  %v4612_v12 = vrot.slane %v13420_v30, 4  ;;  %v9701_v21 = vpop.eup %9700  ;;  %v8762_v38 = vunpack.i.h.bf16 %v8760_v20  ;;  %v8761_v23 = vunpack.i.l.bf16 %v8760_v20 }
 0x824   :  { %v3765_v41 = vmin.f32 %v13429_v1, 0.0  ;;  %v7477_v19 = vadd.f32 -1.0, %v9701_v21 }
 0x825   :  { %v4613_v37 = vsel %vm165_vm0, %v4610_v50, %v4612_v12  ;;  %v3588_v50 = vsel %vm3579_vm6, %v3575_v11, %v8751_v61 }
 0x826   :  { %v3779_v35 = vmul.f32 1.442695, %v3765_v41  ;;  %4638 = vrot.lane.b32.xlu1 %v4613_v37, %s9856_s18  ;;  %v3812_v26 = vsel %vm3752_vm14, %v13379_v17, %v7477_v19  ;;  %v3589_v17 = vsel %vm3579_vm6, %v3576_v36, %v8752_v5  ;;  %v3600_v20 = vsel %vm16065_vm9, %v3588_v50, %v8756_v29  ;;  %v3851_v29 = vld [vmem:[%s15741_s2 + $0x50] sm:$0xff]  ;;  %vm16070_vm9 = vmmov %vm16069_vm12 }
 0x827   :  { %v3826_v32 = vmul.f32 %v13442_v43, %v3812_v26  ;;  %v3601_v55 = vsel %vm16066_vm4, %v3589_v17, %v8757_v27  ;;  %v3613_v41 = vsel %vm15830_vm2, %v3600_v20, %v8761_v23  ;;  %v8791_v19 = vunpack.i.l.bf16 %v13242_v4 }
 0x828   :  { %9702 = vpow2.f32 %v3779_v35  ;;  %v4546_v59 = vpop.permute.xlu0 %4545  ;;  %v3614_v21 = vsel %vm15830_vm2, %v3601_v55, %v8762_v38  ;;  %v3839_v35 = vadd.f32 %v13460_v13, %v3825_v8  ;;  %v8796_v27 = vunpack.i.l.bf16 %v13266_v58 }
 0x829   :  { %v13468_v31 = vadd.f32 %v4546_v59, %v15989_v53  ;;  %v3840_v47 = vadd.f32 %v13460_v13, %v3826_v32  ;;  %v8772_v53 = vunpack.i.h.bf16 %v13304_v15  ;;  %v8797_v15 = vunpack.i.h.bf16 %v13266_v58 }
 0x82a   :  { %v8765_v16 = vpop.permute.xlu1 %8764  ;;  %v4695_v38 = vmin.f32 %v13465_v28, 0.0  ;;  %vm3753_vm14 = vcmp.gt.f32.partialorder %v13429_v1, 0.0  ;;  %v3552_v58 = vsel %vm16069_vm12, %v13417_v45, %v8776_v22  ;;  %v3553_v36 = vsel %vm16070_vm9, %v13423_v49, %v8777_v48  ;;  %v4803_v45 = vld [vmem:[%s15740_s1 + $0x40] sm:$0xf] }
 0x82b   :  { %v8767_v40 = vunpack.i.h.bf16 %v8765_v16  ;;  %v8766_v24 = vunpack.i.l.bf16 %v8765_v16  ;;  %v4614_v2 = vrot.slane %v13468_v31, 4  ;;  %v3864_v23 = vmul.f32 %v3852_v57, %v3840_v47 }
 0x82c   :  { %v3565_v50 = vsel %vm3554_vm7, %v3552_v58, %v8791_v19  ;;  %v3863_v32 = vmul.f32 %v3851_v29, %v3839_v35  ;;  %v4708_v17 = vmul.f32 1.442695, %v4694_v7  ;;  %v3566_v46 = vsel %vm3554_vm7, %v3553_v36, %v8792_v9 }
 0x82d   :  { %v3625_v11 = vsel %vm16067_vm8, %v3613_v41, %v8766_v24  ;;  %v3626_v61 = vsel %vm16068_vm10, %v3614_v21, %v8767_v40  ;;  %v4615_v37 = vsel %vm165_vm0, %v4612_v12, %v4614_v2  ;;  %vm16071_vm4 = vcmask 654336  }
 0x82e   :  { %v9703_v5 = vpop.eup %9702  ;;  %v3638_v42 = vsel %vm15829_vm1, %v3625_v11, %v8771_v52  ;;  %4640 = vrot.lane.b32.xlu0 %v4615_v37, %s9856_s18  ;;  %v3639_v4 = vsel %vm15829_vm1, %v3626_v61, %v8772_v53  ;;  %v3577_v22 = vsel %vm16071_vm4, %v3565_v50, %v8796_v27  ;;  %vm16072_vm8 = vmmov %vm16071_vm4  ;;  %vm16073_vm10 = vcmask 64512  }
 0x82f   :  { %v7478_v26 = vadd.f32 -1.0, %v9703_v5  ;;  %v3646_v12 = vpack.c.bf16 %v3639_v4, %v3638_v42  ;;  %v3578_v49 = vsel %vm16072_vm8, %v3566_v46, %v8797_v15  ;;  %v3876_v7 = vsel %vm16073_vm10, %v3864_v23, 0.0  ;;  %vm16075_vm12 = vmmov %vm16073_vm10  ;;  %v13567_v46 = vld [vmem:[%s15741_s2 + $0x18] ss:$0 sm:$0xff] }
 0x830   :  { %v8802_v20 = vunpack.i.h.bf16 %v13284_v63  ;;  %v8801_v55 = vunpack.i.l.bf16 %v13284_v63  ;;  %v8807_v24 = vunpack.i.h.bf16 %v13297_v33  ;;  %v8806_v47 = vunpack.i.l.bf16 %v13297_v33 }
 0x831   :  { %v3813_v52 = vsel %vm3753_vm14, %v13429_v1, %v7478_v26  ;;  %3740 = vmatmul.bf16.gmra.mxu3 %v3646_v12  ;;  %v4710_v1 = vmul.f32 1.442695, %v4695_v38  ;;  %vm16074_vm14 = vmmov %vm16073_vm10  ;;  %v8812_v9 = vunpack.i.h.bf16 %v13308_v60  ;;  %v8811_v53 = vunpack.i.l.bf16 %v13308_v60 }
 0x832   :  { %v3827_v59 = vmul.f32 %v13442_v43, %v3813_v52  ;;  %v4457_v8 = vpop.permute.xlu1 %4456  ;;  %v3875_v41 = vsel %vm16074_vm14, %v3863_v32, 0.0  ;;  %v8817_v11 = vunpack.i.h.bf16 %v13339_v34  ;;  %v8816_v61 = vunpack.i.l.bf16 %v13339_v34 }
 0x833   :  { %v13517_v48 = vadd.f32 %v4457_v8, %v16003_v54  ;;  %v4828_v54 = vsel %vm165_vm0, %v4803_v45, 0  ;;  %v3877_v57 = vadd.f32 %v3876_v7, %v3875_v41  ;;  %9704 = vpow2.f32 %v4710_v1 }
 0x834   :  { %v3841_v16 = vadd.f32 %v13460_v13, %v3827_v59  ;;  %4837 = vmatpush.bf16.msra.mxu3 %v4828_v54  ;;  %v3590_v5 = vsel %vm3579_vm6, %v3577_v22, %v8801_v55  ;;  %v3591_v19 = vsel %vm3579_vm6, %v3578_v49, %v8802_v20  ;;  %9706 = vpow2.f32 %v4708_v17  ;;  %v13559_v59 = vld [vmem:[%s15741_s2 + $0x10] ss:$0 sm:$0xff]  ;;  %v4635_v55 = vpop.permute.xlu0 %4634 }
 0x835   :  { %v4525_v40 = vrot.slane %v13517_v48, 2  ;;  %vm16076_vm9 = vcmask 785408   ;;  %vm16078_vm8 = vcmask 916480   ;;  %vm4681_vm14 = vcmp.gt.f32.partialorder %v13465_v28, 0.0 }
 0x836   :  { %v3865_v21 = vmul.f32 %v3853_v56, %v3841_v16  ;;  %v3602_v60 = vsel %vm16076_vm9, %v3590_v5, %v8806_v47  ;;  %vm16077_vm4 = vmmov %vm16076_vm9  ;;  %vm16080_vm9 = vcmask 64512  }
 0x837   :  { %v4526_v63 = vsel %vm1178_vm15, %v4523_v10, %v4525_v40  ;;  %v3603_v10 = vsel %vm16077_vm4, %v3591_v19, %v8807_v24  ;;  %v3615_v34 = vsel %vm15830_vm2, %v3602_v60, %v8811_v53  ;;  %vm16079_vm10 = vmmov %vm16078_vm8  ;;  %v4671_v24 = vadd.f32 %v4635_v55, %v13155_v0 }
 0x838   :  { %v3878_v33 = vsel %vm16075_vm12, %v3865_v21, 0.0  ;;  %4551 = vrot.lane.b32.xlu2 %v4526_v63, %s9855_s6  ;;  %v3616_v27 = vsel %vm15830_vm2, %v3603_v10, %v8812_v9  ;;  %v3627_v29 = vsel %vm16078_vm8, %v3615_v34, %v8816_v61  ;;  %vm4680_vm12 = vcmp.gt.f32.partialorder %v13360_v6, 0.0 }
 0x839   :  { %v13543_v35 = vadd.f32 %v3878_v33, %v3877_v57  ;;  %v3628_v26 = vsel %vm16079_vm10, %v3616_v27, %v8817_v11  ;;  %v9705_v23 = vpop.eup %9704  ;;  %vm16081_vm10 = vmmov %vm16080_vm9 }
 0x83a   :  { %v8820_v37 = vpop.permute.xlu1 %8819  ;;  %v9707_v58 = vpop.eup %9706  ;;  %v7508_v52 = vadd.f32 -1.0, %v9705_v23 }
 0x83b   :  { %v8822_v42 = vunpack.i.h.bf16 %v8820_v37  ;;  %v8821_v15 = vunpack.i.l.bf16 %v8820_v37  ;;  %v7507_v50 = vadd.f32 -1.0, %v9707_v58  ;;  %v13594_v58 = vpop.f32.mrf.mxu3 }
 0x83c   :  { %v4751_v32 = vsel %vm4681_vm14, %v13465_v28, %v7508_v52 }
 0x83d   :  { %v3640_v4 = vsel %vm15829_vm1, %v3627_v29, %v8821_v15  ;;  %v3641_v38 = vsel %vm15829_vm1, %v3628_v26, %v8822_v42  ;;  %v4750_v8 = vsel %vm4680_vm12, %v13360_v6, %v7507_v50  ;;  %v4767_v17 = vmul.f32 %v13559_v59, %v4751_v32 }
 0x83e   :  { %v3647_v12 = vpack.c.bf16 %v3641_v38, %v3640_v4  ;;  %v4766_v22 = vmul.f32 %v13559_v59, %v4750_v8  ;;  %vm4685_vm12 = vcmp.gt.f32.partialorder %v4671_v24, 0.0  ;;  %vm16164_vm1 = vcmask 916480  }
 0x83f   :  { %v4783_v45 = vadd.f32 %v13567_v46, %v4767_v17 }
 0x840   :  { %4553 = vrot.lane.b32.xlu2 %v4525_v40, %s9855_s6  ;;  %v4782_v1 = vadd.f32 %v13567_v46, %v4766_v22 }
 0x841   :  { %3745 = vmatmul.bf16.gmra.mxu3 %v3647_v12 }
 0x842   :  { %v4629_v36 = vpop.permute.xlu1 %4628  ;;  %v4796_v7 = vpack.c.bf16 %v4783_v45, %v4782_v1 }
 0x843   :  { %v4668_v16 = vadd.f32 %v4629_v36, %v16010_v14  ;;  %v13603_v8 = vpop.f32.mrf.mxu3 }
 0x845   :  { %v4696_v20 = vmin.f32 %v4668_v16, 0.0  ;;  %vm4682_vm4 = vcmp.gt.f32.partialorder %v4668_v16, 0.0 }
 0x84a   :  { %v4548_v56 = vpop.permute.xlu1 %4547 }
 0x84b   :  { %v13571_v28 = vadd.f32 %v4548_v56, %v13138_v3  ;;  %v4712_v3 = vmul.f32 1.442695, %v4696_v20 }
 0x84d   :  { %v4616_v49 = vrot.slane %v13571_v28, 4  ;;  %9708 = vpow2.f32 %v4712_v3  ;;  %v13613_v3 = vpop.f32.mrf.mxu3 }
 0x84f   :  { %v4617_v6 = vsel %vm165_vm0, %v4614_v2, %v4616_v49  ;;  %v4699_v2 = vmin.f32 %v4671_v24, 0.0 }
 0x850   :  { %4642 = vrot.lane.b32.xlu1 %v4617_v6, %s9856_s18 }
 0x851   :  { %7521 = vmatmul.msk.bf16.vlgmr.msra.gmra.mxu3 %vm16080_vm9, %v4796_v7  ;;  %v4718_v63 = vmul.f32 1.442695, %v4699_v2 }
 0x853   :  { %v9709_v41 = vpop.eup %9708 }
 0x854   :  { %v7509_v9 = vadd.f32 -1.0, %v9709_v41 }
 0x856   :  { %v4752_v11 = vsel %vm4682_vm4, %v4668_v16, %v7509_v9 }
 0x85f   :  { %v4631_v40 = vpop.permute.xlu2 %4630 }
 0x860   :  { %v4669_v54 = vadd.f32 %v4631_v40, %v13200_v18  ;;  %v4768_v18 = vmul.f32 %v13559_v59, %v4752_v11 }
 0x862   :  { %v4697_v47 = vmin.f32 %v4669_v54, 0.0  ;;  %vm4683_vm8 = vcmp.gt.f32.partialorder %v4669_v54, 0.0  ;;  %v4784_v60 = vadd.f32 %v13567_v46, %v4768_v18 }
 0x864   :  { %v4714_v21 = vmul.f32 1.442695, %v4697_v47 }
 0x866   :  { %9710 = vpow2.f32 %v4714_v21 }
 0x867   :  { %v4633_v53 = vpop.permute.xlu2 %4632  ;;  %9712 = vpow2.f32 %v4718_v63  ;;  %v3767_v63 = vmin.f32 %v13603_v8, 0.0 }
 0x868   :  { %v4670_v57 = vadd.f32 %v4633_v53, %v13293_v44  ;;  %v3766_v53 = vmin.f32 %v13594_v58, 0.0 }
 0x869   :  { %v3783_v18 = vmul.f32 1.442695, %v3767_v63  ;;  %v3855_v63 = vld [vmem:[%s15741_s2 + $0x70] sm:$0xff] }
 0x86a   :  { %v4698_v14 = vmin.f32 %v4670_v57, 0.0  ;;  %vm4684_vm14 = vcmp.gt.f32.partialorder %v4670_v57, 0.0 }
 0x86c   :  { %v9711_v61 = vpop.eup %9710  ;;  %v4716_v33 = vmul.f32 1.442695, %v4698_v14 }
 0x86d   :  { %v7510_v5 = vadd.f32 -1.0, %v9711_v61  ;;  %v9713_v44 = vpop.eup %9712 }
 0x86e   :  { %9714 = vpow2.f32 %v4716_v33  ;;  %v7512_v34 = vadd.f32 -1.0, %v9713_v44  ;;  %v3781_v33 = vmul.f32 1.442695, %v3766_v53 }
 0x86f   :  { %v4753_v0 = vsel %vm4683_vm8, %v4669_v54, %v7510_v5 }
 0x870   :  { %v4769_v19 = vmul.f32 %v13559_v59, %v4753_v0  ;;  %v4755_v29 = vsel %vm4685_vm12, %v4671_v24, %v7512_v34  ;;  %v3768_v0 = vmin.f32 %v13613_v3, 0.0  ;;  %vm3755_vm12 = vcmp.gt.f32.partialorder %v13603_v8, 0.0 }
 0x871   :  { %v4771_v4 = vmul.f32 %v13559_v59, %v4755_v29 }
 0x872   :  { %v4785_v10 = vadd.f32 %v13567_v46, %v4769_v19 }
 0x873   :  { %v4787_v23 = vadd.f32 %v13567_v46, %v4771_v4 }
 0x874   :  { %v9715_v37 = vpop.eup %9714  ;;  %v4797_v42 = vpack.c.bf16 %v4785_v10, %v4784_v60  ;;  %v3785_v10 = vmul.f32 1.442695, %v3768_v0 }
 0x875   :  { %v7511_v15 = vadd.f32 -1.0, %v9715_v37 }
 0x876   :  { %7522 = vmatmul.msk.bf16.gmra.mxu3 %vm16081_vm10, %v4797_v42  ;;  %vm16082_vm10 = vmmov %vm16080_vm9 }
 0x877   :  { %v4754_v27 = vsel %vm4684_vm14, %v4670_v57, %v7511_v15  ;;  %vm3754_vm14 = vcmp.gt.f32.partialorder %v13594_v58, 0.0 }
 0x878   :  { %v4770_v26 = vmul.f32 %v13559_v59, %v4754_v27 }
 0x87a   :  { %v4786_v38 = vadd.f32 %v13567_v46, %v4770_v26 }
 0x87c   :  { %v4798_v12 = vpack.c.bf16 %v4787_v23, %v4786_v38 }
 0x886   :  { %7523 = vmatmul.msk.bf16.gmra.mxu3 %vm16080_vm9, %v4798_v12  ;;  %vm3756_vm9 = vcmp.gt.f32.partialorder %v13613_v3, 0.0 }
 0x888   :  { %v4550_v52 = vpop.permute.xlu1 %4549 }
 0x889   :  { %v13598_v36 = vadd.f32 %v4550_v52, %v13215_v25 }
 0x88b   :  { %v4618_v50 = vrot.slane %v13598_v36, 4 }
 0x88d   :  { %v4619_v32 = vsel %vm165_vm0, %v4616_v49, %v4618_v50 }
 0x88e   :  { %4644 = vrot.lane.b32.xlu2 %v4619_v32, %s9856_s18 }
 0x892   :  { %v4552_v17 = vpop.permute.xlu2 %4551 }
 0x893   :  { %v13606_v22 = vadd.f32 %v4552_v17, %v13329_v39  ;;  %v4637_v56 = vpop.permute.xlu0 %4636 }
 0x894   :  { %v4672_v45 = vadd.f32 %v4637_v56, %v13164_v62 }
 0x895   :  { %v4620_v1 = vrot.slane %v13606_v22, 4 }
 0x896   :  { %v4700_v6 = vmin.f32 %v4672_v45, 0.0  ;;  %vm4686_vm4 = vcmp.gt.f32.partialorder %v4672_v45, 0.0 }
 0x897   :  { %v4621_v25 = vsel %vm165_vm0, %v4618_v50, %v4620_v1 }
 0x898   :  { %v4720_v7 = vmul.f32 1.442695, %v4700_v6  ;;  %4646 = vrot.lane.b32.xlu0 %v4621_v25, %s9856_s18  ;;  %v4639_v49 = vpop.permute.xlu1 %4638  ;;  %v7670_v25 = vld [vmem:[%s15740_s1 + $0x48] sm:$0xff] }
 0x899   :  { %v4673_v16 = vadd.f32 %v4639_v49, %v13391_v51  ;;  %v13622_v51 = vpop.f32.mrf.mxu3  ;;  %4917 = vmatpush.bf16.msrb.mxu2 %v7670_v25 }
 0x89a   :  { %9716 = vpow2.f32 %v4720_v7  ;;  %v4554_v20 = vpop.permute.xlu2 %4553  ;;  %v3769_v19 = vmin.f32 %v13622_v51, 0.0 }
 0x89b   :  { %v13616_v39 = vadd.f32 %v4554_v20, %v13517_v48  ;;  %v4701_v55 = vmin.f32 %v4673_v16, 0.0  ;;  %vm4687_vm8 = vcmp.gt.f32.partialorder %v4673_v16, 0.0 }
 0x89c   :  { %v3787_v37 = vmul.f32 1.442695, %v3769_v19 }
 0x89d   :  { %v4622_v62 = vrot.slane %v13616_v39, 4  ;;  %v4722_v40 = vmul.f32 1.442695, %v4701_v55 }
 0x89f   :  { %4650 = vrot.lane.b32.xlu2 %v4622_v62, %s9856_s18  ;;  %v4623_v54 = vsel %vm165_vm0, %v4620_v1, %v4622_v62  ;;  %9718 = vpow2.f32 %v4722_v40 }
 0x8a0   :  { %v9717_v24 = vpop.eup %9716  ;;  %4648 = vrot.lane.b32.xlu1 %v4623_v54, %s9856_s18  ;;  %9720 = vpow2.f32 %v3781_v33  ;;  %v4641_v60 = vpop.permute.xlu0 %4640 }
 0x8a1   :  { %v7513_v47 = vadd.f32 -1.0, %v9717_v24  ;;  %v13630_v61 = vpop.f32.mrf.mxu3  ;;  %9722 = vpow2.f32 %v3783_v18  ;;  %v13637_v42 = vadd.f32 %v4641_v60, %v13420_v30 }
 0x8a2   :  { %v3770_v44 = vmin.f32 %v13630_v61, 0.0  ;;  %9724 = vpow2.f32 %v3785_v10  ;;  %v3856_v10 = vld [vmem:[%s15741_s2 + $0x78] sm:$0xff] }
 0x8a3   :  { %v4756_v41 = vsel %vm4686_vm4, %v4672_v45, %v7513_v47  ;;  %9726 = vpow2.f32 %v3787_v37  ;;  %v4702_v4 = vmin.f32 %v13637_v42, 0.0  ;;  %vm3757_vm4 = vcmp.gt.f32.partialorder %v13622_v51, 0.0 }
 0x8a4   :  { %v4772_v2 = vmul.f32 %v13559_v59, %v4756_v41  ;;  %v3789_v29 = vmul.f32 1.442695, %v3770_v44 }
 0x8a5   :  { %v9719_v21 = vpop.eup %9718  ;;  %v4724_v50 = vmul.f32 1.442695, %v4702_v4 }
 0x8a6   :  { %v7514_v48 = vadd.f32 -1.0, %v9719_v21  ;;  %v4788_v14 = vadd.f32 %v13567_v46, %v4772_v2  ;;  %v9721_v27 = vpop.eup %9720  ;;  %9728 = vpow2.f32 %v3789_v29 }
 0x8a7   :  { %v9723_v26 = vpop.eup %9722  ;;  %v7479_v23 = vadd.f32 -1.0, %v9721_v27  ;;  %v3857_v27 = vld [vmem:[%s15741_s2 + $0x80] sm:$0xff] }
 0x8a8   :  { %v4757_v9 = vsel %vm4687_vm8, %v4673_v16, %v7514_v48  ;;  %v7480_v12 = vadd.f32 -1.0, %v9723_v26  ;;  %v9725_v52 = vpop.eup %9724  ;;  %vm3758_vm8 = vcmp.gt.f32.partialorder %v13630_v61, 0.0 }
 0x8a9   :  { %v4773_v57 = vmul.f32 %v13559_v59, %v4757_v9  ;;  %v9727_v17 = vpop.eup %9726  ;;  %v3814_v56 = vsel %vm3754_vm14, %v13594_v58, %v7479_v23  ;;  %v7481_v1 = vadd.f32 -1.0, %v9725_v52 }
 0x8aa   :  { %v3815_v45 = vsel %vm3755_vm12, %v13603_v8, %v7480_v12  ;;  %v3828_v49 = vmul.f32 %v13442_v43, %v3814_v56  ;;  %v7482_v16 = vadd.f32 -1.0, %v9727_v17  ;;  %vm4688_vm12 = vcmp.gt.f32.partialorder %v13637_v42, 0.0 }
 0x8ab   :  { %v4789_v11 = vadd.f32 %v13567_v46, %v4773_v57  ;;  %v3829_v58 = vmul.f32 %v13442_v43, %v3815_v45  ;;  %v3816_v62 = vsel %vm3756_vm9, %v13613_v3, %v7481_v1  ;;  %v3854_v3 = vld [vmem:[%s15741_s2 + $0x68] sm:$0xff]  ;;  %vm16083_vm9 = vcmask 64512  }
 0x8ac   :  { %v9729_v7 = vpop.eup %9728  ;;  %v3842_v47 = vadd.f32 %v13460_v13, %v3828_v49  ;;  %v3817_v41 = vsel %vm3757_vm4, %v13622_v51, %v7482_v16  ;;  %v3830_v9 = vmul.f32 %v13442_v43, %v3816_v62  ;;  %vm16084_vm4 = vmmov %vm16083_vm9  ;;  %v3859_v49 = vld [vmem:[%s15741_s2 + $0x90] sm:$0xff] }
 0x8ad   :  { %v4799_v5 = vpack.c.bf16 %v4789_v11, %v4788_v14  ;;  %v7483_v40 = vadd.f32 -1.0, %v9729_v7  ;;  %v3843_v2 = vadd.f32 %v13460_v13, %v3829_v58  ;;  %v3831_v14 = vmul.f32 %v13442_v43, %v3817_v41 }
 0x8ae   :  { %v3866_v18 = vmul.f32 %v3854_v3, %v3842_v47  ;;  %v3844_v19 = vadd.f32 %v13460_v13, %v3830_v9  ;;  %v3861_v9 = vld [vmem:[%s15741_s2 + $0xa0] sm:$0xff] }
 0x8af   :  { %7524 = vmatmul.msk.bf16.gmra.mxu3 %vm16082_vm10, %v4799_v5  ;;  %v3818_v11 = vsel %vm3758_vm8, %v13630_v61, %v7483_v40  ;;  %v3867_v0 = vmul.f32 %v3855_v63, %v3843_v2  ;;  %v3845_v61 = vadd.f32 %v13460_v13, %v3831_v14 }
 0x8b0   :  { %v3832_v44 = vmul.f32 %v13442_v43, %v3818_v11  ;;  %v3868_v12 = vmul.f32 %v3856_v10, %v3844_v19  ;;  %v3862_v10 = vld [vmem:[%s15741_s2 + $0xa8] sm:$0x7] }
 0x8b1   :  { %v3882_v23 = vsel %vm16084_vm4, %v3867_v0, 0.0  ;;  %v3869_v56 = vmul.f32 %v3857_v27, %v3845_v61 }
 0x8b4   :  { %v13639_v15 = vpop.f32.mrf.mxu3 }
 0x8b5   :  { %v3771_v34 = vmin.f32 %v13639_v15, 0.0  ;;  %vm3759_vm10 = vcmp.gt.f32.partialorder %v13639_v15, 0.0 }
 0x8b7   :  { %v3791_v38 = vmul.f32 1.442695, %v3771_v34 }
 0x8b9   :  { %9730 = vpow2.f32 %v3791_v38  ;;  %v3880_v38 = vsel %vm16083_vm9, %v3866_v18, 0.0  ;;  %vm16087_vm9 = vmmov %vm16084_vm4 }
 0x8ba   :  { %9732 = vpow2.f32 %v4724_v50  ;;  %v3846_v50 = vadd.f32 %v13460_v13, %v3832_v44  ;;  %v3881_v7 = vadd.f32 %v3880_v38, %v13543_v35  ;;  %v3860_v35 = vld [vmem:[%s15741_s2 + $0x98] sm:$0xff] }
 0x8bc   :  { %v3743_v32 = vpop.f32.mrf.mxu3 }
 0x8bd   :  { %v3772_v30 = vmin.f32 %v3743_v32, 0.0  ;;  %vm3760_vm14 = vcmp.gt.f32.partialorder %v3743_v32, 0.0 }
 0x8bf   :  { %v3793_v6 = vmul.f32 1.442695, %v3772_v30  ;;  %v9731_v55 = vpop.eup %9730 }
 0x8c0   :  { %v9733_v48 = vpop.eup %9732  ;;  %v7484_v53 = vadd.f32 -1.0, %v9731_v55 }
 0x8c1   :  { %9734 = vpow2.f32 %v3793_v6  ;;  %v7515_v5 = vadd.f32 -1.0, %v9733_v48 }
 0x8c2   :  { %v4643_v20 = vpop.permute.xlu1 %4642  ;;  %v3819_v60 = vsel %vm3759_vm10, %v13639_v15, %v7484_v53 }
 0x8c3   :  { %v4675_v8 = vadd.f32 %v4643_v20, %v13468_v31  ;;  %v4758_v29 = vsel %vm4688_vm12, %v13637_v42, %v7515_v5  ;;  %v3833_v15 = vmul.f32 %v13442_v43, %v3819_v60  ;;  %v3858_v42 = vld [vmem:[%s15741_s2 + $0x88] sm:$0xff]  ;;  %vm16086_vm12 = vmmov %vm16084_vm4 }
 0x8c4   :  { %v3746_v24 = vpop.f32.mrf.mxu3  ;;  %v4774_v45 = vmul.f32 %v13559_v59, %v4758_v29  ;;  %v3870_v55 = vmul.f32 %v3858_v42, %v3846_v50 }
 0x8c5   :  { %v4703_v54 = vmin.f32 %v4675_v8, 0.0  ;;  %v3773_v21 = vmin.f32 %v3746_v24, 0.0  ;;  %vm4689_vm8 = vcmp.gt.f32.partialorder %v4675_v8, 0.0  ;;  %v3847_v6 = vadd.f32 %v13460_v13, %v3833_v15 }
 0x8c6   :  { %vm3761_vm10 = vcmp.gt.f32.partialorder %v3746_v24, 0.0 }
 0x8c7   :  { %v4726_v31 = vmul.f32 1.442695, %v4703_v54  ;;  %v9735_v57 = vpop.eup %9734  ;;  %v3795_v51 = vmul.f32 1.442695, %v3773_v21  ;;  %v3883_v54 = vadd.f32 %v3882_v23, %v3881_v7  ;;  %v3886_v21 = vsel %vm16086_vm12, %v3869_v56, 0.0  ;;  %vm16090_vm12 = vmmov %vm16084_vm4 }
 0x8c8   :  { %v7485_v33 = vadd.f32 -1.0, %v9735_v57  ;;  %v3888_v57 = vsel %vm16087_vm9, %v3870_v55, 0.0  ;;  %vm15827_vm9 = vcmask 59392  }
 0x8c9   :  { %9736 = vpow2.f32 %v4726_v31 }
 0x8ca   :  { %9738 = vpow2.f32 %v3795_v51  ;;  %v3820_v37 = vsel %vm3760_vm14, %v3743_v32, %v7485_v33  ;;  %vm16085_vm14 = vmmov %vm16084_vm4  ;;  %v13716_v33 = vld [vmem:[%s15741_s2 + $0x20] ss:$0 sm:$0xff] }
 0x8cb   :  { %v3834_v32 = vmul.f32 %v13442_v43, %v3820_v37  ;;  %v3884_v58 = vsel %vm16085_vm14, %v3868_v12, 0.0  ;;  %vm16089_vm14 = vmmov %vm16084_vm4 }
 0x8cc   :  { %v3748_v34 = vpop.f32.mrf.mxu3  ;;  %v3885_v2 = vadd.f32 %v3884_v58, %v3883_v54 }
 0x8cd   :  { %v3774_v26 = vmin.f32 %v3748_v34, 0.0  ;;  %v3848_v62 = vadd.f32 %v13460_v13, %v3834_v32 }
 0x8ce   :  { %v3887_v63 = vadd.f32 %v3886_v21, %v3885_v2 }
 0x8cf   :  { %v9737_v4 = vpop.eup %9736  ;;  %v3797_v17 = vmul.f32 1.442695, %v3774_v26  ;;  %v3872_v3 = vmul.f32 %v3860_v35, %v3848_v62 }
 0x8d0   :  { %v9739_v52 = vpop.eup %9738  ;;  %v7516_v30 = vadd.f32 -1.0, %v9737_v4  ;;  %v3889_v5 = vadd.f32 %v3888_v57, %v3887_v63 }
 0x8d1   :  { %v7486_v1 = vadd.f32 -1.0, %v9739_v52  ;;  %9740 = vpow2.f32 %v3797_v17  ;;  %v3892_v0 = vsel %vm16089_vm14, %v3872_v3, 0.0 }
 0x8d2   :  { %v4759_v25 = vsel %vm4689_vm8, %v4675_v8, %v7516_v30  ;;  %v4790_v8 = vadd.f32 %v13567_v46, %v4774_v45  ;;  %vm16088_vm8 = vmmov %vm16084_vm4 }
 0x8d3   :  { %v4775_v16 = vmul.f32 %v13559_v59, %v4759_v25  ;;  %v3821_v20 = vsel %vm3761_vm10, %v3746_v24, %v7486_v1  ;;  %v3871_v24 = vmul.f32 %v3859_v49, %v3847_v6  ;;  %vm3762_vm10 = vcmp.gt.f32.partialorder %v3748_v34, 0.0 }
 0x8d4   :  { %v3835_v40 = vmul.f32 %v13442_v43, %v3821_v20  ;;  %v4839_v41 = vpop.f32.mrf.mxu3 }
 0x8d5   :  { %v4791_v47 = vadd.f32 %v13567_v46, %v4775_v16  ;;  %v3890_v14 = vsel %vm16088_vm8, %v3871_v24, 0.0  ;;  %v4840_v27 = vadd.f32 %v13716_v33, %v4839_v41 }
 0x8d6   :  { %v3849_v48 = vadd.f32 %v13460_v13, %v3835_v40  ;;  %v3891_v60 = vadd.f32 %v3890_v14, %v3889_v5 }
 0x8d7   :  { %v4800_v53 = vpack.c.bf16 %v4791_v47, %v4790_v8  ;;  %v9741_v31 = vpop.eup %9740 }
 0x8d8   :  { %v7487_v51 = vadd.f32 -1.0, %v9741_v31  ;;  %v3873_v11 = vmul.f32 %v3861_v9, %v3849_v48  ;;  %v3893_v15 = vadd.f32 %v3892_v0, %v3891_v60 }
 0x8d9   :  { %7525 = vmatmul.msk.bf16.gmra.mxu3 %vm16084_vm4, %v4800_v53  ;;  %vm16091_vm4 = vcmask 130048  }
 0x8da   :  { %v3822_v18 = vsel %vm3762_vm10, %v3748_v34, %v7487_v51  ;;  %v3894_v61 = vsel %vm16090_vm12, %v3873_v11, 0.0  ;;  %vm16092_vm10 = vmmov %vm16091_vm4 }
 0x8db   :  { %v3836_v19 = vmul.f32 %v13442_v43, %v3822_v18  ;;  %v3895_v4 = vadd.f32 %v3894_v61, %v3893_v15  ;;  %vm16093_vm12 = vmmov %vm16091_vm4 }
 0x8dc   :  { %v4841_v44 = vpop.f32.mrf.mxu3 }
 0x8dd   :  { %v3850_v37 = vadd.f32 %v13460_v13, %v3836_v19  ;;  %v4842_v29 = vadd.f32 %v13716_v33, %v4841_v44 }
 0x8df   :  { %v3874_v34 = vmul.f32 %v3862_v10, %v3850_v37  ;;  %v4874_v26 = vpack.c.bf16 %v4842_v29, %v4840_v27 }
 0x8e1   :  { %7532 = vmatmul.msk.bf16.vlgmr.msrb.gmra.mxu2 %vm16091_vm4, %v4874_v26  ;;  %v3897_v43 = vsel %vm15827_vm9, %v3874_v34, 0.0 }
 0x8e2   :  { %v3898_v38 = vadd.f32 %v3897_v43, %v3895_v4 }
 0x8e4   :  { %v3899_v23 = vrot.slane %v3898_v38, 4 }
 0x8e6   :  { %v3900_v12 = vadd.f32 %v3899_v23, %v3898_v38 }
 0x8e8   :  { %v3901_v52 = vrot.slane %v3900_v12, 2  ;;  %v4645_v17 = vpop.permute.xlu2 %4644 }
 0x8e9   :  { %v4676_v42 = vadd.f32 %v4645_v17, %v13571_v28 }
 0x8ea   :  { %v3902_v50 = vadd.f32 %v3901_v52, %v3900_v12 }
 0x8eb   :  { %v4704_v45 = vmin.f32 %v4676_v42, 0.0  ;;  %vm4690_vm14 = vcmp.gt.f32.partialorder %v4676_v42, 0.0 }
 0x8ec   :  { %v3903_v32 = vrot.slane %v3902_v50, 1 }
 0x8ed   :  { %v4728_v7 = vmul.f32 1.442695, %v4704_v45 }
 0x8ee   :  { %v3904_v13 = vadd.f32 %v3903_v32, %v3902_v50 }
 0x8ef   :  { %9742 = vpow2.f32 %v4728_v7 }
 0x8f0   :  { %v3905_v30 = vsel %vm16088_vm8, %v3904_v13, 0.0 }
 0x8f1   :  { %3906 = vadd.xlane.f32.xlu0 %v3905_v30 }
 0x8f5   :  { %v9743_v28 = vpop.eup %9742 }
 0x8f6   :  { %v7517_v35 = vadd.f32 -1.0, %v9743_v28 }
 0x8f8   :  { %v4760_v9 = vsel %vm4690_vm14, %v4676_v42, %v7517_v35 }
 0x8f9   :  { %v4844_v56 = vpop.f32.mrf.mxu3  ;;  %v4651_v16 = vpop.permute.xlu2 %4650  ;;  %v4776_v3 = vmul.f32 %v13559_v59, %v4760_v9 }
 0x8fa   :  { %v4845_v6 = vadd.f32 %v13716_v33, %v4844_v56  ;;  %v4679_v62 = vadd.f32 %v4651_v16, %v13616_v39 }
 0x8fb   :  { %v4792_v51 = vadd.f32 %v13567_v46, %v4776_v3 }
 0x8fc   :  { %v4707_v8 = vmin.f32 %v4679_v62, 0.0  ;;  %vm4693_vm14 = vcmp.gt.f32.partialorder %v4679_v62, 0.0 }
 0x8fe   :  { %v4734_v24 = vmul.f32 1.442695, %v4707_v8 }
 0x901   :  { %v4846_v1 = vpop.f32.mrf.mxu3 }
 0x902   :  { %v4847_v25 = vadd.f32 %v13716_v33, %v4846_v1 }
 0x904   :  { %v4875_v49 = vpack.c.bf16 %v4847_v25, %v4845_v6  ;;  %v13762_v25 = vld [vmem:[%s15741_s2 + $0x28] ss:$0 sm:$0xff] }
 0x906   :  { %7533 = vmatmul.msk.bf16.gmra.mxu2 %vm16092_vm10, %v4875_v49 }
 0x909   :  { %v4849_v55 = vpop.f32.mrf.mxu3 }
 0x90a   :  { %v4647_v20 = vpop.permute.xlu0 %4646  ;;  %v4850_v48 = vadd.f32 %v13716_v33, %v4849_v55 }
 0x90b   :  { %v4677_v58 = vadd.f32 %v4647_v20, %v13598_v36  ;;  %v13767_v20 = vld [vmem:[%s15741_s2 + $0x30] ss:$0 sm:$0xff] }
 0x90d   :  { %v4705_v40 = vmin.f32 %v4677_v58, 0.0  ;;  %vm4691_vm4 = vcmp.gt.f32.partialorder %v4677_v58, 0.0 }
 0x90f   :  { %v4730_v54 = vmul.f32 1.442695, %v4705_v40 }
 0x911   :  { %9744 = vpow2.f32 %v4730_v54  ;;  %v4851_v21 = vpop.f32.mrf.mxu3 }
 0x912   :  { %v4649_v47 = vpop.permute.xlu1 %4648  ;;  %v4852_v2 = vadd.f32 %v13716_v33, %v4851_v21  ;;  %9746 = vpow2.f32 %v4734_v24 }
 0x913   :  { %v4678_v41 = vadd.f32 %v4649_v47, %v13606_v22 }
 0x914   :  { %v4876_v53 = vpack.c.bf16 %v4852_v2, %v4850_v48 }
 0x915   :  { %v4706_v36 = vmin.f32 %v4678_v41, 0.0  ;;  %vm4692_vm10 = vcmp.gt.f32.partialorder %v4678_v41, 0.0 }
 0x916   :  { %7534 = vmatmul.msk.bf16.gmra.mxu2 %vm16093_vm12, %v4876_v53  ;;  %vm16094_vm12 = vmmov %vm16088_vm8 }
 0x917   :  { %v9745_v39 = vpop.eup %9744  ;;  %v4732_v31 = vmul.f32 1.442695, %v4706_v36 }
 0x918   :  { %v7518_v57 = vadd.f32 -1.0, %v9745_v39  ;;  %v9747_v11 = vpop.eup %9746 }
 0x919   :  { %9748 = vpow2.f32 %v4732_v31  ;;  %v7520_v19 = vadd.f32 -1.0, %v9747_v11 }
 0x91a   :  { %v4761_v22 = vsel %vm4691_vm4, %v4677_v58, %v7518_v57  ;;  %vm16095_vm4 = vcmask 130048  }
 0x91b   :  { %v4777_v63 = vmul.f32 %v13559_v59, %v4761_v22  ;;  %v4763_v10 = vsel %vm4693_vm14, %v4679_v62, %v7520_v19 }
 0x91c   :  { %v4779_v61 = vmul.f32 %v13559_v59, %v4763_v10 }
 0x91d   :  { %v4793_v14 = vadd.f32 %v13567_v46, %v4777_v63 }
 0x91e   :  { %v4795_v27 = vadd.f32 %v13567_v46, %v4779_v61 }
 0x91f   :  { %v9749_v5 = vpop.eup %9748  ;;  %v4801_v18 = vpack.c.bf16 %v4793_v14, %v4792_v51 }
 0x920   :  { %v7519_v0 = vadd.f32 -1.0, %v9749_v5 }
 0x921   :  { %7526 = vmatmul.msk.bf16.gmra.mxu3 %vm16088_vm8, %v4801_v18  ;;  %vm16096_vm8 = vmmov %vm16095_vm4 }
 0x922   :  { %v4762_v60 = vsel %vm4692_vm10, %v4678_v41, %v7519_v0 }
 0x923   :  { %v4778_v44 = vmul.f32 %v13559_v59, %v4762_v60  ;;  %v3908_v59 = vld [vmem:[%s15741_s2 + $0x48] sm:$0x1] }
 0x925   :  { %v4794_v37 = vadd.f32 %v13567_v46, %v4778_v44 }
 0x927   :  { %v4802_v29 = vpack.c.bf16 %v4795_v27, %v4794_v37 }
 0x931   :  { %7527 = vmatmul.msk.bf16.gmra.mxu3 %vm16094_vm12, %v4802_v29 }
 0x932   :  { %v4854_v15 = vpop.f32.mrf.mxu3 }
 0x933   :  { %v4855_v26 = vadd.f32 %v13716_v33, %v4854_v15 }
 0x93a   :  { %v4856_v34 = vpop.f32.mrf.mxu3 }
 0x93b   :  { %v4857_v4 = vadd.f32 %v13716_v33, %v4856_v34 }
 0x93d   :  { %v4877_v43 = vpack.c.bf16 %v4857_v4, %v4855_v26 }
 0x93f   :  { %7535 = vmatmul.msk.bf16.gmra.mxu2 %vm16095_vm4, %v4877_v43 }
 0x95c   :  { %v4859_v38 = vpop.f32.mrf.mxu3 }
 0x95d   :  { %v4860_v46 = vadd.f32 %v13716_v33, %v4859_v38 }
 0x964   :  { %v4861_v23 = vpop.f32.mrf.mxu3  ;;  %v4919_v52 = vpop.f32.mrf.mxu2 }
 0x965   :  { %v4862_v12 = vadd.f32 %v13716_v33, %v4861_v23  ;;  %v3907_v50 = vpop.xlane.xlu0 %3906  ;;  %v4968_v32 = vmin.f32 %v4919_v52, 0.0  ;;  %vm4954_vm10 = vcmp.gt.f32.partialorder %v4919_v52, 0.0 }
 0x966   :  { %v3909_v13 = vadd.f32 %v3908_v59, %v3907_v50 }
 0x967   :  { %v4878_v30 = vpack.c.bf16 %v4862_v12, %v4860_v46  ;;  %v4982_v17 = vmul.f32 1.442695, %v4968_v32 }
 0x968   :  { %v3910_v56 = vsub.f32 0.0, %v3909_v13 }
 0x969   :  { %7536 = vmatmul.msk.bf16.gmra.mxu2 %vm16096_vm8, %v4878_v30  ;;  %9750 = vpow2.f32 %v4982_v17  ;;  %vm15828_vm8 = vcmask 0  }
 0x96a   :  { %v3911_v42 = vmul.f32 1.442695, %v3910_v56 }
 0x96c   :  { %9752 = vpow2.f32 %v3911_v42  ;;  %v4921_v45 = vpop.f32.mrf.mxu2 }
 0x96d   :  { %v4969_v1 = vmin.f32 %v4921_v45, 0.0  ;;  %vm4955_vm14 = vcmp.gt.f32.partialorder %v4921_v45, 0.0 }
 0x96f   :  { %v9751_v6 = vpop.eup %9750  ;;  %v4984_v7 = vmul.f32 1.442695, %v4969_v1 }
 0x970   :  { %v7539_v49 = vadd.f32 -1.0, %v9751_v6 }
 0x971   :  { %9754 = vpow2.f32 %v4984_v7 }
 0x972   :  { %v9753_v16 = vpop.eup %9752  ;;  %v5024_v58 = vsel %vm4954_vm10, %v4919_v52, %v7539_v49 }
 0x973   :  { %v3913_v55 = vadd.f32 1.0, %v9753_v16  ;;  %v5040_v62 = vmul.f32 %v13762_v25, %v5024_v58 }
 0x975   :  { %9756 = vrcp.f32 %v3913_v55  ;;  %v13771_v40 = vadd.f32 %v13767_v20, %v5040_v62  ;;  %v3925_v48 = vand.u32 2147483648, %v3913_v55  ;;  %v3923_v36 = vand.u32 2147483647, %v3913_v55 }
 0x976   :  { %vm3919_vm4 = vweird.f32 %v3913_v55 }
 0x977   :  { %v9755_v28 = vpop.eup %9754  ;;  %5084 = vrot.lane.b32.xlu1 %v13771_v40, %s9855_s6  ;;  %v3926_v53 = vor.u32 1.1754944e-38, %v3925_v48 }
 0x978   :  { %v7540_v54 = vadd.f32 -1.0, %v9755_v28 }
 0x97a   :  { %v5025_v35 = vsel %vm4955_vm14, %v4921_v45, %v7540_v54  ;;  %vm3924_vm14 = vcmp.eq.f32.partialorder %v3923_v36, 8.507059e+37 }
 0x97b   :  { %v9757_v8 = vpop.eup %9756  ;;  %v5041_v41 = vmul.f32 %v13762_v25, %v5025_v35 }
 0x97c   :  { %v3915_v47 = vmul.f32 %v9757_v8, %v3913_v55  ;;  %vm3920_vm12 = vweird.f32 %v9757_v8 }
 0x97d   :  { %v13777_v24 = vadd.f32 %v13767_v20, %v5041_v41  ;;  %vm3921_vm10 = vmor %vm3919_vm4, %vm3920_vm12 }
 0x97e   :  { %v3916_v21 = vsub.f32 1.0, %v3915_v47 }
 0x97f   :  { %5086 = vrot.lane.b32.xlu2 %v13777_v24, %s9855_s6 }
 0x980   :  { %v3917_v2 = vmul.f32 %v9757_v8, %v3916_v21 }
 0x982   :  { %v3918_v9 = vadd.f32 %v9757_v8, %v3917_v2 }
 0x984   :  { %v3922_v39 = vsel %vm3921_vm10, %v9757_v8, %v3918_v9  ;;  %vm16097_vm10 = vcmask 130048  }
 0x985   :  { %v3927_v31 = vsel %vm3924_vm14, %v3926_v53, %v3922_v39  ;;  %vm16098_vm14 = vmmov %vm16097_vm10 }
 0x986   :  { %3930 = vst.msk [vmem:[%s15743_s3] sm:$0x1] %vm15828_vm8, %v3927_v31 }
 0x989   :  { %v4924_v57 = vpop.f32.mrf.mxu2 }
 0x98a   :  { %v4970_v3 = vmin.f32 %v4924_v57, 0.0  ;;  %vm4956_vm9 = vcmp.gt.f32.partialorder %v4924_v57, 0.0 }
 0x98c   :  { %v4986_v22 = vmul.f32 1.442695, %v4970_v3 }
 0x98e   :  { %9758 = vpow2.f32 %v4986_v22 }
 0x991   :  { %v4926_v63 = vpop.f32.mrf.mxu2 }
 0x992   :  { %v4971_v51 = vmin.f32 %v4926_v63, 0.0  ;;  %vm4957_vm12 = vcmp.gt.f32.partialorder %v4926_v63, 0.0 }
 0x994   :  { %v9759_v14 = vpop.eup %9758  ;;  %v4988_v11 = vmul.f32 1.442695, %v4971_v51 }
 0x995   :  { %v7541_v5 = vadd.f32 -1.0, %v9759_v14 }
 0x996   :  { %9760 = vpow2.f32 %v4988_v11 }
 0x997   :  { %v5026_v18 = vsel %vm4956_vm9, %v4924_v57, %v7541_v5 }
 0x998   :  { %v5042_v0 = vmul.f32 %v13762_v25, %v5026_v18 }
 0x999   :  { %v4929_v19 = vpop.f32.mrf.mxu2 }
 0x99a   :  { %v13787_v60 = vadd.f32 %v13767_v20, %v5042_v0  ;;  %v4972_v10 = vmin.f32 %v4929_v19, 0.0  ;;  %vm4958_vm9 = vcmp.gt.f32.partialorder %v4929_v19, 0.0 }
 0x99c   :  { %v9761_v44 = vpop.eup %9760  ;;  %v4990_v61 = vmul.f32 1.442695, %v4972_v10  ;;  %5088 = vrot.lane.b32.xlu1 %v13787_v60, %s9855_s6 }
 0x99d   :  { %v7542_v37 = vadd.f32 -1.0, %v9761_v44 }
 0x99e   :  { %9762 = vpow2.f32 %v4990_v61 }
 0x99f   :  { %v5027_v27 = vsel %vm4957_vm12, %v4926_v63, %v7542_v37 }
 0x9a0   :  { %v5043_v29 = vmul.f32 %v13762_v25, %v5027_v27 }
 0x9a1   :  { %v4931_v15 = vpop.f32.mrf.mxu2 }
 0x9a2   :  { %v13793_v34 = vadd.f32 %v13767_v20, %v5043_v29  ;;  %v4973_v26 = vmin.f32 %v4931_v15, 0.0  ;;  %vm4959_vm4 = vcmp.gt.f32.partialorder %v4931_v15, 0.0 }
 0x9a4   :  { %v4864_v4 = vpop.f32.mrf.mxu3  ;;  %v9763_v43 = vpop.eup %9762  ;;  %v4992_v38 = vmul.f32 1.442695, %v4973_v26  ;;  %5090 = vrot.lane.b32.xlu2 %v13793_v34, %s9855_s6 }
 0x9a5   :  { %v7543_v59 = vadd.f32 -1.0, %v9763_v43  ;;  %v4865_v50 = vadd.f32 %v13716_v33, %v4864_v4 }
 0x9a6   :  { %9764 = vpow2.f32 %v4992_v38 }
 0x9a7   :  { %v5028_v23 = vsel %vm4958_vm9, %v4929_v19, %v7543_v59 }
 0x9a8   :  { %v5044_v46 = vmul.f32 %v13762_v25, %v5028_v23 }
 0x9aa   :  { %v13799_v12 = vadd.f32 %v13767_v20, %v5044_v46 }
 0x9ac   :  { %v4866_v52 = vpop.f32.mrf.mxu3  ;;  %v9765_v13 = vpop.eup %9764  ;;  %5092 = vrot.lane.b32.xlu1 %v13799_v12, %s9855_s6 }
 0x9ad   :  { %v4867_v32 = vadd.f32 %v13716_v33, %v4866_v52  ;;  %v7544_v30 = vadd.f32 -1.0, %v9765_v13 }
 0x9af   :  { %v4879_v17 = vpack.c.bf16 %v4867_v32, %v4865_v50  ;;  %v5029_v56 = vsel %vm4959_vm4, %v4931_v15, %v7544_v30 }
 0x9b0   :  { %v5045_v42 = vmul.f32 %v13762_v25, %v5029_v56 }
 0x9b1   :  { %7537 = vmatmul.msk.bf16.gmra.mxu2 %vm16097_vm10, %v4879_v17 }
 0x9b2   :  { %v13808_v45 = vadd.f32 %v13767_v20, %v5045_v42 }
 0x9b4   :  { %v4869_v1 = vpop.f32.mrf.mxu3  ;;  %5094 = vrot.lane.b32.xlu2 %v13808_v45, %s9855_s6 }
 0x9b5   :  { %v4870_v7 = vadd.f32 %v13716_v33, %v4869_v1 }
 0x9bc   :  { %v4871_v6 = vpop.f32.mrf.mxu3 }
 0x9bd   :  { %v4872_v49 = vadd.f32 %v13716_v33, %v4871_v6 }
 0x9bf   :  { %v4880_v16 = vpack.c.bf16 %v4872_v49, %v4870_v7 }
 0x9c1   :  { %7538 = vmatmul.msk.bf16.gmra.mxu2 %vm16098_vm14, %v4880_v16 }
 0x9c2   :  { %v4934_v58 = vpop.f32.mrf.mxu2 }
 0x9c3   :  { %v4974_v55 = vmin.f32 %v4934_v58, 0.0  ;;  %vm4960_vm12 = vcmp.gt.f32.partialorder %v4934_v58, 0.0 }
 0x9c5   :  { %v4994_v62 = vmul.f32 1.442695, %v4974_v55 }
 0x9c7   :  { %9766 = vpow2.f32 %v4994_v62 }
 0x9ca   :  { %v4936_v28 = vpop.f32.mrf.mxu2 }
 0x9cb   :  { %v4975_v54 = vmin.f32 %v4936_v28, 0.0  ;;  %vm4961_vm9 = vcmp.gt.f32.partialorder %v4936_v28, 0.0 }
 0x9cd   :  { %v9767_v8 = vpop.eup %9766  ;;  %v4996_v35 = vmul.f32 1.442695, %v4975_v54 }
 0x9ce   :  { %v7545_v47 = vadd.f32 -1.0, %v9767_v8 }
 0x9cf   :  { %9768 = vpow2.f32 %v4996_v35 }
 0x9d0   :  { %v5030_v41 = vsel %vm4960_vm12, %v4934_v58, %v7545_v47 }
 0x9d1   :  { %v5046_v21 = vmul.f32 %v13762_v25, %v5030_v41 }
 0x9d3   :  { %v13817_v48 = vadd.f32 %v13767_v20, %v5046_v21 }
 0x9d5   :  { %v9769_v33 = vpop.eup %9768  ;;  %5096 = vrot.lane.b32.xlu1 %v13817_v48, %s9855_s6 }
 0x9d6   :  { %v7546_v2 = vadd.f32 -1.0, %v9769_v33 }
 0x9d8   :  { %v5031_v36 = vsel %vm4961_vm9, %v4936_v28, %v7546_v2 }
 0x9d9   :  { %v5047_v9 = vmul.f32 %v13762_v25, %v5031_v36  ;;  %v5087_v38 = vpop.permute.xlu2 %5086 }
 0x9da   :  { %v5127_v50 = vadd.f32 %v5087_v38, %v13777_v24 }
 0x9db   :  { %v13823_v53 = vadd.f32 %v13767_v20, %v5047_v9 }
 0x9dc   :  { %v5141_v42 = vmul.f32 0.5, %v5127_v50 }
 0x9dd   :  { %5098 = vrot.lane.b32.xlu2 %v13823_v53, %s9855_s6 }
 0x9de   :  { %v5169_v16 = vrot.slane %v5141_v42, 4 }
 0x9e9   :  { %v5085_v37 = vpop.permute.xlu1 %5084 }
 0x9ea   :  { %v5126_v32 = vadd.f32 %v5085_v37, %v13771_v40 }
 0x9ec   :  { %v4939_v39 = vpop.f32.mrf.mxu2  ;;  %v5140_v1 = vmul.f32 0.5, %v5126_v32 }
 0x9ed   :  { %v4976_v31 = vmin.f32 %v4939_v39, 0.0  ;;  %vm4962_vm4 = vcmp.gt.f32.partialorder %v4939_v39, 0.0 }
 0x9ee   :  { %v5168_v58 = vrot.slane %v5140_v1, 4 }
 0x9ef   :  { %v4998_v57 = vmul.f32 1.442695, %v4976_v31 }
 0x9f0   :  { %v13858_v8 = vsel %vm165_vm0, %v5168_v58, %v5169_v16  ;;  %v13861_v35 = vsel %vm165_vm0, 0.0, %v5168_v58 }
 0x9f1   :  { %9770 = vpow2.f32 %v4998_v57  ;;  %v5213_v9 = vrot.slane %v13861_v35, 1  ;;  %v5559_v1 = vrot.slane %v13858_v8, 6 }
 0x9f4   :  { %v4941_v3 = vpop.f32.mrf.mxu2 }
 0x9f5   :  { %v4977_v22 = vmin.f32 %v4941_v3, 0.0  ;;  %vm4963_vm10 = vcmp.gt.f32.partialorder %v4941_v3, 0.0 }
 0x9f7   :  { %v9771_v63 = vpop.eup %9770  ;;  %v5000_v51 = vmul.f32 1.442695, %v4977_v22 }
 0x9f8   :  { %v7547_v14 = vadd.f32 -1.0, %v9771_v63 }
 0x9f9   :  { %9772 = vpow2.f32 %v5000_v51 }
 0x9fa   :  { %v5032_v11 = vsel %vm4962_vm4, %v4939_v39, %v7547_v14  ;;  %v5214_v39 = vrot.slane %v13858_v8, 1  ;;  %vm16099_vm4 = vcmask 1046528  }
 0x9fb   :  { %v5048_v5 = vmul.f32 %v13762_v25, %v5032_v11 }
 0x9fd   :  { %v13829_v18 = vadd.f32 %v13767_v20, %v5048_v5 }
 0x9fe   :  { %v5091_v11 = vpop.permute.xlu2 %5090 }
 0x9ff   :  { %v9773_v0 = vpop.eup %9772  ;;  %5100 = vrot.lane.b32.xlu1 %v13829_v18, %s9855_s6 }
 0xa00   :  { %v7548_v19 = vadd.f32 -1.0, %v9773_v0 }
 0xa02   :  { %v5033_v10 = vsel %vm4963_vm10, %v4941_v3, %v7548_v19  ;;  %vm16100_vm10 = vmmov %vm16099_vm4 }
 0xa03   :  { %v5049_v44 = vmul.f32 %v13762_v25, %v5033_v10  ;;  %v5215_v63 = vsel %vm16100_vm10, %v5213_v9, %v5214_v39  ;;  %vm16104_vm10 = vcmask 1042432  }
 0xa05   :  { %v13835_v61 = vadd.f32 %v13767_v20, %v5049_v44  ;;  %v5351_v44 = vrot.slane %v13861_v35, 3 }
 0xa07   :  { %5102 = vrot.lane.b32.xlu2 %v13835_v61, %s9855_s6 }
 0xa0e   :  { %v5089_v26 = vpop.permute.xlu1 %5088 }
 0xa0f   :  { %v5128_v23 = vadd.f32 %v5089_v26, %v13787_v60  ;;  %v7678_v26 = vld [vmem:[%s15740_s1 + $0x88] sm:$0xff] }
 0xa10   :  { %5880 = vmatpush.bf16.msra.mxu1 %v7678_v26 }
 0xa11   :  { %v13842_v30 = vmul.f32 0.5, %v5128_v23 }
 0xa13   :  { %v5171_v49 = vrot.slane %v13842_v30, 4 }
 0xa15   :  { %v13854_v62 = vsel %vm165_vm0, %v5169_v16, %v5171_v49  ;;  %v5283_v16 = vrot.slane %v13858_v8, 2 }
 0xa16   :  { %v5216_v21 = vrot.slane %v13854_v62, 1  ;;  %v5354_v5 = vrot.slane %v13854_v62, 3  ;;  %v5423_v0 = vrot.slane %v13854_v62, 4  ;;  %v5492_v30 = vrot.slane %v13854_v62, 5 }
 0xa18   :  { %v5217_v57 = vsel %vm16099_vm4, %v5214_v39, %v5216_v21 }
 0xa19   :  { %v8823_v14 = vpack.i.bf16 %v5217_v57, %v5215_v63  ;;  %v5095_v57 = vpop.permute.xlu2 %5094 }
 0xa1e   :  { %v5093_v22 = vpop.permute.xlu1 %5092 }
 0xa1f   :  { %v5130_v10 = vadd.f32 %v5093_v22, %v13799_v12  ;;  %v5129_v12 = vadd.f32 %v5091_v11, %v13793_v34 }
 0xa21   :  { %v5143_v34 = vmul.f32 0.5, %v5129_v12 }
 0xa34   :  { %v4944_v27 = vpop.f32.mrf.mxu2 }
 0xa35   :  { %v4978_v29 = vmin.f32 %v4944_v27, 0.0  ;;  %vm4964_vm14 = vcmp.gt.f32.partialorder %v4944_v27, 0.0 }
 0xa37   :  { %v5002_v15 = vmul.f32 1.442695, %v4978_v29  ;;  %v5420_v29 = vrot.slane %v13861_v35, 4 }
 0xa39   :  { %9774 = vpow2.f32 %v5002_v15  ;;  %v5421_v15 = vrot.slane %v13858_v8, 4 }
 0xa3b   :  { %v5424_v38 = vsel %vm165_vm0, %v5421_v15, %v5423_v0 }
 0xa3c   :  { %v4946_v4 = vpop.f32.mrf.mxu2 }
 0xa3d   :  { %v4979_v43 = vmin.f32 %v4946_v4, 0.0  ;;  %vm4965_vm12 = vcmp.gt.f32.partialorder %v4946_v4, 0.0 }
 0xa3f   :  { %v9775_v59 = vpop.eup %9774  ;;  %v5004_v46 = vmul.f32 1.442695, %v4979_v43 }
 0xa40   :  { %v7549_v52 = vadd.f32 -1.0, %v9775_v59  ;;  %v13899_v59 = vmul.f32 0.5, %v5130_v10  ;;  %v5131_v10 = vadd.f32 %v5095_v57, %v13808_v45 }
 0xa41   :  { %9776 = vpow2.f32 %v5004_v46 }
 0xa42   :  { %v5034_v13 = vsel %vm4964_vm14, %v4944_v27, %v7549_v52  ;;  %v5352_v27 = vrot.slane %v13858_v8, 3  ;;  %v5422_v52 = vsel %vm165_vm0, %v5420_v29, %v5421_v15  ;;  %v5175_v42 = vrot.slane %v13899_v59, 4 }
 0xa43   :  { %v5050_v17 = vmul.f32 %v13762_v25, %v5034_v13  ;;  %v8838_v13 = vpack.i.bf16 %v5424_v38, %v5422_v52  ;;  %v5145_v12 = vmul.f32 0.5, %v5131_v10 }
 0xa44   :  { %v4949_v56 = vpop.f32.mrf.mxu2 }
 0xa45   :  { %v13846_v6 = vadd.f32 %v13767_v20, %v5050_v17  ;;  %v4980_v60 = vmin.f32 %v4949_v56, 0.0  ;;  %vm4966_vm9 = vcmp.gt.f32.partialorder %v4949_v56, 0.0  ;;  %v5561_v17 = vrot.slane %v13854_v62, 6 }
 0xa47   :  { %v9777_v7 = vpop.eup %9776  ;;  %v5006_v24 = vmul.f32 1.442695, %v4980_v60  ;;  %5104 = vrot.lane.b32.xlu1 %v13846_v6, %s9855_s6  ;;  %v5627_v60 = vrot.slane %v13861_v35, 7  ;;  %v5562_v58 = vsel %vm2239_vm3, %v5559_v1, %v5561_v17 }
 0xa48   :  { %v7550_v40 = vadd.f32 -1.0, %v9777_v7  ;;  %v5628_v7 = vrot.slane %v13858_v8, 7 }
 0xa49   :  { %9778 = vpow2.f32 %v5006_v24  ;;  %v5173_v24 = vrot.slane %v5143_v34, 4 }
 0xa4a   :  { %v5035_v55 = vsel %vm4965_vm12, %v4946_v4, %v7550_v40  ;;  %vm16101_vm12 = vcmask 1044480   ;;  %v5282_v40 = vrot.slane %v13861_v35, 2 }
 0xa4b   :  { %v5051_v28 = vmul.f32 %v13762_v25, %v5035_v55  ;;  %v5355_v43 = vsel %vm16101_vm12, %v5352_v27, %v5354_v5 }
 0xa4c   :  { %v4951_v54 = vpop.f32.mrf.mxu2 }
 0xa4d   :  { %v13864_v47 = vadd.f32 %v13767_v20, %v5051_v28  ;;  %v4981_v41 = vmin.f32 %v4951_v54, 0.0  ;;  %vm4967_vm14 = vcmp.gt.f32.partialorder %v4951_v54, 0.0  ;;  %v13930_v28 = vsel %vm165_vm0, %v5173_v24, %v5175_v42 }
 0xa4e   :  { %v5289_v22 = vrot.slane %v13930_v28, 2  ;;  %v5358_v63 = vrot.slane %v13930_v28, 3  ;;  %v5565_v52 = vrot.slane %v13930_v28, 6  ;;  %v5427_v59 = vrot.slane %v13930_v28, 4 }
 0xa4f   :  { %v9779_v33 = vpop.eup %9778  ;;  %v5008_v2 = vmul.f32 1.442695, %v4981_v41  ;;  %5106 = vrot.lane.b32.xlu2 %v13864_v47, %s9855_s6  ;;  %v5097_v41 = vpop.permute.xlu1 %5096 }
 0xa50   :  { %v7551_v36 = vadd.f32 -1.0, %v9779_v33 }
 0xa51   :  { %9780 = vpow2.f32 %v5008_v2  ;;  %v5629_v2 = vsel %vm2310_vm5, %v5627_v60, %v5628_v7 }
 0xa52   :  { %v5036_v31 = vsel %vm4966_vm9, %v4949_v56, %v7551_v36  ;;  %vm16102_vm9 = vmmov %vm16101_vm12  ;;  %v5630_v56 = vrot.slane %v13854_v62, 7  ;;  %v13938_v36 = vsel %vm165_vm0, %v5171_v49, %v5173_v24 }
 0xa53   :  { %v5052_v3 = vmul.f32 %v13762_v25, %v5036_v31  ;;  %v5353_v46 = vsel %vm16102_vm9, %v5351_v44, %v5352_v27  ;;  %v5284_v31 = vsel %vm1178_vm15, %v5282_v40, %v5283_v16  ;;  %v5287_v49 = vrot.slane %v13938_v36, 2  ;;  %vm16103_vm4 = vmmov %vm16102_vm9 }
 0xa54   :  { %v8833_v32 = vpack.i.bf16 %v5355_v43, %v5353_v46  ;;  %v5631_v55 = vsel %vm2310_vm5, %v5628_v7, %v5630_v56  ;;  %v5356_v11 = vrot.slane %v13938_v36, 3  ;;  %v5490_v44 = vrot.slane %v13858_v8, 5  ;;  %vm16106_vm12 = vmmov %vm16104_vm10 }
 0xa55   :  { %v13877_v51 = vadd.f32 %v13767_v20, %v5052_v3  ;;  %v8853_v39 = vpack.i.bf16 %v5631_v55, %v5629_v2  ;;  %v5496_v46 = vrot.slane %v13930_v28, 5  ;;  %vm16107_vm9 = vmmov %vm16104_vm10  ;;  %v5099_v2 = vpop.permute.xlu2 %5098 }
 0xa56   :  { %v5359_v27 = vsel %vm16103_vm4, %v5356_v11, %v5358_v63  ;;  %v5493_v15 = vsel %vm16104_vm10, %v5490_v44, %v5492_v30  ;;  %vm16109_vm10 = vmmov %vm16107_vm9 }
 0xa57   :  { %v9781_v19 = vpop.eup %9780  ;;  %8824 = vrot.lane.b32.xlu2 %v8823_v14, %s9849_s11  ;;  %5108 = vrot.lane.b32.xlu0 %v13877_v51, %s9855_s6  ;;  %v5132_v14 = vadd.f32 %v5097_v41, %v13817_v48  ;;  %v5489_v48 = vrot.slane %v13861_v35, 5 }
 0xa58   :  { %v7552_v37 = vadd.f32 -1.0, %v9781_v19  ;;  %v7677_v19 = vld [vmem:[%s15740_s1 + $0x80] sm:$0xff] }
 0xa59   :  { %5881 = vmatpush.bf16.msra.mxu1 %v7677_v19  ;;  %v13962_v29 = vmul.f32 0.5, %v5132_v14  ;;  %v5491_v38 = vsel %vm16106_vm12, %v5489_v48, %v5490_v44 }
 0xa5a   :  { %v5037_v4 = vsel %vm4967_vm14, %v4951_v54, %v7552_v37  ;;  %v5290_v37 = vsel %vm1178_vm15, %v5287_v49, %v5289_v22  ;;  %vm16105_vm14 = vmmov %vm16103_vm4  ;;  %vm16108_vm4 = vcmask 1046528  }
 0xa5b   :  { %v5053_v23 = vmul.f32 %v13762_v25, %v5037_v4  ;;  %v5285_v25 = vrot.slane %v13854_v62, 2  ;;  %v5357_v45 = vsel %vm16105_vm14, %v5354_v5, %v5356_v11  ;;  %v5179_v34 = vrot.slane %v13962_v29, 4  ;;  %vm16110_vm14 = vmmov %vm16108_vm4 }
 0xa5c   :  { %v8868_v43 = vpack.i.bf16 %v5359_v27, %v5357_v45  ;;  %v5494_v5 = vrot.slane %v13938_v36, 5  ;;  %vm16111_vm12 = vmmov %vm16108_vm4 }
 0xa5d   :  { %v13905_v50 = vadd.f32 %v13767_v20, %v5053_v23  ;;  %v5558_v20 = vrot.slane %v13861_v35, 6  ;;  %v5286_v54 = vsel %vm1178_vm15, %v5283_v16, %v5285_v25  ;;  %v5288_v26 = vsel %vm1178_vm15, %v5285_v25, %v5287_v49 }
 0xa5e   :  { %v8828_v3 = vpack.i.bf16 %v5286_v54, %v5284_v31  ;;  %v8863_v4 = vpack.i.bf16 %v5290_v37, %v5288_v26  ;;  %v8843_v23 = vpack.i.bf16 %v5493_v15, %v5491_v38  ;;  %v5177_v25 = vrot.slane %v5145_v12, 4 }
 0xa5f   :  { %8834 = vrot.lane.b32.xlu2 %v8833_v32, %s9853_s15  ;;  %8839 = vrot.lane.b32.xlu0 %v8838_v13, %s9858_s20  ;;  %v5560_v33 = vsel %vm2239_vm3, %v5558_v20, %v5559_v1  ;;  %v5220_v32 = vrot.slane %v13930_v28, 1  ;;  %v5563_v13 = vrot.slane %v13938_v36, 6  ;;  %v5218_v20 = vrot.slane %v13938_v36, 1 }
 0xa60   :  { %5110 = vrot.lane.b32.xlu1 %v13905_v50, %s9855_s6  ;;  %v8848_v9 = vpack.i.bf16 %v5562_v58, %v5560_v33  ;;  %v5497_v1 = vsel %vm16107_vm9, %v5494_v5, %v5496_v46  ;;  %v13989_v7 = vsel %vm165_vm0, %v5177_v25, %v5179_v34  ;;  %v5495_v16 = vsel %vm16109_vm10, %v5492_v30, %v5494_v5  ;;  %vm16112_vm9 = vmmov %vm16108_vm4 }
 0xa61   :  { %v5566_v60 = vsel %vm2239_vm3, %v5563_v13, %v5565_v52  ;;  %v5221_v24 = vsel %vm16108_vm4, %v5218_v20, %v5220_v32  ;;  %v5564_v58 = vsel %vm2239_vm3, %v5561_v17, %v5563_v13  ;;  %v13999_v55 = vsel %vm165_vm0, %v5175_v42, %v5177_v25  ;;  %v7676_v42 = vld [vmem:[%s15740_s1 + $0x78] sm:$0xff]  ;;  %vm16113_vm4 = vmmov %vm16109_vm10 }
 0xa62   :  { %v8878_v54 = vpack.i.bf16 %v5497_v1, %v5495_v16  ;;  %v8883_v41 = vpack.i.bf16 %v5566_v60, %v5564_v58  ;;  %v5219_v33 = vsel %vm16110_vm14, %v5216_v21, %v5218_v20  ;;  %v5293_v31 = vrot.slane %v13989_v7, 2  ;;  %5882 = vmatpush.bf16.msra.mxu1 %v7676_v42  ;;  %vm16114_vm10 = vmmov %vm16113_vm4 }
 0xa63   :  { %v5222_v17 = vrot.slane %v13999_v55, 1  ;;  %v5291_v21 = vrot.slane %v13999_v55, 2  ;;  %v5431_v15 = vrot.slane %v13989_v7, 4  ;;  %v5500_v26 = vrot.slane %v13989_v7, 5  ;;  %vm16115_vm14 = vmmov %vm16112_vm9 }
 0xa64   :  { %v5429_v12 = vrot.slane %v13999_v55, 4  ;;  %v5638_v16 = vrot.slane %v13989_v7, 7  ;;  %v5362_v29 = vrot.slane %v13989_v7, 3 }
 0xa65   :  { %v5294_v30 = vsel %vm1178_vm15, %v5291_v21, %v5293_v31  ;;  %v5223_v19 = vsel %vm16112_vm9, %v5220_v32, %v5222_v17  ;;  %v5292_v10 = vsel %vm1178_vm15, %v5289_v22, %v5291_v21  ;;  %v5634_v22 = vrot.slane %v13930_v28, 7 }
 0xa66   :  { %v8898_v44 = vpack.i.bf16 %v5294_v30, %v5292_v10  ;;  %v5432_v38 = vsel %vm165_vm0, %v5429_v12, %v5431_v15  ;;  %v5430_v13 = vsel %vm165_vm0, %v5427_v59, %v5429_v12 }
 0xa67   :  { %8849 = vrot.lane.b32.xlu2 %v8848_v9, %s9856_s18  ;;  %8854 = vrot.lane.b32.xlu0 %v8853_v39, %s9855_s6  ;;  %v8858_v9 = vpack.i.bf16 %v5221_v24, %v5219_v33  ;;  %v5224_v39 = vrot.slane %v13989_v7, 1  ;;  %v8908_v1 = vpack.i.bf16 %v5432_v38, %v5430_v13 }
 0xa68   :  { %8829 = vrot.lane.b32.xlu1 %v8828_v3, %s9851_s13  ;;  %v5133_v3 = vadd.f32 %v5099_v2, %v13823_v53 }
 0xa69   :  { %v5225_v14 = vsel %vm16111_vm12, %v5222_v17, %v5224_v39  ;;  %vm16116_vm12 = vcmask 1044480  }
 0xa6a   :  { %v5147_v53 = vmul.f32 0.5, %v5133_v3  ;;  %v8893_v48 = vpack.i.bf16 %v5225_v14, %v5223_v19  ;;  %v5569_v14 = vrot.slane %v13989_v7, 6 }
 0xa6f   :  { %8864 = vrot.lane.b32.xlu2 %v8863_v4, %s9851_s13  ;;  %8869 = vrot.lane.b32.xlu0 %v8868_v43, %s9853_s15  ;;  %v5498_v4 = vrot.slane %v13999_v55, 5  ;;  %v5632_v43 = vrot.slane %v13938_v36, 7 }
 0xa70   :  { %8844 = vrot.lane.b32.xlu1 %v8843_v23, %s9857_s19 }
 0xa71   :  { %v5101_v40 = vpop.permute.xlu1 %5100  ;;  %v5501_v23 = vsel %vm16113_vm4, %v5498_v4, %v5500_v26  ;;  %v5635_v5 = vsel %vm2310_vm5, %v5632_v43, %v5634_v22  ;;  %v5499_v25 = vsel %vm16114_vm10, %v5496_v46, %v5498_v4  ;;  %v5633_v24 = vsel %vm2310_vm5, %v5630_v56, %v5632_v43  ;;  %v7675_v56 = vld [vmem:[%s15740_s1 + $0x70] sm:$0xff]  ;;  %vm16117_vm4 = vmmov %vm16116_vm12 }
 0xa72   :  { %v5134_v57 = vadd.f32 %v5101_v40, %v13829_v18  ;;  %v5425_v18 = vrot.slane %v13938_v36, 4  ;;  %v8913_v60 = vpack.i.bf16 %v5501_v23, %v5499_v25  ;;  %v8888_v40 = vpack.i.bf16 %v5635_v5, %v5633_v24  ;;  %5883 = vmatpush.bf16.msra.mxu1 %v7675_v56  ;;  %vm16118_vm10 = vmmov %vm16117_vm4 }
 0xa73   :  { %v5636_v46 = vrot.slane %v13999_v55, 7 }
 0xa74   :  { %v14022_v49 = vmul.f32 0.5, %v5134_v57  ;;  %v5428_v11 = vsel %vm165_vm0, %v5425_v18, %v5427_v59  ;;  %v5426_v37 = vsel %vm165_vm0, %v5423_v0, %v5425_v18  ;;  %v5181_v0 = vrot.slane %v5147_v53, 4 }
 0xa75   :  { %v8873_v27 = vpack.i.bf16 %v5428_v11, %v5426_v37  ;;  %v5567_v11 = vrot.slane %v13999_v55, 6 }
 0xa76   :  { %v5183_v45 = vrot.slane %v14022_v49, 4  ;;  %v14059_v20 = vsel %vm165_vm0, %v5179_v34, %v5181_v0 }
 0xa77   :  { %8879 = vrot.lane.b32.xlu2 %v8878_v54, %s9857_s19  ;;  %8884 = vrot.lane.b32.xlu0 %v8883_v41, %s9856_s18  ;;  %v5226_v34 = vrot.slane %v14059_v20, 1  ;;  %v5360_v54 = vrot.slane %v13999_v55, 3  ;;  %v5639_v41 = vsel %vm2310_vm5, %v5636_v46, %v5638_v16  ;;  %v5433_v30 = vrot.slane %v14059_v20, 4 }
 0xa78   :  { %8859 = vrot.lane.b32.xlu1 %v8858_v9, %s9849_s11  ;;  %v14049_v32 = vsel %vm165_vm0, %v5181_v0, %v5183_v45  ;;  %v5637_v9 = vsel %vm2310_vm5, %v5634_v22, %v5636_v46  ;;  %v5570_v10 = vsel %vm2239_vm3, %v5567_v11, %v5569_v14  ;;  %v5568_v22 = vsel %vm2239_vm3, %v5565_v52, %v5567_v11  ;;  %v7671_v11 = vld [vmem:[%s15740_s1 + $0x50] sm:$0xff] }
 0xa79   :  { %v5228_v58 = vrot.slane %v14049_v32, 1  ;;  %v5363_v2 = vsel %vm16116_vm12, %v5360_v54, %v5362_v29  ;;  %v5227_v57 = vsel %vm16112_vm9, %v5224_v39, %v5226_v34  ;;  %v8923_v59 = vpack.i.bf16 %v5639_v41, %v5637_v9  ;;  %v5103_v41 = vpop.permute.xlu2 %5102 }
 0xa7a   :  { %v5361_v21 = vsel %vm16117_vm4, %v5358_v63, %v5360_v54  ;;  %v5366_v3 = vrot.slane %v14049_v32, 3  ;;  %v5435_v18 = vrot.slane %v14049_v32, 4  ;;  %v5364_v39 = vrot.slane %v14059_v20, 3 }
 0xa7b   :  { %v5229_v33 = vsel %vm16115_vm14, %v5226_v34, %v5228_v58  ;;  %v8903_v42 = vpack.i.bf16 %v5363_v2, %v5361_v21  ;;  %vm16119_vm14 = vmmov %vm16117_vm4  ;;  %v8918_v12 = vpack.i.bf16 %v5570_v10, %v5568_v22  ;;  %v5573_v4 = vrot.slane %v14049_v32, 6  ;;  %v7672_v21 = vld [vmem:[%s15740_s1 + $0x58] sm:$0xff] }
 0xa7c   :  { %v8928_v17 = vpack.i.bf16 %v5229_v33, %v5227_v57  ;;  %v5367_v63 = vsel %vm16118_vm10, %v5364_v39, %v5366_v3  ;;  %v5436_v19 = vsel %vm165_vm0, %v5433_v30, %v5435_v18  ;;  %v5365_v53 = vsel %vm16119_vm14, %v5362_v29, %v5364_v39  ;;  %vm16122_vm10 = vmmov %vm16117_vm4 }
 0xa7d   :  { %v8938_v37 = vpack.i.bf16 %v5367_v63, %v5365_v53  ;;  %v5642_v0 = vrot.slane %v14049_v32, 7  ;;  %v5571_v43 = vrot.slane %v14059_v20, 6  ;;  %v5640_v38 = vrot.slane %v14059_v20, 7 }
 0xa7e   :  { %v5295_v52 = vrot.slane %v14059_v20, 2  ;;  %v5504_v46 = vrot.slane %v14049_v32, 5  ;;  %v5502_v34 = vrot.slane %v14059_v20, 5  ;;  %vm16120_vm12 = vcmask 1042432  }
 0xa7f   :  { %8894 = vrot.lane.b32.xlu2 %v8893_v48, %s9849_s11  ;;  %8899 = vrot.lane.b32.xlu0 %v8898_v44, %s9851_s13  ;;  %v5434_v48 = vsel %vm165_vm0, %v5431_v15, %v5433_v30  ;;  %v7674_v44 = vld [vmem:[%s15740_s1 + $0x68] sm:$0xff]  ;;  %v5297_v15 = vrot.slane %v14049_v32, 2  ;;  %v5574_v23 = vsel %vm2239_vm3, %v5571_v43, %v5573_v4  ;;  %v5643_v5 = vsel %vm2310_vm5, %v5640_v38, %v5642_v0  ;;  %vm16121_vm9 = vmmov %vm16120_vm12 }
 0xa80   :  { %8874 = vrot.lane.b32.xlu1 %v8873_v27, %s9858_s20  ;;  %v8943_v27 = vpack.i.bf16 %v5436_v19, %v5434_v48  ;;  %5884 = vmatpush.bf16.msra.mxu1 %v7674_v44  ;;  %v5572_v25 = vsel %vm2239_vm3, %v5569_v14, %v5571_v43  ;;  %v5505_v56 = vsel %vm16120_vm12, %v5502_v34, %v5504_v46  ;;  %vm16123_vm14 = vcmask 1046528  }
 0xa81   :  { %v5298_v13 = vsel %vm1178_vm15, %v5295_v52, %v5297_v15  ;;  %v5135_v33 = vadd.f32 %v5103_v41, %v13835_v61  ;;  %vm16124_vm12 = vmmov %vm16123_vm14 }
 0xa83   :  { %v5149_v2 = vmul.f32 0.5, %v5135_v33 }
 0xa85   :  { %v5185_v57 = vrot.slane %v5149_v2, 4 }
 0xa87   :  { %8909 = vrot.lane.b32.xlu2 %v8908_v1, %s9858_s20  ;;  %8914 = vrot.lane.b32.xlu0 %v8913_v60, %s9857_s19  ;;  %v5641_v1 = vsel %vm2310_vm5, %v5638_v16, %v5640_v38  ;;  %v8953_v60 = vpack.i.bf16 %v5574_v23, %v5572_v25  ;;  %v7673_v16 = vld [vmem:[%s15740_s1 + $0x60] sm:$0xff] }
 0xa88   :  { %8889 = vrot.lane.b32.xlu1 %v8888_v40, %s9855_s6  ;;  %v8958_v24 = vpack.i.bf16 %v5643_v5, %v5641_v1  ;;  %v5296_v40 = vsel %vm1178_vm15, %v5293_v31, %v5295_v52  ;;  %5885 = vmatpush.bf16.msra.mxu1 %v7673_v16  ;;  %v5503_v31 = vsel %vm16121_vm9, %v5500_v26, %v5502_v34 }
 0xa89   :  { %v8933_v29 = vpack.i.bf16 %v5298_v13, %v5296_v40  ;;  %v8948_v54 = vpack.i.bf16 %v5505_v56, %v5503_v31  ;;  %v14152_v26 = vsel %vm165_vm0, %v5183_v45, %v5185_v57 }
 0xa8a   :  { %v5299_v61 = vrot.slane %v14152_v26, 2  ;;  %v5368_v39 = vrot.slane %v14152_v26, 3  ;;  %v5575_v23 = vrot.slane %v14152_v26, 6  ;;  %v5437_v5 = vrot.slane %v14152_v26, 4 }
 0xa8c   :  { %5886 = vmatpush.bf16.msra.mxu1 %v7672_v21  ;;  %v5300_v53 = vsel %vm1178_vm15, %v5297_v15, %v5299_v61  ;;  %v5369_v48 = vsel %vm16117_vm4, %v5366_v3, %v5368_v39  ;;  %vm16125_vm4 = vmmov %vm16121_vm9  ;;  %v5576_v56 = vsel %vm2239_vm3, %v5573_v4, %v5575_v23 }
 0xa8f   :  { %8924 = vrot.lane.b32.xlu2 %v8923_v59, %s9855_s6  ;;  %8929 = vrot.lane.b32.xlu0 %v8928_v17, %s9849_s11 }
 0xa90   :  { %8904 = vrot.lane.b32.xlu1 %v8903_v42, %s9853_s15  ;;  %5887 = vmatpush.bf16.msra.mxu1 %v7671_v11 }
 0xa97   :  { %8939 = vrot.lane.b32.xlu2 %v8938_v37, %s9853_s15  ;;  %8944 = vrot.lane.b32.xlu0 %v8943_v27, %s9858_s20 }
 0xa98   :  { %8919 = vrot.lane.b32.xlu1 %v8918_v12, %s9856_s18 }
 0xa9f   :  { %8954 = vrot.lane.b32.xlu2 %v8953_v60, %s9856_s18  ;;  %8959 = vrot.lane.b32.xlu0 %v8958_v24, %s9855_s6 }
 0xaa0   :  { %8934 = vrot.lane.b32.xlu1 %v8933_v29, %s9851_s13 }
 0xaa8   :  { %8949 = vrot.lane.b32.xlu1 %v8948_v54, %s9857_s19 }
 0xaa9   :  { %v5107_v9 = vpop.permute.xlu2 %5106 }
 0xaaa   :  { %v5137_v45 = vadd.f32 %v5107_v9, %v13864_v47 }
 0xaac   :  { %v5151_v15 = vmul.f32 0.5, %v5137_v45 }
 0xaae   :  { %v5189_v13 = vrot.slane %v5151_v15, 4 }
 0xab1   :  { %v14156_v30 = vpop.permute.xlu2 %8824 }
 0xab9   :  { %v5105_v59 = vpop.permute.xlu1 %5104  ;;  %v14190_v25 = vpop.permute.xlu2 %8834 }
 0xaba   :  { %v5136_v17 = vadd.f32 %v5105_v59, %v13846_v6  ;;  %v5230_v6 = vrot.slane %v14152_v26, 1  ;;  %v5644_v59 = vrot.slane %v14152_v26, 7 }
 0xabc   :  { %v5150_v42 = vmul.f32 0.5, %v5136_v17  ;;  %v5231_v47 = vsel %vm16123_vm14, %v5228_v58, %v5230_v6  ;;  %v5506_v58 = vrot.slane %v14152_v26, 5 }
 0xabe   :  { %v5187_v14 = vrot.slane %v5150_v42, 4  ;;  %v5507_v16 = vsel %vm16125_vm4, %v5504_v46, %v5506_v58 }
 0xac0   :  { %v14163_v49 = vsel %vm165_vm0, %v5185_v57, %v5187_v14  ;;  %v14203_v34 = vsel %vm165_vm0, %v5187_v14, %v5189_v13 }
 0xac1   :  { %v5301_v63 = vrot.slane %v14163_v49, 2  ;;  %v5370_v19 = vrot.slane %v14163_v49, 3  ;;  %v5232_v10 = vrot.slane %v14163_v49, 1  ;;  %v5508_v38 = vrot.slane %v14163_v49, 5 }
 0xac2   :  { %v5577_v3 = vrot.slane %v14163_v49, 6  ;;  %v5439_v52 = vrot.slane %v14163_v49, 4  ;;  %v5646_v9 = vrot.slane %v14163_v49, 7  ;;  %v5303_v46 = vrot.slane %v14203_v34, 2 }
 0xac3   :  { %v5302_v44 = vsel %vm1178_vm15, %v5299_v61, %v5301_v63  ;;  %v5371_v37 = vsel %vm16122_vm10, %v5368_v39, %v5370_v19  ;;  %v5233_v27 = vsel %vm16124_vm12, %v5230_v6, %v5232_v10  ;;  %v5509_v60 = vsel %vm16121_vm9, %v5506_v58, %v5508_v38  ;;  %v14230_v39 = vpop.permute.xlu2 %8849  ;;  %vm16126_vm10 = vmmov %vm16124_vm12 }
 0xac4   :  { %v8968_v22 = vpack.i.bf16 %v5302_v44, %v5300_v53  ;;  %v8973_v12 = vpack.i.bf16 %v5371_v37, %v5369_v48  ;;  %v8963_v43 = vpack.i.bf16 %v5233_v27, %v5231_v47  ;;  %v5578_v24 = vsel %vm2239_vm3, %v5575_v23, %v5577_v3  ;;  %vm16127_vm14 = vmmov %vm16126_vm10 }
 0xac5   :  { %v5440_v29 = vsel %vm165_vm0, %v5437_v5, %v5439_v52  ;;  %v8983_v54 = vpack.i.bf16 %v5509_v60, %v5507_v16  ;;  %v8988_v41 = vpack.i.bf16 %v5578_v24, %v5576_v56  ;;  %v5234_v4 = vrot.slane %v14203_v34, 1  ;;  %vm16128_vm12 = vmmov %vm16125_vm4 }
 0xac6   :  { %8969 = vrot.lane.b32.xlu2 %v8968_v22, %s9851_s13  ;;  %8974 = vrot.lane.b32.xlu0 %v8973_v12, %s9853_s15  ;;  %v5647_v14 = vsel %vm2310_vm5, %v5644_v59, %v5646_v9  ;;  %v5304_v61 = vsel %vm1178_vm15, %v5301_v63, %v5303_v46  ;;  %v5645_v48 = vsel %vm2310_vm5, %v5642_v0, %v5644_v59  ;;  %v8827_v22 = vunpack.i.h.bf16 %v14156_v30 }
 0xac7   :  { %8964 = vrot.lane.b32.xlu1 %v8963_v43, %s9849_s11  ;;  %v5235_v45 = vsel %vm16126_vm10, %v5232_v10, %v5234_v4  ;;  %v8993_v47 = vpack.i.bf16 %v5647_v14, %v5645_v48  ;;  %v5510_v12 = vrot.slane %v14203_v34, 5  ;;  %v5441_v0 = vrot.slane %v14203_v34, 4 }
 0xac8   :  { %v5372_v15 = vrot.slane %v14203_v34, 3  ;;  %v8826_v58 = vunpack.i.l.bf16 %v14156_v30  ;;  %vm16129_vm9 = vcmask 130048   ;;  %vm16130_vm4 = vcmask 1044480  }
 0xac9   :  { %v5109_v1 = vpop.permute.xlu0 %5108  ;;  %v5698_v60 = vsel %vm16129_vm9, %v13858_v8, %v8827_v22  ;;  %vm16131_vm10 = vmmov %vm16130_vm4  ;;  %v8837_v14 = vunpack.i.h.bf16 %v14190_v25 }
 0xaca   :  { %v5138_v40 = vadd.f32 %v5109_v1, %v13877_v51  ;;  %v5438_v51 = vsel %vm165_vm0, %v5435_v18, %v5437_v5 }
 0xacb   :  { %v8978_v33 = vpack.i.bf16 %v5440_v29, %v5438_v51 }
 0xacc   :  { %v5152_v31 = vmul.f32 0.5, %v5138_v40 }
 0xace   :  { %v5191_v2 = vrot.slane %v5152_v31, 4  ;;  %8984 = vrot.lane.b32.xlu2 %v8983_v54, %s9857_s19  ;;  %8989 = vrot.lane.b32.xlu0 %v8988_v41, %s9856_s18  ;;  %v5442_v31 = vsel %vm165_vm0, %v5439_v52, %v5441_v0 }
 0xacf   :  { %8979 = vrot.lane.b32.xlu1 %v8978_v33, %s9858_s20 }
 0xad0   :  { %v14219_v57 = vsel %vm165_vm0, %v5189_v13, %v5191_v2 }
 0xad1   :  { %v14222_v18 = vpop.permute.xlu0 %8839  ;;  %v5305_v17 = vrot.slane %v14219_v57, 2  ;;  %v5236_v21 = vrot.slane %v14219_v57, 1  ;;  %v5443_v27 = vrot.slane %v14219_v57, 4  ;;  %v5374_v10 = vrot.slane %v14219_v57, 3 }
 0xad2   :  { %v5111_v42 = vpop.permute.xlu1 %5110  ;;  %v5581_v8 = vrot.slane %v14219_v57, 6  ;;  %v5650_v33 = vrot.slane %v14219_v57, 7 }
 0xad3   :  { %v5139_v6 = vadd.f32 %v5111_v42, %v13905_v50  ;;  %v5306_v11 = vsel %vm1178_vm15, %v5303_v46, %v5305_v17  ;;  %v5237_v53 = vsel %vm16127_vm14, %v5234_v4, %v5236_v21  ;;  %v5512_v50 = vrot.slane %v14219_v57, 5  ;;  %vm16132_vm14 = vmmov %vm16128_vm12 }
 0xad4   :  { %v9003_v44 = vpack.i.bf16 %v5306_v11, %v5304_v61  ;;  %v8998_v63 = vpack.i.bf16 %v5237_v53, %v5235_v45  ;;  %v5444_v1 = vsel %vm165_vm0, %v5441_v0, %v5443_v27  ;;  %v5375_v30 = vsel %vm16131_vm10, %v5372_v15, %v5374_v10 }
 0xad5   :  { %v5153_v37 = vmul.f32 0.5, %v5139_v6  ;;  %v5513_v13 = vsel %vm16128_vm12, %v5510_v12, %v5512_v50  ;;  %v5511_v29 = vsel %vm16132_vm14, %v5508_v38, %v5510_v12  ;;  %vm16133_vm12 = vmmov %vm16130_vm4  ;;  %v9013_v51 = vpack.i.bf16 %v5444_v1, %v5442_v31  ;;  %v14284_v38 = vpop.permute.xlu2 %8864 }
 0xad6   :  { %9004 = vrot.lane.b32.xlu0 %v9003_v44, %s9851_s13  ;;  %8999 = vrot.lane.b32.xlu2 %v8998_v63, %s9849_s11  ;;  %v5373_v54 = vsel %vm16133_vm12, %v5370_v19, %v5372_v15  ;;  %v9018_v41 = vpack.i.bf16 %v5513_v13, %v5511_v29  ;;  %v5579_v4 = vrot.slane %v14203_v34, 6  ;;  %v5648_v19 = vrot.slane %v14203_v34, 7 }
 0xad7   :  { %v5193_v43 = vrot.slane %v5153_v37, 4  ;;  %8994 = vrot.lane.b32.xlu1 %v8993_v47, %s9855_s6  ;;  %v9008_v46 = vpack.i.bf16 %v5375_v30, %v5373_v54  ;;  %v8852_v6 = vunpack.i.h.bf16 %v14230_v39  ;;  %v8851_v11 = vunpack.i.l.bf16 %v14230_v39 }
 0xad8   :  { %v5582_v61 = vsel %vm2239_vm3, %v5579_v4, %v5581_v8  ;;  %v5651_v45 = vsel %vm2310_vm5, %v5648_v19, %v5650_v33  ;;  %v8842_v39 = vunpack.i.h.bf16 %v14222_v18  ;;  %v8841_v37 = vunpack.i.l.bf16 %v14222_v18 }
 0xad9   :  { %v5194_v23 = vsel %vm165_vm0, %v5191_v2, %v5193_v43  ;;  %v14255_v5 = vpop.permute.xlu0 %8854  ;;  %v5697_v2 = vsel %vm16129_vm9, %v13861_v35, %v8826_v58  ;;  %v8836_v35 = vunpack.i.l.bf16 %v14190_v25  ;;  %v5580_v25 = vsel %vm2239_vm3, %v5577_v3, %v5579_v4 }
 0xada   :  { %v14266_v24 = vsel %vm16130_vm4, %v5194_v23, 0.0  ;;  %v8830_v40 = vpop.permute.xlu1 %8829  ;;  %vm16134_vm4 = vcmask 1046528   ;;  %v9023_v22 = vpack.i.bf16 %v5582_v61, %v5580_v25  ;;  %v5649_v12 = vsel %vm2310_vm5, %v5646_v9, %v5648_v19 }
 0xadb   :  { %v8832_v16 = vunpack.i.h.bf16 %v8830_v40  ;;  %v8831_v56 = vunpack.i.l.bf16 %v8830_v40  ;;  %v5238_v52 = vrot.slane %v14266_v24, 1  ;;  %v8857_v43 = vunpack.i.h.bf16 %v14255_v5 }
 0xadc   :  { %v9028_v58 = vpack.i.bf16 %v5651_v45, %v5649_v12  ;;  %v8856_v3 = vunpack.i.l.bf16 %v14255_v5  ;;  %vm16135_vm10 = vcmask 523264   ;;  %vm16137_vm12 = vcmask 654336  }
 0xadd   :  { %v5712_v59 = vsel %vm918_vm11, %v5698_v60, %v8832_v16  ;;  %v5711_v42 = vsel %vm918_vm11, %v5697_v2, %v8831_v56  ;;  %v5239_v63 = vsel %vm16134_vm4, %v5236_v21, %v5238_v52  ;;  %vm16136_vm14 = vmmov %vm16135_vm10  ;;  %v5445_v60 = vrot.slane %v14266_v24, 4  ;;  %v8880_v29 = vpop.permute.xlu2 %8879 }
 0xade   :  { %9019 = vrot.lane.b32.xlu0 %v9018_v41, %s9857_s19  ;;  %9014 = vrot.lane.b32.xlu2 %v9013_v51, %s9858_s20  ;;  %v5726_v53 = vsel %vm948_vm13, %v5712_v59, %v8837_v14  ;;  %v5725_v48 = vsel %vm948_vm13, %v5711_v42, %v8836_v35  ;;  %v9033_v13 = vpack.i.bf16 %v5238_v52, %v5239_v63  ;;  %vm16138_vm9 = vmmov %vm16137_vm12  ;;  %v5376_v9 = vrot.slane %v14266_v24, 3 }
 0xadf   :  { %9009 = vrot.lane.b32.xlu1 %v9008_v46, %s9853_s15  ;;  %v5739_v23 = vsel %vm16135_vm10, %v5725_v48, %v8841_v37  ;;  %v5740_v21 = vsel %vm16136_vm14, %v5726_v53, %v8842_v39  ;;  %vm16139_vm4 = vcmask 785408   ;;  %v5307_v5 = vrot.slane %v14266_v24, 2  ;;  %v16146_v53 = vld [vmem:[#allocation11_spill] sm:$0xff] }
 0xae0   :  { %vm16140_vm8 = vmmov %vm16139_vm4  ;;  %vm16141_vm10 = vcmask 916480   ;;  %v5446_v41 = vsel %vm165_vm0, %v5443_v27, %v5445_v60  ;;  %v5652_v14 = vrot.slane %v14266_v24, 7  ;;  %v5583_v35 = vrot.slane %v14266_v24, 6 }
 0xae1   :  { %v14306_v44 = vpop.permute.xlu0 %8869  ;;  %vm16142_vm14 = vmmov %vm16141_vm10  ;;  %v5308_v46 = vsel %vm1178_vm15, %v5305_v17, %v5307_v5  ;;  %v9048_v59 = vpack.i.bf16 %v5445_v60, %v5446_v41  ;;  %v5514_v27 = vrot.slane %v14266_v24, 5  ;;  %v8867_v61 = vunpack.i.h.bf16 %v14284_v38 }
 0xae2   :  { %v8845_v47 = vpop.permute.xlu1 %8844  ;;  %v9038_v19 = vpack.i.bf16 %v5307_v5, %v5308_v46  ;;  %v5653_v45 = vsel %vm2310_vm5, %v5650_v33, %v5652_v14  ;;  %v5654_v48 = vsel %vm2310_vm5, %v5652_v14, %v16146_v53  ;;  %v8872_v37 = vunpack.i.h.bf16 %v14306_v44 }
 0xae3   :  { %v8847_v0 = vunpack.i.h.bf16 %v8845_v47  ;;  %v8846_v15 = vunpack.i.l.bf16 %v8845_v47  ;;  %v8871_v33 = vunpack.i.l.bf16 %v14306_v44  ;;  %v9063_v12 = vpack.i.bf16 %v5654_v48, %v5653_v45 }
 0xae5   :  { %v5753_v18 = vsel %vm16137_vm12, %v5739_v23, %v8846_v15  ;;  %v5754_v1 = vsel %vm16138_vm9, %v5740_v21, %v8847_v0  ;;  %vm16144_vm12 = vcmask 130048   ;;  %v8881_v23 = vunpack.i.l.bf16 %v8880_v29 }
 0xae6   :  { %v5767_v40 = vsel %vm16139_vm4, %v5753_v18, %v8851_v11  ;;  %v5768_v30 = vsel %vm16140_vm8, %v5754_v1, %v8852_v6  ;;  %9034 = vrot.lane.b32.xlu0 %v9033_v13, %s9849_s11  ;;  %9029 = vrot.lane.b32.xlu2 %v9028_v58, %s9855_s6  ;;  %vm16143_vm8 = vcmask 1044480   ;;  %vm16145_vm9 = vmmov %vm16144_vm12  ;;  %v8866_v6 = vunpack.i.l.bf16 %v14284_v38  ;;  %v8895_v11 = vpop.permute.xlu2 %8894 }
 0xae7   :  { %v5781_v16 = vsel %vm16141_vm10, %v5767_v40, %v8856_v3  ;;  %v5782_v56 = vsel %vm16142_vm14, %v5768_v30, %v8857_v43  ;;  %9024 = vrot.lane.b32.xlu1 %v9023_v22, %s9856_s18  ;;  %v5377_v51 = vsel %vm16143_vm8, %v5374_v10, %v5376_v9  ;;  %vm16147_vm4 = vcmask 1042432  }
 0xae8   :  { %v5795_v31 = vpack.c.bf16 %v5782_v56, %v5781_v16  ;;  %v9043_v42 = vpack.i.bf16 %v5376_v9, %v5377_v51  ;;  %v5515_v38 = vsel %vm16147_vm4, %v5512_v50, %v5514_v27  ;;  %vm16148_vm10 = vcmask 523264  }
 0xae9   :  { %v8885_v54 = vpop.permute.xlu0 %8884  ;;  %v9053_v15 = vpack.i.bf16 %v5514_v27, %v5515_v38  ;;  %vm16149_vm14 = vmmov %vm16148_vm10  ;;  %v8882_v50 = vunpack.i.h.bf16 %v8880_v29  ;;  %vm16150_vm8 = vcmask 654336   ;;  %v8897_v41 = vunpack.i.h.bf16 %v8895_v11 }
 0xaea   :  { %v8860_v2 = vpop.permute.xlu1 %8859  ;;  %5888 = vmatmul.bf16.vlgmr.msra.gmra.mxu1 %v5795_v31  ;;  %v8887_v13 = vunpack.i.h.bf16 %v8885_v54  ;;  %v8886_v18 = vunpack.i.l.bf16 %v8885_v54  ;;  %v8896_v51 = vunpack.i.l.bf16 %v8895_v11 }
 0xaeb   :  { %v8862_v4 = vunpack.i.h.bf16 %v8860_v2  ;;  %v8861_v52 = vunpack.i.l.bf16 %v8860_v2 }
 0xaed   :  { %v5700_v10 = vsel %vm16144_vm12, %v13938_v36, %v8862_v4  ;;  %v5699_v17 = vsel %vm16145_vm9, %v13854_v62, %v8861_v52  ;;  %v5584_v36 = vsel %vm2239_vm3, %v5581_v8, %v5583_v35  ;;  %vm16151_vm12 = vmmov %vm16150_vm8  ;;  %vm16152_vm9 = vcmask 785408  }
 0xaee   :  { %9049 = vrot.lane.b32.xlu0 %v9048_v59, %s9858_s20  ;;  %9044 = vrot.lane.b32.xlu2 %v9043_v42, %s9853_s15  ;;  %v5714_v62 = vsel %vm918_vm11, %v5700_v10, %v8867_v61  ;;  %v5713_v25 = vsel %vm918_vm11, %v5699_v17, %v8866_v6  ;;  %v9058_v43 = vpack.i.bf16 %v5583_v35, %v5584_v36  ;;  %v8910_v60 = vpop.permute.xlu2 %8909  ;;  %vm16153_vm4 = vmmov %vm16152_vm9 }
 0xaef   :  { %9039 = vrot.lane.b32.xlu1 %v9038_v19, %s9851_s13  ;;  %v5727_v8 = vsel %vm948_vm13, %v5713_v25, %v8871_v33  ;;  %v5728_v0 = vsel %vm948_vm13, %v5714_v62, %v8872_v37  ;;  %v8912_v61 = vunpack.i.h.bf16 %v8910_v60  ;;  %v8911_v6 = vunpack.i.l.bf16 %v8910_v60 }
 0xaf1   :  { %v8900_v39 = vpop.permute.xlu0 %8899 }
 0xaf2   :  { %v8875_v63 = vpop.permute.xlu1 %8874  ;;  %v8902_v2 = vunpack.i.h.bf16 %v8900_v39  ;;  %v8901_v46 = vunpack.i.l.bf16 %v8900_v39 }
 0xaf3   :  { %v8877_v47 = vunpack.i.h.bf16 %v8875_v63  ;;  %v8876_v22 = vunpack.i.l.bf16 %v8875_v63 }
 0xaf5   :  { %v5741_v58 = vsel %vm16148_vm10, %v5727_v8, %v8876_v22  ;;  %v5742_v3 = vsel %vm16149_vm14, %v5728_v0, %v8877_v47  ;;  %vm16154_vm10 = vcmask 916480  }
 0xaf6   :  { %9064 = vrot.lane.b32.xlu0 %v9063_v12, %s9855_s6  ;;  %9059 = vrot.lane.b32.xlu2 %v9058_v43, %s9856_s18  ;;  %v5755_v44 = vsel %vm16150_vm8, %v5741_v58, %v8881_v23  ;;  %v5756_v21 = vsel %vm16151_vm12, %v5742_v3, %v8882_v50  ;;  %vm16155_vm14 = vmmov %vm16154_vm10  ;;  %vm16156_vm8 = vcmask 130048   ;;  %v8925_v19 = vpop.permute.xlu2 %8924 }
 0xaf7   :  { %9054 = vrot.lane.b32.xlu1 %v9053_v15, %s9857_s19  ;;  %v5769_v5 = vsel %vm16152_vm9, %v5755_v44, %v8886_v18  ;;  %v5770_v16 = vsel %vm16153_vm4, %v5756_v21, %v8887_v13  ;;  %v5702_v59 = vsel %vm16156_vm8, %v13999_v55, %v8897_v41  ;;  %vm16157_vm12 = vmmov %vm16156_vm8  ;;  %vm16158_vm9 = vcmask 523264  }
 0xaf8   :  { %v5701_v42 = vsel %vm16157_vm12, %v13930_v28, %v8896_v51  ;;  %v5716_v14 = vsel %vm918_vm11, %v5702_v59, %v8902_v2  ;;  %vm16159_vm4 = vmmov %vm16158_vm9  ;;  %v8927_v62 = vunpack.i.h.bf16 %v8925_v19  ;;  %v8926_v25 = vunpack.i.l.bf16 %v8925_v19 }
 0xaf9   :  { %v8915_v30 = vpop.permute.xlu0 %8914  ;;  %v5715_v35 = vsel %vm918_vm11, %v5701_v42, %v8901_v46  ;;  %vm16162_vm8 = vcmask 785408  }
 0xafa   :  { %v8890_v1 = vpop.permute.xlu1 %8889  ;;  %v8917_v55 = vunpack.i.h.bf16 %v8915_v30  ;;  %v8916_v53 = vunpack.i.l.bf16 %v8915_v30  ;;  %vm16163_vm12 = vmmov %vm16162_vm8 }
 0xafb   :  { %v8892_v9 = vunpack.i.h.bf16 %v8890_v1  ;;  %v8891_v40 = vunpack.i.l.bf16 %v8890_v1 }
 0xafd   :  { %v5783_v56 = vsel %vm16154_vm10, %v5769_v5, %v8891_v40  ;;  %v5784_v29 = vsel %vm16155_vm14, %v5770_v16, %v8892_v9  ;;  %vm16160_vm10 = vcmask 654336  }
 0xafe   :  { %v5796_v31 = vpack.c.bf16 %v5784_v29, %v5783_v56  ;;  %vm16161_vm14 = vmmov %vm16160_vm10  ;;  %v8940_v22 = vpop.permute.xlu2 %8939 }
 0xaff   :  { %v8942_v13 = vunpack.i.h.bf16 %v8940_v22  ;;  %v8941_v18 = vunpack.i.l.bf16 %v8940_v22 }
 0xb00   :  { %5893 = vmatmul.bf16.gmra.mxu1 %v5796_v31 }
 0xb01   :  { %v8930_v17 = vpop.permute.xlu0 %8929 }
 0xb02   :  { %v8905_v54 = vpop.permute.xlu1 %8904  ;;  %v8932_v8 = vunpack.i.h.bf16 %v8930_v17  ;;  %v8931_v0 = vunpack.i.l.bf16 %v8930_v17 }
 0xb03   :  { %v8907_v4 = vunpack.i.h.bf16 %v8905_v54  ;;  %v8906_v52 = vunpack.i.l.bf16 %v8905_v54 }
 0xb05   :  { %v5729_v27 = vsel %vm948_vm13, %v5715_v35, %v8906_v52  ;;  %v5730_v10 = vsel %vm948_vm13, %v5716_v14, %v8907_v4 }
 0xb06   :  { %v5743_v11 = vsel %vm16158_vm9, %v5729_v27, %v8911_v6  ;;  %v5744_v45 = vsel %vm16159_vm4, %v5730_v10, %v8912_v61  ;;  %vm16165_vm9 = vmmov %vm16164_vm1  ;;  %vm16166_vm4 = vcmask 130048   ;;  %v8955_v1 = vpop.permute.xlu2 %8954 }
 0xb07   :  { %v5757_v63 = vsel %vm16160_vm10, %v5743_v11, %v8916_v53  ;;  %v5758_v39 = vsel %vm16161_vm14, %v5744_v45, %v8917_v55  ;;  %v5704_v50 = vsel %vm16166_vm4, %v14059_v20, %v8932_v8  ;;  %vm16167_vm10 = vmmov %vm16166_vm4  ;;  %v8957_v29 = vunpack.i.h.bf16 %v8955_v1 }
 0xb08   :  { %v5703_v23 = vsel %vm16167_vm10, %v13989_v7, %v8931_v0  ;;  %v8956_v31 = vunpack.i.l.bf16 %v8955_v1  ;;  %vm16174_vm10 = vcmask 916480  }
 0xb09   :  { %v8945_v43 = vpop.permute.xlu0 %8944  ;;  %vm16175_vm2 = vmmov %vm16174_vm10 }
 0xb0a   :  { %v8920_v48 = vpop.permute.xlu1 %8919  ;;  %v8947_v40 = vunpack.i.h.bf16 %v8945_v43  ;;  %v8946_v30 = vunpack.i.l.bf16 %v8945_v43 }
 0xb0b   :  { %v8922_v28 = vunpack.i.h.bf16 %v8920_v48  ;;  %v8921_v36 = vunpack.i.l.bf16 %v8920_v48 }
 0xb0d   :  { %v5771_v38 = vsel %vm16162_vm8, %v5757_v63, %v8921_v36  ;;  %v5772_v37 = vsel %vm16163_vm12, %v5758_v39, %v8922_v28  ;;  %vm16170_vm8 = vcmask 654336  }
 0xb0e   :  { %v5785_v33 = vsel %vm16164_vm1, %v5771_v38, %v8926_v25  ;;  %v5786_v47 = vsel %vm16165_vm9, %v5772_v37, %v8927_v62  ;;  %vm16168_vm1 = vcmask 523264   ;;  %vm16171_vm12 = vmmov %vm16170_vm8  ;;  %vm16172_vm9 = vcmask 785408  }
 0xb0f   :  { %v5797_v12 = vpack.c.bf16 %v5786_v47, %v5785_v33  ;;  %vm16169_vm14 = vmmov %vm16168_vm1 }
 0xb10   :  { %vm16173_vm4 = vmmov %vm16172_vm9 }
 0xb11   :  { %5898 = vmatmul.bf16.gmra.mxu1 %v5797_v12  ;;  %v8960_v5 = vpop.permute.xlu0 %8959 }
 0xb12   :  { %v8935_v15 = vpop.permute.xlu1 %8934  ;;  %v8962_v51 = vunpack.i.h.bf16 %v8960_v5  ;;  %v8961_v2 = vunpack.i.l.bf16 %v8960_v5 }
 0xb13   :  { %v8937_v58 = vunpack.i.h.bf16 %v8935_v15  ;;  %v8936_v3 = vunpack.i.l.bf16 %v8935_v15 }
 0xb15   :  { %v5717_v44 = vsel %vm918_vm11, %v5703_v23, %v8936_v3  ;;  %v5718_v21 = vsel %vm918_vm11, %v5704_v50, %v8937_v58 }
 0xb16   :  { %v5731_v60 = vsel %vm948_vm13, %v5717_v44, %v8941_v18  ;;  %v5732_v9 = vsel %vm948_vm13, %v5718_v21, %v8942_v13 }
 0xb17   :  { %v5745_v7 = vsel %vm16168_vm1, %v5731_v60, %v8946_v30  ;;  %v5746_v41 = vsel %vm16169_vm14, %v5732_v9, %v8947_v40  ;;  %vm16176_vm1 = vcmask 130048  }
 0xb18   :  { %vm16177_vm14 = vmmov %vm16176_vm1 }
 0xb1a   :  { %v8950_v16 = vpop.permute.xlu1 %8949 }
 0xb1b   :  { %v8952_v56 = vunpack.i.h.bf16 %v8950_v16  ;;  %v8951_v20 = vunpack.i.l.bf16 %v8950_v16 }
 0xb1d   :  { %v5759_v46 = vsel %vm16170_vm8, %v5745_v7, %v8951_v20  ;;  %v5760_v54 = vsel %vm16171_vm12, %v5746_v41, %v8952_v56 }
 0xb1e   :  { %v5773_v4 = vsel %vm16172_vm9, %v5759_v46, %v8956_v31  ;;  %v5774_v52 = vsel %vm16173_vm4, %v5760_v54, %v8957_v29  ;;  %vm16180_vm9 = vmmov %vm16171_vm12 }
 0xb1f   :  { %v5787_v59 = vsel %vm16174_vm10, %v5773_v4, %v8961_v2  ;;  %v5788_v42 = vsel %vm16175_vm2, %v5774_v52, %v8962_v51  ;;  %vm16178_vm2 = vcmask 523264   ;;  %vm16181_vm10 = vmmov %vm16173_vm4 }
 0xb20   :  { %v5798_v19 = vpack.c.bf16 %v5788_v42, %v5787_v59  ;;  %v8970_v14 = vpop.permute.xlu2 %8969  ;;  %vm16179_vm8 = vmmov %vm16178_vm2 }
 0xb21   :  { %v8972_v45 = vunpack.i.h.bf16 %v8970_v14  ;;  %v8971_v55 = vunpack.i.l.bf16 %v8970_v14 }
 0xb22   :  { %5903 = vmatmul.bf16.gmra.mxu1 %v5798_v19 }
 0xb28   :  { %v8985_v35 = vpop.permute.xlu2 %8984 }
 0xb29   :  { %v8987_v47 = vunpack.i.h.bf16 %v8985_v35  ;;  %v8986_v22 = vunpack.i.l.bf16 %v8985_v35 }
 0xb30   :  { %v9000_v53 = vpop.permute.xlu2 %8999 }
 0xb31   :  { %v9002_v60 = vunpack.i.h.bf16 %v9000_v53  ;;  %v9001_v9 = vunpack.i.l.bf16 %v9000_v53 }
 0xb38   :  { %v8975_v27 = vpop.permute.xlu0 %8974  ;;  %v9015_v3 = vpop.permute.xlu2 %9014 }
 0xb39   :  { %v8965_v10 = vpop.permute.xlu1 %8964  ;;  %v8977_v25 = vunpack.i.h.bf16 %v8975_v27  ;;  %v8976_v63 = vunpack.i.l.bf16 %v8975_v27  ;;  %v9017_v54 = vunpack.i.h.bf16 %v9015_v3  ;;  %v9016_v4 = vunpack.i.l.bf16 %v9015_v3 }
 0xb3a   :  { %v8967_v17 = vunpack.i.h.bf16 %v8965_v10  ;;  %v8966_v61 = vunpack.i.l.bf16 %v8965_v10 }
 0xb3c   :  { %v5706_v6 = vsel %vm16176_vm1, %v14152_v26, %v8967_v17  ;;  %v5705_v11 = vsel %vm16177_vm14, %v14049_v32, %v8966_v61  ;;  %vm16182_vm1 = vcmask 916480  }
 0xb3d   :  { %v5719_v28 = vsel %vm918_vm11, %v5705_v11, %v8971_v55  ;;  %v5720_v36 = vsel %vm918_vm11, %v5706_v6, %v8972_v45  ;;  %vm16183_vm14 = vmmov %vm16182_vm1 }
 0xb3e   :  { %v5734_v37 = vsel %vm948_vm13, %v5720_v36, %v8977_v25  ;;  %v5733_v26 = vsel %vm948_vm13, %v5719_v28, %v8976_v63 }
 0xb40   :  { %v8990_v48 = vpop.permute.xlu0 %8989  ;;  %v9030_v7 = vpop.permute.xlu2 %9029 }
 0xb41   :  { %v8980_v62 = vpop.permute.xlu1 %8979  ;;  %v8992_v0 = vunpack.i.h.bf16 %v8990_v48  ;;  %v8991_v15 = vunpack.i.l.bf16 %v8990_v48  ;;  %v9032_v27 = vunpack.i.h.bf16 %v9030_v7  ;;  %v9031_v10 = vunpack.i.l.bf16 %v9030_v7 }
 0xb42   :  { %v8982_v39 = vunpack.i.h.bf16 %v8980_v62  ;;  %v8981_v38 = vunpack.i.l.bf16 %v8980_v62 }
 0xb44   :  { %v5747_v33 = vsel %vm16178_vm2, %v5733_v26, %v8981_v38  ;;  %v5748_v32 = vsel %vm16179_vm8, %v5734_v37, %v8982_v39  ;;  %vm16184_vm2 = vcmask 130048  }
 0xb45   :  { %v5761_v12 = vsel %vm16171_vm12, %v5747_v33, %v8986_v22  ;;  %v5762_v43 = vsel %vm16180_vm9, %v5748_v32, %v8987_v47  ;;  %v5708_v29 = vsel %vm16184_vm2, %v14203_v34, %v9002_v60  ;;  %vm16185_vm8 = vmmov %vm16184_vm2  ;;  %vm16186_vm12 = vcmask 523264  }
 0xb46   :  { %v5775_v44 = vsel %vm16173_vm4, %v5761_v12, %v8991_v15  ;;  %v5776_v21 = vsel %vm16181_vm10, %v5762_v43, %v8992_v0  ;;  %v5707_v31 = vsel %vm16185_vm8, %v14163_v49, %v9001_v9  ;;  %vm16187_vm9 = vmmov %vm16186_vm12  ;;  %vm16188_vm4 = vcmask 654336  }
 0xb47   :  { %vm16189_vm10 = vmmov %vm16188_vm4  ;;  %vm16192_vm2 = vcmask 916480  }
 0xb48   :  { %v9005_v8 = vpop.permute.xlu0 %9004  ;;  %vm16193_vm8 = vmmov %vm16192_vm2  ;;  %v9045_v53 = vpop.permute.xlu2 %9044 }
 0xb49   :  { %v8995_v58 = vpop.permute.xlu1 %8994  ;;  %v9007_v40 = vunpack.i.h.bf16 %v9005_v8  ;;  %v9006_v30 = vunpack.i.l.bf16 %v9005_v8  ;;  %v9047_v32 = vunpack.i.h.bf16 %v9045_v53  ;;  %v9046_v47 = vunpack.i.l.bf16 %v9045_v53 }
 0xb4a   :  { %v8997_v50 = vunpack.i.h.bf16 %v8995_v58  ;;  %v8996_v23 = vunpack.i.l.bf16 %v8995_v58 }
 0xb4b   :  { %v5722_v41 = vsel %vm918_vm11, %v5708_v29, %v9007_v40  ;;  %v5721_v51 = vsel %vm918_vm11, %v5707_v31, %v9006_v30  ;;  %v5819_v30 = vld [vmem:[%s15741_s2 + $0xb8] sm:$0xff] }
 0xb4c   :  { %v5789_v13 = vsel %vm16182_vm1, %v5775_v44, %v8996_v23  ;;  %v5790_v18 = vsel %vm16183_vm14, %v5776_v21, %v8997_v50  ;;  %vm16190_vm1 = vcmask 785408  }
 0xb4d   :  { %v5799_v1 = vpack.c.bf16 %v5790_v18, %v5789_v13  ;;  %vm16191_vm14 = vmmov %vm16190_vm1 }
 0xb4f   :  { %5908 = vmatmul.bf16.gmra.mxu1 %v5799_v1 }
 0xb50   :  { %v9020_v5 = vpop.permute.xlu0 %9019  ;;  %v9060_v12 = vpop.permute.xlu2 %9059 }
 0xb51   :  { %v9010_v16 = vpop.permute.xlu1 %9009  ;;  %v9022_v34 = vunpack.i.h.bf16 %v9020_v5  ;;  %v9021_v19 = vunpack.i.l.bf16 %v9020_v5  ;;  %v9062_v23 = vunpack.i.h.bf16 %v9060_v12  ;;  %v9061_v44 = vunpack.i.l.bf16 %v9060_v12 }
 0xb52   :  { %v9012_v56 = vunpack.i.h.bf16 %v9010_v16  ;;  %v9011_v20 = vunpack.i.l.bf16 %v9010_v16 }
 0xb54   :  { %v5735_v2 = vsel %vm948_vm13, %v5721_v51, %v9011_v20  ;;  %v5736_v46 = vsel %vm948_vm13, %v5722_v41, %v9012_v56 }
 0xb55   :  { %v5749_v52 = vsel %vm16186_vm12, %v5735_v2, %v9016_v4  ;;  %v5750_v59 = vsel %vm16187_vm9, %v5736_v46, %v9017_v54  ;;  %vm16194_vm12 = vcmask 130048   ;;  %v5820_v54 = vld [vmem:[%s15741_s2 + $0xc0] sm:$0xff] }
 0xb56   :  { %v5763_v17 = vsel %vm16188_vm4, %v5749_v52, %v9021_v19  ;;  %v5764_v61 = vsel %vm16189_vm10, %v5750_v59, %v9022_v34  ;;  %vm16195_vm9 = vmmov %vm16194_vm12  ;;  %vm16196_vm4 = vcmask 523264  }
 0xb57   :  { %vm16197_vm10 = vmmov %vm16196_vm4 }
 0xb58   :  { %v9035_v42 = vpop.permute.xlu0 %9034 }
 0xb59   :  { %v9025_v14 = vpop.permute.xlu1 %9024  ;;  %v9037_v28 = vunpack.i.h.bf16 %v9035_v42  ;;  %v9036_v36 = vunpack.i.l.bf16 %v9035_v42 }
 0xb5a   :  { %v9027_v49 = vunpack.i.h.bf16 %v9025_v14  ;;  %v9026_v35 = vunpack.i.l.bf16 %v9025_v14 }
 0xb5b   :  { %v5710_v38 = vsel %vm16194_vm12, %v14266_v24, %v9037_v28  ;;  %v5709_v37 = vsel %vm16195_vm9, %v14219_v57, %v9036_v36  ;;  %v5818_v57 = vld [vmem:[%s15741_s2 + $0xb0] sm:$0xff]  ;;  %vm16202_vm12 = vcmask 916480   ;;  %v14486_v36 = vld [vmem:[%s15741_s2 + $0x18] ss:$0 sm:$0xff] }
 0xb5c   :  { %v5777_v6 = vsel %vm16190_vm1, %v5763_v17, %v9026_v35  ;;  %v5778_v11 = vsel %vm16191_vm14, %v5764_v61, %v9027_v49  ;;  %vm16198_vm1 = vcmask 654336   ;;  %vm16203_vm9 = vmmov %vm16202_vm12  ;;  %v5821_v35 = vld [vmem:[%s15741_s2 + $0xc8] sm:$0xff] }
 0xb5d   :  { %v5791_v45 = vsel %vm16192_vm2, %v5777_v6, %v9031_v10  ;;  %v5792_v55 = vsel %vm16193_vm8, %v5778_v11, %v9032_v27  ;;  %vm16199_vm14 = vmmov %vm16198_vm1  ;;  %vm16200_vm2 = vcmask 785408   ;;  %v14479_v6 = vld [vmem:[%s15741_s2 + $0x10] ss:$0 sm:$0xff] }
 0xb5e   :  { %v5800_v48 = vpack.c.bf16 %v5792_v55, %v5791_v45  ;;  %vm16201_vm8 = vmmov %vm16200_vm2 }
 0xb60   :  { %5913 = vmatmul.bf16.gmra.mxu1 %v5800_v48  ;;  %v9050_v62 = vpop.permute.xlu0 %9049 }
 0xb61   :  { %v9040_v25 = vpop.permute.xlu1 %9039  ;;  %v9052_v0 = vunpack.i.h.bf16 %v9050_v62  ;;  %v9051_v15 = vunpack.i.l.bf16 %v9050_v62 }
 0xb62   :  { %v9042_v63 = vunpack.i.h.bf16 %v9040_v25  ;;  %v9041_v39 = vunpack.i.l.bf16 %v9040_v25  ;;  %v5822_v25 = vld [vmem:[%s15741_s2 + $0xd0] sm:$0xff] }
 0xb64   :  { %v5723_v26 = vsel %vm918_vm11, %v5709_v37, %v9041_v39  ;;  %v5724_v33 = vsel %vm918_vm11, %v5710_v38, %v9042_v63 }
 0xb65   :  { %v5737_v43 = vsel %vm948_vm13, %v5723_v26, %v9046_v47  ;;  %v5738_v8 = vsel %vm948_vm13, %v5724_v33, %v9047_v32 }
 0xb66   :  { %v5751_v21 = vsel %vm16196_vm4, %v5737_v43, %v9051_v15  ;;  %v5752_v13 = vsel %vm16197_vm10, %v5738_v8, %v9052_v0 }
 0xb67   :  { %v5889_v22 = vpop.f32.mrf.mxu1 }
 0xb68   :  { %v9065_v3 = vpop.permute.xlu0 %9064  ;;  %v5890_v40 = vadd.f32 %v5889_v22, %v5818_v57 }
 0xb69   :  { %v9055_v58 = vpop.permute.xlu1 %9054  ;;  %v9067_v60 = vunpack.i.h.bf16 %v9065_v3  ;;  %v9066_v9 = vunpack.i.l.bf16 %v9065_v3 }
 0xb6a   :  { %v9057_v24 = vunpack.i.h.bf16 %v9055_v58  ;;  %v9056_v50 = vunpack.i.l.bf16 %v9055_v58  ;;  %v5938_v41 = vmin.f32 %v5890_v40, 0.0  ;;  %vm5924_vm10 = vcmp.gt.f32.partialorder %v5890_v40, 0.0 }
 0xb6c   :  { %v5765_v18 = vsel %vm16198_vm1, %v5751_v21, %v9056_v50  ;;  %v5766_v1 = vsel %vm16199_vm14, %v5752_v13, %v9057_v24  ;;  %v5952_v46 = vmul.f32 1.442695, %v5938_v41  ;;  %v5823_v24 = vld [vmem:[%s15741_s2 + $0xd8] sm:$0xff] }
 0xb6d   :  { %v5779_v5 = vsel %vm16200_vm2, %v5765_v18, %v9061_v44  ;;  %v5780_v16 = vsel %vm16201_vm8, %v5766_v1, %v9062_v23  ;;  %vm16204_vm2 = vcmask 1046528  }
 0xb6e   :  { %v5793_v56 = vsel %vm16202_vm12, %v5779_v5, %v9066_v9  ;;  %v5794_v20 = vsel %vm16203_vm9, %v5780_v16, %v9067_v60  ;;  %vm16205_vm8 = vmmov %vm16204_vm2  ;;  %vm16206_vm9 = vcmask 1044480  }
 0xb6f   :  { %v5891_v29 = vpop.f32.mrf.mxu1  ;;  %v5801_v31 = vpack.c.bf16 %v5794_v20, %v5793_v56 }
 0xb70   :  { %v5892_v7 = vadd.f32 %v5891_v29, %v5819_v30 }
 0xb71   :  { %5918 = vmatmul.bf16.gmra.mxu1 %v5801_v31 }
 0xb72   :  { %v5939_v51 = vmin.f32 %v5892_v7, 0.0  ;;  %vm5925_vm4 = vcmp.gt.f32.partialorder %v5892_v7, 0.0 }
 0xb74   :  { %v5954_v2 = vmul.f32 1.442695, %v5939_v51 }
 0xb76   :  { %9782 = vpow2.f32 %v5954_v2 }
 0xb77   :  { %9784 = vpow2.f32 %v5952_v46 }
 0xb7c   :  { %v9783_v52 = vpop.eup %9782 }
 0xb7d   :  { %v5894_v4 = vpop.f32.mrf.mxu1  ;;  %v9785_v42 = vpop.eup %9784  ;;  %v7586_v19 = vadd.f32 -1.0, %v9783_v52 }
 0xb7e   :  { %v5895_v59 = vadd.f32 %v5894_v4, %v5820_v54  ;;  %v7585_v14 = vadd.f32 -1.0, %v9785_v42 }
 0xb7f   :  { %v5995_v27 = vsel %vm5925_vm4, %v5892_v7, %v7586_v19  ;;  %vm16207_vm4 = vmmov %vm16206_vm9 }
 0xb80   :  { %v5940_v34 = vmin.f32 %v5895_v59, 0.0  ;;  %v5994_v17 = vsel %vm5924_vm10, %v5890_v40, %v7585_v14  ;;  %v6009_v11 = vmul.f32 %v14479_v6, %v5995_v27  ;;  %vm5926_vm1 = vcmp.gt.f32.partialorder %v5895_v59, 0.0 }
 0xb81   :  { %v6008_v55 = vmul.f32 %v14479_v6, %v5994_v17  ;;  %vm16209_vm10 = vcmask 1042432  }
 0xb82   :  { %v5956_v49 = vmul.f32 1.442695, %v5940_v34  ;;  %v14489_v62 = vadd.f32 %v14486_v36, %v6009_v11  ;;  %v5824_v34 = vld [vmem:[%s15741_s2 + $0xe0] sm:$0xff] }
 0xb83   :  { %v14495_v63 = vadd.f32 %v14486_v36, %v6008_v55 }
 0xb84   :  { %9786 = vpow2.f32 %v5956_v49  ;;  %v6406_v32 = vrot.slane %v14489_v62, 7  ;;  %v6049_v47 = vrot.slane %v14489_v62, 1  ;;  %v6108_v56 = vrot.slane %v14489_v62, 2 }
 0xb85   :  { %v5896_v10 = vpop.f32.mrf.mxu1  ;;  %v6405_v12 = vrot.slane %v14495_v63, 7  ;;  %v6048_v15 = vrot.slane %v14495_v63, 1  ;;  %v6167_v29 = vrot.slane %v14489_v62, 3  ;;  %v6107_v41 = vrot.slane %v14495_v63, 2 }
 0xb86   :  { %v5897_v61 = vadd.f32 %v5896_v10, %v5821_v35 }
 0xb87   :  { %v6407_v50 = vsel %vm2310_vm5, %v6405_v12, %v6406_v32  ;;  %v6050_v44 = vsel %vm16204_vm2, %v6048_v15, %v6049_v47  ;;  %v6109_v42 = vsel %vm1178_vm15, %v6107_v41, %v6108_v56 }
 0xb88   :  { %v5941_v45 = vmin.f32 %v5897_v61, 0.0  ;;  %vm5927_vm14 = vcmp.gt.f32.partialorder %v5897_v61, 0.0 }
 0xb8a   :  { %v9787_v53 = vpop.eup %9786  ;;  %v5958_v48 = vmul.f32 1.442695, %v5941_v45 }
 0xb8b   :  { %v7587_v28 = vadd.f32 -1.0, %v9787_v53  ;;  %v6345_v53 = vrot.slane %v14489_v62, 6 }
 0xb8c   :  { %9788 = vpow2.f32 %v5958_v48 }
 0xb8d   :  { %v5996_v39 = vsel %vm5926_vm1, %v5895_v59, %v7587_v28  ;;  %v6285_v28 = vrot.slane %v14489_v62, 5  ;;  %vm16210_vm1 = vmmov %vm16209_vm10 }
 0xb8e   :  { %v6010_v38 = vmul.f32 %v14479_v6, %v5996_v39  ;;  %v5899_v37 = vpop.f32.mrf.mxu1 }
 0xb8f   :  { %v5900_v26 = vadd.f32 %v5899_v37, %v5822_v25  ;;  %v6166_v37 = vrot.slane %v14495_v63, 3 }
 0xb90   :  { %v14499_v33 = vadd.f32 %v14486_v36, %v6010_v38 }
 0xb91   :  { %v5942_v22 = vmin.f32 %v5900_v26, 0.0  ;;  %vm5928_vm12 = vcmp.gt.f32.partialorder %v5900_v26, 0.0 }
 0xb92   :  { %v9789_v43 = vpop.eup %9788  ;;  %v9068_v8 = vpack.i.bf16 %v14499_v33, %v14489_v62  ;;  %v6408_v0 = vrot.slane %v14499_v33, 7  ;;  %v6051_v58 = vrot.slane %v14499_v33, 1  ;;  %v6169_v30 = vrot.slane %v14499_v33, 3 }
 0xb93   :  { %v7588_v3 = vadd.f32 -1.0, %v9789_v43  ;;  %v5960_v57 = vmul.f32 1.442695, %v5942_v22  ;;  %v6110_v5 = vrot.slane %v14499_v33, 2  ;;  %v6347_v11 = vrot.slane %v14499_v33, 6 }
 0xb94   :  { %9069 = vrot.lane.b32.xlu0 %v9068_v8, %s9858_s20  ;;  %v14517_v23 = vsel %vm2310_vm5, %v6406_v32, %v6408_v0  ;;  %v14523_v21 = vsel %vm16205_vm8, %v6049_v47, %v6051_v58  ;;  %v6170_v46 = vsel %vm16206_vm9, %v6167_v29, %v6169_v30  ;;  %v6287_v55 = vrot.slane %v14499_v33, 5 }
 0xb95   :  { %v5997_v13 = vsel %vm5927_vm14, %v5897_v61, %v7588_v3  ;;  %9790 = vpow2.f32 %v5960_v57  ;;  %v9103_v18 = vpack.i.bf16 %v14517_v23, %v6407_v50  ;;  %v9073_v1 = vpack.i.bf16 %v14523_v21, %v6050_v44  ;;  %vm16211_vm14 = vmmov %vm16207_vm4 }
 0xb96   :  { %v6011_v60 = vmul.f32 %v14479_v6, %v5997_v13  ;;  %v5901_v9 = vpop.f32.mrf.mxu1  ;;  %v6111_v54 = vsel %vm1178_vm15, %v6108_v56, %v6110_v5  ;;  %v14585_v32 = vsel %vm2239_vm3, %v6345_v53, %v6347_v11  ;;  %v6288_v12 = vsel %vm16210_vm1, %v6285_v28, %v6287_v55 }
 0xb97   :  { %v5902_v40 = vadd.f32 %v5901_v9, %v5823_v24  ;;  %9104 = vrot.lane.b32.xlu2 %v9103_v18, %s9860_s26  ;;  %9074 = vrot.lane.b32.xlu1 %v9073_v1, %s9848_s10  ;;  %v9078_v27 = vpack.i.bf16 %v6111_v54, %v6109_v42  ;;  %v6168_v43 = vsel %vm16211_vm14, %v6166_v37, %v6167_v29  ;;  %v6228_v13 = vrot.slane %v14499_v33, 4 }
 0xb98   :  { %v14533_v16 = vadd.f32 %v14486_v36, %v6011_v60  ;;  %v9083_v3 = vpack.i.bf16 %v6170_v46, %v6168_v43  ;;  %v6226_v60 = vrot.slane %v14489_v62, 4  ;;  %v6344_v37 = vrot.slane %v14495_v63, 6 }
 0xb99   :  { %v5943_v20 = vmin.f32 %v5902_v40, 0.0  ;;  %vm5929_vm2 = vcmp.gt.f32.partialorder %v5902_v40, 0.0 }
 0xb9a   :  { %v6171_v31 = vrot.slane %v14533_v16, 3  ;;  %v6112_v7 = vrot.slane %v14533_v16, 2  ;;  %v6349_v49 = vrot.slane %v14533_v16, 6  ;;  %v6289_v10 = vrot.slane %v14533_v16, 5 }
 0xb9b   :  { %v9791_v51 = vpop.eup %9790  ;;  %v5962_v2 = vmul.f32 1.442695, %v5943_v20  ;;  %v6410_v18 = vrot.slane %v14533_v16, 7  ;;  %v6053_v1 = vrot.slane %v14533_v16, 1  ;;  %v14615_v56 = vsel %vm165_vm0, %v6226_v60, %v6228_v13 }
 0xb9c   :  { %v7589_v4 = vadd.f32 -1.0, %v9791_v51  ;;  %v14545_v52 = vsel %vm16207_vm4, %v6169_v30, %v6171_v31  ;;  %v14550_v59 = vsel %vm1178_vm15, %v6110_v5, %v6112_v7  ;;  %v14570_v48 = vsel %vm2239_vm3, %v6347_v11, %v6349_v49  ;;  %vm16213_vm4 = vmmov %vm16210_vm1 }
 0xb9d   :  { %9792 = vpow2.f32 %v5962_v2  ;;  %v9118_v19 = vpack.i.bf16 %v14545_v52, %v6170_v46  ;;  %v9113_v14 = vpack.i.bf16 %v14550_v59, %v6111_v54  ;;  %v14579_v38 = vsel %vm16209_vm10, %v6287_v55, %v6289_v10  ;;  %vm16215_vm10 = vmmov %vm16210_vm1 }
 0xb9e   :  { %v5998_v35 = vsel %vm5928_vm12, %v5900_v26, %v7589_v4  ;;  %v9133_v8 = vpack.i.bf16 %v14570_v48, %v14585_v32  ;;  %v9128_v15 = vpack.i.bf16 %v14579_v38, %v6288_v12  ;;  %v6225_v5 = vrot.slane %v14495_v63, 4  ;;  %vm16212_vm12 = vmmov %vm16205_vm8 }
 0xb9f   :  { %v6012_v17 = vmul.f32 %v14479_v6, %v5998_v35  ;;  %v5904_v61 = vpop.f32.mrf.mxu1  ;;  %9119 = vrot.lane.b32.xlu0 %v9118_v19, %s9862_s0  ;;  %9114 = vrot.lane.b32.xlu2 %v9113_v14, %s9857_s19  ;;  %v14620_v29 = vsel %vm2310_vm5, %v6408_v0, %v6410_v18  ;;  %v6054_v41 = vsel %vm16212_vm12, %v6051_v58, %v6053_v1  ;;  %v6284_v14 = vrot.slane %v14495_v63, 5  ;;  %vm16216_vm1 = vmmov %vm16211_vm14 }
 0xba0   :  { %v5905_v45 = vadd.f32 %v5904_v61, %v5824_v34  ;;  %9079 = vrot.lane.b32.xlu1 %v9078_v27, %s9849_s11  ;;  %v6227_v46 = vsel %vm165_vm0, %v6225_v5, %v6226_v60  ;;  %vm16217_vm14 = vmmov %vm16213_vm4  ;;  %v5825_v60 = vld [vmem:[%s15741_s2 + $0xe8] sm:$0xff] }
 0xba1   :  { %v14574_v25 = vadd.f32 %v14486_v36, %v6012_v17  ;;  %v9088_v54 = vpack.i.bf16 %v14615_v56, %v6227_v46  ;;  %v6286_v17 = vsel %vm16213_vm4, %v6284_v14, %v6285_v28  ;;  %vm16220_vm12 = vmmov %vm16216_vm1 }
 0xba2   :  { %v5944_v39 = vmin.f32 %v5905_v45, 0.0  ;;  %vm5930_vm9 = vcmp.gt.f32.partialorder %v5905_v45, 0.0  ;;  %v9093_v11 = vpack.i.bf16 %v6288_v12, %v6286_v17  ;;  %v6346_v12 = vsel %vm2239_vm3, %v6344_v37, %v6345_v53 }
 0xba3   :  { %16208 = vst [vmem:[#allocation14_spill] sm:$0xff] %v14574_v25  ;;  %v9793_v26 = vpop.eup %9792  ;;  %v6412_v24 = vrot.slane %v14574_v25, 7  ;;  %v6055_v50 = vrot.slane %v14574_v25, 1  ;;  %v6114_v4 = vrot.slane %v14574_v25, 2  ;;  %v9098_v43 = vpack.i.bf16 %v14585_v32, %v6346_v12 }
 0xba4   :  { %v7590_v47 = vadd.f32 -1.0, %v9793_v26  ;;  %v5964_v22 = vmul.f32 1.442695, %v5944_v39  ;;  %v6173_v39 = vrot.slane %v14574_v25, 3  ;;  %v6351_v46 = vrot.slane %v14574_v25, 6 }
 0xba5   :  { %v14611_v30 = vsel %vm16205_vm8, %v6053_v1, %v6055_v50  ;;  %v6115_v0 = vsel %vm1178_vm15, %v6112_v7, %v6114_v4  ;;  %v6291_v7 = vrot.slane %v14574_v25, 5  ;;  %v9143_v17 = vpack.i.bf16 %v14574_v25, %v14533_v16 }
 0xba6   :  { %v5999_v57 = vsel %vm5929_vm2, %v5902_v40, %v7590_v47  ;;  %9794 = vpow2.f32 %v5964_v22  ;;  %v14608_v40 = vsel %vm2310_vm5, %v6410_v18, %v6412_v24  ;;  %v9148_v2 = vpack.i.bf16 %v14611_v30, %v6054_v41  ;;  %vm16218_vm2 = vmmov %vm16205_vm8 }
 0xba7   :  { %v6013_v44 = vmul.f32 %v14479_v6, %v5999_v57  ;;  %9134 = vrot.lane.b32.xlu0 %v9133_v8, %s9855_s6  ;;  %9129 = vrot.lane.b32.xlu2 %v9128_v15, %s9863_s28  ;;  %v9178_v51 = vpack.i.bf16 %v14608_v40, %v14620_v29  ;;  %v9153_v27 = vpack.i.bf16 %v6115_v0, %v14550_v59  ;;  %v6232_v8 = vrot.slane %v14574_v25, 4  ;;  %vm16219_vm8 = vmmov %vm16218_vm2  ;;  %v5906_v5 = vpop.f32.mrf.mxu1 }
 0xba8   :  { %9084 = vrot.lane.b32.xlu1 %v9083_v3, %s9850_s12  ;;  %v14660_v28 = vsel %vm16216_vm1, %v6171_v31, %v6173_v39  ;;  %v6292_v26 = vsel %vm16217_vm14, %v6289_v10, %v6291_v7  ;;  %v9108_v18 = vpack.i.bf16 %v6054_v41, %v14523_v21 }
 0xba9   :  { %v14603_v9 = vadd.f32 %v14486_v36, %v6013_v44  ;;  %v9158_v22 = vpack.i.bf16 %v14660_v28, %v14545_v52  ;;  %v6230_v52 = vrot.slane %v14533_v16, 4 }
 0xbab   :  { %v6116_v42 = vrot.slane %v14603_v9, 2  ;;  %v6293_v55 = vrot.slane %v14603_v9, 5  ;;  %v6057_v10 = vrot.slane %v14603_v9, 1  ;;  %v14686_v32 = vsel %vm165_vm0, %v6230_v52, %v6232_v8 }
 0xbac   :  { %v9795_v20 = vpop.eup %9794  ;;  %v6231_v3 = vsel %vm165_vm0, %v6228_v13, %v6230_v52 }
 0xbad   :  { %v7591_v34 = vadd.f32 -1.0, %v9795_v20  ;;  %v6117_v58 = vsel %vm1178_vm15, %v6114_v4, %v6116_v42  ;;  %v14655_v59 = vsel %vm16215_vm10, %v6291_v7, %v6293_v55  ;;  %v6058_v15 = vsel %vm16219_vm8, %v6055_v50, %v6057_v10 }
 0xbae   :  { %v9188_v35 = vpack.i.bf16 %v6117_v58, %v6115_v0  ;;  %v9203_v47 = vpack.i.bf16 %v14655_v59, %v6292_v26  ;;  %v9163_v44 = vpack.i.bf16 %v14686_v32, %v6231_v3  ;;  %v5907_v50 = vadd.f32 %v5906_v5, %v5825_v60 }
 0xbaf   :  { %9179 = vrot.lane.b32.xlu0 %v9178_v51, %s9860_s26  ;;  %9149 = vrot.lane.b32.xlu2 %v9148_v2, %s9848_s10  ;;  %v6000_v19 = vsel %vm5930_vm9, %v5905_v45, %v7591_v34  ;;  %v9168_v20 = vpack.i.bf16 %v6292_v26, %v14579_v38  ;;  %v9123_v51 = vpack.i.bf16 %v6231_v3, %v14615_v56  ;;  %vm16221_vm9 = vmmov %vm16216_vm1  ;;  %v6414_v7 = vrot.slane %v14603_v9, 7 }
 0xbb0   :  { %9089 = vrot.lane.b32.xlu1 %v9088_v54, %s9851_s13  ;;  %v6014_v61 = vmul.f32 %v14479_v6, %v6000_v19  ;;  %v5945_v41 = vmin.f32 %v5907_v50, 0.0  ;;  %v6175_v54 = vrot.slane %v14603_v9, 3  ;;  %v6352_v56 = vsel %vm2239_vm3, %v6349_v49, %v6351_v46  ;;  %vm16223_vm1 = vmmov %vm16218_vm2 }
 0xbb1   :  { %v9173_v0 = vpack.i.bf16 %v6352_v56, %v14570_v48  ;;  %v6234_v49 = vrot.slane %v14603_v9, 4  ;;  %vm5931_vm4 = vcmp.gt.f32.partialorder %v5907_v50, 0.0 }
 0xbb2   :  { %v14650_v45 = vadd.f32 %v14486_v36, %v6014_v61  ;;  %v5966_v4 = vmul.f32 1.442695, %v5945_v41 }
 0xbb4   :  { %16214 = vst [vmem:[#allocation12_spill] sm:$0xff] %v14650_v45  ;;  %v6059_v31 = vrot.slane %v14650_v45, 1  ;;  %v6118_v1 = vrot.slane %v14650_v45, 2  ;;  %v6177_v2 = vrot.slane %v14650_v45, 3  ;;  %9796 = vpow2.f32 %v5966_v4 }
 0xbb5   :  { %v6236_v19 = vrot.slane %v14650_v45, 4  ;;  %v6295_v61 = vrot.slane %v14650_v45, 5 }
 0xbb6   :  { %v14683_v53 = vsel %vm16218_vm2, %v6057_v10, %v6059_v31  ;;  %v14703_v13 = vsel %vm1178_vm15, %v6116_v42, %v6118_v1  ;;  %v14717_v38 = vsel %vm16220_vm12, %v6175_v54, %v6177_v2  ;;  %v6176_v42 = vsel %vm16221_vm9, %v6173_v39, %v6175_v54  ;;  %v5826_v39 = vld [vmem:[%s15741_s2 + $0xf0] sm:$0xff]  ;;  %vm16224_vm2 = vmmov %vm16221_vm9 }
 0xbb7   :  { %9189 = vrot.lane.b32.xlu0 %v9188_v35, %s9857_s19  ;;  %9154 = vrot.lane.b32.xlu2 %v9153_v27, %s9849_s11  ;;  %v9223_v57 = vpack.i.bf16 %v14683_v53, %v6058_v15  ;;  %v9228_v21 = vpack.i.bf16 %v14703_v13, %v6117_v58  ;;  %v9233_v34 = vpack.i.bf16 %v14717_v38, %v6176_v42  ;;  %vm16225_vm12 = vmmov %vm16215_vm10 }
 0xbb8   :  { %9094 = vrot.lane.b32.xlu1 %v9093_v11, %s9852_s14  ;;  %v9138_v58 = vpack.i.bf16 %v14620_v29, %v14517_v23  ;;  %v14735_v14 = vsel %vm165_vm0, %v6234_v49, %v6236_v19  ;;  %v6235_v35 = vsel %vm165_vm0, %v6232_v8, %v6234_v49  ;;  %v9183_v29 = vpack.i.bf16 %v6058_v15, %v14611_v30  ;;  %v5827_v15 = vld [vmem:[%s15741_s2 + $0xf8] sm:$0xff]  ;;  %vm16226_vm9 = vmmov %vm16223_vm1 }
 0xbb9   :  { %v9238_v23 = vpack.i.bf16 %v14735_v14, %v6235_v35  ;;  %v14755_v37 = vsel %vm16215_vm10, %v6293_v55, %v6295_v61  ;;  %v9193_v52 = vpack.i.bf16 %v6176_v42, %v14660_v28  ;;  %v6355_v55 = vrot.slane %v14650_v45, 6  ;;  %v5828_v42 = vld [vmem:[%s15741_s2 + $0x100] sm:$0xff]  ;;  %vm16227_vm10 = vmmov %vm16224_vm2 }
 0xbba   :  { %v9797_v48 = vpop.eup %9796  ;;  %v9243_v12 = vpack.i.bf16 %v14755_v37, %v14655_v59 }
 0xbbb   :  { %v7592_v11 = vadd.f32 -1.0, %v9797_v48 }
 0xbbd   :  { %v6001_v26 = vsel %vm5931_vm4, %v5907_v50, %v7592_v11  ;;  %v6416_v50 = vrot.slane %v14650_v45, 7 }
 0xbbe   :  { %v6015_v8 = vmul.f32 %v14479_v6, %v6001_v26 }
 0xbbf   :  { %9204 = vrot.lane.b32.xlu0 %v9203_v47, %s9863_s28  ;;  %9159 = vrot.lane.b32.xlu2 %v9158_v22, %s9850_s12  ;;  %v6415_v47 = vsel %vm2310_vm5, %v6412_v24, %v6414_v7  ;;  %v6353_v24 = vrot.slane %v14603_v9, 6 }
 0xbc0   :  { %9099 = vrot.lane.b32.xlu1 %v9098_v43, %s9853_s15  ;;  %v9213_v22 = vpack.i.bf16 %v6415_v47, %v14608_v40  ;;  %v9198_v43 = vpack.i.bf16 %v6235_v35, %v14686_v32  ;;  %v14775_v40 = vadd.f32 %v14486_v36, %v6015_v8 }
 0xbc1   :  { %v14780_v32 = vsel %vm2239_vm3, %v6353_v24, %v6355_v55 }
 0xbc2   :  { %16222 = vst [vmem:[#allocation15_spill] sm:$0xff] %v14775_v40  ;;  %v6061_v5 = vrot.slane %v14775_v40, 1  ;;  %v6357_v26 = vrot.slane %v14775_v40, 6 }
 0xbc4   :  { %v14796_v41 = vsel %vm16223_vm1, %v6059_v31, %v6061_v5  ;;  %v6179_v31 = vrot.slane %v14775_v40, 3  ;;  %vm16228_vm1 = vmmov %vm16224_vm2 }
 0xbc5   :  { %v9258_v4 = vpack.i.bf16 %v14796_v41, %v14683_v53  ;;  %v6120_v53 = vrot.slane %v14775_v40, 2 }
 0xbc7   :  { %9224 = vrot.lane.b32.xlu0 %v9223_v57, %s9848_s10  ;;  %9164 = vrot.lane.b32.xlu2 %v9163_v44, %s9851_s13  ;;  %v6354_v57 = vsel %vm2239_vm3, %v6351_v46, %v6353_v24 }
 0xbc8   :  { %9109 = vrot.lane.b32.xlu1 %v9108_v18, %s9861_s27  ;;  %v9248_v44 = vpack.i.bf16 %v14780_v32, %v6354_v57  ;;  %v9208_v60 = vpack.i.bf16 %v6354_v57, %v6352_v56  ;;  %v9218_v56 = vpack.i.bf16 %v14650_v45, %v14603_v9 }
 0xbcc   :  { %v5909_v27 = vpop.f32.mrf.mxu1 }
 0xbcd   :  { %v5910_v30 = vadd.f32 %v5909_v27, %v5826_v39  ;;  %v14828_v27 = vsel %vm16224_vm2, %v6177_v2, %v6179_v31  ;;  %vm16229_vm2 = vmmov %vm16225_vm12 }
 0xbce   :  { %v9268_v39 = vpack.i.bf16 %v14828_v27, %v14717_v38  ;;  %v6297_v38 = vrot.slane %v14775_v40, 5 }
 0xbcf   :  { %9229 = vrot.lane.b32.xlu0 %v9228_v21, %s9849_s11  ;;  %9169 = vrot.lane.b32.xlu2 %v9168_v20, %s9852_s14  ;;  %v5946_v10 = vmin.f32 %v5910_v30, 0.0  ;;  %vm5932_vm14 = vcmp.gt.f32.partialorder %v5910_v30, 0.0 }
 0xbd0   :  { %9124 = vrot.lane.b32.xlu1 %v9123_v51, %s9856_s18  ;;  %v6417_v51 = vsel %vm2310_vm5, %v6414_v7, %v6416_v50 }
 0xbd1   :  { %v5968_v59 = vmul.f32 1.442695, %v5946_v10  ;;  %v14867_v10 = vsel %vm2239_vm3, %v6355_v55, %v6357_v26 }
 0xbd2   :  { %v9283_v24 = vpack.i.bf16 %v14867_v10, %v14780_v32 }
 0xbd3   :  { %9798 = vpow2.f32 %v5968_v59 }
 0xbd4   :  { %v5911_v3 = vpop.f32.mrf.mxu1 }
 0xbd5   :  { %v5912_v28 = vadd.f32 %v5911_v3, %v5827_v15  ;;  %v14874_v15 = vsel %vm16225_vm12, %v6295_v61, %v6297_v38  ;;  %vm16231_vm12 = vmmov %vm16226_vm9 }
 0xbd6   :  { %v9278_v55 = vpack.i.bf16 %v14874_v15, %v14755_v37 }
 0xbd7   :  { %9234 = vrot.lane.b32.xlu0 %v9233_v34, %s9850_s12  ;;  %9174 = vrot.lane.b32.xlu2 %v9173_v0, %s9853_s15  ;;  %v5947_v18 = vmin.f32 %v5912_v28, 0.0  ;;  %v9253_v34 = vpack.i.bf16 %v6417_v51, %v6415_v47  ;;  %v6238_v0 = vrot.slane %v14775_v40, 4  ;;  %v5829_v47 = vld [vmem:[%s15741_s2 + $0x108] sm:$0xff]  ;;  %vm5933_vm8 = vcmp.gt.f32.partialorder %v5912_v28, 0.0 }
 0xbd8   :  { %9139 = vrot.lane.b32.xlu1 %v9138_v58, %s9854_s24 }
 0xbd9   :  { %v5970_v20 = vmul.f32 1.442695, %v5947_v18  ;;  %v9799_v46 = vpop.eup %9798  ;;  %v14821_v35 = vsel %vm165_vm0, %v6236_v19, %v6238_v0 }
 0xbda   :  { %v7593_v58 = vadd.f32 -1.0, %v9799_v46  ;;  %v9273_v19 = vpack.i.bf16 %v14821_v35, %v14735_v14 }
 0xbdb   :  { %9800 = vpow2.f32 %v5970_v20 }
 0xbdd   :  { %v5914_v54 = vpop.f32.mrf.mxu1 }
 0xbde   :  { %v14812_v49 = vadd.f32 %v5914_v54, %v5828_v42 }
 0xbdf   :  { %9239 = vrot.lane.b32.xlu0 %v9238_v23, %s9851_s13  ;;  %9184 = vrot.lane.b32.xlu2 %v9183_v29, %s9861_s27  ;;  %v6002_v23 = vsel %vm5932_vm14, %v5910_v30, %v7593_v58  ;;  %v14835_v29 = vsel %vm1178_vm15, %v6118_v1, %v6120_v53  ;;  %v6418_v30 = vrot.slane %v14775_v40, 7 }
 0xbe0   :  { %9144 = vrot.lane.b32.xlu1 %v9143_v17, %s9858_s20  ;;  %v5948_v11 = vmin.f32 %v14812_v49, 0.0  ;;  %v6016_v2 = vmul.f32 %v14479_v6, %v6002_v23  ;;  %v9263_v7 = vpack.i.bf16 %v14835_v29, %v14703_v13  ;;  %v7686_v23 = vld [vmem:[%s15740_s1 + $0xc8] sm:$0xff]  ;;  %vm5934_vm4 = vcmp.gt.f32.partialorder %v14812_v49, 0.0 }
 0xbe1   :  { %v9801_v17 = vpop.eup %9800  ;;  %v6419_v8 = vsel %vm2310_vm5, %v6416_v50, %v6418_v30  ;;  %7019 = vmatpush.bf16.msrb.mxu3 %v7686_v23 }
 0xbe2   :  { %v7594_v1 = vadd.f32 -1.0, %v9801_v17  ;;  %v5972_v13 = vmul.f32 1.442695, %v5948_v11  ;;  %v9288_v3 = vpack.i.bf16 %v6419_v8, %v6417_v51 }
 0xbe4   :  { %9802 = vpow2.f32 %v5972_v13 }
 0xbe7   :  { %9244 = vrot.lane.b32.xlu0 %v9243_v12, %s9852_s14  ;;  %9199 = vrot.lane.b32.xlu2 %v9198_v43, %s9856_s18  ;;  %v14857_v12 = vadd.f32 %v14486_v36, %v6016_v2 }
 0xbe8   :  { %9194 = vrot.lane.b32.xlu1 %v9193_v52, %s9862_s0  ;;  %v6003_v52 = vsel %vm5933_vm8, %v5912_v28, %v7594_v1  ;;  %vm16230_vm8 = vmmov %vm16229_vm2 }
 0xbe9   :  { %v6017_v59 = vmul.f32 %v14479_v6, %v6003_v52  ;;  %v6420_v28 = vrot.slane %v14857_v12, 7  ;;  %v6063_v61 = vrot.slane %v14857_v12, 1  ;;  %v9293_v46 = vpack.i.bf16 %v14857_v12, %v14775_v40 }
 0xbea   :  { %v9803_v20 = vpop.eup %9802  ;;  %v6181_v58 = vrot.slane %v14857_v12, 3 }
 0xbeb   :  { %v14899_v50 = vsel %vm2310_vm5, %v6418_v30, %v6420_v28  ;;  %v14906_v51 = vsel %vm16226_vm9, %v6061_v5, %v6063_v61  ;;  %v6122_v5 = vrot.slane %v14857_v12, 2 }
 0xbec   :  { %v9328_v54 = vpack.i.bf16 %v14899_v50, %v6419_v8  ;;  %v6182_v1 = vsel %vm16228_vm1, %v6179_v31, %v6181_v58  ;;  %v6359_v31 = vrot.slane %v14857_v12, 6 }
 0xbef   :  { %9249 = vrot.lane.b32.xlu0 %v9248_v44, %s9853_s15  ;;  %9214 = vrot.lane.b32.xlu2 %v9213_v22, %s9854_s24  ;;  %v5916_v22 = vpop.f32.mrf.mxu1 }
 0xbf0   :  { %9209 = vrot.lane.b32.xlu1 %v9208_v60, %s9855_s6  ;;  %v14859_v43 = vadd.f32 %v5916_v22, %v5829_v47  ;;  %v14894_v60 = vadd.f32 %v14486_v36, %v6017_v59 }
 0xbf1   :  { %v14789_v21 = vpop.permute.xlu2 %9104 }
 0xbf2   :  { %v5949_v57 = vmin.f32 %v14859_v43, 0.0  ;;  %v6124_v42 = vrot.slane %v14894_v60, 2  ;;  %v15831_v52 = vrot.slane %v14894_v60, 6  ;;  %vm5935_vm14 = vcmp.gt.f32.partialorder %v14859_v43, 0.0 }
 0xbf4   :  { %v5974_v37 = vmul.f32 1.442695, %v5949_v57 }
 0xbf6   :  { %9804 = vpow2.f32 %v5974_v37 }
 0xbf7   :  { %9259 = vrot.lane.b32.xlu0 %v9258_v4, %s9861_s27  ;;  %9219 = vrot.lane.b32.xlu2 %v9218_v56, %s9858_s20  ;;  %v9298_v4 = vpack.i.bf16 %v14906_v51, %v14796_v41  ;;  %v6183_v56 = vrot.slane %v14894_v60, 3 }
 0xbf8   :  { %9254 = vrot.lane.b32.xlu1 %v9253_v34, %s9860_s26  ;;  %v7595_v34 = vadd.f32 -1.0, %v9803_v20  ;;  %v14977_v20 = vsel %vm2239_vm3, %v6359_v31, %v15831_v52 }
 0xbf9   :  { %v14814_v48 = vpop.permute.xlu2 %9114 }
 0xbfa   :  { %v6004_v2 = vsel %vm5934_vm4, %v14812_v49, %v7595_v34  ;;  %v15833_v49 = vrot.slane %v14894_v60, 5  ;;  %vm16233_vm4 = vmmov %vm16226_vm9 }
 0xbfb   :  { %v6018_v13 = vmul.f32 %v14479_v6, %v6004_v2  ;;  %v9308_v2 = vpack.i.bf16 %v6182_v1, %v14828_v27  ;;  %v6065_v27 = vrot.slane %v14894_v60, 1 }
 0xbfc   :  { %v9805_v30 = vpop.eup %9804 }
 0xbff   :  { %9274 = vrot.lane.b32.xlu0 %v9273_v19, %s9856_s18  ;;  %9269 = vrot.lane.b32.xlu2 %v9268_v39, %s9862_s0  ;;  %v14933_v19 = vsel %vm16227_vm10, %v6181_v58, %v6183_v56  ;;  %v14938_v39 = vsel %vm1178_vm15, %v6122_v5, %v6124_v42  ;;  %vm16234_vm10 = vcmask 64512  }
 0xc00   :  { %9264 = vrot.lane.b32.xlu1 %v9263_v7, %s9857_s19  ;;  %v6123_v7 = vsel %vm1178_vm15, %v6120_v53, %v6122_v5  ;;  %v9343_v47 = vpack.i.bf16 %v14933_v19, %v6182_v1  ;;  %v7685_v53 = vld [vmem:[%s15740_s1 + $0xc0] sm:$0xff] }
 0xc01   :  { %v14854_v14 = vpop.permute.xlu2 %9129  ;;  %v9338_v22 = vpack.i.bf16 %v14938_v39, %v6123_v7  ;;  %v9303_v8 = vpack.i.bf16 %v6123_v7, %v14835_v29  ;;  %7020 = vmatpush.bf16.msrb.mxu3 %v7685_v53  ;;  %v7684_v29 = vld [vmem:[%s15740_s1 + $0xb8] sm:$0xff] }
 0xc05   :  { %7021 = vmatpush.bf16.msrb.mxu3 %v7684_v29 }
 0xc06   :  { %v14886_v44 = vpop.permute.xlu0 %9069 }
 0xc07   :  { %9289 = vrot.lane.b32.xlu0 %v9288_v3, %s9854_s24  ;;  %9284 = vrot.lane.b32.xlu2 %v9283_v24, %s9855_s6  ;;  %v7596_v3 = vadd.f32 -1.0, %v9805_v30  ;;  %v6299_v24 = vrot.slane %v14857_v12, 5  ;;  %v7682_v30 = vld [vmem:[%s15740_s1 + $0xa8] sm:$0xff] }
 0xc08   :  { %9279 = vrot.lane.b32.xlu1 %v9278_v55, %s9863_s28  ;;  %v14969_v55 = vadd.f32 %v14486_v36, %v6018_v13 }
 0xc09   :  { %v14889_v32 = vpop.permute.xlu2 %9149  ;;  %v14891_v18 = vpop.permute.xlu1 %9074  ;;  %v6300_v34 = vsel %vm16230_vm8, %v6297_v38, %v6299_v24  ;;  %v15834_v38 = vrot.slane %v14857_v12, 4 }
 0xc0a   :  { %v6067_v7 = vrot.slane %v14969_v55, 1  ;;  %v6185_v52 = vrot.slane %v14969_v55, 3 }
 0xc0c   :  { %v15027_v53 = vsel %vm16231_vm12, %v6065_v27, %v6067_v7  ;;  %vm16238_vm12 = vcmask 195584  }
 0xc0f   :  { %9294 = vrot.lane.b32.xlu0 %v9293_v46, %s9858_s20  ;;  %9329 = vrot.lane.b32.xlu2 %v9328_v54, %s9860_s26  ;;  %v14982_v46 = vsel %vm16229_vm2, %v6299_v24, %v15833_v49  ;;  %v6005_v54 = vsel %vm5935_vm14, %v14859_v43, %v7596_v3  ;;  %v15832_v43 = vrot.slane %v14969_v55, 7  ;;  %v15034_v3 = vsel %vm165_vm0, %v6238_v0, %v15834_v38  ;;  %vm16235_vm14 = vmmov %vm16234_vm10 }
 0xc10   :  { %9299 = vrot.lane.b32.xlu1 %v9298_v4, %s9848_s10  ;;  %v14988_v4 = vsel %vm2239_vm3, %v6357_v26, %v6359_v31  ;;  %v9353_v58 = vpack.i.bf16 %v14982_v46, %v6300_v34  ;;  %v6019_v23 = vmul.f32 %v14479_v6, %v6005_v54  ;;  %v7683_v26 = vld [vmem:[%s15740_s1 + $0xb0] sm:$0xff]  ;;  %v6422_v6 = vrot.slane %v14894_v60, 7 }
 0xc11   :  { %v14923_v41 = vpop.permute.xlu0 %9119  ;;  %v14925_v17 = vpop.permute.xlu2 %9154  ;;  %v9358_v5 = vpack.i.bf16 %v14977_v20, %v14988_v4  ;;  %7022 = vmatpush.bf16.msrb.mxu3 %v7683_v26  ;;  %v15044_v31 = vsel %vm16226_vm9, %v6063_v61, %v6065_v27  ;;  %v9313_v0 = vpack.i.bf16 %v15034_v3, %v14821_v35  ;;  %v7681_v61 = vld [vmem:[%s15740_s1 + $0xa0] sm:$0xff]  ;;  %v7680_v35 = vld [vmem:[%s15740_s1 + $0x98] sm:$0xff]  ;;  %vm16236_vm2 = vcmask 130048   ;;  %vm16239_vm9 = vmmov %vm16238_vm12 }
 0xc12   :  { %v14928_v11 = vpop.permute.xlu1 %9079  ;;  %v9373_v29 = vpack.i.bf16 %v15027_v53, %v15044_v31  ;;  %vm16237_vm8 = vmmov %vm16236_vm2 }
 0xc15   :  { %7023 = vmatpush.bf16.msrb.mxu3 %v7682_v30 }
 0xc17   :  { %9344 = vrot.lane.b32.xlu0 %v9343_v47, %s9862_s0  ;;  %9339 = vrot.lane.b32.xlu2 %v9338_v22, %s9857_s19  ;;  %v15017_v22 = vadd.f32 %v14486_v36, %v6019_v23  ;;  %v15039_v36 = vsel %vm2310_vm5, %v6420_v28, %v6422_v6  ;;  %v6126_v28 = vrot.slane %v14969_v55, 2  ;;  %v5830_v23 = vld [vmem:[%s15741_s2 + $0x110] sm:$0xff] }
 0xc18   :  { %9304 = vrot.lane.b32.xlu1 %v9303_v8, %s9849_s11  ;;  %v15024_v8 = vsel %vm2310_vm5, %v6422_v6, %v15832_v43 }
 0xc19   :  { %v14964_v59 = vpop.permute.xlu0 %9134  ;;  %v14966_v57 = vpop.permute.xlu2 %9159  ;;  %v9403_v24 = vpack.i.bf16 %v15024_v8, %v15039_v36  ;;  %v15053_v54 = vrot.slane %v15017_v22, 1  ;;  %7024 = vmatpush.bf16.msrb.mxu3 %v7681_v61  ;;  %v15079_v27 = vsel %vm1178_vm15, %v6124_v42, %v6126_v28  ;;  %v9318_v61 = vpack.i.bf16 %v6300_v34, %v14874_v15  ;;  %v7679_v42 = vld [vmem:[%s15740_s1 + $0x90] sm:$0xff] }
 0xc1a   :  { %v14972_v37 = vpop.permute.xlu1 %9084 }
 0xc1b   :  { %16232 = vst [vmem:[#allocation13_spill] sm:$0xff] %v15053_v54  ;;  %v15074_v6 = vsel %vm16233_vm4, %v6067_v7, %v15053_v54  ;;  %v15090_v7 = vrot.slane %v15017_v22, 2  ;;  %vm16240_vm4 = vcmask 326656  }
 0xc1d   :  { %7025 = vmatpush.bf16.msrb.mxu3 %v7680_v35  ;;  %v9077_v35 = vunpack.i.h.bf16 %v14891_v18 }
 0xc1f   :  { %9359 = vrot.lane.b32.xlu0 %v9358_v5, %s9855_s6  ;;  %9354 = vrot.lane.b32.xlu2 %v9353_v58, %s9863_s28 }
 0xc20   :  { %9309 = vrot.lane.b32.xlu1 %v9308_v2, %s9850_s12  ;;  %v5919_v2 = vpop.f32.mrf.mxu1 }
 0xc21   :  { %v15012_v1 = vpop.permute.xlu0 %9179  ;;  %v15014_v47 = vpop.permute.xlu2 %9164  ;;  %v15081_v30 = vadd.f32 %v5919_v2, %v5830_v23  ;;  %v9081_v23 = vunpack.i.l.bf16 %v14928_v11  ;;  %7026 = vmatpush.bf16.msrb.mxu3 %v7679_v42  ;;  %v9087_v2 = vunpack.i.h.bf16 %v14972_v37 }
 0xc22   :  { %v15019_v13 = vpop.permute.xlu1 %9089 }
 0xc23   :  { %v5950_v15 = vmin.f32 %v15081_v30, 0.0 }
 0xc27   :  { %9404 = vrot.lane.b32.xlu0 %v9403_v24, %s9860_s26  ;;  %9374 = vrot.lane.b32.xlu2 %v9373_v29, %s9848_s10  ;;  %v9076_v24 = vunpack.i.l.bf16 %v14891_v18  ;;  %v9408_v29 = vpack.i.bf16 %v15053_v54, %v15074_v6  ;;  %v9086_v18 = vunpack.i.l.bf16 %v14972_v37  ;;  %v6770_v37 = vsel %vm16235_vm14, %v14489_v62, %v9077_v35 }
 0xc28   :  { %9314 = vrot.lane.b32.xlu1 %v9313_v0, %s9851_s13  ;;  %v9378_v0 = vpack.i.bf16 %v15079_v27, %v14938_v39  ;;  %v9082_v39 = vunpack.i.h.bf16 %v14928_v11  ;;  %v9091_v11 = vunpack.i.l.bf16 %v15019_v13  ;;  %vm16242_vm14 = vcmask 457728  }
 0xc29   :  { %v15065_v5 = vpop.permute.xlu0 %9189  ;;  %v15067_v58 = vpop.permute.xlu2 %9169  ;;  %v6769_v34 = vsel %vm16234_vm10, %v14495_v63, %v9076_v24  ;;  %v15120_v63 = vsel %vm16228_vm1, %v6183_v56, %v6185_v52  ;;  %vm16241_vm10 = vmmov %vm16240_vm4 }
 0xc2a   :  { %v9095_v26 = vpop.permute.xlu1 %9094  ;;  %v6781_v24 = vsel %vm16236_vm2, %v6769_v34, %v9081_v23  ;;  %v6782_v45 = vsel %vm16237_vm8, %v6770_v37, %v9082_v39  ;;  %v9383_v62 = vpack.i.bf16 %v15120_v63, %v14933_v19  ;;  %v15137_v23 = vrot.slane %v15017_v22, 3  ;;  %vm16243_vm2 = vmmov %vm16242_vm14 }
 0xc2b   :  { %v9097_v42 = vunpack.i.h.bf16 %v9095_v26  ;;  %v9096_v38 = vunpack.i.l.bf16 %v9095_v26  ;;  %v6793_v54 = vsel %vm16238_vm12, %v6781_v24, %v9086_v18  ;;  %v6794_v25 = vsel %vm16239_vm9, %v6782_v45, %v9087_v2 }
 0xc2c   :  { %v6805_v35 = vsel %vm918_vm11, %v6793_v54, %v9091_v11  ;;  %v6244_v39 = vrot.slane %v14969_v55, 4  ;;  %v9107_v54 = vunpack.i.h.bf16 %v14789_v21  ;;  %v9106_v34 = vunpack.i.l.bf16 %v14789_v21 }
 0xc2d   :  { %v5976_v18 = vmul.f32 1.442695, %v5950_v15  ;;  %v9072_v15 = vunpack.i.h.bf16 %v14886_v44  ;;  %vm16245_vm8 = vcmask 523264   ;;  %vm16247_vm9 = vcmask 654336  }
 0xc2e   :  { %vm16246_vm12 = vmmov %vm16245_vm8 }
 0xc2f   :  { %9409 = vrot.lane.b32.xlu0 %v9408_v29, %s9848_s10  ;;  %9379 = vrot.lane.b32.xlu2 %v9378_v0, %s9849_s11  ;;  %v9092_v29 = vunpack.i.h.bf16 %v15019_v13  ;;  %9806 = vpow2.f32 %v5976_v18 }
 0xc30   :  { %9319 = vrot.lane.b32.xlu1 %v9318_v61, %s9852_s14  ;;  %v15115_v61 = vsel %vm1178_vm15, %v6126_v28, %v15090_v7  ;;  %v9323_v28 = vpack.i.bf16 %v14988_v4, %v14867_v10  ;;  %v6817_v10 = vsel %vm16240_vm4, %v6805_v35, %v9096_v38  ;;  %vm16248_vm4 = vmmov %vm16247_vm9 }
 0xc31   :  { %v15107_v43 = vpop.permute.xlu0 %9204  ;;  %v15109_v49 = vpop.permute.xlu2 %9174  ;;  %v9413_v56 = vpack.i.bf16 %v15090_v7, %v15115_v61  ;;  %v6806_v26 = vsel %vm918_vm11, %v6794_v25, %v9092_v29  ;;  %v6242_v25 = vrot.slane %v14894_v60, 4  ;;  %v5831_v29 = vld [vmem:[%s15741_s2 + $0x118] sm:$0x3] }
 0xc32   :  { %v9100_v0 = vpop.permute.xlu1 %9099  ;;  %v6818_v4 = vsel %vm16241_vm10, %v6806_v26, %v9097_v42  ;;  %vm16250_vm10 = vcmask 1042432  }
 0xc33   :  { %v9102_v13 = vunpack.i.h.bf16 %v9100_v0  ;;  %v9101_v40 = vunpack.i.l.bf16 %v9100_v0  ;;  %v15159_v0 = vsel %vm16228_vm1, %v6185_v52, %v15137_v23  ;;  %v15162_v37 = vsel %vm165_vm0, %v6242_v25, %v6244_v39 }
 0xc34   :  { %v9418_v52 = vpack.i.bf16 %v15137_v23, %v15159_v0  ;;  %vm16251_vm1 = vcmask 785408  }
 0xc35   :  { %v6829_v45 = vsel %vm948_vm13, %v6817_v10, %v9101_v40  ;;  %v6830_v19 = vsel %vm948_vm13, %v6818_v4, %v9102_v13  ;;  %v5921_v40 = vpop.f32.mrf.mxu1  ;;  %v15177_v10 = vrot.slane %v15017_v22, 4 }
 0xc36   :  { %v6841_v21 = vsel %vm16242_vm14, %v6829_v45, %v9106_v34  ;;  %v6842_v24 = vsel %vm16243_vm2, %v6830_v19, %v9107_v54  ;;  %v15171_v35 = vadd.f32 %v5921_v40, %v5831_v29  ;;  %v6303_v19 = vrot.slane %v14969_v55, 5  ;;  %vm16252_vm14 = vmmov %vm16251_vm1 }
 0xc37   :  { %9414 = vrot.lane.b32.xlu0 %v9413_v56, %s9849_s11  ;;  %9384 = vrot.lane.b32.xlu2 %v9383_v62, %s9850_s12  ;;  %v16244_v56 = vrot.slane %v14857_v12, 4  ;;  %v6854_v45 = vsel %vm16246_vm12, %v6842_v24, %v9072_v15  ;;  %v9117_v34 = vunpack.i.h.bf16 %v14814_v48  ;;  %v9116_v29 = vunpack.i.l.bf16 %v14814_v48 }
 0xc38   :  { %9324 = vrot.lane.b32.xlu1 %v9323_v28, %s9853_s15  ;;  %v9071_v28 = vunpack.i.l.bf16 %v14886_v44  ;;  %v9333_v44 = vpack.i.bf16 %v15044_v31, %v14906_v51  ;;  %v5951_v40 = vmin.f32 %v15171_v35, 0.0  ;;  %v15198_v18 = vsel %vm165_vm0, %v6244_v39, %v15177_v10 }
 0xc39   :  { %v15150_v2 = vpop.permute.xlu0 %9224  ;;  %v15152_v38 = vpop.permute.xlu2 %9184  ;;  %v6243_v62 = vsel %vm165_vm0, %v16244_v56, %v6242_v25  ;;  %v16249_v48 = vrot.slane %v14894_v60, 5  ;;  %v9122_v15 = vunpack.i.h.bf16 %v14923_v41  ;;  %v9151_v39 = vunpack.i.l.bf16 %v14889_v32 }
 0xc3a   :  { %v9110_v11 = vpop.permute.xlu1 %9109  ;;  %v9388_v26 = vpack.i.bf16 %v15162_v37, %v6243_v62  ;;  %v6853_v4 = vsel %vm16245_vm8, %v6841_v21, %v9071_v28  ;;  %v9121_v28 = vunpack.i.l.bf16 %v14923_v41  ;;  %v15220_v41 = vrot.slane %v15017_v22, 5 }
 0xc3b   :  { %v9112_v42 = vunpack.i.h.bf16 %v9110_v11  ;;  %v9111_v13 = vunpack.i.l.bf16 %v9110_v11  ;;  %v9152_v11 = vunpack.i.h.bf16 %v14889_v32  ;;  %vm16254_vm2 = vcmask 64512  }
 0xc3c   :  { %vm16255_vm8 = vmmov %vm16254_vm2  ;;  %vm16256_vm12 = vcmask 850944  }
 0xc3d   :  { %v6865_v25 = vsel %vm3554_vm7, %v6853_v4, %v9111_v13  ;;  %v6866_v54 = vsel %vm3554_vm7, %v6854_v45, %v9112_v42  ;;  %v15206_v13 = vsel %vm16250_vm10, %v16249_v48, %v6303_v19  ;;  %v9348_v4 = vpack.i.bf16 %v6243_v62, %v15034_v3 }
 0xc3e   :  { %v6877_v21 = vsel %vm16247_vm9, %v6865_v25, %v9116_v29  ;;  %v6878_v24 = vsel %vm16248_vm4, %v6866_v54, %v9117_v34  ;;  %v15839_v45 = vrot.slane %v15017_v22, 7  ;;  %v9393_v34 = vpack.i.bf16 %v15206_v13, %v14982_v46  ;;  %vm16257_vm9 = vmmov %vm16256_vm12 }
 0xc3f   :  { %9419 = vrot.lane.b32.xlu0 %v9418_v52, %s9850_s12  ;;  %9389 = vrot.lane.b32.xlu2 %v9388_v26, %s9851_s13  ;;  %v9423_v26 = vpack.i.bf16 %v15177_v10, %v15198_v18  ;;  %v6889_v25 = vsel %vm3579_vm6, %v6877_v21, %v9121_v28  ;;  %v6890_v54 = vsel %vm3579_vm6, %v6878_v24, %v9122_v15  ;;  %v16253_v3 = vrot.slane %v14969_v55, 7  ;;  %vm16258_vm4 = vmmov %vm16250_vm10 }
 0xc40   :  { %9334 = vrot.lane.b32.xlu1 %v9333_v44, %s9861_s27  ;;  %v9807_v44 = vpop.eup %9806  ;;  %v5978_v21 = vmul.f32 1.442695, %v5951_v40  ;;  %v9132_v24 = vunpack.i.h.bf16 %v14854_v14  ;;  %v9131_v46 = vunpack.i.l.bf16 %v14854_v14  ;;  %v6772_v15 = vsel %vm16254_vm2, %v14533_v16, %v9152_v11 }
 0xc41   :  { %v15192_v51 = vpop.permute.xlu0 %9229  ;;  %v15194_v31 = vpop.permute.xlu2 %9199  ;;  %v15230_v62 = vsel %vm2310_vm5, %v16253_v3, %v15839_v45  ;;  %v7597_v48 = vadd.f32 -1.0, %v9807_v44  ;;  %v6771_v28 = vsel %vm16255_vm8, %v14499_v33, %v9151_v39  ;;  %v9156_v14 = vunpack.i.l.bf16 %v14925_v17 }
 0xc42   :  { %v9125_v42 = vpop.permute.xlu1 %9124  ;;  %v9137_v16 = vunpack.i.h.bf16 %v14964_v59  ;;  %v9136_v33 = vunpack.i.l.bf16 %v14964_v59  ;;  %v15255_v39 = vsel %vm16258_vm4, %v6303_v19, %v15220_v41  ;;  %v9167_v59 = vunpack.i.h.bf16 %v15014_v47 }
 0xc43   :  { %v9127_v56 = vunpack.i.h.bf16 %v9125_v42  ;;  %v9126_v52 = vunpack.i.l.bf16 %v9125_v42  ;;  %v15840_v42 = vrot.slane %v14969_v55, 6  ;;  %v9166_v3 = vunpack.i.l.bf16 %v15014_v47 }
 0xc44   :  { %vm16260_vm10 = vcmask 916480   ;;  %v9171_v40 = vunpack.i.l.bf16 %v15067_v58  ;;  %v9363_v47 = vpack.i.bf16 %v15039_v36, %v14899_v50  ;;  %vm16264_vm8 = vcmask 130048  }
 0xc45   :  { %v6901_v32 = vsel %vm16251_vm1, %v6889_v25, %v9126_v52  ;;  %v6902_v29 = vsel %vm16252_vm14, %v6890_v54, %v9127_v56  ;;  %v9157_v56 = vunpack.i.h.bf16 %v14925_v17  ;;  %v16259_v17 = vrot.slane %v14894_v60, 6  ;;  %vm16261_vm1 = vmmov %vm16260_vm10 }
 0xc46   :  { %v6913_v52 = vsel %vm16256_vm12, %v6901_v32, %v9131_v46  ;;  %v9162_v54 = vunpack.i.h.bf16 %v14966_v57  ;;  %vm16262_vm14 = vcmask 982016   ;;  %vm16265_vm12 = vmmov %vm16264_vm8  ;;  %9808 = vpow2.f32 %v5978_v21  ;;  %v15310_v21 = vld [vmem:[%s15741_s2 + $0x10] ss:$0 sm:$0xff] }
 0xc47   :  { %9424 = vrot.lane.b32.xlu0 %v9423_v26, %s9851_s13  ;;  %9394 = vrot.lane.b32.xlu2 %v9393_v34, %s9852_s14  ;;  %v6914_v26 = vsel %vm16257_vm9, %v6902_v29, %v9132_v24  ;;  %v9161_v34 = vunpack.i.l.bf16 %v14966_v57  ;;  %v6925_v19 = vsel %vm16260_vm10, %v6913_v52, %v9136_v33  ;;  %vm16263_vm2 = vmmov %vm16262_vm14  ;;  %v6783_v52 = vsel %vm16264_vm8, %v6771_v28, %v9156_v14 }
 0xc48   :  { %9349 = vrot.lane.b32.xlu1 %v9348_v4, %s9856_s18  ;;  %v15262_v4 = vsel %vm2239_vm3, %v16259_v17, %v15840_v42  ;;  %v6926_v24 = vsel %vm16261_vm1, %v6914_v26, %v9137_v16  ;;  %v9428_v17 = vpack.i.bf16 %v15220_v41, %v15255_v39  ;;  %v6784_v26 = vsel %vm16265_vm12, %v6772_v15, %v9157_v56 }
 0xc49   :  { %v15247_v44 = vpop.permute.xlu0 %9234  ;;  %v15249_v25 = vpop.permute.xlu2 %9214  ;;  %v9398_v57 = vpack.i.bf16 %v15262_v4, %v14977_v20  ;;  %v9177_v16 = vunpack.i.h.bf16 %v15109_v49  ;;  %v9176_v33 = vunpack.i.l.bf16 %v15109_v49  ;;  %vm16266_vm9 = vcmask 195584  }
 0xc4a   :  { %v9140_v11 = vpop.permute.xlu1 %9139  ;;  %v6795_v20 = vsel %vm16266_vm9, %v6783_v52, %v9161_v34  ;;  %vm16267_vm4 = vmmov %vm16266_vm9  ;;  %vm5936_vm10 = vcmp.gt.f32.partialorder %v15081_v30, 0.0  ;;  %vm16268_vm1 = vcmask 326656   ;;  %vm16272_vm12 = vcmask 523264  }
 0xc4b   :  { %v9142_v32 = vunpack.i.h.bf16 %v9140_v11  ;;  %v9141_v29 = vunpack.i.l.bf16 %v9140_v11  ;;  %v9172_v11 = vunpack.i.h.bf16 %v15067_v58  ;;  %v6796_v58 = vsel %vm16267_vm4, %v6784_v26, %v9162_v54  ;;  %vm16273_vm9 = vmmov %vm16272_vm12 }
 0xc4c   :  { %v6807_v50 = vsel %vm918_vm11, %v6795_v20, %v9166_v3  ;;  %v6808_v36 = vsel %vm918_vm11, %v6796_v58, %v9167_v59  ;;  %v6006_v15 = vsel %vm5936_vm10, %v15081_v30, %v7597_v48  ;;  %v9181_v59 = vunpack.i.l.bf16 %v15012_v1 }
 0xc4d   :  { %v6937_v46 = vsel %vm16262_vm14, %v6925_v19, %v9141_v29  ;;  %v6938_v45 = vsel %vm16263_vm2, %v6926_v24, %v9142_v32  ;;  %v6819_v28 = vsel %vm16268_vm1, %v6807_v50, %v9171_v40  ;;  %vm16269_vm14 = vmmov %vm16268_vm1  ;;  %v9182_v29 = vunpack.i.h.bf16 %v15012_v1 }
 0xc4e   :  { %v6949_v42 = vpack.c.bf16 %v6938_v45, %v6937_v46  ;;  %v6820_v56 = vsel %vm16269_vm14, %v6808_v36, %v9172_v11  ;;  %v9438_v3 = vpack.i.bf16 %v15115_v61, %v15079_v27  ;;  %v9433_v30 = vpack.i.bf16 %v15074_v6, %v15027_v53  ;;  %v9809_v53 = vpop.eup %9808 }
 0xc4f   :  { %9429 = vrot.lane.b32.xlu0 %v9428_v17, %s9852_s14  ;;  %9399 = vrot.lane.b32.xlu2 %v9398_v57, %s9853_s15  ;;  %v6832_v54 = vsel %vm948_vm13, %v6820_v56, %v9177_v16  ;;  %v6020_v48 = vmul.f32 %v15310_v21, %v6006_v15  ;;  %vm16270_vm2 = vcmask 457728   ;;  %v9368_v1 = vpack.i.bf16 %v14969_v55, %v14894_v60  ;;  %v15331_v57 = vld [vmem:[%s15741_s2 + $0x18] ss:$0 sm:$0xff] }
 0xc50   :  { %9364 = vrot.lane.b32.xlu1 %v9363_v47, %s9854_s24  ;;  %7027 = vmatmul.bf16.vlgmr.msrb.gmra.mxu3 %v6949_v42  ;;  %v6831_v42 = vsel %vm948_vm13, %v6819_v28, %v9176_v33  ;;  %vm16271_vm8 = vmmov %vm16270_vm2  ;;  %v9187_v6 = vunpack.i.h.bf16 %v15152_v38  ;;  %v9186_v61 = vunpack.i.l.bf16 %v15152_v38  ;;  %v9192_v38 = vunpack.i.h.bf16 %v15065_v5 }
 0xc51   :  { %v15292_v45 = vpop.permute.xlu0 %9239  ;;  %v15294_v49 = vpop.permute.xlu2 %9219  ;;  %v6843_v40 = vsel %vm16270_vm2, %v6831_v42, %v9181_v59  ;;  %v6844_v19 = vsel %vm16271_vm8, %v6832_v54, %v9182_v29  ;;  %v15334_v11 = vadd.f32 %v15331_v57, %v6020_v48  ;;  %v9191_v16 = vunpack.i.l.bf16 %v15065_v5 }
 0xc52   :  { %v9145_v14 = vpop.permute.xlu1 %9144  ;;  %v7598_v58 = vadd.f32 -1.0, %v9809_v53  ;;  %v9453_v50 = vpack.i.bf16 %v15255_v39, %v15206_v13  ;;  %vm16274_vm4 = vcmask 654336   ;;  %v9448_v28 = vpack.i.bf16 %v15198_v18, %v15162_v37 }
 0xc53   :  { %v9147_v34 = vunpack.i.h.bf16 %v9145_v14  ;;  %v9146_v32 = vunpack.i.l.bf16 %v9145_v14  ;;  %vm16275_vm10 = vmmov %vm16274_vm4  ;;  %v9443_v56 = vpack.i.bf16 %v15159_v0, %v15120_v63  ;;  %v6365_v42 = vrot.slane %v15017_v22, 6 }
 0xc54   :  { %v6367_v54 = vrot.slane %v15334_v11, 6  ;;  %vm5937_vm1 = vcmp.gt.f32.partialorder %v15171_v35, 0.0  ;;  %v9202_v13 = vunpack.i.h.bf16 %v15194_v31  ;;  %v9201_v39 = vunpack.i.l.bf16 %v15194_v31 }
 0xc55   :  { %v6856_v24 = vsel %vm16272_vm12, %v6844_v19, %v9147_v34  ;;  %v6855_v27 = vsel %vm16273_vm9, %v6843_v40, %v9146_v32  ;;  %v6007_v63 = vsel %vm5937_vm1, %v15171_v35, %v7598_v58  ;;  %v9207_v0 = vunpack.i.h.bf16 %v15107_v43 }
 0xc56   :  { %v6868_v47 = vsel %vm3554_vm7, %v6856_v24, %v9187_v6  ;;  %v6867_v52 = vsel %vm3554_vm7, %v6855_v27, %v9186_v61  ;;  %v9206_v37 = vunpack.i.l.bf16 %v15107_v43  ;;  %vm16276_vm14 = vcmask 785408  }
 0xc57   :  { %9439 = vrot.lane.b32.xlu0 %v9438_v3, %s9857_s19  ;;  %9434 = vrot.lane.b32.xlu2 %v9433_v30, %s9861_s27  ;;  %v6879_v36 = vsel %vm16274_vm4, %v6867_v52, %v9191_v16  ;;  %v6880_v15 = vsel %vm16275_vm10, %v6868_v47, %v9192_v38  ;;  %vm16277_vm2 = vmmov %vm16276_vm14  ;;  %v9227_v31 = vunpack.i.h.bf16 %v15150_v2  ;;  %v9226_v59 = vunpack.i.l.bf16 %v15150_v2 }
 0xc58   :  { %9369 = vrot.lane.b32.xlu1 %v9368_v1, %s9858_s20  ;;  %v16278_v35 = vrot.slane %v14969_v55, 6  ;;  %v15373_v43 = vsel %vm2239_vm3, %v6365_v42, %v6367_v54  ;;  %v9232_v48 = vunpack.i.h.bf16 %v15192_v51  ;;  %v9231_v40 = vunpack.i.l.bf16 %v15192_v51 }
 0xc59   :  { %v15324_v46 = vpop.permute.xlu0 %9244  ;;  %v15326_v17 = vpop.permute.xlu2 %9269  ;;  %v9217_v24 = vunpack.i.h.bf16 %v15249_v25  ;;  %v9216_v2 = vunpack.i.l.bf16 %v15249_v25  ;;  %vm16279_vm8 = vcmask 850944   ;;  %vm16281_vm9 = vcmask 916480  }
 0xc5a   :  { %v9195_v26 = vpop.permute.xlu1 %9194  ;;  %v6366_v30 = vsel %vm2239_vm3, %v16278_v35, %v6365_v42  ;;  %vm16280_vm12 = vmmov %vm16279_vm8  ;;  %v9236_v51 = vunpack.i.l.bf16 %v15247_v44  ;;  %vm16283_vm10 = vcmask 982016   ;;  %v6502_v25 = vrot.slane %v15334_v11, 1 }
 0xc5b   :  { %v9197_v33 = vunpack.i.h.bf16 %v9195_v26  ;;  %v9196_v20 = vunpack.i.l.bf16 %v9195_v26  ;;  %vm16282_vm4 = vmmov %vm16281_vm9  ;;  %v9473_v47 = vpack.i.bf16 %v15373_v43, %v6366_v30  ;;  %v9458_v52 = vpack.i.bf16 %v6366_v30, %v15262_v4 }
 0xc5c   :  { %vm16284_vm1 = vmmov %vm16283_vm10  ;;  %v6021_v16 = vmul.f32 %v15310_v21, %v6007_v63  ;;  %v6428_v58 = vrot.slane %v15334_v11, 7  ;;  %v9242_v21 = vunpack.i.h.bf16 %v15292_v45  ;;  %v6616_v35 = vrot.slane %v15334_v11, 4 }
 0xc5d   :  { %v6891_v14 = vsel %vm3579_vm6, %v6879_v36, %v9196_v20  ;;  %v6892_v5 = vsel %vm3579_vm6, %v6880_v15, %v9197_v33  ;;  %v9237_v33 = vunpack.i.h.bf16 %v15247_v44  ;;  %v16285_v20 = vpack.i.bf16 %v15230_v62, %v15024_v8  ;;  %v16287_v36 = vld [vmem:[#allocation14_spill] sm:$0xff] }
 0xc5e   :  { %v6903_v18 = vsel %vm16276_vm14, %v6891_v14, %v9201_v39  ;;  %v6904_v34 = vsel %vm16277_vm2, %v6892_v5, %v9202_v13  ;;  %vm16286_vm14 = vcmask 64512   ;;  %v9241_v44 = vunpack.i.l.bf16 %v15292_v45  ;;  %v16292_v45 = vld [vmem:[#allocation13_spill] sm:$0xff] }
 0xc5f   :  { %9454 = vrot.lane.b32.xlu0 %v9453_v50, %s9863_s28  ;;  %9449 = vrot.lane.b32.xlu2 %v9448_v28, %s9856_s18  ;;  %v6915_v27 = vsel %vm16279_vm8, %v6903_v18, %v9206_v37  ;;  %v6916_v53 = vsel %vm16280_vm12, %v6904_v34, %v9207_v0  ;;  %v6774_v50 = vsel %vm16286_vm14, %v14603_v9, %v9227_v31  ;;  %vm16288_vm2 = vmmov %vm16286_vm14  ;;  %vm16289_vm8 = vcmask 130048  }
 0xc60   :  { %9444 = vrot.lane.b32.xlu1 %v9443_v56, %s9862_s0  ;;  %v6773_v15 = vsel %vm16288_vm2, %v16287_v36, %v9226_v59  ;;  %vm16290_vm12 = vmmov %vm16289_vm8  ;;  %v9247_v56 = vunpack.i.h.bf16 %v15324_v46  ;;  %v9246_v14 = vunpack.i.l.bf16 %v15324_v46  ;;  %v16295_v46 = vrot.slane %v15017_v22, 7 }
 0xc61   :  { %v9250_v32 = vpop.permute.xlu0 %9249  ;;  %v15363_v29 = vpop.permute.xlu2 %9284  ;;  %v6785_v28 = vsel %vm16289_vm8, %v6773_v15, %v9231_v40  ;;  %v6786_v8 = vsel %vm16290_vm12, %v6774_v50, %v9232_v48  ;;  %vm16298_vm2 = vcmask 457728   ;;  %vm16300_vm12 = vcmask 523264  }
 0xc62   :  { %v9210_v3 = vpop.permute.xlu1 %9209  ;;  %v9252_v13 = vunpack.i.h.bf16 %v9250_v32  ;;  %v9251_v39 = vunpack.i.l.bf16 %v9250_v32  ;;  %v15419_v31 = vsel %vm2310_vm5, %v16295_v46, %v6428_v58  ;;  %v9468_v32 = vpack.i.bf16 %v15334_v11, %v15017_v22  ;;  %vm16299_vm8 = vmmov %vm16298_vm2 }
 0xc63   :  { %v9212_v19 = vunpack.i.h.bf16 %v9210_v3  ;;  %v9211_v1 = vunpack.i.l.bf16 %v9210_v3 }
 0xc65   :  { %v6927_v6 = vsel %vm16281_vm9, %v6915_v27, %v9211_v1  ;;  %v6928_v61 = vsel %vm16282_vm4, %v6916_v53, %v9212_v19  ;;  %vm16291_vm9 = vcmask 195584   ;;  %vm16293_vm4 = vcmask 1046528  }
 0xc66   :  { %v6939_v26 = vsel %vm16283_vm10, %v6927_v6, %v9216_v2  ;;  %v6940_v38 = vsel %vm16284_vm1, %v6928_v61, %v9217_v24  ;;  %v6797_v42 = vsel %vm16291_vm9, %v6785_v28, %v9236_v51  ;;  %v6503_v0 = vsel %vm16293_vm4, %v16292_v45, %v6502_v25  ;;  %vm16294_vm10 = vmmov %vm16291_vm9 }
 0xc67   :  { %9474 = vrot.lane.b32.xlu0 %v9473_v47, %s9853_s15  ;;  %9464 = vrot.lane.b32.xlu2 %v16285_v20, %s9854_s24  ;;  %v6950_v4 = vpack.c.bf16 %v6940_v38, %v6939_v26  ;;  %v6798_v37 = vsel %vm16294_vm10, %v6786_v8, %v9237_v33  ;;  %v6809_v59 = vsel %vm918_vm11, %v6797_v42, %v9241_v44  ;;  %vm16296_vm1 = vcmask 326656   ;;  %vm16301_vm9 = vmmov %vm16300_vm12 }
 0xc68   :  { %9459 = vrot.lane.b32.xlu1 %v9458_v52, %s9855_s6  ;;  %v6810_v3 = vsel %vm918_vm11, %v6798_v37, %v9242_v21  ;;  %v6821_v30 = vsel %vm16296_vm1, %v6809_v59, %v9246_v14  ;;  %vm16297_vm14 = vmmov %vm16296_vm1  ;;  %v9483_v40 = vpack.i.bf16 %v6502_v25, %v6503_v0  ;;  %v6578_v19 = vrot.slane %v15334_v11, 3 }
 0xc69   :  { %7032 = vmatmul.bf16.gmra.mxu3 %v6950_v4  ;;  %v9260_v5 = vpop.permute.xlu0 %9259  ;;  %v15408_v9 = vpop.permute.xlu2 %9329  ;;  %v6822_v48 = vsel %vm16297_vm14, %v6810_v3, %v9247_v56  ;;  %v6833_v1 = vsel %vm948_vm13, %v6821_v30, %v9251_v39  ;;  %v9478_v2 = vpack.i.bf16 %v15419_v31, %v15230_v62  ;;  %v6540_v27 = vrot.slane %v15334_v11, 2 }
 0xc6a   :  { %v9255_v63 = vpop.permute.xlu1 %9254  ;;  %v6834_v24 = vsel %vm948_vm13, %v6822_v48, %v9252_v13  ;;  %v6035_v61 = vadd.f32 %v15331_v57, %v6021_v16  ;;  %v9222_v47 = vunpack.i.h.bf16 %v15294_v49  ;;  %v9221_v52 = vunpack.i.l.bf16 %v15294_v49 }
 0xc6b   :  { %v9257_v18 = vunpack.i.h.bf16 %v9255_v63  ;;  %v9256_v34 = vunpack.i.l.bf16 %v9255_v63  ;;  %v6617_v26 = vsel %vm165_vm0, %v15177_v10, %v6616_v35  ;;  %vm16302_vm4 = vcmask 1044480  }
 0xc6c   :  { %v6579_v57 = vsel %vm16302_vm4, %v15137_v23, %v6578_v19  ;;  %v6541_v16 = vsel %vm1178_vm15, %v15090_v7, %v6540_v27  ;;  %v9262_v49 = vunpack.i.h.bf16 %v9260_v5  ;;  %v9261_v20 = vunpack.i.l.bf16 %v9260_v5 }
 0xc6d   :  { %v6846_v53 = vsel %vm16298_vm2, %v6834_v24, %v9257_v18  ;;  %v6845_v6 = vsel %vm16299_vm8, %v6833_v1, %v9256_v34  ;;  %v6693_v36 = vrot.slane %v6035_v61, 6  ;;  %v6731_v15 = vrot.slane %v6035_v61, 7 }
 0xc6e   :  { %v6858_v38 = vsel %vm16300_vm12, %v6846_v53, %v9222_v47  ;;  %v6857_v25 = vsel %vm16301_vm9, %v6845_v6, %v9221_v52  ;;  %v9498_v44 = vpack.i.bf16 %v6616_v35, %v6617_v26  ;;  %v9493_v28 = vpack.i.bf16 %v6578_v19, %v6579_v57 }
 0xc6f   :  { %9484 = vrot.lane.b32.xlu0 %v9483_v40, %s9861_s27  ;;  %9469 = vrot.lane.b32.xlu2 %v9468_v32, %s9858_s20  ;;  %v6869_v21 = vsel %vm3554_vm7, %v6857_v25, %v9261_v20  ;;  %v6870_v10 = vsel %vm3554_vm7, %v6858_v38, %v9262_v49  ;;  %vm16303_vm0 = vcmask 654336   ;;  %v9488_v23 = vpack.i.bf16 %v6540_v27, %v6541_v16 }
 0xc70   :  { %9479 = vrot.lane.b32.xlu1 %v9478_v2, %s9860_s26  ;;  %vm16304_vm10 = vmmov %vm16303_vm0  ;;  %v6654_v14 = vrot.slane %v15334_v11, 5  ;;  %v9272_v7 = vunpack.i.h.bf16 %v15326_v17  ;;  %v9271_v5 = vunpack.i.l.bf16 %v15326_v17  ;;  %v6732_v42 = vsel %vm2310_vm5, %v6428_v58, %v6731_v15 }
 0xc71   :  { %v9275_v51 = vpop.permute.xlu0 %9274  ;;  %v15442_v62 = vpop.permute.xlu2 %9339  ;;  %v6694_v13 = vsel %vm2239_vm3, %v6367_v54, %v6693_v36  ;;  %vm16305_vm15 = vcmask 1042432   ;;  %v9513_v58 = vpack.i.bf16 %v6732_v42, %v15419_v31  ;;  %v9287_v54 = vunpack.i.h.bf16 %v15363_v29 }
 0xc72   :  { %v9265_v33 = vpop.permute.xlu1 %9264  ;;  %v9277_v0 = vunpack.i.h.bf16 %v9275_v51  ;;  %v9276_v37 = vunpack.i.l.bf16 %v9275_v51  ;;  %v6655_v34 = vsel %vm16305_vm15, %v15220_v41, %v6654_v14  ;;  %v9508_v11 = vpack.i.bf16 %v6694_v13, %v15373_v43 }
 0xc73   :  { %v9267_v4 = vunpack.i.h.bf16 %v9265_v33  ;;  %v9266_v50 = vunpack.i.l.bf16 %v9265_v33  ;;  %v9286_v3 = vunpack.i.l.bf16 %v15363_v29  ;;  %vm16306_vm3 = vcmask 785408  }
 0xc74   :  { %vm16307_vm5 = vmmov %vm16306_vm3  ;;  %vm16308_vm1 = vcmask 850944   ;;  %v9503_v19 = vpack.i.bf16 %v6654_v14, %v6655_v34  ;;  %vm16310_vm2 = vcmask 916480   ;;  %vm16312_vm12 = vcmask 982016  }
 0xc75   :  { %v6881_v8 = vsel %vm16303_vm0, %v6869_v21, %v9266_v50  ;;  %v6882_v56 = vsel %vm16304_vm10, %v6870_v10, %v9267_v4  ;;  %vm16309_vm14 = vmmov %vm16308_vm1  ;;  %vm16315_vm4 = vcmask 64512   ;;  %vm16318_vm10 = vcmask 130048  }
 0xc76   :  { %v6893_v39 = vsel %vm3579_vm6, %v6881_v8, %v9271_v5  ;;  %v6894_v63 = vsel %vm3579_vm6, %v6882_v56, %v9272_v7  ;;  %vm16311_vm8 = vmmov %vm16310_vm2  ;;  %v16314_v8 = vld [vmem:[#allocation15_spill] sm:$0xff] }
 0xc77   :  { %9499 = vrot.lane.b32.xlu0 %v9498_v44, %s9856_s18  ;;  %9494 = vrot.lane.b32.xlu2 %v9493_v28, %s9862_s0  ;;  %v6905_v32 = vsel %vm16306_vm3, %v6893_v39, %v9276_v37  ;;  %v6906_v35 = vsel %vm16307_vm5, %v6894_v63, %v9277_v0  ;;  %vm16313_vm9 = vmmov %vm16312_vm12  ;;  %vm16320_vm3 = vcmask 195584  }
 0xc78   :  { %9489 = vrot.lane.b32.xlu1 %v9488_v23, %s9857_s19  ;;  %v16316_v23 = vld [vmem:[#allocation12_spill] sm:$0xff]  ;;  %vm16317_vm0 = vmmov %vm16315_vm4 }
 0xc79   :  { %v9290_v45 = vpop.permute.xlu0 %9289  ;;  %v15470_v17 = vpop.permute.xlu2 %9354  ;;  %vm16319_vm15 = vmmov %vm16318_vm10 }
 0xc7a   :  { %v9280_v18 = vpop.permute.xlu1 %9279  ;;  %v9292_v30 = vunpack.i.h.bf16 %v9290_v45  ;;  %v9291_v48 = vunpack.i.l.bf16 %v9290_v45  ;;  %vm16321_vm5 = vmmov %vm16320_vm3 }
 0xc7b   :  { %v9282_v46 = vunpack.i.h.bf16 %v9280_v18  ;;  %v9281_v59 = vunpack.i.l.bf16 %v9280_v18 }
 0xc7d   :  { %v6917_v40 = vsel %vm16308_vm1, %v6905_v32, %v9281_v59  ;;  %v6918_v41 = vsel %vm16309_vm14, %v6906_v35, %v9282_v46  ;;  %vm16322_vm1 = vcmask 326656  }
 0xc7e   :  { %v6929_v1 = vsel %vm16310_vm2, %v6917_v40, %v9286_v3  ;;  %v6930_v31 = vsel %vm16311_vm8, %v6918_v41, %v9287_v54  ;;  %vm16323_vm14 = vmmov %vm16322_vm1  ;;  %v9332_v54 = vunpack.i.h.bf16 %v15408_v9  ;;  %v9331_v3 = vunpack.i.l.bf16 %v15408_v9 }
 0xc7f   :  { %9514 = vrot.lane.b32.xlu0 %v9513_v58, %s9854_s24  ;;  %9509 = vrot.lane.b32.xlu2 %v9508_v11, %s9855_s6  ;;  %v6941_v29 = vsel %vm16312_vm12, %v6929_v1, %v9291_v48  ;;  %v6942_v43 = vsel %vm16313_vm9, %v6930_v31, %v9292_v30  ;;  %vm16324_vm2 = vcmask 457728   ;;  %vm16326_vm12 = vcmask 523264  }
 0xc80   :  { %9504 = vrot.lane.b32.xlu1 %v9503_v19, %s9863_s28  ;;  %v6951_v24 = vpack.c.bf16 %v6942_v43, %v6941_v29  ;;  %vm16325_vm8 = vmmov %vm16324_vm2 }
 0xc81   :  { %v9295_v2 = vpop.permute.xlu0 %9294  ;;  %v15489_v53 = vpop.permute.xlu2 %9374  ;;  %vm16327_vm9 = vmmov %vm16326_vm12 }
 0xc82   :  { %v9300_v27 = vpop.permute.xlu1 %9299  ;;  %7037 = vmatmul.bf16.gmra.mxu3 %v6951_v24  ;;  %v9297_v19 = vunpack.i.h.bf16 %v9295_v2  ;;  %v9296_v1 = vunpack.i.l.bf16 %v9295_v2 }
 0xc83   :  { %v9302_v49 = vunpack.i.h.bf16 %v9300_v27  ;;  %v9301_v20 = vunpack.i.l.bf16 %v9300_v27  ;;  %v9342_v27 = vunpack.i.h.bf16 %v15442_v62 }
 0xc85   :  { %v6776_v56 = vsel %vm16315_vm4, %v16314_v8, %v9302_v49  ;;  %v6775_v14 = vsel %vm16317_vm0, %v16316_v23, %v9301_v20  ;;  %vm16328_vm4 = vcmask 654336   ;;  %v9356_v8 = vunpack.i.l.bf16 %v15470_v17 }
 0xc86   :  { %vm16329_vm0 = vmmov %vm16328_vm4 }
 0xc89   :  { %v15491_v6 = vpop.permute.xlu0 %9344  ;;  %v15493_v47 = vpop.permute.xlu2 %9379 }
 0xc8a   :  { %v9305_v61 = vpop.permute.xlu1 %9304  ;;  %v9347_v49 = vunpack.i.h.bf16 %v15491_v6  ;;  %v9346_v20 = vunpack.i.l.bf16 %v15491_v6 }
 0xc8b   :  { %v9307_v4 = vunpack.i.h.bf16 %v9305_v61  ;;  %v9306_v50 = vunpack.i.l.bf16 %v9305_v61  ;;  %v9341_v61 = vunpack.i.l.bf16 %v15442_v62 }
 0xc8d   :  { %v6787_v13 = vsel %vm16318_vm10, %v6775_v14, %v9306_v50  ;;  %v6788_v39 = vsel %vm16319_vm15, %v6776_v56, %v9307_v4  ;;  %vm16330_vm10 = vcmask 785408  }
 0xc8e   :  { %vm16331_vm15 = vmmov %vm16330_vm10 }
 0xc91   :  { %v15495_v52 = vpop.permute.xlu0 %9359  ;;  %v15497_v26 = vpop.permute.xlu2 %9384 }
 0xc92   :  { %v9310_v51 = vpop.permute.xlu1 %9309 }
 0xc93   :  { %v9312_v36 = vunpack.i.h.bf16 %v9310_v51  ;;  %v9311_v15 = vunpack.i.l.bf16 %v9310_v51 }
 0xc95   :  { %v6799_v0 = vsel %vm16320_vm3, %v6787_v13, %v9311_v15  ;;  %v6800_v37 = vsel %vm16321_vm5, %v6788_v39, %v9312_v36  ;;  %vm16332_vm3 = vcmask 850944   ;;  %v9362_v13 = vunpack.i.h.bf16 %v15495_v52 }
 0xc96   :  { %vm16333_vm5 = vmmov %vm16332_vm3  ;;  %v9361_v39 = vunpack.i.l.bf16 %v15495_v52 }
 0xc99   :  { %v15499_v38 = vpop.permute.xlu0 %9404  ;;  %v15501_v33 = vpop.permute.xlu2 %9389 }
 0xc9a   :  { %v9315_v25 = vpop.permute.xlu1 %9314 }
 0xc9b   :  { %v9317_v10 = vunpack.i.h.bf16 %v9315_v25  ;;  %v9316_v44 = vunpack.i.l.bf16 %v9315_v25 }
 0xc9d   :  { %v6811_v18 = vsel %vm918_vm11, %v6799_v0, %v9316_v44  ;;  %v6812_v34 = vsel %vm918_vm11, %v6800_v37, %v9317_v10  ;;  %v9377_v10 = vunpack.i.h.bf16 %v15489_v53 }
 0xca1   :  { %v15503_v57 = vpop.permute.xlu0 %9409  ;;  %v15511_v7 = vpop.permute.xlu2 %9394 }
 0xca2   :  { %v9320_v16 = vpop.permute.xlu1 %9319 }
 0xca3   :  { %v9322_v5 = vunpack.i.h.bf16 %v9320_v16  ;;  %v9321_v42 = vunpack.i.l.bf16 %v9320_v16 }
 0xca5   :  { %v6823_v46 = vsel %vm16322_vm1, %v6811_v18, %v9321_v42  ;;  %v6824_v59 = vsel %vm16323_vm14, %v6812_v34, %v9322_v5  ;;  %vm16334_vm1 = vcmask 64512   ;;  %v9376_v42 = vunpack.i.l.bf16 %v15489_v53 }
 0xca6   :  { %v6778_v5 = vsel %vm16334_vm1, %v14894_v60, %v9377_v10  ;;  %v9387_v18 = vunpack.i.h.bf16 %v15497_v26  ;;  %v9386_v34 = vunpack.i.l.bf16 %v15497_v26  ;;  %vm16335_vm14 = vcmask 916480  }
 0xca7   :  { %v9392_v53 = vunpack.i.h.bf16 %v15501_v33 }
 0xca9   :  { %v15505_v21 = vpop.permute.xlu0 %9414  ;;  %v15529_v31 = vpop.permute.xlu2 %9399 }
 0xcaa   :  { %v9325_v28 = vpop.permute.xlu1 %9324 }
 0xcab   :  { %v9327_v63 = vunpack.i.h.bf16 %v9325_v28  ;;  %v9326_v45 = vunpack.i.l.bf16 %v9325_v28  ;;  %v9357_v28 = vunpack.i.h.bf16 %v15470_v17  ;;  %v9381_v17 = vunpack.i.l.bf16 %v15493_v47 }
 0xcad   :  { %v6835_v58 = vsel %vm948_vm13, %v6823_v46, %v9326_v45  ;;  %v6836_v11 = vsel %vm948_vm13, %v6824_v59, %v9327_v63  ;;  %v9382_v45 = vunpack.i.h.bf16 %v15493_v47  ;;  %v9391_v59 = vunpack.i.l.bf16 %v15501_v33 }
 0xcae   :  { %v6847_v30 = vsel %vm16324_vm2, %v6835_v58, %v9331_v3  ;;  %v6848_v48 = vsel %vm16325_vm8, %v6836_v11, %v9332_v54  ;;  %vm16336_vm2 = vmmov %vm16335_vm14  ;;  %vm16337_vm8 = vcmask 982016   ;;  %v9397_v11 = vunpack.i.h.bf16 %v15511_v7 }
 0xcaf   :  { %v6859_v29 = vsel %vm16326_vm12, %v6847_v30, %v9296_v1  ;;  %v6860_v43 = vsel %vm16327_vm9, %v6848_v48, %v9297_v19  ;;  %vm16338_vm12 = vmmov %vm16337_vm8  ;;  %v9396_v54 = vunpack.i.l.bf16 %v15511_v7  ;;  %v9402_v30 = vunpack.i.h.bf16 %v15529_v31 }
 0xcb0   :  { %vm16339_vm9 = vmmov %vm16334_vm1  ;;  %v9401_v33 = vunpack.i.l.bf16 %v15529_v31  ;;  %vm16346_vm1 = vcmask 457728  }
 0xcb1   :  { %v15525_v32 = vpop.permute.xlu0 %9419  ;;  %v9435_v56 = vpop.permute.xlu2 %9434  ;;  %v6777_v47 = vsel %vm16339_vm9, %v14857_v12, %v9376_v42 }
 0xcb2   :  { %v9335_v35 = vpop.permute.xlu1 %9334 }
 0xcb3   :  { %v9337_v40 = vunpack.i.h.bf16 %v9335_v35  ;;  %v9336_v41 = vunpack.i.l.bf16 %v9335_v35 }
 0xcb5   :  { %v6871_v24 = vsel %vm3554_vm7, %v6859_v29, %v9336_v41  ;;  %v6872_v9 = vsel %vm3554_vm7, %v6860_v43, %v9337_v40 }
 0xcb6   :  { %v6883_v25 = vsel %vm16328_vm4, %v6871_v24, %v9341_v61  ;;  %v6884_v2 = vsel %vm16329_vm0, %v6872_v9, %v9342_v27  ;;  %vm16340_vm4 = vcmask 130048   ;;  %v9407_v61 = vunpack.i.h.bf16 %v15499_v38 }
 0xcb7   :  { %v6895_v36 = vsel %vm3579_vm6, %v6883_v25, %v9346_v20  ;;  %v6896_v15 = vsel %vm3579_vm6, %v6884_v2, %v9347_v49  ;;  %v6789_v3 = vsel %vm16340_vm4, %v6777_v47, %v9381_v17  ;;  %vm16341_vm0 = vmmov %vm16340_vm4  ;;  %v9406_v25 = vunpack.i.l.bf16 %v15499_v38 }
 0xcb8   :  { %v6790_v35 = vsel %vm16341_vm0, %v6778_v5, %v9382_v45  ;;  %vm16352_vm4 = vcmask 785408  }
 0xcb9   :  { %v15537_v51 = vpop.permute.xlu0 %9424  ;;  %v9450_v19 = vpop.permute.xlu2 %9449  ;;  %vm16353_vm0 = vmmov %vm16352_vm4 }
 0xcba   :  { %v9350_v16 = vpop.permute.xlu1 %9349  ;;  %v9452_v45 = vunpack.i.h.bf16 %v9450_v19  ;;  %v9451_v17 = vunpack.i.l.bf16 %v9450_v19 }
 0xcbb   :  { %v9352_v4 = vunpack.i.h.bf16 %v9350_v16  ;;  %v9351_v50 = vunpack.i.l.bf16 %v9350_v16 }
 0xcbd   :  { %v6907_v62 = vsel %vm16330_vm10, %v6895_v36, %v9351_v50  ;;  %v6908_v44 = vsel %vm16331_vm15, %v6896_v15, %v9352_v4  ;;  %vm16342_vm10 = vcmask 195584   ;;  %v9437_v4 = vunpack.i.h.bf16 %v9435_v56 }
 0xcbe   :  { %v6919_v23 = vsel %vm16332_vm3, %v6907_v62, %v9356_v8  ;;  %v6920_v6 = vsel %vm16333_vm5, %v6908_v44, %v9357_v28  ;;  %v6801_v48 = vsel %vm16342_vm10, %v6789_v3, %v9386_v34  ;;  %vm16343_vm15 = vmmov %vm16342_vm10  ;;  %vm16344_vm3 = vcmask 326656  }
 0xcbf   :  { %v6931_v46 = vsel %vm16335_vm14, %v6919_v23, %v9361_v39  ;;  %v6932_v60 = vsel %vm16336_vm2, %v6920_v6, %v9362_v13  ;;  %v6802_v40 = vsel %vm16343_vm15, %v6790_v35, %v9387_v18  ;;  %v6813_v12 = vsel %vm918_vm11, %v6801_v48, %v9391_v59  ;;  %vm16345_vm5 = vmmov %vm16344_vm3 }
 0xcc0   :  { %v6814_v41 = vsel %vm918_vm11, %v6802_v40, %v9392_v53  ;;  %v6825_v1 = vsel %vm16344_vm3, %v6813_v12, %v9396_v54  ;;  %vm16347_vm14 = vmmov %vm16346_vm1  ;;  %vm16348_vm2 = vcmask 523264   ;;  %v9436_v50 = vunpack.i.l.bf16 %v9435_v56 }
 0xcc1   :  { %v15552_v14 = vpop.permute.xlu0 %9429  ;;  %v6826_v29 = vsel %vm16345_vm5, %v6814_v41, %v9397_v11  ;;  %v6837_v24 = vsel %vm948_vm13, %v6825_v1, %v9401_v33  ;;  %v9465_v44 = vpop.permute.xlu2 %9464  ;;  %v9411_v59 = vunpack.i.l.bf16 %v15503_v57  ;;  %vm16354_vm10 = vcmask 850944  }
 0xcc2   :  { %v9365_v63 = vpop.permute.xlu1 %9364  ;;  %v6838_v31 = vsel %vm948_vm13, %v6826_v29, %v9402_v30  ;;  %v6849_v2 = vsel %vm16346_vm1, %v6837_v24, %v9406_v25  ;;  %v9466_v54 = vunpack.i.l.bf16 %v9465_v44  ;;  %vm16355_vm15 = vmmov %vm16354_vm10  ;;  %vm16356_vm3 = vcmask 64512  }
 0xcc3   :  { %v9367_v0 = vunpack.i.h.bf16 %v9365_v63  ;;  %v9366_v37 = vunpack.i.l.bf16 %v9365_v63  ;;  %v6850_v16 = vsel %vm16347_vm14, %v6838_v31, %v9407_v61  ;;  %v9417_v33 = vunpack.i.h.bf16 %v15505_v21 }
 0xcc4   :  { %vm16357_vm5 = vcmask 916480   ;;  %v9416_v41 = vunpack.i.l.bf16 %v15505_v21  ;;  %vm16359_vm14 = vcmask 982016   ;;  %v9422_v29 = vunpack.i.h.bf16 %v15525_v32  ;;  %v15618_v21 = vld [vmem:[%s15741_s2 + $0x38] ss:$0 sm:$0xff] }
 0xcc5   :  { %v6943_v52 = vsel %vm16337_vm8, %v6931_v46, %v9366_v37  ;;  %v6944_v58 = vsel %vm16338_vm12, %v6932_v60, %v9367_v0  ;;  %vm16349_vm8 = vmmov %vm16348_vm2  ;;  %vm16350_vm12 = vcmask 654336   ;;  %v9412_v0 = vunpack.i.h.bf16 %v15503_v57 }
 0xcc6   :  { %v6952_v26 = vpack.c.bf16 %v6944_v58, %v6943_v52  ;;  %vm16351_vm9 = vmmov %vm16350_vm12  ;;  %v9467_v52 = vunpack.i.h.bf16 %v9465_v44  ;;  %v9427_v31 = vunpack.i.h.bf16 %v15537_v51  ;;  %v9432_v61 = vunpack.i.h.bf16 %v15552_v14  ;;  %v15634_v44 = vld [vmem:[%s15741_s2 + $0x40] ss:$0 sm:$0xff] }
 0xcc7   :  { %v6780_v30 = vsel %vm16356_vm3, %v15017_v22, %v9412_v0  ;;  %vm16358_vm1 = vmmov %vm16357_vm5 }
 0xcc8   :  { %7042 = vmatmul.bf16.gmra.mxu3 %v6952_v26 }
 0xcc9   :  { %v9440_v7 = vpop.permute.xlu0 %9439  ;;  %v9470_v48 = vpop.permute.xlu2 %9469 }
 0xcca   :  { %v9370_v43 = vpop.permute.xlu1 %9369  ;;  %v9442_v28 = vunpack.i.h.bf16 %v9440_v7  ;;  %v9441_v8 = vunpack.i.l.bf16 %v9440_v7 }
 0xccb   :  { %v9372_v9 = vunpack.i.h.bf16 %v9370_v43  ;;  %v9371_v27 = vunpack.i.l.bf16 %v9370_v43  ;;  %v9421_v43 = vunpack.i.l.bf16 %v15525_v32  ;;  %v9431_v32 = vunpack.i.l.bf16 %v15552_v14 }
 0xccd   :  { %v6862_v49 = vsel %vm16348_vm2, %v6850_v16, %v9372_v9  ;;  %v6861_v20 = vsel %vm16349_vm8, %v6849_v2, %v9371_v27  ;;  %vm16360_vm2 = vmmov %vm16359_vm14  ;;  %v9426_v9 = vunpack.i.l.bf16 %v15537_v51 }
 0xcce   :  { %v6874_v15 = vsel %vm3554_vm7, %v6862_v49, %v9437_v4  ;;  %v6873_v10 = vsel %vm3554_vm7, %v6861_v20, %v9436_v50 }
 0xccf   :  { %v6885_v42 = vsel %vm16350_vm12, %v6873_v10, %v9441_v8  ;;  %v6886_v13 = vsel %vm16351_vm9, %v6874_v15, %v9442_v28  ;;  %vm16361_vm12 = vmmov %vm16356_vm3  ;;  %vm16362_vm9 = vcmask 130048  }
 0xcd0   :  { %v6779_v27 = vsel %vm16361_vm12, %v14969_v55, %v9411_v59 }
 0xcd1   :  { %v9455_v36 = vpop.permute.xlu0 %9454  ;;  %v6791_v16 = vsel %vm16362_vm9, %v6779_v27, %v9416_v41 }
 0xcd2   :  { %v9445_v62 = vpop.permute.xlu1 %9444  ;;  %v9457_v46 = vunpack.i.h.bf16 %v9455_v36  ;;  %v9456_v60 = vunpack.i.l.bf16 %v9455_v36 }
 0xcd3   :  { %v9447_v38 = vunpack.i.h.bf16 %v9445_v62  ;;  %v9446_v23 = vunpack.i.l.bf16 %v9445_v62  ;;  %v7028_v6 = vpop.f32.mrf.mxu3 }
 0xcd4   :  { %v7070_v5 = vmin.f32 %v7028_v6, 0.0  ;;  %vm7058_vm8 = vcmp.gt.f32.partialorder %v7028_v6, 0.0 }
 0xcd5   :  { %v6897_v39 = vsel %vm3579_vm6, %v6885_v42, %v9446_v23  ;;  %v6898_v56 = vsel %vm3579_vm6, %v6886_v13, %v9447_v38 }
 0xcd6   :  { %v7082_v63 = vmul.f32 1.442695, %v7070_v5  ;;  %v6909_v37 = vsel %vm16352_vm4, %v6897_v39, %v9451_v17  ;;  %v6910_v18 = vsel %vm16353_vm0, %v6898_v56, %v9452_v45  ;;  %vm16363_vm4 = vmmov %vm16362_vm9  ;;  %vm16364_vm0 = vcmask 195584   ;;  %v9495_v5 = vpop.permute.xlu2 %9494  ;;  %v7158_v17 = vld [vmem:[%s15741_s2 + $0x50] sm:$0xff] }
 0xcd7   :  { %v6921_v26 = vsel %vm16354_vm10, %v6909_v37, %v9456_v60  ;;  %v6922_v3 = vsel %vm16355_vm15, %v6910_v18, %v9457_v46  ;;  %v6792_v51 = vsel %vm16363_vm4, %v6780_v30, %v9417_v33  ;;  %v6803_v50 = vsel %vm16364_vm0, %v6791_v16, %v9421_v43  ;;  %vm16365_vm10 = vmmov %vm16364_vm0 }
 0xcd8   :  { %9810 = vpow2.f32 %v7082_v63  ;;  %v6804_v36 = vsel %vm16365_vm10, %v6792_v51, %v9422_v29  ;;  %v6815_v10 = vsel %vm918_vm11, %v6803_v50, %v9426_v9  ;;  %vm16366_vm15 = vcmask 326656   ;;  %vm16374_vm9 = vmmov %vm16361_vm12 }
 0xcd9   :  { %v9475_v34 = vpop.permute.xlu0 %9474  ;;  %v6816_v14 = vsel %vm918_vm11, %v6804_v36, %v9427_v31  ;;  %v6827_v28 = vsel %vm16366_vm15, %v6815_v10, %v9431_v32  ;;  %vm16367_vm3 = vmmov %vm16366_vm15  ;;  %v9472_v56 = vunpack.i.h.bf16 %v9470_v48  ;;  %v9471_v63 = vunpack.i.l.bf16 %v9470_v48 }
 0xcda   :  { %v9460_v53 = vpop.permute.xlu1 %9459  ;;  %v9477_v49 = vunpack.i.h.bf16 %v9475_v34  ;;  %v9476_v20 = vunpack.i.l.bf16 %v9475_v34  ;;  %v6828_v8 = vsel %vm16367_vm3, %v6816_v14, %v9432_v61  ;;  %vm16377_vm0 = vcmask 850944  }
 0xcdb   :  { %v9462_v58 = vunpack.i.h.bf16 %v9460_v53  ;;  %v9461_v47 = vunpack.i.l.bf16 %v9460_v53  ;;  %v7030_v11 = vpop.f32.mrf.mxu3  ;;  %v7159_v53 = vld [vmem:[%s15741_s2 + $0x58] sm:$0xff]  ;;  %vm16378_vm10 = vmmov %vm16377_vm0  ;;  %vm16381_vm3 = vcmask 982016  }
 0xcdc   :  { %v7071_v35 = vmin.f32 %v7030_v11, 0.0  ;;  %v6839_v23 = vsel %vm948_vm13, %v6827_v28, %v9476_v20 }
 0xcdd   :  { %v6933_v40 = vsel %vm16357_vm5, %v6921_v26, %v9461_v47  ;;  %v6934_v57 = vsel %vm16358_vm1, %v6922_v3, %v9462_v58  ;;  %vm16368_vm5 = vcmask 457728   ;;  %vm7059_vm1 = vcmp.gt.f32.partialorder %v7030_v11, 0.0 }
 0xcde   :  { %v9811_v12 = vpop.eup %9810  ;;  %v7084_v19 = vmul.f32 1.442695, %v7071_v35  ;;  %v6945_v7 = vsel %vm16359_vm14, %v6933_v40, %v9466_v54  ;;  %v6946_v1 = vsel %vm16360_vm2, %v6934_v57, %v9467_v52  ;;  %vm16369_vm11 = vmmov %vm16368_vm5  ;;  %vm16372_vm2 = vcmask 654336  }
 0xcdf   :  { %v7631_v22 = vadd.f32 -1.0, %v9811_v12  ;;  %v6953_v24 = vpack.c.bf16 %v6946_v1, %v6945_v7  ;;  %v9497_v57 = vunpack.i.h.bf16 %v9495_v5  ;;  %v9496_v12 = vunpack.i.l.bf16 %v9495_v5  ;;  %v9510_v1 = vpop.permute.xlu2 %9509 }
 0xce0   :  { %9812 = vpow2.f32 %v7084_v19 }
 0xce1   :  { %v7118_v25 = vsel %vm7058_vm8, %v7028_v6, %v7631_v22  ;;  %7047 = vmatmul.bf16.gmra.mxu3 %v6953_v24  ;;  %v9485_v2 = vpop.permute.xlu0 %9484  ;;  %v6840_v6 = vsel %vm948_vm13, %v6828_v8, %v9477_v49  ;;  %vm16370_vm13 = vcmask 523264   ;;  %vm16373_vm8 = vmmov %vm16372_vm2 }
 0xce2   :  { %v9480_v4 = vpop.permute.xlu1 %9479  ;;  %v7132_v62 = vmul.f32 %v15618_v21, %v7118_v25  ;;  %vm16371_vm14 = vmmov %vm16370_vm13  ;;  %v9487_v59 = vunpack.i.h.bf16 %v9485_v2  ;;  %v9486_v52 = vunpack.i.l.bf16 %v9485_v2  ;;  %v9512_v25 = vunpack.i.h.bf16 %v9510_v1 }
 0xce3   :  { %v9482_v15 = vunpack.i.h.bf16 %v9480_v4  ;;  %v9481_v55 = vunpack.i.l.bf16 %v9480_v4  ;;  %v9511_v2 = vunpack.i.l.bf16 %v9510_v1 }
 0xce4   :  { %v7146_v45 = vadd.f32 %v15634_v44, %v7132_v62 }
 0xce5   :  { %v6852_v13 = vsel %vm16368_vm5, %v6840_v6, %v9482_v15  ;;  %v6851_v39 = vsel %vm16369_vm11, %v6839_v23, %v9481_v55  ;;  %vm16382_vm5 = vmmov %vm16381_vm3  ;;  %v7160_v23 = vld [vmem:[%s15741_s2 + $0x60] sm:$0xff] }
 0xce6   :  { %v9813_v38 = vpop.eup %9812  ;;  %v6864_v34 = vsel %vm16370_vm13, %v6852_v13, %v9472_v56  ;;  %v6863_v46 = vsel %vm16371_vm14, %v6851_v39, %v9471_v63  ;;  %v7170_v54 = vmul.f32 %v7158_v17, %v7146_v45 }
 0xce7   :  { %v7632_v42 = vadd.f32 -1.0, %v9813_v38  ;;  %v6875_v3 = vsel %vm3554_vm7, %v6863_v46, %v9486_v52  ;;  %v6876_v35 = vsel %vm3554_vm7, %v6864_v34, %v9487_v59  ;;  %vm16375_vm7 = vcmask 785408  }
 0xce8   :  { %v7182_v19 = vsel %vm16361_vm12, %v7170_v54, 0.0  ;;  %vm16376_vm4 = vmmov %vm16375_vm7 }
 0xce9   :  { %v7119_v0 = vsel %vm7059_vm1, %v7030_v11, %v7632_v42  ;;  %v9500_v37 = vpop.permute.xlu0 %9499  ;;  %vm16383_vm1 = vmmov %vm16374_vm9 }
 0xcea   :  { %v7133_v18 = vmul.f32 %v15618_v21, %v7119_v0  ;;  %v9490_v60 = vpop.permute.xlu1 %9489  ;;  %v9502_v24 = vunpack.i.h.bf16 %v9500_v37  ;;  %v9501_v31 = vunpack.i.l.bf16 %v9500_v37 }
 0xceb   :  { %v9492_v58 = vunpack.i.h.bf16 %v9490_v60  ;;  %v9491_v47 = vunpack.i.l.bf16 %v9490_v60 }
 0xcec   :  { %v7147_v26 = vadd.f32 %v15634_v44, %v7133_v18  ;;  %v7033_v11 = vpop.f32.mrf.mxu3 }
 0xced   :  { %v7072_v30 = vmin.f32 %v7033_v11, 0.0  ;;  %v6887_v48 = vsel %vm16372_vm2, %v6875_v3, %v9491_v47  ;;  %v6888_v40 = vsel %vm16373_vm8, %v6876_v35, %v9492_v58  ;;  %vm7060_vm11 = vcmp.gt.f32.partialorder %v7033_v11, 0.0 }
 0xcee   :  { %v7171_v33 = vmul.f32 %v7159_v53, %v7147_v26  ;;  %v6899_v43 = vsel %vm3579_vm6, %v6887_v48, %v9496_v12  ;;  %v6900_v22 = vsel %vm3579_vm6, %v6888_v40, %v9497_v57  ;;  %vm16379_vm6 = vcmask 916480  }
 0xcef   :  { %v7086_v41 = vmul.f32 1.442695, %v7072_v30  ;;  %v6911_v16 = vsel %vm16375_vm7, %v6899_v43, %v9501_v31  ;;  %v6912_v51 = vsel %vm16376_vm4, %v6900_v22, %v9502_v24  ;;  %vm16380_vm15 = vmmov %vm16379_vm6 }
 0xcf0   :  { %v7183_v7 = vsel %vm16374_vm9, %v7171_v33, 0.0  ;;  %vm16384_vm4 = vmmov %vm16383_vm1 }
 0xcf1   :  { %v7184_v29 = vadd.f32 %v7183_v7, %v7182_v19  ;;  %9814 = vpow2.f32 %v7086_v41  ;;  %v9515_v9 = vpop.permute.xlu0 %9514 }
 0xcf2   :  { %v9505_v27 = vpop.permute.xlu1 %9504  ;;  %v9517_v49 = vunpack.i.h.bf16 %v9515_v9  ;;  %v9516_v20 = vunpack.i.l.bf16 %v9515_v9 }
 0xcf3   :  { %v9507_v61 = vunpack.i.h.bf16 %v9505_v27  ;;  %v9506_v32 = vunpack.i.l.bf16 %v9505_v27 }
 0xcf4   :  { %v7035_v39 = vpop.f32.mrf.mxu3 }
 0xcf5   :  { %v6923_v4 = vsel %vm16377_vm0, %v6911_v16, %v9506_v32  ;;  %v6924_v50 = vsel %vm16378_vm10, %v6912_v51, %v9507_v61  ;;  %v7073_v0 = vmin.f32 %v7035_v39, 0.0  ;;  %vm7061_vm13 = vcmp.gt.f32.partialorder %v7035_v39, 0.0  ;;  %v7161_v51 = vld [vmem:[%s15741_s2 + $0x68] sm:$0xff]  ;;  %vm16385_vm0 = vmmov %vm16383_vm1 }
 0xcf6   :  { %v6935_v36 = vsel %vm16379_vm6, %v6923_v4, %v9511_v2  ;;  %v6936_v15 = vsel %vm16380_vm15, %v6924_v50, %v9512_v25  ;;  %vm16386_vm6 = vmmov %vm16385_vm0 }
 0xcf7   :  { %v9815_v55 = vpop.eup %9814  ;;  %v6947_v10 = vsel %vm16381_vm3, %v6935_v36, %v9516_v20  ;;  %v6948_v14 = vsel %vm16382_vm5, %v6936_v15, %v9517_v49  ;;  %v7088_v34 = vmul.f32 1.442695, %v7073_v0  ;;  %v7162_v15 = vld [vmem:[%s15741_s2 + $0x70] sm:$0xff]  ;;  %vm16387_vm15 = vmmov %vm16385_vm0 }
 0xcf8   :  { %v7633_v62 = vadd.f32 -1.0, %v9815_v55  ;;  %v6954_v28 = vpack.c.bf16 %v6948_v14, %v6947_v10  ;;  %vm16388_vm3 = vmmov %vm16385_vm0 }
 0xcf9   :  { %9816 = vpow2.f32 %v7088_v34  ;;  %vm16389_vm5 = vmmov %vm16385_vm0 }
 0xcfa   :  { %v7120_v8 = vsel %vm7060_vm11, %v7033_v11, %v7633_v62  ;;  %7052 = vmatmul.bf16.gmra.mxu3 %v6954_v28 }
 0xcfb   :  { %v7134_v38 = vmul.f32 %v15618_v21, %v7120_v8 }
 0xcfd   :  { %v7148_v6 = vadd.f32 %v15634_v44, %v7134_v38  ;;  %v7163_v38 = vld [vmem:[%s15741_s2 + $0x78] sm:$0xff] }
 0xcff   :  { %v7172_v5 = vmul.f32 %v7160_v23, %v7148_v6  ;;  %v9817_v3 = vpop.eup %9816 }
 0xd00   :  { %v7634_v33 = vadd.f32 -1.0, %v9817_v3 }
 0xd01   :  { %v7185_v42 = vsel %vm16383_vm1, %v7172_v5, 0.0  ;;  %vm16390_vm1 = vmmov %vm16385_vm0 }
 0xd02   :  { %v15675_v13 = vadd.f32 %v7185_v42, %v7184_v29  ;;  %v7121_v41 = vsel %vm7061_vm13, %v7035_v39, %v7634_v33  ;;  %vm16391_vm13 = vmmov %vm16385_vm0 }
 0xd03   :  { %v7135_v29 = vmul.f32 %v15618_v21, %v7121_v41 }
 0xd05   :  { %v7038_v56 = vpop.f32.mrf.mxu3  ;;  %v7149_v25 = vadd.f32 %v15634_v44, %v7135_v29 }
 0xd06   :  { %v7074_v18 = vmin.f32 %v7038_v56, 0.0  ;;  %vm7062_vm14 = vcmp.gt.f32.partialorder %v7038_v56, 0.0 }
 0xd07   :  { %v7173_v10 = vmul.f32 %v7161_v51, %v7149_v25 }
 0xd08   :  { %v7090_v60 = vmul.f32 1.442695, %v7074_v18 }
 0xd0a   :  { %9818 = vpow2.f32 %v7090_v60 }
 0xd0d   :  { %v7040_v63 = vpop.f32.mrf.mxu3 }
 0xd0e   :  { %v7075_v46 = vmin.f32 %v7040_v63, 0.0  ;;  %vm7063_vm2 = vcmp.gt.f32.partialorder %v7040_v63, 0.0 }
 0xd10   :  { %v7092_v59 = vmul.f32 1.442695, %v7075_v46  ;;  %v9819_v30 = vpop.eup %9818  ;;  %v7165_v46 = vld [vmem:[%s15741_s2 + $0x88] sm:$0xff] }
 0xd11   :  { %v7635_v57 = vadd.f32 -1.0, %v9819_v30  ;;  %v7167_v30 = vld [vmem:[%s15741_s2 + $0x98] sm:$0xff] }
 0xd12   :  { %9820 = vpow2.f32 %v7092_v59 }
 0xd13   :  { %v7122_v1 = vsel %vm7062_vm14, %v7038_v56, %v7635_v57  ;;  %v7187_v56 = vsel %vm16384_vm4, %v7173_v10, 0.0  ;;  %v7168_v57 = vld [vmem:[%s15741_s2 + $0xa0] sm:$0xff]  ;;  %vm16392_vm14 = vcmask 59392   ;;  %vm16394_vm4 = vcmask 0  }
 0xd14   :  { %v7136_v24 = vmul.f32 %v15618_v21, %v7122_v1 }
 0xd16   :  { %v7150_v4 = vadd.f32 %v15634_v44, %v7136_v24 }
 0xd18   :  { %v9821_v40 = vpop.eup %9820  ;;  %v7174_v8 = vmul.f32 %v7162_v15, %v7150_v4 }
 0xd19   :  { %v7636_v19 = vadd.f32 -1.0, %v9821_v40 }
 0xd1a   :  { %v7189_v34 = vsel %vm16385_vm0, %v7174_v8, 0.0 }
 0xd1b   :  { %v7123_v31 = vsel %vm7063_vm2, %v7040_v63, %v7636_v19  ;;  %v7164_v63 = vld [vmem:[%s15741_s2 + $0x80] sm:$0xff]  ;;  %vm16393_vm2 = vmmov %vm16385_vm0 }
 0xd1c   :  { %v7137_v49 = vmul.f32 %v15618_v21, %v7123_v31 }
 0xd1e   :  { %v7151_v62 = vadd.f32 %v15634_v44, %v7137_v49 }
 0xd4b   :  { %v7043_v45 = vpop.f32.mrf.mxu3 }
 0xd4c   :  { %v7076_v53 = vmin.f32 %v7043_v45, 0.0  ;;  %vm7064_vm8 = vcmp.gt.f32.partialorder %v7043_v45, 0.0 }
 0xd4e   :  { %v7094_v47 = vmul.f32 1.442695, %v7076_v53 }
 0xd50   :  { %9822 = vpow2.f32 %v7094_v47 }
 0xd53   :  { %v7045_v17 = vpop.f32.mrf.mxu3 }
 0xd54   :  { %v7077_v52 = vmin.f32 %v7045_v17, 0.0  ;;  %vm7065_vm12 = vcmp.gt.f32.partialorder %v7045_v17, 0.0 }
 0xd56   :  { %v7096_v26 = vmul.f32 1.442695, %v7077_v52  ;;  %v9823_v12 = vpop.eup %9822  ;;  %v7188_v52 = vadd.f32 %v7187_v56, %v15675_v13 }
 0xd57   :  { %v7637_v43 = vadd.f32 -1.0, %v9823_v12 }
 0xd58   :  { %9824 = vpow2.f32 %v7096_v26 }
 0xd59   :  { %v7124_v2 = vsel %vm7064_vm8, %v7043_v45, %v7637_v43 }
 0xd5a   :  { %v7138_v55 = vmul.f32 %v15618_v21, %v7124_v2 }
 0xd5c   :  { %v7152_v5 = vadd.f32 %v15634_v44, %v7138_v55 }
 0xd5e   :  { %v9825_v7 = vpop.eup %9824  ;;  %v7176_v53 = vmul.f32 %v7164_v63, %v7152_v5 }
 0xd5f   :  { %v7638_v9 = vadd.f32 -1.0, %v9825_v7 }
 0xd60   :  { %v7193_v33 = vsel %vm16387_vm15, %v7176_v53, 0.0 }
 0xd61   :  { %v7125_v50 = vsel %vm7065_vm12, %v7045_v17, %v7638_v9  ;;  %v7175_v17 = vmul.f32 %v7163_v38, %v7151_v62 }
 0xd62   :  { %v7139_v28 = vmul.f32 %v15618_v21, %v7125_v50 }
 0xd64   :  { %v7048_v37 = vpop.f32.mrf.mxu3  ;;  %v7153_v0 = vadd.f32 %v15634_v44, %v7139_v28 }
 0xd65   :  { %v7078_v54 = vmin.f32 %v7048_v37, 0.0  ;;  %vm7066_vm9 = vcmp.gt.f32.partialorder %v7048_v37, 0.0 }
 0xd66   :  { %v7177_v26 = vmul.f32 %v7165_v46, %v7153_v0 }
 0xd67   :  { %v7098_v35 = vmul.f32 1.442695, %v7078_v54  ;;  %v7191_v54 = vsel %vm16386_vm6, %v7175_v17, 0.0 }
 0xd68   :  { %v7195_v41 = vsel %vm16388_vm3, %v7177_v26, 0.0 }
 0xd69   :  { %9826 = vpow2.f32 %v7098_v35  ;;  %v7190_v35 = vadd.f32 %v7189_v34, %v7188_v52 }
 0xd6b   :  { %v7192_v40 = vadd.f32 %v7191_v54, %v7190_v35 }
 0xd6c   :  { %v7050_v58 = vpop.f32.mrf.mxu3 }
 0xd6d   :  { %v7079_v11 = vmin.f32 %v7050_v58, 0.0  ;;  %vm7067_vm7 = vcmp.gt.f32.partialorder %v7050_v58, 0.0  ;;  %v7194_v7 = vadd.f32 %v7193_v33, %v7192_v40 }
 0xd6f   :  { %v7100_v48 = vmul.f32 1.442695, %v7079_v11  ;;  %v9827_v22 = vpop.eup %9826 }
 0xd70   :  { %v7639_v16 = vadd.f32 -1.0, %v9827_v22  ;;  %v7196_v22 = vadd.f32 %v7195_v41, %v7194_v7 }
 0xd71   :  { %9828 = vpow2.f32 %v7100_v48 }
 0xd72   :  { %v7126_v14 = vsel %vm7066_vm9, %v7048_v37, %v7639_v16 }
 0xd73   :  { %v7140_v42 = vmul.f32 %v15618_v21, %v7126_v14  ;;  %v7214_v14 = vld [vmem:[%s15741_s2 + $0x48] sm:$0x1] }
 0xd75   :  { %v7154_v59 = vadd.f32 %v15634_v44, %v7140_v42 }
 0xd77   :  { %v9829_v61 = vpop.eup %9828 }
 0xd78   :  { %v7640_v36 = vadd.f32 -1.0, %v9829_v61  ;;  %v7169_v61 = vld [vmem:[%s15741_s2 + $0xa8] sm:$0x7] }
 0xd7a   :  { %v7127_v23 = vsel %vm7067_vm7, %v7050_v58, %v7640_v36  ;;  %v7166_v58 = vld [vmem:[%s15741_s2 + $0x90] sm:$0xff] }
 0xd7b   :  { %v7141_v37 = vmul.f32 %v15618_v21, %v7127_v23  ;;  %v7178_v13 = vmul.f32 %v7166_v58, %v7154_v59 }
 0xd7d   :  { %v7053_v27 = vpop.f32.mrf.mxu3  ;;  %v7155_v11 = vadd.f32 %v15634_v44, %v7141_v37  ;;  %v7197_v29 = vsel %vm16389_vm5, %v7178_v13, 0.0 }
 0xd7e   :  { %v7080_v32 = vmin.f32 %v7053_v27, 0.0  ;;  %vm7068_vm10 = vcmp.gt.f32.partialorder %v7053_v27, 0.0 }
 0xd7f   :  { %v7179_v19 = vmul.f32 %v7167_v30, %v7155_v11 }
 0xd80   :  { %v7102_v20 = vmul.f32 1.442695, %v7080_v32 }
 0xd81   :  { %v7199_v31 = vsel %vm16390_vm1, %v7179_v19, 0.0 }
 0xd82   :  { %9830 = vpow2.f32 %v7102_v20 }
 0xd85   :  { %v7055_v6 = vpop.f32.mrf.mxu3 }
 0xd86   :  { %v7081_v39 = vmin.f32 %v7055_v6, 0.0  ;;  %vm7069_vm11 = vcmp.gt.f32.partialorder %v7055_v6, 0.0 }
 0xd88   :  { %v9831_v45 = vpop.eup %9830  ;;  %v7104_v18 = vmul.f32 1.442695, %v7081_v39 }
 0xd89   :  { %v7641_v60 = vadd.f32 -1.0, %v9831_v45 }
 0xd8a   :  { %9832 = vpow2.f32 %v7104_v18 }
 0xd8b   :  { %v7128_v47 = vsel %vm7068_vm10, %v7053_v27, %v7641_v60  ;;  %v7198_v27 = vadd.f32 %v7197_v29, %v7196_v22 }
 0xd8c   :  { %v7142_v3 = vmul.f32 %v15618_v21, %v7128_v47 }
 0xd8d   :  { %v7200_v2 = vadd.f32 %v7199_v31, %v7198_v27 }
 0xd8e   :  { %v7156_v48 = vadd.f32 %v15634_v44, %v7142_v3 }
 0xd90   :  { %v9833_v12 = vpop.eup %9832  ;;  %v7180_v43 = vmul.f32 %v7168_v57, %v7156_v48 }
 0xd91   :  { %v7642_v1 = vadd.f32 -1.0, %v9833_v12 }
 0xd92   :  { %v7201_v32 = vsel %vm16391_vm13, %v7180_v43, 0.0 }
 0xd93   :  { %v7129_v24 = vsel %vm7069_vm11, %v7055_v6, %v7642_v1  ;;  %v7202_v51 = vadd.f32 %v7201_v32, %v7200_v2 }
 0xd94   :  { %v7143_v9 = vmul.f32 %v15618_v21, %v7129_v24 }
 0xd96   :  { %v7157_v25 = vadd.f32 %v15634_v44, %v7143_v9 }
 0xd98   :  { %v7181_v16 = vmul.f32 %v7169_v61, %v7157_v25 }
 0xd9a   :  { %v7203_v49 = vsel %vm16392_vm14, %v7181_v16, 0.0 }
 0xd9b   :  { %v7204_v20 = vadd.f32 %v7203_v49, %v7202_v51 }
 0xd9d   :  { %v7205_v4 = vrot.slane %v7204_v20, 4 }
 0xd9f   :  { %v7206_v50 = vadd.f32 %v7205_v4, %v7204_v20 }
 0xda1   :  { %v7207_v36 = vrot.slane %v7206_v50, 2 }
 0xda3   :  { %v7208_v15 = vadd.f32 %v7207_v36, %v7206_v50 }
 0xda5   :  { %v7209_v21 = vrot.slane %v7208_v15, 1 }
 0xda7   :  { %v7210_v55 = vadd.f32 %v7209_v21, %v7208_v15 }
 0xda9   :  { %v7211_v10 = vsel %vm16393_vm2, %v7210_v55, 0.0 }
 0xdaa   :  { %7212 = vadd.xlane.f32.xlu1 %v7211_v10 }
 0xe1d   :  { %v7213_v44 = vpop.xlane.xlu1 %7212 }
 0xe1e   :  { %v7215_v62 = vadd.f32 %v7214_v14, %v7213_v44 }
 0xe20   :  { %v7216_v28 = vsub.f32 0.0, %v7215_v62 }
 0xe22   :  { %v7217_v8 = vmul.f32 1.442695, %v7216_v28 }
 0xe24   :  { %9834 = vpow2.f32 %v7217_v8 }
 0xe2a   :  { %v9835_v38 = vpop.eup %9834 }
 0xe2b   :  { %v7219_v23 = vadd.f32 1.0, %v9835_v38 }
 0xe2d   :  { %9836 = vrcp.f32 %v7219_v23  ;;  %v7231_v39 = vand.u32 2147483648, %v7219_v23  ;;  %v7229_v63 = vand.u32 2147483647, %v7219_v23  ;;  %vm7225_vm12 = vweird.f32 %v7219_v23 }
 0xe2f   :  { %v7232_v17 = vor.u32 1.1754944e-38, %v7231_v39  ;;  %vm7230_vm7 = vcmp.eq.f32.partialorder %v7229_v63, 8.507059e+37 }
 0xe33   :  { %v9837_v6 = vpop.eup %9836 }
 0xe34   :  { %v7221_v5 = vmul.f32 %v9837_v6, %v7219_v23  ;;  %vm7226_vm8 = vweird.f32 %v9837_v6 }
 0xe35   :  { %vm7227_vm9 = vmor %vm7225_vm12, %vm7226_vm8 }
 0xe36   :  { %v7222_v42 = vsub.f32 1.0, %v7221_v5 }
 0xe38   :  { %v7223_v56 = vmul.f32 %v9837_v6, %v7222_v42 }
 0xe3a   :  { %v7224_v45 = vadd.f32 %v9837_v6, %v7223_v56 }
 0xe3c   :  { %v7228_v0 = vsel %vm7227_vm9, %v9837_v6, %v7224_v45 }
 0xe3d   :  { %v7233_v37 = vsel %vm7230_vm7, %v7232_v17, %v7228_v0 }
 0xe3e   :  { %7643 = vst.msk [vmem:[%s15743_s3 + $0x1] sm:$0x1] %vm16394_vm4, %v7233_v37 }

</bundles_post_ra>
